<compile_context>
chip_gen: v6e
topology: v6e:2x2x1
jax: 0.10.0
libtpu: 0.0.40
codegen_flags: <defaults>
</compile_context>

<pallas_src>
from functools import partial

import jax
import jax.numpy as jnp
from jax.experimental import pallas as pl
from jax.experimental.pallas import tpu as pltpu


# --------------------------------------------------------------------------
# helpers
# --------------------------------------------------------------------------

def _pick_row_tile(l0, target=256):
    """Largest multiple-of-8 row tile <= target dividing l0 (else l0)."""
    if l0 <= target:
        return l0
    for tr in range(target, 7, -8):
        if l0 % tr == 0:
            return tr
    return l0


def _bn_scale_shift(psum, pssq, count, gamma, beta, eps=1e-5):
    """Training-mode BN: per-channel scale/shift from fused conv statistics."""
    # TODO(synk): E[x^2]-E[x]^2 in f32 can cancel for pretrained weights with
    # large channel means; fine for the reference (fresh, kaiming) init.
    c = psum.shape[-1]
    s = jnp.sum(psum.reshape(-1, c), axis=0)
    ss = jnp.sum(pssq.reshape(-1, c), axis=0)
    mean = s / count
    var = jnp.maximum(ss / count - mean * mean, 0.0)      # biased (torch train)
    scale = gamma * jax.lax.rsqrt(var + eps)
    shift = beta - mean * scale
    return scale, shift


# --------------------------------------------------------------------------
# stem conv (full im2col, K = KH*KW*Cin = 147) + fused BN statistics
# --------------------------------------------------------------------------

def _stem_conv_kernel(x_ref, w_ref, y_ref, sum_ref, ssq_ref):
    # x_ref (1, TR, K) bf16; w_ref (K, OC) bf16 — one fat MXU matmul.
    acc = jnp.dot(x_ref[0], w_ref[...], preferred_element_type=jnp.float32)
    y_ref[0] = acc.astype(y_ref.dtype)
    sum_ref[0] = jnp.sum(acc, axis=0, keepdims=True)
    ssq_ref[0] = jnp.sum(acc * acc, axis=0, keepdims=True)


def _stem_im2col(x_nhwc, KH, KW, stride, pad):
    """Full im2col in XLA glue (only used for the tiny-Cin stem)."""
    N, H, W, C = x_nhwc.shape
    OH = (H + 2 * pad - KH) // stride + 1
    OW = (W + 2 * pad - KW) // stride + 1
    need_h = KH + stride * (OH - 1)
    need_w = KW + stride * (OW - 1)
    xp = jnp.pad(x_nhwc, ((0, 0),
                          (pad, max(need_h - H - pad, 0)),
                          (pad, max(need_w - W - pad, 0)),
                          (0, 0)))
    taps = []
    for i in range(KH):
        for j in range(KW):
            taps.append(xp[:, i:i + stride * (OH - 1) + 1:stride,
                           j:j + stride * (OW - 1) + 1:stride, :])
    patches = jnp.stack(taps, axis=3)                    # (N, OH, OW, KH*KW, C)
    lhs = patches.reshape(N, OH * OW, KH * KW * C).astype(jnp.bfloat16)
    return lhs, OH, OW


def stem_conv_bn_stats(x_nhwc, w_hwio, *, stride, pad):
    N = x_nhwc.shape[0]
    KH, KW, Cin, OC = w_hwio.shape
    lhs, OH, OW = _stem_im2col(x_nhwc, KH, KW, stride, pad)
    L0 = OH * OW
    K = KH * KW * Cin
    w2 = w_hwio.reshape(K, OC).astype(jnp.bfloat16)

    TR = _pick_row_tile(L0)                  # second grid axis: row tiles
    RT = L0 // TR

    flops = 2 * N * L0 * K * OC
    bytes_accessed = (lhs.size * 2 + w2.size * 2
                      + N * L0 * OC * 2 + 2 * N * RT * OC * 4)

    y, psum, pssq = pl.pallas_call(
        _stem_conv_kernel,
        out_shape=(
            jax.ShapeDtypeStruct((N, L0, OC), jnp.bfloat16),
            jax.ShapeDtypeStruct((N * RT, 1, OC), jnp.float32),
            jax.ShapeDtypeStruct((N * RT, 1, OC), jnp.float32),
        ),
        grid=(N, RT),
        in_specs=[
            pl.BlockSpec((1, TR, K), lambda n, r: (n, r, 0)),
            pl.BlockSpec((K, OC), lambda n, r: (0, 0)),
        ],
        out_specs=(
            pl.BlockSpec((1, TR, OC), lambda n, r: (n, r, 0)),
            pl.BlockSpec((1, 1, OC), lambda n, r: (n * RT + r, 0, 0)),
            pl.BlockSpec((1, 1, OC), lambda n, r: (n * RT + r, 0, 0)),
        ),
        compiler_params=pltpu.CompilerParams(
            dimension_semantics=("parallel", "parallel"),
            vmem_limit_bytes=32 * 1024 * 1024,
        ),
        cost_estimate=pl.CostEstimate(
            flops=flops, transcendentals=0, bytes_accessed=bytes_accessed),
    )(lhs, w2)
    return y, psum, pssq, OH, OW


# --------------------------------------------------------------------------
# res-stage conv (3x3 / s2 / p1): KW folded into contraction (K = 3*Cin),
# 3 matmuls accumulated in registers + fused BN statistics
# --------------------------------------------------------------------------

def _res_conv_kernel(x_ref, w_ref, y_ref, sum_ref, ssq_ref, *,
                     OH, OW, HPp, stride, KH):
    # x_ref (1, stride*HPp*OW, KW*Cin) bf16 — H-phase-split, KW-folded lhs
    # w_ref (KH, KW*Cin, OC)            bf16
    L0 = OH * OW
    acc = None
    for i in range(KH):
        pi, di = i % stride, i // stride
        base = (pi * HPp + di) * OW
        lhs = x_ref[0, base:base + L0, :]                  # (L0, KW*Cin)
        t = jnp.dot(lhs, w_ref[i], preferred_element_type=jnp.float32)
        acc = t if acc is None else acc + t
    y_ref[0] = acc.astype(y_ref.dtype)
    sum_ref[0] = jnp.sum(acc, axis=0, keepdims=True)
    ssq_ref[0] = jnp.sum(acc * acc, axis=0, keepdims=True)


def _res_conv_input(a_nhwc, scale, shift):
    """Apply the previous stage's BN affine (if any) and build the KW-folded,
    H-phase-split lhs of a 3x3/stride-2/pad-1 conv: (N, 2*HPp*OW, 3*C) bf16.
    The affine fuses into the pad/transpose copy XLA emits anyway."""
    N, H, W, C = a_nhwc.shape
    x = a_nhwc.astype(jnp.float32)
    if scale is not None:
        x = x * scale + shift
    x = x.astype(jnp.bfloat16)
    s, k, p = 2, 3, 1
    OH = (H + 2 * p - k) // s + 1
    OW = (W + 2 * p - k) // s + 1
    HPp = OH + (k - 1) // s
    pb = s * HPp - H - p                                   # >= 1
    pr = max(k + s * (OW - 1) - W - p, 0)
    xp = jnp.pad(x, ((0, 0), (p, pb), (p, pr), (0, 0)))
    # KW im2col: tap j at output col ow reads padded col s*ow + j
    taps = [xp[:, :, j:j + s * (OW - 1) + 1:s, :] for j in range(k)]
    xk = jnp.stack(taps, axis=3).reshape(N, s * HPp, OW, k * C)
    # H phase split: padded row r = s*h + pi  ->  layout (pi, h)
    xk = xk.reshape(N, HPp, s, OW, k * C)
    xk = jnp.transpose(xk, (0, 2, 1, 3, 4))
    xflat = xk.reshape(N, s * HPp * OW, k * C)
    return xflat, OH, OW, HPp


def res_conv_bn_stats(xflat, w_hwio, *, OH, OW, HPp):
    N, FLAT, KC = xflat.shape
    KH, KW, Cin, OC = w_hwio.shape
    w2 = w_hwio.reshape(KH, KW * Cin, OC).astype(jnp.bfloat16)
    L0 = OH * OW

    flops = 2 * N * L0 * KH * KW * Cin * OC
    bytes_accessed = xflat.size * 2 + w2.size * 2 + N * L0 * OC * 2 + 2 * N * OC * 4

    y, psum, pssq = pl.pallas_call(
        partial(_res_conv_kernel, OH=OH, OW=OW, HPp=HPp, stride=2, KH=KH),
        out_shape=(
            jax.ShapeDtypeStruct((N, L0, OC), jnp.bfloat16),
            jax.ShapeDtypeStruct((N, 1, OC), jnp.float32),
            jax.ShapeDtypeStruct((N, 1, OC), jnp.float32),
        ),
        grid=(N,),
        in_specs=[
            pl.BlockSpec((1, FLAT, KC), lambda n: (n, 0, 0)),
            pl.BlockSpec((KH, KW * Cin, OC), lambda n: (0, 0, 0)),
        ],
        out_specs=(
            pl.BlockSpec((1, L0, OC), lambda n: (n, 0, 0)),
            pl.BlockSpec((1, 1, OC), lambda n: (n, 0, 0)),
            pl.BlockSpec((1, 1, OC), lambda n: (n, 0, 0)),
        ),
        compiler_params=pltpu.CompilerParams(
            dimension_semantics=("parallel",),
            vmem_limit_bytes=32 * 1024 * 1024,
        ),
        cost_estimate=pl.CostEstimate(
            flops=flops, transcendentals=0, bytes_accessed=bytes_accessed),
    )(xflat, w2)
    return y, psum, pssq


# --------------------------------------------------------------------------
# MaxPool 3x3 / s2 / p1 — window taps extracted in-kernel from phase layout.
# The stem BN+ReLU is applied in the glue that builds the phase layout, so the
# pad value 0.0 is the post-ReLU floor (torch's -inf pad semantics preserved).
# --------------------------------------------------------------------------

def _phase_decompose(x_nhwc, KH, KW, stride, pad, pad_value):
    N, H, W, C = x_nhwc.shape
    OH = (H + 2 * pad - KH) // stride + 1
    OW = (W + 2 * pad - KW) // stride + 1
    HPp = OH + (KH - 1) // stride
    WPp = OW + (KW - 1) // stride
    Ht, Wt = stride * HPp, stride * WPp
    ph = max(Ht - H - pad, 0)
    pw = max(Wt - W - pad, 0)
    xp = jnp.pad(x_nhwc, ((0, 0), (pad, ph), (pad, pw), (0, 0)),
                 constant_values=pad_value)
    xp = xp[:, :Ht, :Wt, :]
    xp = xp.reshape(N, HPp, stride, WPp, stride, C)
    xp = jnp.transpose(xp, (0, 2, 4, 1, 3, 5))             # (N, pi, pj, h, w, C)
    xp = xp.reshape(N, stride * stride * HPp, WPp, C)
    return xp, OH, OW, HPp, WPp


def _maxpool_kernel(x_ref, o_ref, *, K, stride, OH, OW, HPp):
    res = None
    for i in range(K):
        for j in range(K):
            pi, di = i % stride, i // stride
            pj, dj = j % stride, j // stride
            base = (pi * stride + pj) * HPp + di
            p = x_ref[0, base:base + OH, dj:dj + OW, :].astype(jnp.float32)
            res = p if res is None else jnp.maximum(res, p)
    o_ref[0] = res.astype(o_ref.dtype)


def maxpool2d(x_nhwc, *, k=3, stride=2, pad=1, pad_value=0.0):
    N, H, W, C = x_nhwc.shape
    xph, OH, OW, HPp, WPp = _phase_decompose(x_nhwc, k, k, stride, pad, pad_value)
    itemsize = x_nhwc.dtype.itemsize
    return pl.pallas_call(
        partial(_maxpool_kernel, K=k, stride=stride, OH=OH, OW=OW, HPp=HPp),
        out_shape=jax.ShapeDtypeStruct((N, OH, OW, C), x_nhwc.dtype),
        grid=(N,),
        in_specs=[pl.BlockSpec((1, stride * stride * HPp, WPp, C),
                               lambda n: (n, 0, 0, 0))],
        out_specs=pl.BlockSpec((1, OH, OW, C), lambda n: (n, 0, 0, 0)),
        compiler_params=pltpu.CompilerParams(dimension_semantics=("parallel",)),
        cost_estimate=pl.CostEstimate(
            flops=N * OH * OW * C * k * k, transcendentals=0,
            bytes_accessed=xph.size * itemsize + N * OH * OW * C * itemsize),
    )(xph)


# --------------------------------------------------------------------------
# head: fused global average pool + FC (res4's BN affine folded into the FC
# weights outside; output padded to 128 lanes, sliced back outside)
# --------------------------------------------------------------------------

def _head_kernel(x_ref, w_ref, b_ref, o_ref):
    pooled = jnp.mean(x_ref[...].astype(jnp.float32), axis=1)          # (N, C)
    o_ref[...] = jnp.dot(pooled, w_ref[...],
                         preferred_element_type=jnp.float32) + b_ref[...]


def head_pool_fc(x3, fc_w, fc_b):
    N, HW, C = x3.shape
    NC = fc_w.shape[1]
    NCp = ((NC + 127) // 128) * 128
    wp = jnp.zeros((C, NCp), jnp.float32).at[:, :NC].set(fc_w)
    bp = jnp.zeros((1, NCp), jnp.float32).at[:, :NC].set(fc_b)
    out = pl.pallas_call(
        _head_kernel,
        out_shape=jax.ShapeDtypeStruct((N, NCp), jnp.float32),
        grid=(1,),
        in_specs=[
            pl.BlockSpec((N, HW, C), lambda i: (0, 0, 0)),
            pl.BlockSpec((C, NCp), lambda i: (0, 0)),
            pl.BlockSpec((1, NCp), lambda i: (0, 0)),
        ],
        out_specs=pl.BlockSpec((N, NCp), lambda i: (0, 0)),
    )(x3, wp, bp)
    return out[:, :NC]


# --------------------------------------------------------------------------
# parameters (matches the torch initialisation; conv biases dropped — zero
# initialised in the reference and cancelled by training-mode BN anyway)
# --------------------------------------------------------------------------

def init_params(key, image_channels=3, num_classes=10):
    ks = jax.random.split(key, 8)

    def conv_w(k, kh, kw, cin, cout):
        fan_out = cout * kh * kw               # kaiming_normal_, mode='fan_out'
        std = (2.0 / fan_out) ** 0.5
        return std * jax.random.normal(k, (kh, kw, cin, cout), jnp.float32)

    p = {}
    p["stem_w"] = conv_w(ks[0], 7, 7, image_channels, 64)
    p["stem_gamma"] = jnp.ones((64,), jnp.float32)
    p["stem_beta"] = jnp.zeros((64,), jnp.float32)
    for idx, (cin, cout) in zip((2, 3, 4), [(64, 128), (128, 256), (256, 512)]):
        p[f"res{idx}_w"] = conv_w(ks[idx - 1], 3, 3, cin, cout)
        p[f"res{idx}_gamma"] = jnp.ones((cout,), jnp.float32)
        p[f"res{idx}_beta"] = jnp.zeros((cout,), jnp.float32)
    p["fc_w"] = 0.01 * jax.random.normal(ks[6], (512, num_classes), jnp.float32)
    p["fc_b"] = jnp.zeros((num_classes,), jnp.float32)
    return p


# --------------------------------------------------------------------------
# forward
# --------------------------------------------------------------------------

def resnet18_forward(params, x_nchw):
    x_nchw = jnp.asarray(x_nchw)
    if x_nchw.ndim == 3:
        x_nchw = x_nchw[None]
    if x_nchw.ndim != 4:
        raise ValueError("input must be (N, C, H, W) or (C, H, W)")
    N = x_nchw.shape[0]
    x = jnp.transpose(x_nchw, (0, 2, 3, 1)).astype(jnp.float32)   # NCHW -> NHWC

    # stem: Conv7x7/s2/p3 (+fused BN stats) -> BN+ReLU (in glue) -> MaxPool
    y1, ps1, ss1, OH1, OW1 = stem_conv_bn_stats(x, params["stem_w"],
                                                stride=2, pad=3)
    sc1, sh1 = _bn_scale_shift(ps1, ss1, N * OH1 * OW1,
                               params["stem_gamma"], params["stem_beta"])
    a1 = jnp.maximum(y1.astype(jnp.float32) * sc1 + sh1, 0.0).astype(jnp.bfloat16)
    a1 = a1.reshape(N, OH1, OW1, -1)
    a = maxpool2d(a1, k=3, stride=2, pad=1, pad_value=0.0)        # post-ReLU floor

    # res1 is an identity (ResidualBlock.forward returns x); res2..res4 reduce
    # to BN(Conv3x3 stride 2)(x) from each stage's downsample path.  Each
    # stage's BN affine is folded into the next stage's input glue (or the FC).
    scale, shift = None, None
    for i in (2, 3, 4):
        xflat, OH, OW, HPp = _res_conv_input(a, scale, shift)
        y, ps, ssq = res_conv_bn_stats(xflat, params[f"res{i}_w"],
                                       OH=OH, OW=OW, HPp=HPp)
        scale, shift = _bn_scale_shift(ps, ssq, N * OH * OW,
                                       params[f"res{i}_gamma"],
                                       params[f"res{i}_beta"])
        a = y.reshape(N, OH, OW, -1)

    # head: avgpool is linear, so res4's BN affine folds into the FC weights.
    fc_w_eff = params["fc_w"] * scale[:, None]
    fc_b_eff = params["fc_b"] + shift @ params["fc_w"]
    Nn, Hh, Ww, Cc = a.shape
    logits = head_pool_fc(a.reshape(Nn, Hh * Ww, Cc), fc_w_eff, fc_b_eff)
    return logits


if __name__ == "__main__":
    key = jax.random.PRNGKey(0)
    pkey, xkey = jax.random.split(key)
    params = init_params(pkey, image_channels=3, num_classes=10)
    x = jax.random.normal(xkey, (2, 3, 64, 64), jnp.float32)      # small NCHW
    out = jax.jit(resnet18_forward)(params, x)
    jax.block_until_ready(out)
    assert out.shape == (2, 10) and out.dtype == jnp.float32
    assert bool(jnp.all(jnp.isfinite(out)))
    print("KERNEL_OK")
</pallas_src>

<mosaic_0001>
module attributes {stable_mosaic.version = 11 : i64} {
  func.func @_stem_conv_kernel(%arg0: i32, %arg1: i32, %arg2: memref<1x256x147xbf16, #tpu.memory_space<vmem>>, %arg3: memref<147x64xbf16, #tpu.memory_space<vmem>>, %arg4: memref<1x256x64xbf16, #tpu.memory_space<vmem>>, %arg5: memref<1x1x64xf32, #tpu.memory_space<vmem>>, %arg6: memref<1x1x64xf32, #tpu.memory_space<vmem>>) attributes {dimension_semantics = [#tpu.dimension_semantics<parallel>, #tpu.dimension_semantics<parallel>], iteration_bounds = array<i64: 2, 4>, scalar_prefetch = 0 : i64, scratch_operands = 0 : i64, tpu.core_type = #tpu.core_type<tc>, window_params = [{transform_indices = @transform_0, window_bounds = array<i64: 1, 256, 147>}, {pipeline_mode = #tpu.pipeline_mode<synchronous>, transform_indices = @transform_1, window_bounds = array<i64: 147, 64>}, {transform_indices = @transform_2, window_bounds = array<i64: 1, 256, 64>}, {transform_indices = @transform_3, window_bounds = array<i64: 1, 1, 64>}, {transform_indices = @transform_4, window_bounds = array<i64: 1, 1, 64>}]} {
    %c0 = arith.constant 0 : index
    %c0_0 = arith.constant 0 : index
    %c0_1 = arith.constant 0 : index
    %0 = vector.load %arg2[%c0, %c0_0, %c0_1] : memref<1x256x147xbf16, #tpu.memory_space<vmem>>, vector<1x256x147xbf16>
    %1 = vector.shape_cast %0 : vector<1x256x147xbf16> to vector<256x147xbf16>
    %c0_2 = arith.constant 0 : index
    %c0_3 = arith.constant 0 : index
    %2 = vector.load %arg3[%c0_2, %c0_3] : memref<147x64xbf16, #tpu.memory_space<vmem>>, vector<147x64xbf16>
    %cst = arith.constant dense<0.000000e+00> : vector<256x64xf32>
    %3 = tpu.matmul %1, %2, %cst {dimension_numbers = #tpu.dot_dimension_numbers<[1], [0], [0], [1], [0, 0, 1, 1], [], []>} : vector<256x147xbf16>, vector<147x64xbf16>, vector<256x64xf32> -> vector<256x64xf32>
    %4 = arith.truncf %3 : vector<256x64xf32> to vector<256x64xbf16>
    %c0_4 = arith.constant 0 : index
    %c0_5 = arith.constant 0 : index
    %c0_6 = arith.constant 0 : index
    %5 = vector.load %arg4[%c0_4, %c0_5, %c0_6] : memref<1x256x64xbf16, #tpu.memory_space<vmem>>, vector<1x256x64xbf16>
    %6 = vector.shape_cast %5 : vector<1x256x64xbf16> to vector<256x64xbf16>
    %7 = vector.shape_cast %4 : vector<256x64xbf16> to vector<1x256x64xbf16>
    tpu.vector_store %arg4[%c0_4, %c0_5, %c0_6], %7 {strides = array<i32>} : memref<1x256x64xbf16, #tpu.memory_space<vmem>>, vector<1x256x64xbf16>,
    %cst_7 = arith.constant dense<0.000000e+00> : vector<64xf32>
    %8 = vector.multi_reduction <add>, %3, %cst_7 [0] : vector<256x64xf32> to vector<64xf32>
    %9 = vector.shape_cast %8 : vector<64xf32> to vector<1x64xf32>
    %c0_8 = arith.constant 0 : index
    %c0_9 = arith.constant 0 : index
    %c0_10 = arith.constant 0 : index
    %10 = vector.load %arg5[%c0_8, %c0_9, %c0_10] : memref<1x1x64xf32, #tpu.memory_space<vmem>>, vector<1x1x64xf32>
    %11 = vector.shape_cast %10 : vector<1x1x64xf32> to vector<1x64xf32>
    %12 = vector.shape_cast %9 : vector<1x64xf32> to vector<1x1x64xf32>
    tpu.vector_store %arg5[%c0_8, %c0_9, %c0_10], %12 {strides = array<i32>} : memref<1x1x64xf32, #tpu.memory_space<vmem>>, vector<1x1x64xf32>,
    %13 = arith.mulf %3, %3 : vector<256x64xf32>
    %cst_11 = arith.constant dense<0.000000e+00> : vector<64xf32>
    %14 = vector.multi_reduction <add>, %13, %cst_11 [0] : vector<256x64xf32> to vector<64xf32>
    %15 = vector.shape_cast %14 : vector<64xf32> to vector<1x64xf32>
    %c0_12 = arith.constant 0 : index
    %c0_13 = arith.constant 0 : index
    %c0_14 = arith.constant 0 : index
    %16 = vector.load %arg6[%c0_12, %c0_13, %c0_14] : memref<1x1x64xf32, #tpu.memory_space<vmem>>, vector<1x1x64xf32>
    %17 = vector.shape_cast %16 : vector<1x1x64xf32> to vector<1x64xf32>
    %18 = vector.shape_cast %15 : vector<1x64xf32> to vector<1x1x64xf32>
    tpu.vector_store %arg6[%c0_12, %c0_13, %c0_14], %18 {strides = array<i32>} : memref<1x1x64xf32, #tpu.memory_space<vmem>>, vector<1x1x64xf32>,
    return
  }
  func.func @transform_0(%arg0: i32, %arg1: i32) -> (i32, i32, i32) {
    %c0_i32 = arith.constant 0 : i32
    %c0_i32_0 = arith.constant 0 : i32
    return %arg0, %arg1, %c0_i32 : i32, i32, i32
  }
  func.func @transform_1(%arg0: i32, %arg1: i32) -> (i32, i32) {
    %c0_i32 = arith.constant 0 : i32
    %c0_i32_0 = arith.constant 0 : i32
    %c0_i32_1 = arith.constant 0 : i32
    return %c0_i32, %c0_i32_0 : i32, i32
  }
  func.func @transform_2(%arg0: i32, %arg1: i32) -> (i32, i32, i32) {
    %c0_i32 = arith.constant 0 : i32
    %c0_i32_0 = arith.constant 0 : i32
    return %arg0, %arg1, %c0_i32 : i32, i32, i32
  }
  func.func @transform_3(%arg0: i32, %arg1: i32) -> (i32, i32, i32) {
    %c4_i32 = arith.constant 4 : i32
    %0 = arith.muli %arg0, %c4_i32 : i32
    %1 = arith.addi %0, %arg1 : i32
    %c0_i32 = arith.constant 0 : i32
    %c0_i32_0 = arith.constant 0 : i32
    %c0_i32_1 = arith.constant 0 : i32
    return %1, %c0_i32, %c0_i32_0 : i32, i32, i32
  }
  func.func @transform_4(%arg0: i32, %arg1: i32) -> (i32, i32, i32) {
    %c4_i32 = arith.constant 4 : i32
    %0 = arith.muli %arg0, %c4_i32 : i32
    %1 = arith.addi %0, %arg1 : i32
    %c0_i32 = arith.constant 0 : i32
    %c0_i32_0 = arith.constant 0 : i32
    %c0_i32_1 = arith.constant 0 : i32
    return %1, %c0_i32, %c0_i32_0 : i32, i32, i32
  }
}

module attributes {stable_mosaic.version = 11 : i64} {
  func.func @_maxpool_kernel(%arg0: i32, %arg1: memref<1x68x17x64xbf16, #tpu.memory_space<vmem>>, %arg2: memref<1x16x16x64xbf16, #tpu.memory_space<vmem>>) attributes {dimension_semantics = [#tpu.dimension_semantics<parallel>], iteration_bounds = array<i64: 2>, scalar_prefetch = 0 : i64, scratch_operands = 0 : i64, tpu.core_type = #tpu.core_type<tc>, window_params = [{transform_indices = @transform_0, window_bounds = array<i64: 1, 68, 17, 64>}, {transform_indices = @transform_1, window_bounds = array<i64: 1, 16, 16, 64>}]} {
    %c0 = arith.constant 0 : index
    %c0_0 = arith.constant 0 : index
    %c0_1 = arith.constant 0 : index
    %c0_2 = arith.constant 0 : index
    %0 = vector.load %arg1[%c0, %c0_0, %c0_1, %c0_2] : memref<1x68x17x64xbf16, #tpu.memory_space<vmem>>, vector<1x16x16x64xbf16>
    %1 = vector.shape_cast %0 : vector<1x16x16x64xbf16> to vector<16x16x64xbf16>
    %2 = arith.extf %1 : vector<16x16x64xbf16> to vector<16x16x64xf32>
    %c0_3 = arith.constant 0 : index
    %c17 = arith.constant 17 : index
    %c0_4 = arith.constant 0 : index
    %c0_5 = arith.constant 0 : index
    %3 = vector.load %arg1[%c0_3, %c17, %c0_4, %c0_5] : memref<1x68x17x64xbf16, #tpu.memory_space<vmem>>, vector<1x16x16x64xbf16>
    %4 = vector.shape_cast %3 : vector<1x16x16x64xbf16> to vector<16x16x64xbf16>
    %5 = arith.extf %4 : vector<16x16x64xbf16> to vector<16x16x64xf32>
    %6 = arith.maximumf %2, %5 : vector<16x16x64xf32>
    %c0_6 = arith.constant 0 : index
    %c0_7 = arith.constant 0 : index
    %c1 = arith.constant 1 : index
    %c0_8 = arith.constant 0 : index
    %7 = vector.load %arg1[%c0_6, %c0_7, %c1, %c0_8] : memref<1x68x17x64xbf16, #tpu.memory_space<vmem>>, vector<1x16x16x64xbf16>
    %8 = vector.shape_cast %7 : vector<1x16x16x64xbf16> to vector<16x16x64xbf16>
    %9 = arith.extf %8 : vector<16x16x64xbf16> to vector<16x16x64xf32>
    %10 = arith.maximumf %6, %9 : vector<16x16x64xf32>
    %c0_9 = arith.constant 0 : index
    %c34 = arith.constant 34 : index
    %c0_10 = arith.constant 0 : index
    %c0_11 = arith.constant 0 : index
    %11 = vector.load %arg1[%c0_9, %c34, %c0_10, %c0_11] : memref<1x68x17x64xbf16, #tpu.memory_space<vmem>>, vector<1x16x16x64xbf16>
    %12 = vector.shape_cast %11 : vector<1x16x16x64xbf16> to vector<16x16x64xbf16>
    %13 = arith.extf %12 : vector<16x16x64xbf16> to vector<16x16x64xf32>
    %14 = arith.maximumf %10, %13 : vector<16x16x64xf32>
    %c0_12 = arith.constant 0 : index
    %c51 = arith.constant 51 : index
    %c0_13 = arith.constant 0 : index
    %c0_14 = arith.constant 0 : index
    %15 = vector.load %arg1[%c0_12, %c51, %c0_13, %c0_14] : memref<1x68x17x64xbf16, #tpu.memory_space<vmem>>, vector<1x16x16x64xbf16>
    %16 = vector.shape_cast %15 : vector<1x16x16x64xbf16> to vector<16x16x64xbf16>
    %17 = arith.extf %16 : vector<16x16x64xbf16> to vector<16x16x64xf32>
    %18 = arith.maximumf %14, %17 : vector<16x16x64xf32>
    %c0_15 = arith.constant 0 : index
    %c34_16 = arith.constant 34 : index
    %c1_17 = arith.constant 1 : index
    %c0_18 = arith.constant 0 : index
    %19 = vector.load %arg1[%c0_15, %c34_16, %c1_17, %c0_18] : memref<1x68x17x64xbf16, #tpu.memory_space<vmem>>, vector<1x16x16x64xbf16>
    %20 = vector.shape_cast %19 : vector<1x16x16x64xbf16> to vector<16x16x64xbf16>
    %21 = arith.extf %20 : vector<16x16x64xbf16> to vector<16x16x64xf32>
    %22 = arith.maximumf %18, %21 : vector<16x16x64xf32>
    %c0_19 = arith.constant 0 : index
    %c1_20 = arith.constant 1 : index
    %c0_21 = arith.constant 0 : index
    %c0_22 = arith.constant 0 : index
    %23 = vector.load %arg1[%c0_19, %c1_20, %c0_21, %c0_22] : memref<1x68x17x64xbf16, #tpu.memory_space<vmem>>, vector<1x16x16x64xbf16>
    %24 = vector.shape_cast %23 : vector<1x16x16x64xbf16> to vector<16x16x64xbf16>
    %25 = arith.extf %24 : vector<16x16x64xbf16> to vector<16x16x64xf32>
    %26 = arith.maximumf %22, %25 : vector<16x16x64xf32>
    %c0_23 = arith.constant 0 : index
    %c18 = arith.constant 18 : index
    %c0_24 = arith.constant 0 : index
    %c0_25 = arith.constant 0 : index
    %27 = vector.load %arg1[%c0_23, %c18, %c0_24, %c0_25] : memref<1x68x17x64xbf16, #tpu.memory_space<vmem>>, vector<1x16x16x64xbf16>
    %28 = vector.shape_cast %27 : vector<1x16x16x64xbf16> to vector<16x16x64xbf16>
    %29 = arith.extf %28 : vector<16x16x64xbf16> to vector<16x16x64xf32>
    %30 = arith.maximumf %26, %29 : vector<16x16x64xf32>
    %c0_26 = arith.constant 0 : index
    %c1_27 = arith.constant 1 : index
    %c1_28 = arith.constant 1 : index
    %c0_29 = arith.constant 0 : index
    %31 = vector.load %arg1[%c0_26, %c1_27, %c1_28, %c0_29] : memref<1x68x17x64xbf16, #tpu.memory_space<vmem>>, vector<1x16x16x64xbf16>
    %32 = vector.shape_cast %31 : vector<1x16x16x64xbf16> to vector<16x16x64xbf16>
    %33 = arith.extf %32 : vector<16x16x64xbf16> to vector<16x16x64xf32>
    %34 = arith.maximumf %30, %33 : vector<16x16x64xf32>
    %35 = arith.truncf %34 : vector<16x16x64xf32> to vector<16x16x64xbf16>
    %c0_30 = arith.constant 0 : index
    %c0_31 = arith.constant 0 : index
    %c0_32 = arith.constant 0 : index
    %c0_33 = arith.constant 0 : index
    %36 = vector.load %arg2[%c0_30, %c0_31, %c0_32, %c0_33] : memref<1x16x16x64xbf16, #tpu.memory_space<vmem>>, vector<1x16x16x64xbf16>
    %37 = vector.shape_cast %36 : vector<1x16x16x64xbf16> to vector<16x16x64xbf16>
    %38 = vector.shape_cast %35 : vector<16x16x64xbf16> to vector<1x16x16x64xbf16>
    tpu.vector_store %arg2[%c0_30, %c0_31, %c0_32, %c0_33], %38 {strides = array<i32>} : memref<1x16x16x64xbf16, #tpu.memory_space<vmem>>, vector<1x16x16x64xbf16>,
    return
  }
  func.func @transform_0(%arg0: i32) -> (i32, i32, i32, i32) {
    %c0_i32 = arith.constant 0 : i32
    %c0_i32_0 = arith.constant 0 : i32
    %c0_i32_1 = arith.constant 0 : i32
    %c0_i32_2 = arith.constant 0 : i32
    return %arg0, %c0_i32, %c0_i32_0, %c0_i32_1 : i32, i32, i32, i32
  }
  func.func @transform_1(%arg0: i32) -> (i32, i32, i32, i32) {
    %c0_i32 = arith.constant 0 : i32
    %c0_i32_0 = arith.constant 0 : i32
    %c0_i32_1 = arith.constant 0 : i32
    %c0_i32_2 = arith.constant 0 : i32
    return %arg0, %c0_i32, %c0_i32_0, %c0_i32_1 : i32, i32, i32, i32
  }
}

module attributes {stable_mosaic.version = 11 : i64} {
  func.func @_res_conv_kernel(%arg0: i32, %arg1: memref<1x144x192xbf16, #tpu.memory_space<vmem>>, %arg2: memref<3x192x128xbf16, #tpu.memory_space<vmem>>, %arg3: memref<1x64x128xbf16, #tpu.memory_space<vmem>>, %arg4: memref<1x1x128xf32, #tpu.memory_space<vmem>>, %arg5: memref<1x1x128xf32, #tpu.memory_space<vmem>>) attributes {dimension_semantics = [#tpu.dimension_semantics<parallel>], iteration_bounds = array<i64: 2>, scalar_prefetch = 0 : i64, scratch_operands = 0 : i64, tpu.core_type = #tpu.core_type<tc>, window_params = [{transform_indices = @transform_0, window_bounds = array<i64: 1, 144, 192>}, {pipeline_mode = #tpu.pipeline_mode<synchronous>, transform_indices = @transform_1, window_bounds = array<i64: 3, 192, 128>}, {transform_indices = @transform_2, window_bounds = array<i64: 1, 64, 128>}, {transform_indices = @transform_3, window_bounds = array<i64: 1, 1, 128>}, {transform_indices = @transform_4, window_bounds = array<i64: 1, 1, 128>}]} {
    %c0 = arith.constant 0 : index
    %c0_0 = arith.constant 0 : index
    %c0_1 = arith.constant 0 : index
    %0 = vector.load %arg1[%c0, %c0_0, %c0_1] : memref<1x144x192xbf16, #tpu.memory_space<vmem>>, vector<1x64x192xbf16>
    %1 = vector.shape_cast %0 : vector<1x64x192xbf16> to vector<64x192xbf16>
    %c0_2 = arith.constant 0 : index
    %c0_3 = arith.constant 0 : index
    %c0_4 = arith.constant 0 : index
    %2 = vector.load %arg2[%c0_2, %c0_3, %c0_4] : memref<3x192x128xbf16, #tpu.memory_space<vmem>>, vector<1x192x128xbf16>
    %3 = vector.shape_cast %2 : vector<1x192x128xbf16> to vector<192x128xbf16>
    %cst = arith.constant dense<0.000000e+00> : vector<64x128xf32>
    %4 = tpu.matmul %1, %3, %cst {dimension_numbers = #tpu.dot_dimension_numbers<[1], [0], [0], [1], [0, 0, 1, 1], [], []>} : vector<64x192xbf16>, vector<192x128xbf16>, vector<64x128xf32> -> vector<64x128xf32>
    %c0_5 = arith.constant 0 : index
    %c72 = arith.constant 72 : index
    %c0_6 = arith.constant 0 : index
    %5 = vector.load %arg1[%c0_5, %c72, %c0_6] : memref<1x144x192xbf16, #tpu.memory_space<vmem>>, vector<1x64x192xbf16>
    %6 = vector.shape_cast %5 : vector<1x64x192xbf16> to vector<64x192xbf16>
    %c1 = arith.constant 1 : index
    %c0_7 = arith.constant 0 : index
    %c0_8 = arith.constant 0 : index
    %7 = vector.load %arg2[%c1, %c0_7, %c0_8] : memref<3x192x128xbf16, #tpu.memory_space<vmem>>, vector<1x192x128xbf16>
    %8 = vector.shape_cast %7 : vector<1x192x128xbf16> to vector<192x128xbf16>
    %cst_9 = arith.constant dense<0.000000e+00> : vector<64x128xf32>
    %9 = tpu.matmul %6, %8, %cst_9 {dimension_numbers = #tpu.dot_dimension_numbers<[1], [0], [0], [1], [0, 0, 1, 1], [], []>} : vector<64x192xbf16>, vector<192x128xbf16>, vector<64x128xf32> -> vector<64x128xf32>
    %10 = arith.addf %4, %9 : vector<64x128xf32>
    %c0_10 = arith.constant 0 : index
    %c8 = arith.constant 8 : index
    %c0_11 = arith.constant 0 : index
    %11 = vector.load %arg1[%c0_10, %c8, %c0_11] : memref<1x144x192xbf16, #tpu.memory_space<vmem>>, vector<1x64x192xbf16>
    %12 = vector.shape_cast %11 : vector<1x64x192xbf16> to vector<64x192xbf16>
    %c2 = arith.constant 2 : index
    %c0_12 = arith.constant 0 : index
    %c0_13 = arith.constant 0 : index
    %13 = vector.load %arg2[%c2, %c0_12, %c0_13] : memref<3x192x128xbf16, #tpu.memory_space<vmem>>, vector<1x192x128xbf16>
    %14 = vector.shape_cast %13 : vector<1x192x128xbf16> to vector<192x128xbf16>
    %cst_14 = arith.constant dense<0.000000e+00> : vector<64x128xf32>
    %15 = tpu.matmul %12, %14, %cst_14 {dimension_numbers = #tpu.dot_dimension_numbers<[1], [0], [0], [1], [0, 0, 1, 1], [], []>} : vector<64x192xbf16>, vector<192x128xbf16>, vector<64x128xf32> -> vector<64x128xf32>
    %16 = arith.addf %10, %15 : vector<64x128xf32>
    %17 = arith.truncf %16 : vector<64x128xf32> to vector<64x128xbf16>
    %c0_15 = arith.constant 0 : index
    %c0_16 = arith.constant 0 : index
    %c0_17 = arith.constant 0 : index
    %18 = vector.load %arg3[%c0_15, %c0_16, %c0_17] : memref<1x64x128xbf16, #tpu.memory_space<vmem>>, vector<1x64x128xbf16>
    %19 = vector.shape_cast %18 : vector<1x64x128xbf16> to vector<64x128xbf16>
    %20 = vector.shape_cast %17 : vector<64x128xbf16> to vector<1x64x128xbf16>
    tpu.vector_store %arg3[%c0_15, %c0_16, %c0_17], %20 {strides = array<i32>} : memref<1x64x128xbf16, #tpu.memory_space<vmem>>, vector<1x64x128xbf16>,
    %cst_18 = arith.constant dense<0.000000e+00> : vector<128xf32>
    %21 = vector.multi_reduction <add>, %16, %cst_18 [0] : vector<64x128xf32> to vector<128xf32>
    %22 = vector.shape_cast %21 : vector<128xf32> to vector<1x128xf32>
    %c0_19 = arith.constant 0 : index
    %c0_20 = arith.constant 0 : index
    %c0_21 = arith.constant 0 : index
    %23 = vector.load %arg4[%c0_19, %c0_20, %c0_21] : memref<1x1x128xf32, #tpu.memory_space<vmem>>, vector<1x1x128xf32>
    %24 = vector.shape_cast %23 : vector<1x1x128xf32> to vector<1x128xf32>
    %25 = vector.shape_cast %22 : vector<1x128xf32> to vector<1x1x128xf32>
    tpu.vector_store %arg4[%c0_19, %c0_20, %c0_21], %25 {strides = array<i32>} : memref<1x1x128xf32, #tpu.memory_space<vmem>>, vector<1x1x128xf32>,
    %26 = arith.mulf %16, %16 : vector<64x128xf32>
    %cst_22 = arith.constant dense<0.000000e+00> : vector<128xf32>
    %27 = vector.multi_reduction <add>, %26, %cst_22 [0] : vector<64x128xf32> to vector<128xf32>
    %28 = vector.shape_cast %27 : vector<128xf32> to vector<1x128xf32>
    %c0_23 = arith.constant 0 : index
    %c0_24 = arith.constant 0 : index
    %c0_25 = arith.constant 0 : index
    %29 = vector.load %arg5[%c0_23, %c0_24, %c0_25] : memref<1x1x128xf32, #tpu.memory_space<vmem>>, vector<1x1x128xf32>
    %30 = vector.shape_cast %29 : vector<1x1x128xf32> to vector<1x128xf32>
    %31 = vector.shape_cast %28 : vector<1x128xf32> to vector<1x1x128xf32>
    tpu.vector_store %arg5[%c0_23, %c0_24, %c0_25], %31 {strides = array<i32>} : memref<1x1x128xf32, #tpu.memory_space<vmem>>, vector<1x1x128xf32>,
    return
  }
  func.func @transform_0(%arg0: i32) -> (i32, i32, i32) {
    %c0_i32 = arith.constant 0 : i32
    %c0_i32_0 = arith.constant 0 : i32
    %c0_i32_1 = arith.constant 0 : i32
    return %arg0, %c0_i32, %c0_i32_0 : i32, i32, i32
  }
  func.func @transform_1(%arg0: i32) -> (i32, i32, i32) {
    %c0_i32 = arith.constant 0 : i32
    %c0_i32_0 = arith.constant 0 : i32
    %c0_i32_1 = arith.constant 0 : i32
    %c0_i32_2 = arith.constant 0 : i32
    return %c0_i32, %c0_i32_0, %c0_i32_1 : i32, i32, i32
  }
  func.func @transform_2(%arg0: i32) -> (i32, i32, i32) {
    %c0_i32 = arith.constant 0 : i32
    %c0_i32_0 = arith.constant 0 : i32
    %c0_i32_1 = arith.constant 0 : i32
    return %arg0, %c0_i32, %c0_i32_0 : i32, i32, i32
  }
  func.func @transform_3(%arg0: i32) -> (i32, i32, i32) {
    %c0_i32 = arith.constant 0 : i32
    %c0_i32_0 = arith.constant 0 : i32
    %c0_i32_1 = arith.constant 0 : i32
    return %arg0, %c0_i32, %c0_i32_0 : i32, i32, i32
  }
  func.func @transform_4(%arg0: i32) -> (i32, i32, i32) {
    %c0_i32 = arith.constant 0 : i32
    %c0_i32_0 = arith.constant 0 : i32
    %c0_i32_1 = arith.constant 0 : i32
    return %arg0, %c0_i32, %c0_i32_0 : i32, i32, i32
  }
}

module attributes {stable_mosaic.version = 11 : i64} {
  func.func @_res_conv_kernel(%arg0: i32, %arg1: memref<1x40x384xbf16, #tpu.memory_space<vmem>>, %arg2: memref<3x384x256xbf16, #tpu.memory_space<vmem>>, %arg3: memref<1x16x256xbf16, #tpu.memory_space<vmem>>, %arg4: memref<1x1x256xf32, #tpu.memory_space<vmem>>, %arg5: memref<1x1x256xf32, #tpu.memory_space<vmem>>) attributes {dimension_semantics = [#tpu.dimension_semantics<parallel>], iteration_bounds = array<i64: 2>, scalar_prefetch = 0 : i64, scratch_operands = 0 : i64, tpu.core_type = #tpu.core_type<tc>, window_params = [{transform_indices = @transform_0, window_bounds = array<i64: 1, 40, 384>}, {pipeline_mode = #tpu.pipeline_mode<synchronous>, transform_indices = @transform_1, window_bounds = array<i64: 3, 384, 256>}, {transform_indices = @transform_2, window_bounds = array<i64: 1, 16, 256>}, {transform_indices = @transform_3, window_bounds = array<i64: 1, 1, 256>}, {transform_indices = @transform_4, window_bounds = array<i64: 1, 1, 256>}]} {
    %c0 = arith.constant 0 : index
    %c0_0 = arith.constant 0 : index
    %c0_1 = arith.constant 0 : index
    %0 = vector.load %arg1[%c0, %c0_0, %c0_1] : memref<1x40x384xbf16, #tpu.memory_space<vmem>>, vector<1x16x384xbf16>
    %1 = vector.shape_cast %0 : vector<1x16x384xbf16> to vector<16x384xbf16>
    %c0_2 = arith.constant 0 : index
    %c0_3 = arith.constant 0 : index
    %c0_4 = arith.constant 0 : index
    %2 = vector.load %arg2[%c0_2, %c0_3, %c0_4] : memref<3x384x256xbf16, #tpu.memory_space<vmem>>, vector<1x384x256xbf16>
    %3 = vector.shape_cast %2 : vector<1x384x256xbf16> to vector<384x256xbf16>
    %cst = arith.constant dense<0.000000e+00> : vector<16x256xf32>
    %4 = tpu.matmul %1, %3, %cst {dimension_numbers = #tpu.dot_dimension_numbers<[1], [0], [0], [1], [0, 0, 1, 1], [], []>} : vector<16x384xbf16>, vector<384x256xbf16>, vector<16x256xf32> -> vector<16x256xf32>
    %c0_5 = arith.constant 0 : index
    %c20 = arith.constant 20 : index
    %c0_6 = arith.constant 0 : index
    %5 = vector.load %arg1[%c0_5, %c20, %c0_6] : memref<1x40x384xbf16, #tpu.memory_space<vmem>>, vector<1x16x384xbf16>
    %6 = vector.shape_cast %5 : vector<1x16x384xbf16> to vector<16x384xbf16>
    %c1 = arith.constant 1 : index
    %c0_7 = arith.constant 0 : index
    %c0_8 = arith.constant 0 : index
    %7 = vector.load %arg2[%c1, %c0_7, %c0_8] : memref<3x384x256xbf16, #tpu.memory_space<vmem>>, vector<1x384x256xbf16>
    %8 = vector.shape_cast %7 : vector<1x384x256xbf16> to vector<384x256xbf16>
    %cst_9 = arith.constant dense<0.000000e+00> : vector<16x256xf32>
    %9 = tpu.matmul %6, %8, %cst_9 {dimension_numbers = #tpu.dot_dimension_numbers<[1], [0], [0], [1], [0, 0, 1, 1], [], []>} : vector<16x384xbf16>, vector<384x256xbf16>, vector<16x256xf32> -> vector<16x256xf32>
    %10 = arith.addf %4, %9 : vector<16x256xf32>
    %c0_10 = arith.constant 0 : index
    %c4 = arith.constant 4 : index
    %c0_11 = arith.constant 0 : index
    %11 = vector.load %arg1[%c0_10, %c4, %c0_11] : memref<1x40x384xbf16, #tpu.memory_space<vmem>>, vector<1x16x384xbf16>
    %12 = vector.shape_cast %11 : vector<1x16x384xbf16> to vector<16x384xbf16>
    %c2 = arith.constant 2 : index
    %c0_12 = arith.constant 0 : index
    %c0_13 = arith.constant 0 : index
    %13 = vector.load %arg2[%c2, %c0_12, %c0_13] : memref<3x384x256xbf16, #tpu.memory_space<vmem>>, vector<1x384x256xbf16>
    %14 = vector.shape_cast %13 : vector<1x384x256xbf16> to vector<384x256xbf16>
    %cst_14 = arith.constant dense<0.000000e+00> : vector<16x256xf32>
    %15 = tpu.matmul %12, %14, %cst_14 {dimension_numbers = #tpu.dot_dimension_numbers<[1], [0], [0], [1], [0, 0, 1, 1], [], []>} : vector<16x384xbf16>, vector<384x256xbf16>, vector<16x256xf32> -> vector<16x256xf32>
    %16 = arith.addf %10, %15 : vector<16x256xf32>
    %17 = arith.truncf %16 : vector<16x256xf32> to vector<16x256xbf16>
    %c0_15 = arith.constant 0 : index
    %c0_16 = arith.constant 0 : index
    %c0_17 = arith.constant 0 : index
    %18 = vector.load %arg3[%c0_15, %c0_16, %c0_17] : memref<1x16x256xbf16, #tpu.memory_space<vmem>>, vector<1x16x256xbf16>
    %19 = vector.shape_cast %18 : vector<1x16x256xbf16> to vector<16x256xbf16>
    %20 = vector.shape_cast %17 : vector<16x256xbf16> to vector<1x16x256xbf16>
    tpu.vector_store %arg3[%c0_15, %c0_16, %c0_17], %20 {strides = array<i32>} : memref<1x16x256xbf16, #tpu.memory_space<vmem>>, vector<1x16x256xbf16>,
    %cst_18 = arith.constant dense<0.000000e+00> : vector<256xf32>
    %21 = vector.multi_reduction <add>, %16, %cst_18 [0] : vector<16x256xf32> to vector<256xf32>
    %22 = vector.shape_cast %21 : vector<256xf32> to vector<1x256xf32>
    %c0_19 = arith.constant 0 : index
    %c0_20 = arith.constant 0 : index
    %c0_21 = arith.constant 0 : index
    %23 = vector.load %arg4[%c0_19, %c0_20, %c0_21] : memref<1x1x256xf32, #tpu.memory_space<vmem>>, vector<1x1x256xf32>
    %24 = vector.shape_cast %23 : vector<1x1x256xf32> to vector<1x256xf32>
    %25 = vector.shape_cast %22 : vector<1x256xf32> to vector<1x1x256xf32>
    tpu.vector_store %arg4[%c0_19, %c0_20, %c0_21], %25 {strides = array<i32>} : memref<1x1x256xf32, #tpu.memory_space<vmem>>, vector<1x1x256xf32>,
    %26 = arith.mulf %16, %16 : vector<16x256xf32>
    %cst_22 = arith.constant dense<0.000000e+00> : vector<256xf32>
    %27 = vector.multi_reduction <add>, %26, %cst_22 [0] : vector<16x256xf32> to vector<256xf32>
    %28 = vector.shape_cast %27 : vector<256xf32> to vector<1x256xf32>
    %c0_23 = arith.constant 0 : index
    %c0_24 = arith.constant 0 : index
    %c0_25 = arith.constant 0 : index
    %29 = vector.load %arg5[%c0_23, %c0_24, %c0_25] : memref<1x1x256xf32, #tpu.memory_space<vmem>>, vector<1x1x256xf32>
    %30 = vector.shape_cast %29 : vector<1x1x256xf32> to vector<1x256xf32>
    %31 = vector.shape_cast %28 : vector<1x256xf32> to vector<1x1x256xf32>
    tpu.vector_store %arg5[%c0_23, %c0_24, %c0_25], %31 {strides = array<i32>} : memref<1x1x256xf32, #tpu.memory_space<vmem>>, vector<1x1x256xf32>,
    return
  }
  func.func @transform_0(%arg0: i32) -> (i32, i32, i32) {
    %c0_i32 = arith.constant 0 : i32
    %c0_i32_0 = arith.constant 0 : i32
    %c0_i32_1 = arith.constant 0 : i32
    return %arg0, %c0_i32, %c0_i32_0 : i32, i32, i32
  }
  func.func @transform_1(%arg0: i32) -> (i32, i32, i32) {
    %c0_i32 = arith.constant 0 : i32
    %c0_i32_0 = arith.constant 0 : i32
    %c0_i32_1 = arith.constant 0 : i32
    %c0_i32_2 = arith.constant 0 : i32
    return %c0_i32, %c0_i32_0, %c0_i32_1 : i32, i32, i32
  }
  func.func @transform_2(%arg0: i32) -> (i32, i32, i32) {
    %c0_i32 = arith.constant 0 : i32
    %c0_i32_0 = arith.constant 0 : i32
    %c0_i32_1 = arith.constant 0 : i32
    return %arg0, %c0_i32, %c0_i32_0 : i32, i32, i32
  }
  func.func @transform_3(%arg0: i32) -> (i32, i32, i32) {
    %c0_i32 = arith.constant 0 : i32
    %c0_i32_0 = arith.constant 0 : i32
    %c0_i32_1 = arith.constant 0 : i32
    return %arg0, %c0_i32, %c0_i32_0 : i32, i32, i32
  }
  func.func @transform_4(%arg0: i32) -> (i32, i32, i32) {
    %c0_i32 = arith.constant 0 : i32
    %c0_i32_0 = arith.constant 0 : i32
    %c0_i32_1 = arith.constant 0 : i32
    return %arg0, %c0_i32, %c0_i32_0 : i32, i32, i32
  }
}

module attributes {stable_mosaic.version = 11 : i64} {
  func.func @_res_conv_kernel(%arg0: i32, %arg1: memref<1x12x768xbf16, #tpu.memory_space<vmem>>, %arg2: memref<3x768x512xbf16, #tpu.memory_space<vmem>>, %arg3: memref<1x4x512xbf16, #tpu.memory_space<vmem>>, %arg4: memref<1x1x512xf32, #tpu.memory_space<vmem>>, %arg5: memref<1x1x512xf32, #tpu.memory_space<vmem>>) attributes {dimension_semantics = [#tpu.dimension_semantics<parallel>], iteration_bounds = array<i64: 2>, scalar_prefetch = 0 : i64, scratch_operands = 0 : i64, tpu.core_type = #tpu.core_type<tc>, window_params = [{transform_indices = @transform_0, window_bounds = array<i64: 1, 12, 768>}, {pipeline_mode = #tpu.pipeline_mode<synchronous>, transform_indices = @transform_1, window_bounds = array<i64: 3, 768, 512>}, {transform_indices = @transform_2, window_bounds = array<i64: 1, 4, 512>}, {transform_indices = @transform_3, window_bounds = array<i64: 1, 1, 512>}, {transform_indices = @transform_4, window_bounds = array<i64: 1, 1, 512>}]} {
    %c0 = arith.constant 0 : index
    %c0_0 = arith.constant 0 : index
    %c0_1 = arith.constant 0 : index
    %0 = vector.load %arg1[%c0, %c0_0, %c0_1] : memref<1x12x768xbf16, #tpu.memory_space<vmem>>, vector<1x4x768xbf16>
    %1 = vector.shape_cast %0 : vector<1x4x768xbf16> to vector<4x768xbf16>
    %c0_2 = arith.constant 0 : index
    %c0_3 = arith.constant 0 : index
    %c0_4 = arith.constant 0 : index
    %2 = vector.load %arg2[%c0_2, %c0_3, %c0_4] : memref<3x768x512xbf16, #tpu.memory_space<vmem>>, vector<1x768x512xbf16>
    %3 = vector.shape_cast %2 : vector<1x768x512xbf16> to vector<768x512xbf16>
    %cst = arith.constant dense<0.000000e+00> : vector<4x512xf32>
    %4 = tpu.matmul %1, %3, %cst {dimension_numbers = #tpu.dot_dimension_numbers<[1], [0], [0], [1], [0, 0, 1, 1], [], []>} : vector<4x768xbf16>, vector<768x512xbf16>, vector<4x512xf32> -> vector<4x512xf32>
    %c0_5 = arith.constant 0 : index
    %c6 = arith.constant 6 : index
    %c0_6 = arith.constant 0 : index
    %5 = vector.load %arg1[%c0_5, %c6, %c0_6] : memref<1x12x768xbf16, #tpu.memory_space<vmem>>, vector<1x4x768xbf16>
    %6 = vector.shape_cast %5 : vector<1x4x768xbf16> to vector<4x768xbf16>
    %c1 = arith.constant 1 : index
    %c0_7 = arith.constant 0 : index
    %c0_8 = arith.constant 0 : index
    %7 = vector.load %arg2[%c1, %c0_7, %c0_8] : memref<3x768x512xbf16, #tpu.memory_space<vmem>>, vector<1x768x512xbf16>
    %8 = vector.shape_cast %7 : vector<1x768x512xbf16> to vector<768x512xbf16>
    %cst_9 = arith.constant dense<0.000000e+00> : vector<4x512xf32>
    %9 = tpu.matmul %6, %8, %cst_9 {dimension_numbers = #tpu.dot_dimension_numbers<[1], [0], [0], [1], [0, 0, 1, 1], [], []>} : vector<4x768xbf16>, vector<768x512xbf16>, vector<4x512xf32> -> vector<4x512xf32>
    %10 = arith.addf %4, %9 : vector<4x512xf32>
    %c0_10 = arith.constant 0 : index
    %c2 = arith.constant 2 : index
    %c0_11 = arith.constant 0 : index
    %11 = vector.load %arg1[%c0_10, %c2, %c0_11] : memref<1x12x768xbf16, #tpu.memory_space<vmem>>, vector<1x4x768xbf16>
    %12 = vector.shape_cast %11 : vector<1x4x768xbf16> to vector<4x768xbf16>
    %c2_12 = arith.constant 2 : index
    %c0_13 = arith.constant 0 : index
    %c0_14 = arith.constant 0 : index
    %13 = vector.load %arg2[%c2_12, %c0_13, %c0_14] : memref<3x768x512xbf16, #tpu.memory_space<vmem>>, vector<1x768x512xbf16>
    %14 = vector.shape_cast %13 : vector<1x768x512xbf16> to vector<768x512xbf16>
    %cst_15 = arith.constant dense<0.000000e+00> : vector<4x512xf32>
    %15 = tpu.matmul %12, %14, %cst_15 {dimension_numbers = #tpu.dot_dimension_numbers<[1], [0], [0], [1], [0, 0, 1, 1], [], []>} : vector<4x768xbf16>, vector<768x512xbf16>, vector<4x512xf32> -> vector<4x512xf32>
    %16 = arith.addf %10, %15 : vector<4x512xf32>
    %17 = arith.truncf %16 : vector<4x512xf32> to vector<4x512xbf16>
    %c0_16 = arith.constant 0 : index
    %c0_17 = arith.constant 0 : index
    %c0_18 = arith.constant 0 : index
    %18 = vector.load %arg3[%c0_16, %c0_17, %c0_18] : memref<1x4x512xbf16, #tpu.memory_space<vmem>>, vector<1x4x512xbf16>
    %19 = vector.shape_cast %18 : vector<1x4x512xbf16> to vector<4x512xbf16>
    %20 = vector.shape_cast %17 : vector<4x512xbf16> to vector<1x4x512xbf16>
    tpu.vector_store %arg3[%c0_16, %c0_17, %c0_18], %20 {strides = array<i32>} : memref<1x4x512xbf16, #tpu.memory_space<vmem>>, vector<1x4x512xbf16>,
    %cst_19 = arith.constant dense<0.000000e+00> : vector<512xf32>
    %21 = vector.multi_reduction <add>, %16, %cst_19 [0] : vector<4x512xf32> to vector<512xf32>
    %22 = vector.shape_cast %21 : vector<512xf32> to vector<1x512xf32>
    %c0_20 = arith.constant 0 : index
    %c0_21 = arith.constant 0 : index
    %c0_22 = arith.constant 0 : index
    %23 = vector.load %arg4[%c0_20, %c0_21, %c0_22] : memref<1x1x512xf32, #tpu.memory_space<vmem>>, vector<1x1x512xf32>
    %24 = vector.shape_cast %23 : vector<1x1x512xf32> to vector<1x512xf32>
    %25 = vector.shape_cast %22 : vector<1x512xf32> to vector<1x1x512xf32>
    tpu.vector_store %arg4[%c0_20, %c0_21, %c0_22], %25 {strides = array<i32>} : memref<1x1x512xf32, #tpu.memory_space<vmem>>, vector<1x1x512xf32>,
    %26 = arith.mulf %16, %16 : vector<4x512xf32>
    %cst_23 = arith.constant dense<0.000000e+00> : vector<512xf32>
    %27 = vector.multi_reduction <add>, %26, %cst_23 [0] : vector<4x512xf32> to vector<512xf32>
    %28 = vector.shape_cast %27 : vector<512xf32> to vector<1x512xf32>
    %c0_24 = arith.constant 0 : index
    %c0_25 = arith.constant 0 : index
    %c0_26 = arith.constant 0 : index
    %29 = vector.load %arg5[%c0_24, %c0_25, %c0_26] : memref<1x1x512xf32, #tpu.memory_space<vmem>>, vector<1x1x512xf32>
    %30 = vector.shape_cast %29 : vector<1x1x512xf32> to vector<1x512xf32>
    %31 = vector.shape_cast %28 : vector<1x512xf32> to vector<1x1x512xf32>
    tpu.vector_store %arg5[%c0_24, %c0_25, %c0_26], %31 {strides = array<i32>} : memref<1x1x512xf32, #tpu.memory_space<vmem>>, vector<1x1x512xf32>,
    return
  }
  func.func @transform_0(%arg0: i32) -> (i32, i32, i32) {
    %c0_i32 = arith.constant 0 : i32
    %c0_i32_0 = arith.constant 0 : i32
    %c0_i32_1 = arith.constant 0 : i32
    return %arg0, %c0_i32, %c0_i32_0 : i32, i32, i32
  }
  func.func @transform_1(%arg0: i32) -> (i32, i32, i32) {
    %c0_i32 = arith.constant 0 : i32
    %c0_i32_0 = arith.constant 0 : i32
    %c0_i32_1 = arith.constant 0 : i32
    %c0_i32_2 = arith.constant 0 : i32
    return %c0_i32, %c0_i32_0, %c0_i32_1 : i32, i32, i32
  }
  func.func @transform_2(%arg0: i32) -> (i32, i32, i32) {
    %c0_i32 = arith.constant 0 : i32
    %c0_i32_0 = arith.constant 0 : i32
    %c0_i32_1 = arith.constant 0 : i32
    return %arg0, %c0_i32, %c0_i32_0 : i32, i32, i32
  }
  func.func @transform_3(%arg0: i32) -> (i32, i32, i32) {
    %c0_i32 = arith.constant 0 : i32
    %c0_i32_0 = arith.constant 0 : i32
    %c0_i32_1 = arith.constant 0 : i32
    return %arg0, %c0_i32, %c0_i32_0 : i32, i32, i32
  }
  func.func @transform_4(%arg0: i32) -> (i32, i32, i32) {
    %c0_i32 = arith.constant 0 : i32
    %c0_i32_0 = arith.constant 0 : i32
    %c0_i32_1 = arith.constant 0 : i32
    return %arg0, %c0_i32, %c0_i32_0 : i32, i32, i32
  }
}

module attributes {stable_mosaic.version = 11 : i64} {
  func.func @_head_kernel(%arg0: i32, %arg1: memref<2x4x512xbf16, #tpu.memory_space<vmem>>, %arg2: memref<512x128xf32, #tpu.memory_space<vmem>>, %arg3: memref<1x128xf32, #tpu.memory_space<vmem>>, %arg4: memref<2x128xf32, #tpu.memory_space<vmem>>) attributes {dimension_semantics = [#tpu.dimension_semantics<arbitrary>], iteration_bounds = array<i64: 1>, scalar_prefetch = 0 : i64, scratch_operands = 0 : i64, tpu.core_type = #tpu.core_type<tc>, window_params = [{pipeline_mode = #tpu.pipeline_mode<synchronous>, transform_indices = @transform_0, window_bounds = array<i64: 2, 4, 512>}, {pipeline_mode = #tpu.pipeline_mode<synchronous>, transform_indices = @transform_1, window_bounds = array<i64: 512, 128>}, {pipeline_mode = #tpu.pipeline_mode<synchronous>, transform_indices = @transform_2, window_bounds = array<i64: 1, 128>}, {pipeline_mode = #tpu.pipeline_mode<synchronous>, transform_indices = @transform_3, window_bounds = array<i64: 2, 128>}]} {
    %c0 = arith.constant 0 : index
    %c0_0 = arith.constant 0 : index
    %c0_1 = arith.constant 0 : index
    %0 = vector.load %arg1[%c0, %c0_0, %c0_1] : memref<2x4x512xbf16, #tpu.memory_space<vmem>>, vector<2x4x512xbf16>
    %1 = arith.extf %0 : vector<2x4x512xbf16> to vector<2x4x512xf32>
    %cst = arith.constant dense<0.000000e+00> : vector<2x512xf32>
    %2 = vector.multi_reduction <add>, %1, %cst [1] : vector<2x4x512xf32> to vector<2x512xf32>
    %cst_2 = arith.constant 4.000000e+00 : f32
    %3 = vector.broadcast %cst_2 : f32 to vector<2x512xf32>
    %4 = arith.divf %2, %3 : vector<2x512xf32>
    %c0_3 = arith.constant 0 : index
    %c0_4 = arith.constant 0 : index
    %5 = vector.load %arg2[%c0_3, %c0_4] : memref<512x128xf32, #tpu.memory_space<vmem>>, vector<512x128xf32>
    %cst_5 = arith.constant dense<0.000000e+00> : vector<2x128xf32>
    %6 = tpu.matmul %4, %5, %cst_5 {dimension_numbers = #tpu.dot_dimension_numbers<[1], [0], [0], [1], [0, 0, 1, 1], [], []>} : vector<2x512xf32>, vector<512x128xf32>, vector<2x128xf32> -> vector<2x128xf32>
    %c0_6 = arith.constant 0 : index
    %c0_7 = arith.constant 0 : index
    %7 = vector.load %arg3[%c0_6, %c0_7] : memref<1x128xf32, #tpu.memory_space<vmem>>, vector<1x128xf32>
    %8 = vector.broadcast %7 : vector<1x128xf32> to vector<2x128xf32>
    %9 = arith.addf %6, %8 : vector<2x128xf32>
    %c0_8 = arith.constant 0 : index
    %c0_9 = arith.constant 0 : index
    %10 = vector.load %arg4[%c0_8, %c0_9] : memref<2x128xf32, #tpu.memory_space<vmem>>, vector<2x128xf32>
    tpu.vector_store %arg4[%c0_8, %c0_9], %9 {strides = array<i32>} : memref<2x128xf32, #tpu.memory_space<vmem>>, vector<2x128xf32>,
    return
  }
  func.func @transform_0(%arg0: i32) -> (i32, i32, i32) {
    %c0_i32 = arith.constant 0 : i32
    %c0_i32_0 = arith.constant 0 : i32
    %c0_i32_1 = arith.constant 0 : i32
    %c0_i32_2 = arith.constant 0 : i32
    return %c0_i32, %c0_i32_0, %c0_i32_1 : i32, i32, i32
  }
  func.func @transform_1(%arg0: i32) -> (i32, i32) {
    %c0_i32 = arith.constant 0 : i32
    %c0_i32_0 = arith.constant 0 : i32
    %c0_i32_1 = arith.constant 0 : i32
    return %c0_i32, %c0_i32_0 : i32, i32
  }
  func.func @transform_2(%arg0: i32) -> (i32, i32) {
    %c0_i32 = arith.constant 0 : i32
    %c0_i32_0 = arith.constant 0 : i32
    %c0_i32_1 = arith.constant 0 : i32
    return %c0_i32, %c0_i32_0 : i32, i32
  }
  func.func @transform_3(%arg0: i32) -> (i32, i32) {
    %c0_i32 = arith.constant 0 : i32
    %c0_i32_0 = arith.constant 0 : i32
    %c0_i32_1 = arith.constant 0 : i32
    return %c0_i32, %c0_i32_0 : i32, i32
  }
}

</mosaic_0001>

<bundles_post_ra>
// kernel: resnet18_forward.6
= control target key start
LH: loop header
LB: loop body
LE: loop exit
PB: predicated region body
PF: predicated region fallthrough
CT: control target
= control target key end

     0   :  { %s1566_s15 = smov 0   ;;  %s1568_s16 = smov 0   ;;  %s1984_s0 = inlined_call_operand.vmem [shape: bf16[2,1024,147], index: 0, kind: input, shape index: {}]   ;;  %s1985_s1 = inlined_call_operand.vmem [shape: bf16[147,64], index: 1, kind: input, shape index: {}]   ;;  %s1986_s2 = inlined_call_operand.vmem [shape: bf16[2,1024,64], index: 2, kind: output, shape index: {0}]   ;;  %s1987_s3 = inlined_call_operand.vmem [shape: f32[8,1,64], index: 3, kind: output, shape index: {1}]   ;;  %s1988_s4 = inlined_call_operand.vmem [shape: f32[8,1,64], index: 4, kind: output, shape index: {2}]  }
   0x1   :  { %s1570_s17 = smov 0   ;;  %s1572_s18 = smov 0  }
   0x2   :  { %s1574_s19 = smov 0  }
   0x3 LB: > { %s24_s20 = sadd.s32 1, %s1529_s17  ;;  %s27_s21 = sadd.s32 1, %s1533_s18  ;;  %s1537_s19 = sphi %s1574_s19, %s15_s19   ;;  %s1533_s18 = sphi %s1572_s18, %s1992_s18   ;;  %s1529_s17 = sphi %s1570_s17, %s1991_s17   ;;  %s1525_s16 = sphi %s1568_s16, %s1990_s16   ;;  %s1521_s15 = sphi %s1566_s15, %s1989_s15  }
   0x4   : > { %p25_p0 = scmp.ge.s32.totalorder %s24_s20, 4  ;;  %p1245_p1 = scmp.ge.s32.totalorder %s1537_s19, 1 }
   0x5   : > { %p197_p2 = scmp.lt.s32.totalorder %s1537_s19, 9 }
   0x6   : > { %s1994_s20 = smov (%p25_p0, %s24_s20), 0  ;;  %s1996_s21 = smov (!%p25_p0, %s27_s21), %s1533_s18 }
   0x7   : > { %p198_p3 = pnand %p1245_p1, %p197_p2  ;;  %p29_p4 = scmp.ge.s32.totalorder %s1996_s21, 2 }
   0x8   : > { %s1246_s28 = sshll.u32 (!%p198_p3), %s1521_s15, 5  ;;  %p243_p5 = scmp.lt.s32.totalorder (!%p198_p3), %s1525_s16, 1 }
   0x9   : > { %s1998_s21 = smov (%p29_p4, %s1996_s21), 0  ;;  %201 = sbr.rel (%p198_p3) target bundleno = 358 (0x166), region = 28 }
   0xa   : > { %p245_p6 = scmp.lt.s32.totalorder (!%p198_p3), %s1246_s28, 127 }
   0xe   : > { %v1441_v0 = vld [vmem:[%s1985_s1 + $0x38] sm:$0xff]   ;;  %v1539_v1 = vmov 0   ;;  %v1442_v2 = vld [vmem:[%s1985_s1 + $0x30] sm:$0xff]   ;;  %v1443_v3 = vld [vmem:[%s1985_s1 + $0x28] sm:$0xff]   ;;  %s244_s29 = scalar_select %p243_p5, %s1525_s16, 1  ;;  %vm530_vm0 = vcmask 154624  }
   0xf   : > { %586 = vmatprep.subr.bf16.mxu0 %v1539_v1  ;;  %1379 = vmatprep.subr.bf16.mxu1 %v1539_v1  ;;  %v1444_v4 = vld [vmem:[%s1985_s1 + $0x20] sm:$0xff]   ;;  %s2000_s28 = smov (!%p245_p6, %s1246_s28), 127  ;;  %v1445_v5 = vld [vmem:[%s1985_s1 + $0x18] sm:$0xff]   ;;  %v1446_v6 = vld [vmem:[%s1985_s1 + $0x10] sm:$0xff]   ;;  %vm579_vm1 = vcmask 1040384   ;;  %vm580_vm2 = vcmask 1041408  }
  0x10   : > { %587 = vmatpush1.bf16.msra.mxu0 %v1441_v0  ;;  %1389 = vmatpush1.bf16.msra.mxu1 %v1441_v0  ;;  %s1248_s6 = sshll.u32 %s244_s29, 8  ;;  %s1251_s7 = sshll.u32 %s244_s29, 7  ;;  %v1447_v8 = vld [vmem:[%s1985_s1 + $0x8] sm:$0xff]   ;;  %v1540_v9 = vmov 65535   ;;  %v1448_v12 = vld [vmem:[%s1985_s1] sm:$0xff]   ;;  %vm875_vm3 = vcmask 519168  }
  0x11   : > { %588 = vmatprep.subr.bf16.mxu0 %v1539_v1  ;;  %1380 = vmatprep.subr.bf16.mxu1 %v1539_v1  ;;  %s1247_s10 = sshll.u32 %s2000_s28, 1  ;;  %s1626_s11 = sadd.s32 %s1251_s7, %s2000_s28  ;;  %v581_v10 = vsel %vm579_vm1, 4294967295, %v1540_v9  ;;  %v1449_v13 = vld [vmem:[%s1985_s1 + $0x48] ss:$0 sps:$4 sm:$0x33]   ;;  %v1450_v16 = vld [vmem:[%s1985_s1 + $0x40] sm:$0xff]  }
  0x12   : > { %s249_s12 = sadd.s32 %s1248_s6, %s1247_s10  ;;  %v582_v14 = vsel %vm580_vm2, %v581_v10, 0  ;;  %s1252_s8 = sshll.u32 %s1626_s11, 2  ;;  %vm908_vm4 = vcmask 523264   ;;  %vm978_vm5 = vcmask 516096  }
  0x13   : > { %s1249_s13 = sshll.u32 %s249_s12, 2  ;;  %v584_v15 = vand.u32 %v1449_v13, %v582_v14  ;;  %s1712_s12 = scalar_lea.vmem %s1986_s2, %s1252_s8 }
  0x14   : > { %589 = vmatpush1.bf16.msra.mxu0 %v1442_v2  ;;  %1390 = vmatpush1.bf16.msra.mxu1 %v1442_v2  ;;  %s1633_s23 = scalar_lea.vmem %s1984_s0, %s1249_s13  ;;  %s1253_s11 = sshll.u32 %s1525_s16, 2 }
  0x15   : > { %590 = vmatprep.subr.bf16.mxu0 %v1539_v1  ;;  %1381 = vmatprep.subr.bf16.mxu1 %v1539_v1  ;;  %v1453_v7 = vld [vmem:[%s1633_s23 + $0x4] ss:$8 sps:$4 sm:$0xff]   ;;  %v1451_v17 = vld [vmem:[%s1633_s23] ss:$8 sps:$4 sm:$0xff]   ;;  %v1454_v18 = vld [vmem:[%s1633_s23 + $0x14] ss:$8 sps:$4 sm:$0xff]   ;;  %s264_s13 = sadd.s32 %s1521_s15, %s1253_s11 }
  0x16   : > { %1297 = vmatprep.mubr.msk.bf16.mxu0 %vm530_vm0, %v1453_v7  ;;  %v1465_v11 = vld [vmem:[%s1633_s23 + $0x84] ss:$8 sps:$4 sm:$0xff]   ;;  %v1463_v19 = vld [vmem:[%s1633_s23 + $0x80] ss:$8 sps:$4 sm:$0xff]   ;;  %v1469_v20 = vld [vmem:[%s1633_s23 + $0x94] ss:$8 sps:$4 sm:$0xff]  }
  0x17   : > { %1305 = vmatprep.mubr.msk.bf16.mxu1 %vm530_vm0, %v1465_v11  ;;  %v1456_v21 = vld [vmem:[%s1633_s23 + $0x10] ss:$8 sps:$4 sm:$0xff]   ;;  %v1457_v23 = vld [vmem:[%s1633_s23 + $0x24] ss:$8 sps:$4 sm:$0xff]   ;;  %v1459_v25 = vld [vmem:[%s1633_s23 + $0x20] ss:$8 sps:$4 sm:$0xff]  }
  0x18   : > { %591 = vmatpush1.bf16.msra.mxu0 %v1443_v3  ;;  %1391 = vmatpush1.bf16.msra.mxu1 %v1443_v3  ;;  %v1471_v22 = vld [vmem:[%s1633_s23 + $0x90] ss:$8 sps:$4 sm:$0xff]   ;;  %v1475_v24 = vld [vmem:[%s1633_s23 + $0xa4] ss:$8 sps:$4 sm:$0xff]   ;;  %v1477_v26 = vld [vmem:[%s1633_s23 + $0xa0] ss:$8 sps:$4 sm:$0xff]  }
  0x19   : > { %592 = vmatprep.subr.bf16.mxu0 %v1539_v1  ;;  %1382 = vmatprep.subr.bf16.mxu1 %v1539_v1  ;;  %v1460_v27 = vld [vmem:[%s1633_s23 + $0x34] ss:$8 sps:$4 sm:$0xff]   ;;  %v1462_v29 = vld [vmem:[%s1633_s23 + $0x30] ss:$8 sps:$4 sm:$0xff]   ;;  %v1466_v31 = vld [vmem:[%s1633_s23 + $0x44] ss:$8 sps:$4 sm:$0xff]  }
  0x1a   : > { %v1481_v28 = vld [vmem:[%s1633_s23 + $0xb4] ss:$8 sps:$4 sm:$0xff]   ;;  %v1483_v30 = vld [vmem:[%s1633_s23 + $0xb0] ss:$8 sps:$4 sm:$0xff]   ;;  %v1487_v32 = vld [vmem:[%s1633_s23 + $0xc4] ss:$8 sps:$4 sm:$0xff]  }
  0x1b   : > { %v1468_v33 = vld [vmem:[%s1633_s23 + $0x40] ss:$8 sps:$4 sm:$0xff]   ;;  %v1472_v35 = vld [vmem:[%s1633_s23 + $0x54] ss:$8 sps:$4 sm:$0xff]   ;;  %v1474_v37 = vld [vmem:[%s1633_s23 + $0x50] ss:$8 sps:$4 sm:$0xff]  }
  0x1c   : > { %593 = vmatpush1.bf16.msra.mxu0 %v1444_v4  ;;  %1392 = vmatpush1.bf16.msra.mxu1 %v1444_v4  ;;  %v1489_v34 = vld [vmem:[%s1633_s23 + $0xc0] ss:$8 sps:$4 sm:$0xff]   ;;  %v1490_v36 = vld [vmem:[%s1633_s23 + $0xd4] ss:$8 sps:$4 sm:$0xff]   ;;  %v1492_v38 = vld [vmem:[%s1633_s23 + $0xd0] ss:$8 sps:$4 sm:$0xff]  }
  0x1d   : > { %594 = vmatprep.subr.bf16.mxu0 %v1539_v1  ;;  %1383 = vmatprep.subr.bf16.mxu1 %v1539_v1  ;;  %v1478_v39 = vld [vmem:[%s1633_s23 + $0x64] ss:$8 sps:$4 sm:$0xff]   ;;  %v1480_v41 = vld [vmem:[%s1633_s23 + $0x60] ss:$8 sps:$4 sm:$0xff]   ;;  %v1484_v43 = vld [vmem:[%s1633_s23 + $0x74] ss:$8 sps:$4 sm:$0xff]  }
  0x1e   : > { %v1493_v40 = vld [vmem:[%s1633_s23 + $0xe4] ss:$8 sps:$4 sm:$0xff]   ;;  %v1495_v42 = vld [vmem:[%s1633_s23 + $0xe0] ss:$8 sps:$4 sm:$0xff]   ;;  %v1496_v44 = vld [vmem:[%s1633_s23 + $0xf4] ss:$8 sps:$4 sm:$0xff]  }
  0x1f   : > { %v1486_v45 = vld [vmem:[%s1633_s23 + $0x70] ss:$8 sps:$4 sm:$0xff]   ;;  %p265_p7 = scmp.lt.s32.totalorder %s264_s13, 7 }
  0x20   : > { %595 = vmatpush1.bf16.msra.mxu0 %v1445_v5  ;;  %1393 = vmatpush1.bf16.msra.mxu1 %v1445_v5  ;;  %v1498_v46 = vld [vmem:[%s1633_s23 + $0xf0] ss:$8 sps:$4 sm:$0xff]  }
  0x21   : > { %596 = vmatprep.subr.bf16.mxu0 %v1539_v1  ;;  %1384 = vmatprep.subr.bf16.mxu1 %v1539_v1  ;;  %s2002_s13 = smov (!%p265_p7, %s264_s13), 7 }
  0x22   : > { %s267_s22 = scalar_lea.vmem %s1987_s3, %s2002_s13  ;;  %s274_s24 = scalar_lea.vmem %s1988_s4, %s2002_s13 }
  0x24   : > { %597 = vmatpush1.bf16.msra.mxu0 %v1446_v6  ;;  %1394 = vmatpush1.bf16.msra.mxu1 %v1446_v6 }
  0x25   : > { %598 = vmatprep.subr.bf16.mxu0 %v1539_v1  ;;  %1385 = vmatprep.subr.bf16.mxu1 %v1539_v1 }
  0x28   : > { %599 = vmatpush1.bf16.msra.mxu0 %v1447_v8  ;;  %1395 = vmatpush1.bf16.msra.mxu1 %v1447_v8 }
  0x29   : > { %600 = vmatprep.subr.bf16.mxu0 %v1539_v1  ;;  %1386 = vmatprep.subr.bf16.mxu1 %v1539_v1 }
  0x2c   : > { %601 = vmatpush1.bf16.msra.mxu0 %v1448_v12  ;;  %1396 = vmatpush1.bf16.msra.mxu1 %v1448_v12 }
  0x2d   : > { %614 = vmatprep.subr.bf16.mxu0 %v1539_v1  ;;  %1387 = vmatprep.subr.bf16.mxu1 %v1539_v1 }
  0x30   : > { %615 = vmatpush2.bf16.msra.mxu0 %v584_v15  ;;  %1397 = vmatpush2.bf16.msra.mxu1 %v584_v15 }
  0x31   : > { %616 = vmatprep.subr.bf16.mxu0 %v1539_v1  ;;  %1388 = vmatprep.subr.bf16.mxu1 %v1539_v1 }
  0x34   : > { %617 = vmatpush2.bf16.msra.mxu0 %v1450_v16  ;;  %1398 = vmatpush2.bf16.msra.mxu1 %v1450_v16 }
  0x37   : > { %619 = vmatmul.mubr.bf16.vlgmr.msra.gmra.mxu0 %v1451_v17  ;;  %683 = vmatmul.mubr.bf16.vlgmr.msra.gmra.mxu1 %v1463_v19 }
  0x38   : > { %1298 = vmatprep.mubr.msk.bf16.mxu0 %vm530_vm0, %v1454_v18  ;;  %1306 = vmatprep.mubr.msk.bf16.mxu1 %vm530_vm0, %v1469_v20 }
  0x3f   : > { %627 = vmatmul.mubr.bf16.gmra.mxu0 %v1456_v21  ;;  %691 = vmatmul.mubr.bf16.gmra.mxu1 %v1471_v22 }
  0x40   : > { %1299 = vmatprep.mubr.msk.bf16.mxu0 %vm530_vm0, %v1457_v23  ;;  %1307 = vmatprep.mubr.msk.bf16.mxu1 %vm530_vm0, %v1475_v24 }
  0x47   : > { %635 = vmatmul.mubr.bf16.gmra.mxu0 %v1459_v25  ;;  %699 = vmatmul.mubr.bf16.gmra.mxu1 %v1477_v26 }
  0x48   : > { %1300 = vmatprep.mubr.msk.bf16.mxu0 %vm530_vm0, %v1460_v27  ;;  %1308 = vmatprep.mubr.msk.bf16.mxu1 %vm530_vm0, %v1481_v28 }
  0x4f   : > { %643 = vmatmul.mubr.bf16.gmra.mxu0 %v1462_v29  ;;  %707 = vmatmul.mubr.bf16.gmra.mxu1 %v1483_v30 }
  0x50   : > { %1301 = vmatprep.mubr.msk.bf16.mxu0 %vm530_vm0, %v1466_v31  ;;  %1309 = vmatprep.mubr.msk.bf16.mxu1 %vm530_vm0, %v1487_v32 }
  0x57   : > { %651 = vmatmul.mubr.bf16.gmra.mxu0 %v1468_v33  ;;  %715 = vmatmul.mubr.bf16.gmra.mxu1 %v1489_v34 }
  0x58   : > { %1302 = vmatprep.mubr.msk.bf16.mxu0 %vm530_vm0, %v1472_v35  ;;  %1310 = vmatprep.mubr.msk.bf16.mxu1 %vm530_vm0, %v1490_v36 }
  0x5f   : > { %659 = vmatmul.mubr.bf16.gmra.mxu0 %v1474_v37  ;;  %723 = vmatmul.mubr.bf16.gmra.mxu1 %v1492_v38 }
  0x60   : > { %1303 = vmatprep.mubr.msk.bf16.mxu0 %vm530_vm0, %v1478_v39  ;;  %1311 = vmatprep.mubr.msk.bf16.mxu1 %vm530_vm0, %v1493_v40 }
  0x67   : > { %667 = vmatmul.mubr.bf16.gmra.mxu0 %v1480_v41  ;;  %731 = vmatmul.mubr.bf16.gmra.mxu1 %v1495_v42 }
  0x68   : > { %1304 = vmatprep.mubr.msk.bf16.mxu0 %vm530_vm0, %v1484_v43  ;;  %1312 = vmatprep.mubr.msk.bf16.mxu1 %vm530_vm0, %v1496_v44 }
  0x6f   : > { %675 = vmatmul.mubr.bf16.gmra.mxu0 %v1486_v45  ;;  %739 = vmatmul.mubr.bf16.gmra.mxu1 %v1498_v46 }
  0xf7   : > { %v1714_v47 = vpop.f32.mrf.mxu0  ;;  %v1716_v48 = vpop.f32.mrf.mxu1 }
  0xf8   : > { %v1347_v49 = vpack.c.bf16 %v1714_v47, %v1714_v47  ;;  %v1363_v50 = vpack.c.bf16 %v1716_v48, %v1716_v48  ;;  %v980_v32 = vmul.f32 %v1714_v47, %v1714_v47  ;;  %v909_v35 = vsel %vm908_vm4, %v1714_v47, 0.0 }
  0xf9   : > { %v622_v51 = vpop.f32.mrf.mxu0  ;;  %v686_v52 = vpop.f32.mrf.mxu1 }
  0xfa   : > { %876 = vst.msk [vmem:[%s1712_s12] sm:$0xf] %vm875_vm3, %v1347_v49  ;;  %892 = vst.msk [vmem:[%s1712_s12 + $0x40] sm:$0xf] %vm875_vm3, %v1363_v50  ;;  %v1012_v46 = vsel %vm908_vm4, %v980_v32, 0.0 }
  0xfb   : > { %v623_v53 = vpop.f32.mrf.mxu0  ;;  %v1726_v54 = vpop.f32.mrf.mxu1 }
  0xfc   : > { %v1348_v55 = vpack.c.bf16 %v623_v53, %v623_v53  ;;  %v1364_v56 = vpack.c.bf16 %v1726_v54, %v1726_v54  ;;  %v981_v27 = vmul.f32 %v623_v53, %v623_v53  ;;  %v910_v33 = vsel %vm908_vm4, %v623_v53, 0.0 }
  0xfd   : > { %v625_v57 = vpop.f32.mrf.mxu0  ;;  %v689_v58 = vpop.f32.mrf.mxu1  ;;  %v911_v43 = vadd.f32 %v910_v33, %v909_v35 }
  0xfe   : > { %877 = vst.msk [vmem:[%s1712_s12 + $0x4] sm:$0xf] %vm875_vm3, %v1348_v55  ;;  %893 = vst.msk [vmem:[%s1712_s12 + $0x44] sm:$0xf] %vm875_vm3, %v1364_v56  ;;  %v1013_v39 = vsel %vm908_vm4, %v981_v27, 0.0 }
  0xff   : > { %v628_v59 = vpop.f32.mrf.mxu0  ;;  %v1734_v60 = vpop.f32.mrf.mxu1  ;;  %v1014_v51 = vadd.f32 %v1013_v39, %v1012_v46 }
 0x100   : > { %v1349_v61 = vpack.c.bf16 %v628_v59, %v628_v59  ;;  %v1365_v62 = vpack.c.bf16 %v1734_v60, %v1734_v60  ;;  %v982_v34 = vmul.f32 %v628_v59, %v628_v59  ;;  %v912_v40 = vsel %vm908_vm4, %v628_v59, 0.0 }
 0x101   : > { %v630_v63 = vpop.f32.mrf.mxu0  ;;  %v694_v0 = vpop.f32.mrf.mxu1  ;;  %v913_v52 = vadd.f32 %v912_v40, %v911_v43 }
 0x102   : > { %878 = vst.msk [vmem:[%s1712_s12 + $0x8] sm:$0xf] %vm875_vm3, %v1349_v61  ;;  %894 = vst.msk [vmem:[%s1712_s12 + $0x48] sm:$0xf] %vm875_vm3, %v1365_v62  ;;  %v1015_v47 = vsel %vm908_vm4, %v982_v34, 0.0 }
 0x103   : > { %v631_v1 = vpop.f32.mrf.mxu0  ;;  %v1742_v2 = vpop.f32.mrf.mxu1  ;;  %v1016_v62 = vadd.f32 %v1015_v47, %v1014_v51 }
 0x104   : > { %v1350_v3 = vpack.c.bf16 %v631_v1, %v631_v1  ;;  %v1366_v4 = vpack.c.bf16 %v1742_v2, %v1742_v2  ;;  %v983_v36 = vmul.f32 %v631_v1, %v631_v1  ;;  %v914_v49 = vsel %vm908_vm4, %v631_v1, 0.0 }
 0x105   : > { %v633_v5 = vpop.f32.mrf.mxu0  ;;  %v697_v6 = vpop.f32.mrf.mxu1  ;;  %v915_v63 = vadd.f32 %v914_v49, %v913_v52 }
 0x106   : > { %879 = vst.msk [vmem:[%s1712_s12 + $0xc] sm:$0xf] %vm875_vm3, %v1350_v3  ;;  %895 = vst.msk [vmem:[%s1712_s12 + $0x4c] sm:$0xf] %vm875_vm3, %v1366_v4  ;;  %v1017_v53 = vsel %vm908_vm4, %v983_v36, 0.0 }
 0x107   : > { %v636_v7 = vpop.f32.mrf.mxu0  ;;  %v1750_v8 = vpop.f32.mrf.mxu1  ;;  %v1018_v6 = vadd.f32 %v1017_v53, %v1016_v62 }
 0x108   : > { %v1351_v9 = vpack.c.bf16 %v636_v7, %v636_v7  ;;  %v1367_v10 = vpack.c.bf16 %v1750_v8, %v1750_v8  ;;  %v984_v50 = vmul.f32 %v636_v7, %v636_v7  ;;  %v916_v57 = vsel %vm908_vm4, %v636_v7, 0.0 }
 0x109   : > { %v638_v11 = vpop.f32.mrf.mxu0  ;;  %v702_v12 = vpop.f32.mrf.mxu1  ;;  %v917_v7 = vadd.f32 %v916_v57, %v915_v63 }
 0x10a   : > { %880 = vst.msk [vmem:[%s1712_s12 + $0x10] sm:$0xf] %vm875_vm3, %v1351_v9  ;;  %896 = vst.msk [vmem:[%s1712_s12 + $0x50] sm:$0xf] %vm875_vm3, %v1367_v10  ;;  %v1019_v3 = vsel %vm908_vm4, %v984_v50, 0.0 }
 0x10b   : > { %v639_v13 = vpop.f32.mrf.mxu0  ;;  %v1758_v14 = vpop.f32.mrf.mxu1 }
 0x10c   : > { %v1352_v15 = vpack.c.bf16 %v639_v13, %v639_v13  ;;  %v1368_v16 = vpack.c.bf16 %v1758_v14, %v1758_v14  ;;  %v985_v58 = vmul.f32 %v639_v13, %v639_v13  ;;  %v918_v4 = vsel %vm908_vm4, %v639_v13, 0.0 }
 0x10d   : > { %v641_v17 = vpop.f32.mrf.mxu0  ;;  %v705_v18 = vpop.f32.mrf.mxu1 }
 0x10e   : > { %881 = vst.msk [vmem:[%s1712_s12 + $0x14] sm:$0xf] %vm875_vm3, %v1352_v15  ;;  %897 = vst.msk [vmem:[%s1712_s12 + $0x54] sm:$0xf] %vm875_vm3, %v1368_v16  ;;  %v1021_v12 = vsel %vm908_vm4, %v985_v58, 0.0  ;;  %v1020_v17 = vadd.f32 %v1019_v3, %v1018_v6  ;;  %v919_v18 = vadd.f32 %v918_v4, %v917_v7 }
 0x10f   : > { %v644_v19 = vpop.f32.mrf.mxu0  ;;  %v1766_v20 = vpop.f32.mrf.mxu1 }
 0x110   : > { %v1353_v21 = vpack.c.bf16 %v644_v19, %v644_v19  ;;  %v1369_v22 = vpack.c.bf16 %v1766_v20, %v1766_v20  ;;  %v986_v5 = vmul.f32 %v644_v19, %v644_v19  ;;  %v920_v15 = vsel %vm908_vm4, %v644_v19, 0.0 }
 0x111   : > { %v646_v23 = vpop.f32.mrf.mxu0  ;;  %v710_v24 = vpop.f32.mrf.mxu1  ;;  %v921_v19 = vadd.f32 %v920_v15, %v919_v18 }
 0x112   : > { %882 = vst.msk [vmem:[%s1712_s12 + $0x18] sm:$0xf] %vm875_vm3, %v1353_v21  ;;  %898 = vst.msk [vmem:[%s1712_s12 + $0x58] sm:$0xf] %vm875_vm3, %v1369_v22  ;;  %v1023_v23 = vsel %vm908_vm4, %v986_v5, 0.0 }
 0x113   : > { %v647_v25 = vpop.f32.mrf.mxu0  ;;  %v1774_v26 = vpop.f32.mrf.mxu1 }
 0x114   : > { %v1354_v28 = vpack.c.bf16 %v647_v25, %v647_v25  ;;  %v1370_v29 = vpack.c.bf16 %v1774_v26, %v1774_v26  ;;  %v987_v9 = vmul.f32 %v647_v25, %v647_v25  ;;  %v922_v24 = vsel %vm908_vm4, %v647_v25, 0.0 }
 0x115   : > { %v649_v30 = vpop.f32.mrf.mxu0  ;;  %v713_v31 = vpop.f32.mrf.mxu1  ;;  %v923_v36 = vadd.f32 %v922_v24, %v921_v19 }
 0x116   : > { %883 = vst.msk [vmem:[%s1712_s12 + $0x1c] sm:$0xf] %vm875_vm3, %v1354_v28  ;;  %899 = vst.msk [vmem:[%s1712_s12 + $0x5c] sm:$0xf] %vm875_vm3, %v1370_v29  ;;  %v1022_v28 = vadd.f32 %v1021_v12, %v1020_v17  ;;  %v1025_v29 = vsel %vm908_vm4, %v987_v9, 0.0 }
 0x117   : > { %v652_v37 = vpop.f32.mrf.mxu0  ;;  %v1787_v38 = vpop.f32.mrf.mxu1 }
 0x118   : > { %v1355_v41 = vpack.c.bf16 %v652_v37, %v652_v37  ;;  %v1371_v42 = vpack.c.bf16 %v1787_v38, %v1787_v38  ;;  %v988_v27 = vmul.f32 %v652_v37, %v652_v37  ;;  %v924_v32 = vsel %vm908_vm4, %v652_v37, 0.0 }
 0x119   : > { %v654_v44 = vpop.f32.mrf.mxu0  ;;  %v718_v45 = vpop.f32.mrf.mxu1  ;;  %v1024_v35 = vadd.f32 %v1023_v23, %v1022_v28 }
 0x11a   : > { %884 = vst.msk [vmem:[%s1712_s12 + $0x20] sm:$0xf] %vm875_vm3, %v1355_v41  ;;  %900 = vst.msk [vmem:[%s1712_s12 + $0x60] sm:$0xf] %vm875_vm3, %v1371_v42  ;;  %v1027_v41 = vsel %vm908_vm4, %v988_v27, 0.0  ;;  %v925_v44 = vadd.f32 %v924_v32, %v923_v36 }
 0x11b   : > { %v655_v55 = vpop.f32.mrf.mxu0  ;;  %v1801_v56 = vpop.f32.mrf.mxu1  ;;  %v1026_v37 = vadd.f32 %v1025_v29, %v1024_v35  ;;  %v996_v35 = vmul.f32 %v1716_v48, %v1716_v48 }
 0x11c   : > { %v1356_v59 = vpack.c.bf16 %v655_v55, %v655_v55  ;;  %v1372_v61 = vpack.c.bf16 %v1801_v56, %v1801_v56  ;;  %v989_v33 = vmul.f32 %v655_v55, %v655_v55  ;;  %v926_v42 = vsel %vm908_vm4, %v655_v55, 0.0 }
 0x11d   : > { %v657_v0 = vpop.f32.mrf.mxu0  ;;  %v721_v1 = vpop.f32.mrf.mxu1  ;;  %v1028_v53 = vadd.f32 %v1027_v41, %v1026_v37  ;;  %v927_v55 = vadd.f32 %v926_v42, %v925_v44 }
 0x11e   : > { %885 = vst.msk [vmem:[%s1712_s12 + $0x24] sm:$0xf] %vm875_vm3, %v1356_v59  ;;  %901 = vst.msk [vmem:[%s1712_s12 + $0x64] sm:$0xf] %vm875_vm3, %v1372_v61  ;;  %v1029_v49 = vsel %vm908_vm4, %v989_v33, 0.0 }
 0x11f   : > { %v660_v10 = vpop.f32.mrf.mxu0  ;;  %v1812_v11 = vpop.f32.mrf.mxu1  ;;  %v1030_v63 = vadd.f32 %v1029_v49, %v1028_v53 }
 0x120   : > { %v1357_v16 = vpack.c.bf16 %v660_v10, %v660_v10  ;;  %v1373_v13 = vpack.c.bf16 %v1812_v11, %v1812_v11  ;;  %v990_v43 = vmul.f32 %v660_v10, %v660_v10  ;;  %v928_v50 = vsel %vm908_vm4, %v660_v10, 0.0 }
 0x121   : > { %v662_v21 = vpop.f32.mrf.mxu0  ;;  %v726_v22 = vpop.f32.mrf.mxu1  ;;  %v929_v0 = vadd.f32 %v928_v50, %v927_v55 }
 0x122   : > { %886 = vst.msk [vmem:[%s1712_s12 + $0x28] sm:$0xf] %vm875_vm3, %v1357_v16  ;;  %902 = vst.msk [vmem:[%s1712_s12 + $0x68] sm:$0xf] %vm875_vm3, %v1373_v13  ;;  %v1031_v59 = vsel %vm908_vm4, %v990_v43, 0.0 }
 0x123   : > { %v663_v30 = vpop.f32.mrf.mxu0  ;;  %v1825_v31 = vpop.f32.mrf.mxu1  ;;  %v1032_v10 = vadd.f32 %v1031_v59, %v1030_v63  ;;  %v942_v59 = vsel %vm908_vm4, %v1726_v54, 0.0 }
 0x124   : > { %v1358_v34 = vpack.c.bf16 %v663_v30, %v663_v30  ;;  %v1374_v25 = vpack.c.bf16 %v1825_v31, %v1825_v31  ;;  %v991_v45 = vmul.f32 %v663_v30, %v663_v30  ;;  %v930_v61 = vsel %vm908_vm4, %v663_v30, 0.0 }
 0x125   : > { %v665_v39 = vpop.f32.mrf.mxu0  ;;  %v729_v40 = vpop.f32.mrf.mxu1  ;;  %v931_v12 = vadd.f32 %v930_v61, %v929_v0  ;;  %v998_v61 = vmul.f32 %v1734_v60, %v1734_v60  ;;  %v944_v0 = vsel %vm908_vm4, %v1734_v60, 0.0  ;;  %v948_v60 = vsel %vm908_vm4, %v1750_v8, 0.0 }
 0x126   : > { %887 = vst.msk [vmem:[%s1712_s12 + $0x2c] sm:$0xf] %vm875_vm3, %v1358_v34  ;;  %903 = vst.msk [vmem:[%s1712_s12 + $0x6c] sm:$0xf] %vm875_vm3, %v1374_v25  ;;  %v1033_v1 = vsel %vm908_vm4, %v991_v45, 0.0 }
 0x127   : > { %v668_v46 = vpop.f32.mrf.mxu0  ;;  %v1836_v47 = vpop.f32.mrf.mxu1  ;;  %v1034_v18 = vadd.f32 %v1033_v1, %v1032_v10  ;;  %v999_v1 = vmul.f32 %v1742_v2, %v1742_v2 }
 0x128   : > { %v1359_v51 = vpack.c.bf16 %v668_v46, %v668_v46  ;;  %v1375_v52 = vpack.c.bf16 %v1836_v47, %v1836_v47  ;;  %v992_v62 = vmul.f32 %v668_v46, %v668_v46  ;;  %v932_v5 = vsel %vm908_vm4, %v668_v46, 0.0 }
 0x129   : > { %v670_v57 = vpop.f32.mrf.mxu0  ;;  %v734_v58 = vpop.f32.mrf.mxu1  ;;  %v933_v21 = vadd.f32 %v932_v5, %v931_v12  ;;  %v1049_v12 = vsel %vm908_vm4, %v999_v1, 0.0 }
 0x12a   : > { %888 = vst.msk [vmem:[%s1712_s12 + $0x30] sm:$0xf] %vm875_vm3, %v1359_v51  ;;  %904 = vst.msk [vmem:[%s1712_s12 + $0x70] sm:$0xf] %vm875_vm3, %v1375_v52  ;;  %v1035_v13 = vsel %vm908_vm4, %v992_v62, 0.0  ;;  %v940_v51 = vsel %vm908_vm4, %v1716_v48, 0.0  ;;  %v997_v52 = vmul.f32 %v1726_v54, %v1726_v54 }
 0x12b   : > { %v671_v3 = vpop.f32.mrf.mxu0  ;;  %v1849_v4 = vpop.f32.mrf.mxu1  ;;  %v1036_v30 = vadd.f32 %v1035_v13, %v1034_v18  ;;  %v1043_v58 = vsel %vm908_vm4, %v996_v35, 0.0  ;;  %v946_v54 = vsel %vm908_vm4, %v1742_v2, 0.0  ;;  %v950_v2 = vsel %vm908_vm4, %v1758_v14, 0.0 }
 0x12c   : > { %v1360_v6 = vpack.c.bf16 %v671_v3, %v671_v3  ;;  %v993_v7 = vmul.f32 %v671_v3, %v671_v3  ;;  %v1376_v9 = vpack.c.bf16 %v1849_v4, %v1849_v4  ;;  %v934_v17 = vsel %vm908_vm4, %v671_v3, 0.0 }
 0x12d   : > { %v673_v15 = vpop.f32.mrf.mxu0  ;;  %v737_v16 = vpop.f32.mrf.mxu1  ;;  %v935_v32 = vadd.f32 %v934_v17, %v933_v21  ;;  %v1045_v63 = vsel %vm908_vm4, %v997_v52, 0.0  ;;  %v1002_v18 = vmul.f32 %v1766_v20, %v1766_v20 }
 0x12e   : > { %889 = vst.msk [vmem:[%s1712_s12 + $0x34] sm:$0xf] %vm875_vm3, %v1360_v6  ;;  %905 = vst.msk [vmem:[%s1712_s12 + $0x74] sm:$0xf] %vm875_vm3, %v1376_v9  ;;  %v1037_v22 = vsel %vm908_vm4, %v993_v7, 0.0  ;;  %v1047_v6 = vsel %vm908_vm4, %v998_v61, 0.0  ;;  %v1000_v7 = vmul.f32 %v1750_v8, %v1750_v8  ;;  %v1001_v15 = vmul.f32 %v1758_v14, %v1758_v14 }
 0x12f   : > { %v676_v23 = vpop.f32.mrf.mxu0  ;;  %v1861_v24 = vpop.f32.mrf.mxu1  ;;  %v1038_v36 = vadd.f32 %v1037_v22, %v1036_v30  ;;  %v952_v8 = vsel %vm908_vm4, %v1766_v20, 0.0  ;;  %v954_v14 = vsel %vm908_vm4, %v1774_v26, 0.0  ;;  %v1004_v30 = vmul.f32 %v1787_v38, %v1787_v38 }
 0x130   : > { %v1361_v27 = vpack.c.bf16 %v676_v23, %v676_v23  ;;  %v936_v28 = vsel %vm908_vm4, %v676_v23, 0.0  ;;  %v994_v19 = vmul.f32 %v676_v23, %v676_v23  ;;  %v1377_v29 = vpack.c.bf16 %v1861_v24, %v1861_v24 }
 0x131   : > { %v678_v33 = vpop.f32.mrf.mxu0  ;;  %v742_v34 = vpop.f32.mrf.mxu1  ;;  %v937_v39 = vadd.f32 %v936_v28, %v935_v32  ;;  %v1051_v17 = vsel %vm908_vm4, %v1000_v7, 0.0  ;;  %v1053_v23 = vsel %vm908_vm4, %v1001_v15, 0.0  ;;  %v956_v20 = vsel %vm908_vm4, %v1787_v38, 0.0 }
 0x132   : > { %890 = vst.msk [vmem:[%s1712_s12 + $0x38] sm:$0xf] %vm875_vm3, %v1361_v27  ;;  %v1039_v25 = vsel %vm908_vm4, %v994_v19, 0.0  ;;  %906 = vst.msk [vmem:[%s1712_s12 + $0x78] sm:$0xf] %vm875_vm3, %v1377_v29  ;;  %v1003_v27 = vmul.f32 %v1774_v26, %v1774_v26  ;;  %v1055_v29 = vsel %vm908_vm4, %v1002_v18, 0.0  ;;  %v1010_v61 = vmul.f32 %v1861_v24, %v1861_v24 }
 0x133   : > { %v679_v40 = vpop.f32.mrf.mxu0  ;;  %v1873_v41 = vpop.f32.mrf.mxu1  ;;  %v1040_v45 = vadd.f32 %v1039_v25, %v1038_v36  ;;  %v1005_v25 = vmul.f32 %v1801_v56, %v1801_v56  ;;  %v958_v26 = vsel %vm908_vm4, %v1801_v56, 0.0  ;;  %v960_v38 = vsel %vm908_vm4, %v1812_v11, 0.0 }
 0x134   : > { %v1362_v42 = vpack.c.bf16 %v679_v40, %v679_v40  ;;  %v938_v43 = vsel %vm908_vm4, %v679_v40, 0.0  ;;  %v995_v37 = vmul.f32 %v679_v40, %v679_v40  ;;  %v1378_v44 = vpack.c.bf16 %v1873_v41, %v1873_v41 }
 0x135   : > { %v939_v46 = vadd.f32 %v938_v43, %v937_v39  ;;  %v681_v49 = vpop.f32.mrf.mxu0  ;;  %v745_v50 = vpop.f32.mrf.mxu1  ;;  %v1057_v34 = vsel %vm908_vm4, %v1003_v27, 0.0  ;;  %v1059_v39 = vsel %vm908_vm4, %v1004_v30, 0.0  ;;  %v1006_v40 = vmul.f32 %v1812_v11, %v1812_v11 }
 0x136   : > { %891 = vst.msk [vmem:[%s1712_s12 + $0x3c] sm:$0xf] %vm875_vm3, %v1362_v42  ;;  %v1041_v53 = vsel %vm908_vm4, %v995_v37, 0.0  ;;  %907 = vst.msk [vmem:[%s1712_s12 + $0x7c] sm:$0xf] %vm875_vm3, %v1378_v44  ;;  %v1061_v37 = vsel %vm908_vm4, %v1005_v25, 0.0  ;;  %v1007_v44 = vmul.f32 %v1825_v31, %v1825_v31  ;;  %v1008_v50 = vmul.f32 %v1836_v47, %v1836_v47 }
 0x137   : > { %v941_v55 = vadd.f32 %v940_v51, %v939_v46  ;;  %v1042_v57 = vadd.f32 %v1041_v53, %v1040_v45  ;;  %v1063_v49 = vsel %vm908_vm4, %v1006_v40, 0.0  ;;  %v962_v56 = vsel %vm908_vm4, %v1825_v31, 0.0 }
 0x138   : > { %v1065_v53 = vsel %vm908_vm4, %v1007_v44, 0.0  ;;  %v964_v11 = vsel %vm908_vm4, %v1836_v47, 0.0  ;;  %v966_v31 = vsel %vm908_vm4, %v1849_v4, 0.0  ;;  %v968_v47 = vsel %vm908_vm4, %v1861_v24, 0.0 }
 0x139   : > { %v943_v48 = vadd.f32 %v942_v59, %v941_v55  ;;  %v1044_v62 = vadd.f32 %v1043_v58, %v1042_v57  ;;  %v1009_v55 = vmul.f32 %v1849_v4, %v1849_v4  ;;  %v1067_v59 = vsel %vm908_vm4, %v1008_v50, 0.0 }
 0x13a   : > { %v970_v4 = vsel %vm908_vm4, %v1873_v41, 0.0 }
 0x13b   : > { %v945_v3 = vadd.f32 %v944_v0, %v943_v48  ;;  %v1046_v5 = vadd.f32 %v1045_v63, %v1044_v62  ;;  %v1069_v63 = vsel %vm908_vm4, %v1009_v55, 0.0  ;;  %v1011_v0 = vmul.f32 %v1873_v41, %v1873_v41 }
 0x13d   : > { %v947_v9 = vadd.f32 %v946_v54, %v945_v3  ;;  %v1048_v10 = vadd.f32 %v1047_v6, %v1046_v5  ;;  %v1071_v5 = vsel %vm908_vm4, %v1010_v61, 0.0  ;;  %v1073_v7 = vsel %vm908_vm4, %v1011_v0, 0.0 }
 0x13f   : > { %v1050_v16 = vadd.f32 %v1049_v12, %v1048_v10  ;;  %v949_v13 = vadd.f32 %v948_v60, %v947_v9 }
 0x141   : > { %v951_v21 = vadd.f32 %v950_v2, %v949_v13  ;;  %v1052_v22 = vadd.f32 %v1051_v17, %v1050_v16 }
 0x143   : > { %v953_v28 = vadd.f32 %v952_v8, %v951_v21  ;;  %v1054_v19 = vadd.f32 %v1053_v23, %v1052_v22 }
 0x145   : > { %v955_v32 = vadd.f32 %v954_v14, %v953_v28  ;;  %v1056_v33 = vadd.f32 %v1055_v29, %v1054_v19 }
 0x147   : > { %v957_v35 = vadd.f32 %v956_v20, %v955_v32  ;;  %v1058_v36 = vadd.f32 %v1057_v34, %v1056_v33 }
 0x149   : > { %v959_v42 = vadd.f32 %v958_v26, %v957_v35  ;;  %v1060_v43 = vadd.f32 %v1059_v39, %v1058_v36 }
 0x14b   : > { %v1062_v45 = vadd.f32 %v1061_v37, %v1060_v43  ;;  %v961_v46 = vadd.f32 %v960_v38, %v959_v42 }
 0x14d   : > { %v1064_v51 = vadd.f32 %v1063_v49, %v1062_v45  ;;  %v963_v52 = vadd.f32 %v962_v56, %v961_v46 }
 0x14f   : > { %v1066_v57 = vadd.f32 %v1065_v53, %v1064_v51  ;;  %v965_v58 = vadd.f32 %v964_v11, %v963_v52 }
 0x151   : > { %v1068_v48 = vadd.f32 %v1067_v59, %v1066_v57  ;;  %v967_v62 = vadd.f32 %v966_v31, %v965_v58 }
 0x153   : > { %v1070_v1 = vadd.f32 %v1069_v63, %v1068_v48  ;;  %v969_v3 = vadd.f32 %v968_v47, %v967_v62 }
 0x155   : > { %v1072_v6 = vadd.f32 %v1071_v5, %v1070_v1  ;;  %v971_v54 = vadd.f32 %v970_v4, %v969_v3 }
 0x157   : > { %v972_v9 = vrot.slane %v971_v54, 4  ;;  %v1074_v10 = vadd.f32 %v1073_v7, %v1072_v6 }
 0x159   : > { %v973_v24 = vadd.f32 %v972_v9, %v971_v54  ;;  %v1075_v12 = vrot.slane %v1074_v10, 4 }
 0x15b   : > { %v974_v60 = vrot.slane %v973_v24, 2  ;;  %v1076_v15 = vadd.f32 %v1075_v12, %v1074_v10 }
 0x15d   : > { %v975_v16 = vadd.f32 %v974_v60, %v973_v24  ;;  %v1077_v13 = vrot.slane %v1076_v15, 2 }
 0x15f   : > { %v976_v17 = vrot.slane %v975_v16, 1  ;;  %v1078_v2 = vadd.f32 %v1077_v13, %v1076_v15 }
 0x161   : > { %v977_v41 = vadd.f32 %v976_v17, %v975_v16  ;;  %v1079_v18 = vrot.slane %v1078_v2, 1 }
 0x163   : > { %979 = vst.msk [vmem:[%s267_s22] sm:$0x1] %vm978_vm5, %v977_v41  ;;  %v1080_v21 = vadd.f32 %v1079_v18, %v1078_v2 }
 0x165   : > { %1081 = vst.msk [vmem:[%s274_s24] sm:$0x1] %vm978_vm5, %v1080_v21 }
 0x166 PF: > { %s15_s19 = sadd.s32 1, %s1537_s19   ;;  %s1989_s15 = smov %s1529_s17 }
 0x167   : > { %p12_p8 = scmp.ge.s32.totalorder %s15_s19, 10   ;;  %s1990_s16 = smov %s1533_s18 }
 0x168   : > { %s1991_s17 = smov %s1994_s20  ;;  %s1992_s18 = smov %s1998_s21 }
 0x169   :  { %14 = sbr.rel (!%p12_p8) target bundleno = 3 (0x3), region = 82 }

// kernel: resnet18_forward.7
= control target key start
LH: loop header
LB: loop body
LE: loop exit
PB: predicated region body
PF: predicated region fallthrough
CT: control target
= control target key end

     0   :  { %s2088_s6 = smov 0   ;;  %s2717_s0 = inlined_call_operand.vmem [shape: bf16[2,68,17,64], index: 0, kind: input, shape index: {}]   ;;  %s2718_s1 = inlined_call_operand.vmem [shape: bf16[2,16,16,64], index: 1, kind: output, shape index: {}]  }
   0x1 LB: > { %s1555_s7 = sadd.s32 4294967295, %s2076_s6   ;;  %p1559_p0 = scmp.ge.s32.totalorder %s2076_s6, 1  ;;  %s2076_s6 = sphi %s2088_s6, %s11_s6  }
   0x2   : > { %p87_p1 = scmp.lt.s32.totalorder %s2076_s6, 3 }
   0x4   : > { %p88_p2 = pnand %p1559_p0, %p87_p1 }
   0x5   : > { %p107_p3 = scmp.lt.s32.totalorder (!%p88_p2), %s1555_s7, 1 }
   0x6   : > { %91 = sbr.rel (%p88_p2) target bundleno = 208 (0xd0), region = 24 }
   0xb   : > { %s2720_s7 = smov (!%p107_p3, %s1555_s7), 1  ;;  %vm358_vm0 = vcmask 1046528   ;;  %vm1467_vm1 = vcmask 519168  }
   0xc   : > { %s2061_s8 = smul.u32 816, %s2720_s7  ;;  %s1789_s12 = sshll.u32 %s2720_s7, 7 }
   0xd   : > { %s2173_s15 = scalar_lea.vmem %s2718_s1, %s1789_s12 }
   0xe   : > { %s2102_s11 = scalar_lea.vmem %s2717_s0, %s2061_s8 }
   0xf   : > { %v1823_v0 = vld [vmem:[%s2102_s11] sm:$0xff]   ;;  %v1563_v1 = vld [vmem:[%s2102_s11 + $0xcc] sm:$0xff]   ;;  %v2029_v2 = vld [vmem:[%s2102_s11 + $0x198] sm:$0xff]  }
  0x10   : > { %v1824_v3 = vunpack.c.l.bf16 %v1823_v0  ;;  %v1825_v4 = vunpack.c.h.bf16 %v1823_v0  ;;  %v214_v5 = vunpack.c.l.bf16 %v1563_v1  ;;  %v1888_v6 = vunpack.c.l.bf16 %v2029_v2  ;;  %v2108_v7 = vld [vmem:[%s2102_s11 + $0x264] sm:$0xff]   ;;  %v2111_v8 = vld [vmem:[%s2102_s11 + $0xc] sm:$0xff]   ;;  %v2116_v12 = vld [vmem:[%s2102_s11 + $0xd8] sm:$0xff]  }
  0x11   : > { %v1889_v9 = vunpack.c.h.bf16 %v2029_v2  ;;  %v954_v10 = vunpack.c.l.bf16 %v2111_v8  ;;  %v955_v11 = vunpack.c.h.bf16 %v2111_v8  ;;  %v278_v13 = vld [vmem:[%s2102_s11 + $0x8] sm:$0x1]  ;;  %v1659_v18 = vld [vmem:[%s2102_s11 + $0x1a0] sm:$0x1]  ;;  %v633_v19 = vunpack.c.l.bf16 %v2108_v7  ;;  %v1739_v23 = vld [vmem:[%s2102_s11 + $0x14] sm:$0x1] }
  0x12   : > { %v246_v14 = vmax.f32 %v1824_v3, %v214_v5  ;;  %v359_v15 = vrot.slane %v1824_v3, 1  ;;  %v360_v16 = vrot.slane %v1825_v4, 1  ;;  %v777_v17 = vrot.slane %v1888_v6, 1  ;;  %v119_v28 = vld [vmem:[%s2102_s11 + $0xc] sm:$0xff]   ;;  %v2130_v33 = vld [vmem:[%s2102_s11 + $0x1a4] sm:$0xff]   ;;  %v2045_v51 = vld [vmem:[%s2102_s11 + $0x18] sm:$0xff]  }
  0x13   : > { %v778_v20 = vrot.slane %v1889_v9, 1  ;;  %v1195_v21 = vrot.slane %v954_v10, 1  ;;  %v1196_v22 = vrot.slane %v955_v11, 1  ;;  %v1984_v25 = vunpack.c.l.bf16 %v2116_v12  ;;  %v2138_v50 = vld [vmem:[%s2102_s11 + $0x270] sm:$0xff]   ;;  %v2144_v56 = vld [vmem:[%s2102_s11 + $0xe4] sm:$0xff]  }
  0x14   : > { %v361_v24 = vsel %vm358_vm0, %v359_v15, %v360_v16  ;;  %v215_v26 = vunpack.c.h.bf16 %v1563_v1  ;;  %v294_v27 = vunpack.c.l.bf16 %v278_v13  ;;  %v634_v31 = vunpack.c.h.bf16 %v2108_v7  ;;  %v279_v61 = vld [vmem:[%s2102_s11 + $0x14] sm:$0x1] }
  0x15   : > { %v471_v29 = vmax.f32 %v246_v14, %v361_v24  ;;  %v779_v30 = vsel %vm358_vm0, %v777_v17, %v778_v20  ;;  %v713_v32 = vunpack.c.l.bf16 %v1659_v18  ;;  %v1197_v34 = vsel %vm358_vm0, %v1195_v21, %v1196_v22  ;;  %v1740_v14 = vld [vmem:[%s2102_s11 + $0x20] sm:$0x1] }
  0x16   : > { %v247_v35 = vmax.f32 %v1825_v4, %v215_v26  ;;  %v362_v36 = vrot.slane %v294_v27, 1  ;;  %v1131_v37 = vunpack.c.l.bf16 %v1739_v23  ;;  %v151_v40 = vunpack.c.l.bf16 %v119_v28 }
  0x17   : > { %v568_v38 = vmax.f32 %v471_v29, %v1888_v6  ;;  %v780_v39 = vrot.slane %v713_v32, 1  ;;  %v152_v41 = vunpack.c.h.bf16 %v119_v28  ;;  %v538_v44 = vunpack.c.l.bf16 %v2130_v33  ;;  %v1660_v6 = vld [vmem:[%s2102_s11 + $0x1ac] sm:$0x1] }
  0x18   : > { %v363_v42 = vsel %vm358_vm0, %v360_v16, %v362_v36  ;;  %v1198_v43 = vrot.slane %v1131_v37, 1  ;;  %v539_v45 = vunpack.c.h.bf16 %v2130_v33  ;;  %v1985_v48 = vunpack.c.h.bf16 %v2116_v12 }
  0x19   : > { %v665_v46 = vmax.f32 %v568_v38, %v633_v19  ;;  %v472_v47 = vmax.f32 %v247_v35, %v363_v42  ;;  %v248_v49 = vmax.f32 %v151_v40, %v1984_v25  ;;  %v781_v52 = vsel %vm358_vm0, %v778_v20, %v780_v39  ;;  %v2163_v19 = vld [vmem:[%s2102_s11 + $0x1b0] sm:$0xff]  }
  0x1a   : > { %v1199_v53 = vsel %vm358_vm0, %v1196_v22, %v1198_v43  ;;  %v364_v54 = vrot.slane %v151_v40, 1  ;;  %v365_v55 = vrot.slane %v152_v41, 1  ;;  %v782_v59 = vrot.slane %v538_v44, 1  ;;  %v2183_v40 = vld [vmem:[%s2102_s11 + $0x24] sm:$0xff]  }
  0x1b   : > { %v889_v57 = vmax.f32 %v665_v46, %v779_v30  ;;  %v569_v58 = vmax.f32 %v472_v47, %v1889_v9  ;;  %v783_v60 = vrot.slane %v539_v45, 1  ;;  %v1920_v63 = vunpack.c.l.bf16 %v2138_v50 }
  0x1c   : > { %v366_v62 = vsel %vm358_vm0, %v364_v54, %v365_v55  ;;  %v1952_v0 = vunpack.c.l.bf16 %v2045_v51  ;;  %v2151_v1 = vunpack.c.h.bf16 %v2045_v51  ;;  %v1053_v5 = vunpack.c.l.bf16 %v2144_v56 }
  0x1d   : > { %v986_v2 = vmax.f32 %v889_v57, %v954_v10  ;;  %v666_v3 = vmax.f32 %v569_v58, %v634_v31  ;;  %v473_v4 = vmax.f32 %v248_v49, %v366_v62  ;;  %v784_v7 = vsel %vm358_vm0, %v782_v59, %v783_v60  ;;  %v1567_v10 = vld [vmem:[%s2102_s11 + $0xe4] sm:$0xff]   ;;  %v1661_v58 = vld [vmem:[%s2102_s11 + $0x1b8] sm:$0x1] }
  0x1e   : > { %v1200_v9 = vrot.slane %v1952_v0, 1  ;;  %v2157_v12 = vrot.slane %v2151_v1, 1  ;;  %v295_v13 = vunpack.c.l.bf16 %v279_v61  ;;  %v249_v18 = vmax.f32 %v152_v41, %v1985_v48 }
  0x1f   : > { %v1083_v15 = vmax.f32 %v986_v2, %v1984_v25  ;;  %v890_v16 = vmax.f32 %v666_v3, %v781_v52  ;;  %v570_v17 = vmax.f32 %v473_v4, %v538_v44  ;;  %v1921_v22 = vunpack.c.h.bf16 %v2138_v50  ;;  %v1741_v4 = vld [vmem:[%s2102_s11 + $0x2c] sm:$0x1] }
  0x20   : > { %v1202_v20 = vsel %vm358_vm0, %v1200_v9, %v2157_v12  ;;  %v367_v21 = vrot.slane %v295_v13, 1  ;;  %v714_v23 = vunpack.c.l.bf16 %v1660_v6  ;;  %v1132_v25 = vunpack.c.l.bf16 %v1740_v14  ;;  %v2211_v14 = vld [vmem:[%s2102_s11 + $0x1bc] sm:$0xff]  }
  0x21   : > { %v1307_v24 = vmax.f32 %v1083_v15, %v1197_v34  ;;  %v987_v26 = vmax.f32 %v890_v16, %v955_v11  ;;  %v667_v27 = vmax.f32 %v570_v17, %v1920_v63  ;;  %v218_v30 = vunpack.c.l.bf16 %v1567_v10  ;;  %v2178_v11 = vld [vmem:[%s2102_s11 + $0x27c] sm:$0xff]  }
  0x22   : > { %v368_v28 = vsel %vm358_vm0, %v365_v55, %v367_v21  ;;  %v785_v29 = vrot.slane %v714_v23, 1  ;;  %v1892_v31 = vunpack.c.l.bf16 %v2163_v19  ;;  %v1054_v36 = vunpack.c.h.bf16 %v2144_v56  ;;  %v2193_v55 = vld [vmem:[%s2102_s11 + $0xf0] sm:$0xff]  }
  0x23   : > { %v1790_v32 = vpack.c.bf16 %v1307_v24, %v1307_v24  ;;  %v1084_v34 = vmax.f32 %v987_v26, %v1985_v48  ;;  %v891_v35 = vmax.f32 %v667_v27, %v784_v7  ;;  %v474_v8 = vmax.f32 %v249_v18, %v368_v28 }
  0x24   : > { %v1203_v37 = vrot.slane %v1132_v25, 1  ;;  %v250_v38 = vmax.f32 %v1952_v0, %v218_v30  ;;  %v1893_v39 = vunpack.c.h.bf16 %v2163_v19  ;;  %v786_v44 = vsel %vm358_vm0, %v783_v60, %v785_v29  ;;  %v2222_v29 = vld [vmem:[%s2102_s11 + $0x288] sm:$0xff]  }
  0x25   : > { %1468 = vst.msk [vmem:[%s2173_s15] sm:$0xf] %vm1467_vm1, %v1790_v32  ;;  %v1308_v41 = vmax.f32 %v1084_v34, %v1199_v53  ;;  %v988_v42 = vmax.f32 %v891_v35, %v1952_v0  ;;  %v571_v43 = vmax.f32 %v474_v8, %v539_v45  ;;  %v637_v47 = vunpack.c.l.bf16 %v2178_v11  ;;  %v280_v53 = vld [vmem:[%s2102_s11 + $0x20] sm:$0x1]  ;;  %v2046_v35 = vld [vmem:[%s2102_s11 + $0x30] sm:$0xff]  }
  0x26   : > { %v475_v46 = vmax.f32 %v250_v38, %v1202_v20  ;;  %v787_v48 = vrot.slane %v1892_v31, 1  ;;  %v788_v49 = vrot.slane %v1893_v39, 1  ;;  %v958_v54 = vunpack.c.l.bf16 %v2183_v40 }
  0x27   : > { %v1791_v50 = vpack.c.bf16 %v1308_v41, %v1308_v41  ;;  %v1085_v51 = vmax.f32 %v988_v42, %v1053_v5  ;;  %v668_v52 = vmax.f32 %v571_v43, %v1921_v22  ;;  %v1204_v33 = vsel %vm358_vm0, %v2157_v12, %v1203_v37  ;;  %v123_v5 = vld [vmem:[%s2102_s11 + $0x24] sm:$0xff]   ;;  %v2228_v37 = vld [vmem:[%s2102_s11 + $0xfc] sm:$0xff]  }
  0x28   : > { %v572_v45 = vmax.f32 %v475_v46, %v1892_v31  ;;  %v789_v56 = vsel %vm358_vm0, %v787_v48, %v788_v49  ;;  %v959_v57 = vunpack.c.h.bf16 %v2183_v40  ;;  %v1205_v61 = vrot.slane %v958_v54, 1  ;;  %v281_v48 = vld [vmem:[%s2102_s11 + $0x2c] sm:$0x1] }
  0x29   : > { %1469 = vst.msk [vmem:[%s2173_s15 + $0x4] sm:$0xf] %vm1467_vm1, %v1791_v50  ;;  %v1309_v59 = vmax.f32 %v1085_v51, %v1202_v20  ;;  %v892_v60 = vmax.f32 %v668_v52, %v786_v44  ;;  %v219_v62 = vunpack.c.h.bf16 %v1567_v10  ;;  %v1988_v0 = vunpack.c.l.bf16 %v2193_v55 }
  0x2a   : > { %v669_v63 = vmax.f32 %v572_v45, %v637_v47  ;;  %v1206_v2 = vrot.slane %v959_v57, 1  ;;  %v296_v3 = vunpack.c.l.bf16 %v280_v53  ;;  %v715_v13 = vunpack.c.l.bf16 %v1661_v58  ;;  %v1571_v58 = vld [vmem:[%s2102_s11 + $0xfc] sm:$0xff]  }
  0x2b   : > { %v1792_v6 = vpack.c.bf16 %v1309_v59, %v1309_v59  ;;  %v989_v7 = vmax.f32 %v892_v60, %v2151_v1  ;;  %v251_v9 = vmax.f32 %v2151_v1, %v219_v62  ;;  %v638_v18 = vunpack.c.h.bf16 %v2178_v11 }
  0x2c   : > { %v893_v15 = vmax.f32 %v669_v63, %v789_v56  ;;  %v1207_v16 = vsel %vm358_vm0, %v1205_v61, %v1206_v2  ;;  %v372_v17 = vrot.slane %v296_v3, 1  ;;  %v790_v19 = vrot.slane %v715_v13, 1  ;;  %v2249_v63 = vld [vmem:[%s2102_s11 + $0x1c8] sm:$0xff]  }
  0x2d   : > { %1470 = vst.msk [vmem:[%s2173_s15 + $0x8] sm:$0xf] %vm1467_vm1, %v1792_v6  ;;  %v1086_v10 = vmax.f32 %v989_v7, %v1054_v36  ;;  %v1133_v20 = vunpack.c.l.bf16 %v1741_v4  ;;  %v155_v21 = vunpack.c.l.bf16 %v123_v5  ;;  %v156_v23 = vunpack.c.h.bf16 %v123_v5 }
  0x2e   : > { %v990_v22 = vmax.f32 %v893_v15, %v958_v54  ;;  %v373_v1 = vsel %vm358_vm0, %v2157_v12, %v372_v17  ;;  %v542_v24 = vunpack.c.l.bf16 %v2211_v14  ;;  %v1989_v25 = vunpack.c.h.bf16 %v2193_v55  ;;  %v1742_v55 = vld [vmem:[%s2102_s11 + $0x38] sm:$0x1] }
  0x2f   : > { %v1310_v26 = vmax.f32 %v1086_v10, %v1204_v33  ;;  %v476_v27 = vmax.f32 %v251_v9, %v373_v1  ;;  %v1208_v28 = vrot.slane %v1133_v20, 1  ;;  %v252_v31 = vmax.f32 %v155_v21, %v1988_v0  ;;  %v2259_v17 = vld [vmem:[%s2102_s11 + $0x294] sm:$0xff]  }
  0x30   : > { %v1087_v30 = vmax.f32 %v990_v22, %v1988_v0  ;;  %v374_v32 = vrot.slane %v155_v21, 1  ;;  %v375_v34 = vrot.slane %v156_v23, 1  ;;  %v791_v11 = vsel %vm358_vm0, %v788_v49, %v790_v19  ;;  %v1662_v49 = vld [vmem:[%s2102_s11 + $0x1c4] sm:$0x1]  ;;  %v2264_v19 = vld [vmem:[%s2102_s11 + $0x3c] sm:$0xff]  }
  0x31   : > { %v1793_v12 = vpack.c.bf16 %v1310_v26, %v1310_v26  ;;  %v573_v8 = vmax.f32 %v476_v27, %v1893_v39  ;;  %v543_v36 = vunpack.c.h.bf16 %v2211_v14  ;;  %v1924_v42 = vunpack.c.l.bf16 %v2222_v29 }
  0x32   : > { %v1311_v38 = vmax.f32 %v1087_v30, %v1207_v16  ;;  %v376_v41 = vsel %vm358_vm0, %v374_v32, %v375_v34  ;;  %v792_v43 = vrot.slane %v542_v24, 1  ;;  %v1956_v47 = vunpack.c.l.bf16 %v2046_v35  ;;  %v282_v32 = vld [vmem:[%s2102_s11 + $0x38] sm:$0x1] }
  0x33   : > { %1471 = vst.msk [vmem:[%s2173_s15 + $0xc] sm:$0xf] %vm1467_vm1, %v1793_v12  ;;  %v670_v44 = vmax.f32 %v573_v8, %v638_v18  ;;  %v477_v46 = vmax.f32 %v252_v31, %v376_v41  ;;  %v793_v39 = vrot.slane %v543_v36, 1  ;;  %v1209_v51 = vsel %vm358_vm0, %v1206_v2, %v1208_v28  ;;  %v2270_v31 = vld [vmem:[%s2102_s11 + $0x108] sm:$0xff]  }
  0x34   : > { %v1794_v50 = vpack.c.bf16 %v1311_v38, %v1311_v38  ;;  %v2237_v52 = vunpack.c.h.bf16 %v2046_v35  ;;  %v1057_v54 = vunpack.c.l.bf16 %v2228_v37  ;;  %v1210_v45 = vrot.slane %v1956_v47, 1 }
  0x35   : > { %v894_v53 = vmax.f32 %v670_v44, %v791_v11  ;;  %v574_v33 = vmax.f32 %v477_v46, %v542_v24  ;;  %v253_v56 = vmax.f32 %v156_v23, %v1989_v25  ;;  %v794_v59 = vsel %vm358_vm0, %v792_v43, %v793_v39  ;;  %v1663_v11 = vld [vmem:[%s2102_s11 + $0x1d0] sm:$0x1] }
  0x36   : > { %1472 = vst.msk [vmem:[%s2173_s15 + $0x10] sm:$0xf] %vm1467_vm1, %v1794_v50  ;;  %v2246_v60 = vrot.slane %v2237_v52, 1  ;;  %v297_v61 = vunpack.c.l.bf16 %v281_v48  ;;  %v716_v62 = vunpack.c.l.bf16 %v1662_v49  ;;  %v1925_v3 = vunpack.c.h.bf16 %v2222_v29 }
  0x37   : > { %v991_v0 = vmax.f32 %v894_v53, %v959_v57  ;;  %v671_v2 = vmax.f32 %v574_v33, %v1924_v42  ;;  %v1134_v4 = vunpack.c.l.bf16 %v1742_v55  ;;  %v1058_v7 = vunpack.c.h.bf16 %v2228_v37 }
  0x38   : > { %v377_v5 = vrot.slane %v297_v61, 1  ;;  %v795_v6 = vrot.slane %v716_v62, 1  ;;  %v222_v9 = vunpack.c.l.bf16 %v1571_v58  ;;  %v1212_v15 = vsel %vm358_vm0, %v1210_v45, %v2246_v60 }
  0x39   : > { %v1088_v13 = vmax.f32 %v991_v0, %v1989_v25  ;;  %v895_v14 = vmax.f32 %v671_v2, %v794_v59  ;;  %v1896_v16 = vunpack.c.l.bf16 %v2249_v63  ;;  %v1213_v57 = vrot.slane %v1134_v4, 1 }
  0x3a   : > { %v378_v40 = vsel %vm358_vm0, %v375_v34, %v377_v5  ;;  %v254_v18 = vmax.f32 %v1956_v47, %v222_v9  ;;  %v1897_v10 = vunpack.c.h.bf16 %v2249_v63  ;;  %v796_v1 = vsel %vm358_vm0, %v793_v39, %v795_v6  ;;  %v1743_v39 = vld [vmem:[%s2102_s11 + $0x44] sm:$0x1] }
  0x3b   : > { %v1312_v20 = vmax.f32 %v1088_v13, %v1209_v51  ;;  %v992_v21 = vmax.f32 %v895_v14, %v1956_v47  ;;  %v478_v22 = vmax.f32 %v253_v56, %v378_v40  ;;  %v641_v24 = vunpack.c.l.bf16 %v2259_v17  ;;  %v127_v47 = vld [vmem:[%s2102_s11 + $0x3c] sm:$0xff]  }
  0x3c   : > { %v479_v23 = vmax.f32 %v254_v18, %v1212_v15  ;;  %v797_v26 = vrot.slane %v1896_v16, 1  ;;  %v798_v27 = vrot.slane %v1897_v10, 1  ;;  %v962_v30 = vunpack.c.l.bf16 %v2264_v19  ;;  %v2299_v9 = vld [vmem:[%s2102_s11 + $0x2a0] sm:$0xff]  }
  0x3d   : > { %v1795_v25 = vpack.c.bf16 %v1312_v20, %v1312_v20  ;;  %v1089_v28 = vmax.f32 %v992_v21, %v1057_v54  ;;  %v575_v29 = vmax.f32 %v478_v22, %v543_v36  ;;  %v1214_v34 = vsel %vm358_vm0, %v2246_v60, %v1213_v57  ;;  %v2287_v54 = vld [vmem:[%s2102_s11 + $0x1d4] sm:$0xff]  }
  0x3e   : > { %v576_v35 = vmax.f32 %v479_v23, %v1896_v16  ;;  %v799_v12 = vsel %vm358_vm0, %v797_v26, %v798_v27  ;;  %v963_v8 = vunpack.c.h.bf16 %v2264_v19  ;;  %v1215_v38 = vrot.slane %v962_v30, 1  ;;  %v2307_v22 = vld [vmem:[%s2102_s11 + $0x114] sm:$0xff]   ;;  %v283_v26 = vld [vmem:[%s2102_s11 + $0x44] sm:$0x1] }
  0x3f   : > { %1473 = vst.msk [vmem:[%s2173_s15 + $0x14] sm:$0xf] %vm1467_vm1, %v1795_v25  ;;  %v1313_v36 = vmax.f32 %v1089_v28, %v1212_v15  ;;  %v672_v37 = vmax.f32 %v575_v29, %v1925_v3  ;;  %v223_v41 = vunpack.c.h.bf16 %v1571_v58  ;;  %v1992_v43 = vunpack.c.l.bf16 %v2270_v31 }
  0x40   : > { %v673_v42 = vmax.f32 %v576_v35, %v641_v24  ;;  %v1216_v44 = vrot.slane %v963_v8, 1  ;;  %v298_v46 = vunpack.c.l.bf16 %v282_v32  ;;  %v717_v51 = vunpack.c.l.bf16 %v1663_v11  ;;  %v1575_v11 = vld [vmem:[%s2102_s11 + $0x114] sm:$0xff]  }
  0x41   : > { %v1796_v48 = vpack.c.bf16 %v1313_v36, %v1313_v36  ;;  %v896_v49 = vmax.f32 %v672_v37, %v796_v1  ;;  %v255_v50 = vmax.f32 %v2237_v52, %v223_v41  ;;  %v642_v45 = vunpack.c.h.bf16 %v2259_v17 }
  0x42   : > { %v897_v55 = vmax.f32 %v673_v42, %v799_v12  ;;  %v1217_v53 = vsel %vm358_vm0, %v1215_v38, %v1216_v44  ;;  %v382_v33 = vrot.slane %v298_v46, 1  ;;  %v800_v58 = vrot.slane %v717_v51, 1  ;;  %v1744_v12 = vld [vmem:[%s2102_s11 + $0x50] sm:$0x1]  ;;  %v2326_v42 = vld [vmem:[%s2102_s11 + $0x1e0] sm:$0xff]  }
  0x43   : > { %1474 = vst.msk [vmem:[%s2173_s15 + $0x18] sm:$0xf] %vm1467_vm1, %v1796_v48  ;;  %v993_v56 = vmax.f32 %v896_v49, %v2237_v52  ;;  %v1135_v59 = vunpack.c.l.bf16 %v1743_v39  ;;  %v159_v61 = vunpack.c.l.bf16 %v127_v47  ;;  %v160_v0 = vunpack.c.h.bf16 %v127_v47 }
  0x44   : > { %v994_v62 = vmax.f32 %v897_v55, %v962_v30  ;;  %v383_v63 = vsel %vm358_vm0, %v2246_v60, %v382_v33  ;;  %v546_v2 = vunpack.c.l.bf16 %v2287_v54  ;;  %v1993_v5 = vunpack.c.h.bf16 %v2270_v31  ;;  %v1664_v30 = vld [vmem:[%s2102_s11 + $0x1dc] sm:$0x1]  ;;  %v2335_v33 = vld [vmem:[%s2102_s11 + $0x2ac] sm:$0xff]  }
  0x45   : > { %v1090_v3 = vmax.f32 %v993_v56, %v1058_v7  ;;  %v480_v4 = vmax.f32 %v255_v50, %v383_v63  ;;  %v1218_v6 = vrot.slane %v1135_v59, 1  ;;  %v256_v13 = vmax.f32 %v159_v61, %v1992_v43  ;;  %v2047_v7 = vld [vmem:[%s2102_s11 + $0x48] sm:$0xff]   ;;  %v2341_v63 = vld [vmem:[%s2102_s11 + $0x54] sm:$0xff]  }
  0x46   : > { %v1091_v52 = vmax.f32 %v994_v62, %v1992_v43  ;;  %v384_v14 = vrot.slane %v159_v61, 1  ;;  %v385_v15 = vrot.slane %v160_v0, 1  ;;  %v801_v60 = vsel %vm358_vm0, %v798_v27, %v800_v58 }
  0x47   : > { %v1314_v16 = vmax.f32 %v1090_v3, %v1214_v34  ;;  %v577_v17 = vmax.f32 %v480_v4, %v1897_v10  ;;  %v547_v40 = vunpack.c.h.bf16 %v2287_v54  ;;  %v1928_v20 = vunpack.c.l.bf16 %v2299_v9 }
  0x48   : > { %v1315_v57 = vmax.f32 %v1091_v52, %v1217_v53  ;;  %v386_v18 = vsel %vm358_vm0, %v384_v14, %v385_v15  ;;  %v802_v21 = vrot.slane %v546_v2, 1  ;;  %v1219_v25 = vsel %vm358_vm0, %v1216_v44, %v1218_v6 }
  0x49   : > { %v1797_v1 = vpack.c.bf16 %v1314_v16, %v1314_v16  ;;  %v674_v23 = vmax.f32 %v577_v17, %v642_v45  ;;  %v481_v10 = vmax.f32 %v256_v13, %v386_v18  ;;  %v803_v24 = vrot.slane %v547_v40, 1  ;;  %v284_v13 = vld [vmem:[%s2102_s11 + $0x50] sm:$0x1] }
  0x4a   : > { %v1798_v27 = vpack.c.bf16 %v1315_v57, %v1315_v57  ;;  %v1960_v28 = vunpack.c.l.bf16 %v2047_v7  ;;  %v2311_v29 = vunpack.c.h.bf16 %v2047_v7  ;;  %v1061_v35 = vunpack.c.l.bf16 %v2307_v22 }
  0x4b   : > { %1475 = vst.msk [vmem:[%s2173_s15 + $0x1c] sm:$0xf] %vm1467_vm1, %v1797_v1  ;;  %v898_v31 = vmax.f32 %v674_v23, %v801_v60  ;;  %v578_v32 = vmax.f32 %v481_v10, %v546_v2  ;;  %v804_v34 = vsel %vm358_vm0, %v802_v21, %v803_v24  ;;  %v257_v38 = vmax.f32 %v160_v0, %v1993_v5  ;;  %v2351_v60 = vld [vmem:[%s2102_s11 + $0x120] sm:$0xff]   ;;  %v1745_v10 = vld [vmem:[%s2102_s11 + $0x5c] sm:$0x1] }
  0x4c   : > { %1476 = vst.msk [vmem:[%s2173_s15 + $0x20] sm:$0xf] %vm1467_vm1, %v1798_v27  ;;  %v1220_v36 = vrot.slane %v1960_v28, 1  ;;  %v2323_v37 = vrot.slane %v2311_v29, 1  ;;  %v299_v41 = vunpack.c.l.bf16 %v283_v26  ;;  %v1929_v46 = vunpack.c.h.bf16 %v2299_v9 }
  0x4d   : > { %v995_v43 = vmax.f32 %v898_v31, %v963_v8  ;;  %v675_v44 = vmax.f32 %v578_v32, %v1928_v20  ;;  %v718_v39 = vunpack.c.l.bf16 %v1664_v30  ;;  %v1136_v49 = vunpack.c.l.bf16 %v1744_v12  ;;  %v1665_v20 = vld [vmem:[%s2102_s11 + $0x1e8] sm:$0x1] }
  0x4e   : > { %v1222_v47 = vsel %vm358_vm0, %v1220_v36, %v2323_v37  ;;  %v387_v48 = vrot.slane %v299_v41, 1  ;;  %v226_v50 = vunpack.c.l.bf16 %v1575_v11  ;;  %v1900_v53 = vunpack.c.l.bf16 %v2326_v42 }
  0x4f   : > { %v1092_v51 = vmax.f32 %v995_v43, %v1993_v5  ;;  %v899_v54 = vmax.f32 %v675_v44, %v804_v34  ;;  %v805_v55 = vrot.slane %v718_v39, 1  ;;  %v1223_v8 = vrot.slane %v1136_v49, 1  ;;  %v2375_v44 = vld [vmem:[%s2102_s11 + $0x1ec] sm:$0xff]  }
  0x50   : > { %v388_v19 = vsel %vm358_vm0, %v385_v15, %v387_v48  ;;  %v258_v45 = vmax.f32 %v1960_v28, %v226_v50  ;;  %v1901_v56 = vunpack.c.h.bf16 %v2326_v42  ;;  %v1062_v62 = vunpack.c.h.bf16 %v2307_v22  ;;  %v2379_v48 = vld [vmem:[%s2102_s11 + $0x2b8] sm:$0xff]  }
  0x51   : > { %v1316_v58 = vmax.f32 %v1092_v51, %v1219_v25  ;;  %v996_v59 = vmax.f32 %v899_v54, %v1960_v28  ;;  %v482_v61 = vmax.f32 %v257_v38, %v388_v19  ;;  %v806_v0 = vsel %vm358_vm0, %v803_v24, %v805_v55  ;;  %v2361_v24 = vld [vmem:[%s2102_s11 + $0x54] sm:$0xff]   ;;  %v2048_v19 = vld [vmem:[%s2102_s11 + $0x60] sm:$0xff]  }
  0x52   : > { %v483_v2 = vmax.f32 %v258_v45, %v1222_v47  ;;  %v645_v3 = vunpack.c.l.bf16 %v2335_v33  ;;  %v807_v4 = vrot.slane %v1900_v53, 1  ;;  %v808_v52 = vrot.slane %v1901_v56, 1 }
  0x53   : > { %v1799_v5 = vpack.c.bf16 %v1316_v58, %v1316_v58  ;;  %v1093_v6 = vmax.f32 %v996_v59, %v1061_v35  ;;  %v579_v9 = vmax.f32 %v482_v61, %v547_v40  ;;  %v1224_v14 = vsel %vm358_vm0, %v2323_v37, %v1223_v8  ;;  %v2388_v61 = vld [vmem:[%s2102_s11 + $0x12c] sm:$0xff]  }
  0x54   : > { %v580_v15 = vmax.f32 %v483_v2, %v1900_v53  ;;  %v966_v16 = vunpack.c.l.bf16 %v2341_v63  ;;  %v967_v17 = vunpack.c.h.bf16 %v2341_v63  ;;  %v809_v40 = vsel %vm358_vm0, %v807_v4, %v808_v52 }
  0x55   : > { %1477 = vst.msk [vmem:[%s2173_s15 + $0x24] sm:$0xf] %vm1467_vm1, %v1799_v5  ;;  %v1317_v7 = vmax.f32 %v1093_v6, %v1222_v47  ;;  %v676_v57 = vmax.f32 %v579_v9, %v1929_v46  ;;  %v227_v18 = vunpack.c.h.bf16 %v1575_v11  ;;  %v300_v23 = vunpack.c.l.bf16 %v284_v13 }
  0x56   : > { %v677_v21 = vmax.f32 %v580_v15, %v645_v3  ;;  %v1225_v22 = vrot.slane %v966_v16, 1  ;;  %v1226_v1 = vrot.slane %v967_v17, 1  ;;  %v1996_v25 = vunpack.c.l.bf16 %v2351_v60  ;;  %v285_v3 = vld [vmem:[%s2102_s11 + $0x5c] sm:$0x1] }
  0x57   : > { %v1800_v26 = vpack.c.bf16 %v1317_v7, %v1317_v7  ;;  %v900_v27 = vmax.f32 %v676_v57, %v806_v0  ;;  %v259_v28 = vmax.f32 %v2311_v29, %v227_v18  ;;  %v392_v31 = vrot.slane %v300_v23, 1 }
  0x58   : > { %v901_v30 = vmax.f32 %v677_v21, %v809_v40  ;;  %v646_v32 = vunpack.c.h.bf16 %v2335_v33  ;;  %v719_v34 = vunpack.c.l.bf16 %v1665_v20  ;;  %v1227_v12 = vsel %vm358_vm0, %v1225_v22, %v1226_v1  ;;  %v1579_v20 = vld [vmem:[%s2102_s11 + $0x12c] sm:$0xff]  }
  0x59   : > { %1478 = vst.msk [vmem:[%s2173_s15 + $0x28] sm:$0xf] %vm1467_vm1, %v1800_v26  ;;  %v997_v35 = vmax.f32 %v900_v27, %v2311_v29  ;;  %v1137_v11 = vunpack.c.l.bf16 %v1745_v10  ;;  %v163_v36 = vunpack.c.l.bf16 %v2361_v24  ;;  %v393_v41 = vsel %vm358_vm0, %v2323_v37, %v392_v31  ;;  %v2409_v10 = vld [vmem:[%s2102_s11 + $0x1f8] sm:$0xff]  }
  0x5a   : > { %v998_v38 = vmax.f32 %v901_v30, %v966_v16  ;;  %v810_v42 = vrot.slane %v719_v34, 1  ;;  %v164_v43 = vunpack.c.h.bf16 %v2361_v24  ;;  %v484_v39 = vmax.f32 %v259_v28, %v393_v41  ;;  %v2419_v41 = vld [vmem:[%s2102_s11 + $0x2c4] sm:$0xff]  }
  0x5b   : > { %v1094_v46 = vmax.f32 %v997_v35, %v1062_v62  ;;  %v1997_v47 = vunpack.c.h.bf16 %v2351_v60  ;;  %v260_v29 = vmax.f32 %v163_v36, %v1996_v25  ;;  %v1228_v50 = vrot.slane %v1137_v11, 1  ;;  %v1746_v60 = vld [vmem:[%s2102_s11 + $0x68] sm:$0x1] }
  0x5c   : > { %v1095_v49 = vmax.f32 %v998_v38, %v1996_v25  ;;  %v394_v51 = vrot.slane %v163_v36, 1  ;;  %v395_v54 = vrot.slane %v164_v43, 1  ;;  %v581_v55 = vmax.f32 %v484_v39, %v1901_v56 }
  0x5d   : > { %v1318_v37 = vmax.f32 %v1094_v46, %v1224_v14  ;;  %v811_v53 = vsel %vm358_vm0, %v808_v52, %v810_v42  ;;  %v550_v33 = vunpack.c.l.bf16 %v2375_v44  ;;  %v551_v58 = vunpack.c.h.bf16 %v2375_v44  ;;  %v1666_v52 = vld [vmem:[%s2102_s11 + $0x1f4] sm:$0x1]  ;;  %v2422_v42 = vld [vmem:[%s2102_s11 + $0x6c] sm:$0xff]  }
  0x5e   : > { %v1319_v8 = vmax.f32 %v1095_v49, %v1227_v12  ;;  %v396_v45 = vsel %vm358_vm0, %v394_v51, %v395_v54  ;;  %v1932_v59 = vunpack.c.l.bf16 %v2379_v48  ;;  %v678_v56 = vmax.f32 %v581_v55, %v646_v32  ;;  %v286_v51 = vld [vmem:[%s2102_s11 + $0x68] sm:$0x1] }
  0x5f   : > { %v1801_v62 = vpack.c.bf16 %v1318_v37, %v1318_v37  ;;  %v485_v0 = vmax.f32 %v260_v29, %v396_v45  ;;  %v812_v2 = vrot.slane %v550_v33, 1  ;;  %v813_v5 = vrot.slane %v551_v58, 1 }
  0x60   : > { %v1802_v4 = vpack.c.bf16 %v1319_v8, %v1319_v8  ;;  %v1964_v6 = vunpack.c.l.bf16 %v2048_v19  ;;  %v2391_v9 = vunpack.c.h.bf16 %v2048_v19  ;;  %v902_v13 = vmax.f32 %v678_v56, %v811_v53 }
  0x61   : > { %1479 = vst.msk [vmem:[%s2173_s15 + $0x2c] sm:$0xf] %vm1467_vm1, %v1801_v62  ;;  %v1229_v14 = vsel %vm358_vm0, %v1226_v1, %v1228_v50  ;;  %v582_v15 = vmax.f32 %v485_v0, %v550_v33  ;;  %v1065_v16 = vunpack.c.l.bf16 %v2388_v61  ;;  %v814_v7 = vsel %vm358_vm0, %v812_v2, %v813_v5  ;;  %v1747_v0 = vld [vmem:[%s2102_s11 + $0x74] sm:$0x1]  ;;  %v135_v2 = vld [vmem:[%s2102_s11 + $0x6c] sm:$0xff]  }
  0x62   : > { %1480 = vst.msk [vmem:[%s2173_s15 + $0x30] sm:$0xf] %vm1467_vm1, %v1802_v4  ;;  %v1230_v57 = vrot.slane %v1964_v6, 1  ;;  %v2403_v40 = vrot.slane %v2391_v9, 1  ;;  %v301_v18 = vunpack.c.l.bf16 %v285_v3  ;;  %v999_v21 = vmax.f32 %v902_v13, %v967_v17 }
  0x63   : > { %v679_v22 = vmax.f32 %v582_v15, %v1932_v59  ;;  %v261_v23 = vmax.f32 %v164_v43, %v1997_v47  ;;  %v720_v1 = vunpack.c.l.bf16 %v1666_v52  ;;  %v1933_v27 = vunpack.c.h.bf16 %v2379_v48 }
  0x64   : > { %v1232_v24 = vsel %vm358_vm0, %v1230_v57, %v2403_v40  ;;  %v397_v26 = vrot.slane %v301_v18, 1  ;;  %v1138_v25 = vunpack.c.l.bf16 %v1746_v60  ;;  %v1096_v28 = vmax.f32 %v999_v21, %v1997_v47  ;;  %v2428_v47 = vld [vmem:[%s2102_s11 + $0x138] sm:$0xff]  }
  0x65   : > { %v903_v30 = vmax.f32 %v679_v22, %v814_v7  ;;  %v815_v31 = vrot.slane %v720_v1, 1  ;;  %v230_v63 = vunpack.c.l.bf16 %v1579_v20  ;;  %v1904_v34 = vunpack.c.l.bf16 %v2409_v10 }
  0x66   : > { %v398_v17 = vsel %vm358_vm0, %v395_v54, %v397_v26  ;;  %v1233_v32 = vrot.slane %v1138_v25, 1  ;;  %v1905_v35 = vunpack.c.h.bf16 %v2409_v10  ;;  %v1320_v12 = vmax.f32 %v1096_v28, %v1229_v14 }
  0x67   : > { %v1000_v11 = vmax.f32 %v903_v30, %v1964_v6  ;;  %v486_v36 = vmax.f32 %v261_v23, %v398_v17  ;;  %v1066_v38 = vunpack.c.h.bf16 %v2388_v61  ;;  %v816_v43 = vsel %vm358_vm0, %v813_v5, %v815_v31  ;;  %v2452_v23 = vld [vmem:[%s2102_s11 + $0x204] sm:$0xff]  }
  0x68   : > { %v1234_v44 = vsel %vm358_vm0, %v2403_v40, %v1233_v32  ;;  %v262_v46 = vmax.f32 %v1964_v6, %v230_v63  ;;  %v817_v39 = vrot.slane %v1904_v34, 1  ;;  %v1803_v29 = vpack.c.bf16 %v1320_v12, %v1320_v12  ;;  %v2049_v32 = vld [vmem:[%s2102_s11 + $0x78] sm:$0xff]  }
  0x69   : > { %v1097_v48 = vmax.f32 %v1000_v11, %v1065_v16  ;;  %v583_v49 = vmax.f32 %v486_v36, %v551_v58  ;;  %v818_v50 = vrot.slane %v1905_v35, 1  ;;  %v649_v37 = vunpack.c.l.bf16 %v2419_v41  ;;  %v1667_v58 = vld [vmem:[%s2102_s11 + $0x200] sm:$0x1] }
  0x6a   : > { %v487_v54 = vmax.f32 %v262_v46, %v1232_v24  ;;  %v970_v55 = vunpack.c.l.bf16 %v2422_v42  ;;  %v971_v53 = vunpack.c.h.bf16 %v2422_v42  ;;  %1481 = vst.msk [vmem:[%s2173_s15 + $0x34] sm:$0xf] %vm1467_vm1, %v1803_v29  ;;  %v2000_v8 = vunpack.c.l.bf16 %v2428_v47 }
  0x6b   : > { %v1321_v33 = vmax.f32 %v1097_v48, %v1232_v24  ;;  %v680_v19 = vmax.f32 %v583_v49, %v1933_v27  ;;  %v231_v45 = vunpack.c.h.bf16 %v1579_v20  ;;  %v302_v56 = vunpack.c.l.bf16 %v286_v51  ;;  %v287_v48 = vld [vmem:[%s2102_s11 + $0x74] sm:$0x1] }
  0x6c   : > { %v584_v59 = vmax.f32 %v487_v54, %v1904_v34  ;;  %v1235_v61 = vrot.slane %v970_v55, 1  ;;  %v1236_v62 = vrot.slane %v971_v53, 1  ;;  %v819_v5 = vsel %vm358_vm0, %v817_v39, %v818_v50 }
  0x6d   : > { %v1804_v3 = vpack.c.bf16 %v1321_v33, %v1321_v33  ;;  %v904_v4 = vmax.f32 %v680_v19, %v816_v43  ;;  %v263_v6 = vmax.f32 %v2391_v9, %v231_v45  ;;  %v402_v13 = vrot.slane %v302_v56, 1 }
  0x6e   : > { %v681_v52 = vmax.f32 %v584_v59, %v649_v37  ;;  %v650_v14 = vunpack.c.h.bf16 %v2419_v41  ;;  %v721_v15 = vunpack.c.l.bf16 %v1667_v58  ;;  %v1237_v60 = vsel %vm358_vm0, %v1235_v61, %v1236_v62  ;;  %v1668_v37 = vld [vmem:[%s2102_s11 + $0x20c] sm:$0x1]  ;;  %v1583_v58 = vld [vmem:[%s2102_s11 + $0x144] sm:$0xff]  }
  0x6f   : > { %1482 = vst.msk [vmem:[%s2173_s15 + $0x38] sm:$0xf] %vm1467_vm1, %v1804_v3  ;;  %v1001_v16 = vmax.f32 %v904_v4, %v2391_v9  ;;  %v1139_v7 = vunpack.c.l.bf16 %v1747_v0  ;;  %v167_v57 = vunpack.c.l.bf16 %v135_v2  ;;  %v403_v20 = vsel %vm358_vm0, %v2403_v40, %v402_v13  ;;  %v2456_v9 = vld [vmem:[%s2102_s11 + $0x2d0] sm:$0xff]  }
  0x70   : > { %v905_v18 = vmax.f32 %v681_v52, %v819_v5  ;;  %v820_v21 = vrot.slane %v721_v15, 1  ;;  %v168_v22 = vunpack.c.h.bf16 %v135_v2  ;;  %v488_v10 = vmax.f32 %v263_v6, %v403_v20  ;;  %v2484_v0 = vld [vmem:[%s2102_s11 + $0x210] sm:$0xff]  }
  0x71   : > { %v1098_v1 = vmax.f32 %v1001_v16, %v1066_v38  ;;  %v2001_v24 = vunpack.c.h.bf16 %v2428_v47  ;;  %v264_v26 = vmax.f32 %v167_v57, %v2000_v8  ;;  %v1238_v25 = vrot.slane %v1139_v7, 1  ;;  %v2465_v38 = vld [vmem:[%s2102_s11 + $0x144] sm:$0xff]  }
  0x72   : > { %v1002_v27 = vmax.f32 %v905_v18, %v970_v55  ;;  %v404_v28 = vrot.slane %v167_v57, 1  ;;  %v405_v30 = vrot.slane %v168_v22, 1  ;;  %v585_v63 = vmax.f32 %v488_v10, %v1905_v35  ;;  %v1748_v55 = vld [vmem:[%s2102_s11 + $0x80] sm:$0x1] }
  0x73   : > { %v1322_v31 = vmax.f32 %v1098_v1, %v1234_v44  ;;  %v821_v40 = vsel %vm358_vm0, %v818_v50, %v820_v21  ;;  %v554_v17 = vunpack.c.l.bf16 %v2452_v23  ;;  %v555_v11 = vunpack.c.h.bf16 %v2452_v23  ;;  %v2498_v21 = vld [vmem:[%s2102_s11 + $0x84] sm:$0xff]  }
  0x74   : > { %v1099_v34 = vmax.f32 %v1002_v27, %v2000_v8  ;;  %v406_v12 = vsel %vm358_vm0, %v404_v28, %v405_v30  ;;  %v1936_v36 = vunpack.c.l.bf16 %v2456_v9  ;;  %v682_v35 = vmax.f32 %v585_v63, %v650_v14  ;;  %v2508_v63 = vld [vmem:[%s2102_s11 + $0x150] sm:$0xff]  }
  0x75   : > { %v1805_v41 = vpack.c.bf16 %v1322_v31, %v1322_v31  ;;  %v489_v43 = vmax.f32 %v264_v26, %v406_v12  ;;  %v822_v44 = vrot.slane %v554_v17, 1  ;;  %v823_v39 = vrot.slane %v555_v11, 1 }
  0x76   : > { %v1323_v46 = vmax.f32 %v1099_v34, %v1237_v60  ;;  %v1968_v47 = vunpack.c.l.bf16 %v2049_v32  ;;  %v2467_v29 = vunpack.c.h.bf16 %v2049_v32  ;;  %v906_v49 = vmax.f32 %v682_v35, %v821_v40  ;;  %v288_v40 = vld [vmem:[%s2102_s11 + $0x80] sm:$0x1] }
  0x77   : > { %1483 = vst.msk [vmem:[%s2173_s15 + $0x3c] sm:$0xf] %vm1467_vm1, %v1805_v41  ;;  %v1239_v50 = vsel %vm358_vm0, %v1236_v62, %v1238_v25  ;;  %v586_v51 = vmax.f32 %v489_v43, %v554_v17  ;;  %v1069_v54 = vunpack.c.l.bf16 %v2465_v38  ;;  %v824_v19 = vsel %vm358_vm0, %v822_v44, %v823_v39  ;;  %v1749_v43 = vld [vmem:[%s2102_s11 + $0x8c] sm:$0x1] }
  0x78   : > { %v1806_v33 = vpack.c.bf16 %v1323_v46, %v1323_v46  ;;  %v1240_v8 = vrot.slane %v1968_v47, 1  ;;  %v2478_v45 = vrot.slane %v2467_v29, 1  ;;  %v1003_v59 = vmax.f32 %v906_v49, %v971_v53  ;;  %v2492_v53 = vld [vmem:[%s2102_s11 + $0x2dc] sm:$0xff]  }
  0x79   : > { %v683_v61 = vmax.f32 %v586_v51, %v1936_v36  ;;  %v265_v56 = vmax.f32 %v168_v22, %v2001_v24  ;;  %v303_v62 = vunpack.c.l.bf16 %v287_v48  ;;  %v1937_v3 = vunpack.c.h.bf16 %v2456_v9  ;;  %v139_v48 = vld [vmem:[%s2102_s11 + $0x84] sm:$0xff]  }
  0x7a   : > { %1484 = vst.msk [vmem:[%s2173_s15 + $0x40] sm:$0xf] %vm1467_vm1, %v1806_v33  ;;  %v1242_v2 = vsel %vm358_vm0, %v1240_v8, %v2478_v45  ;;  %v722_v4 = vunpack.c.l.bf16 %v1668_v37  ;;  %v1140_v5 = vunpack.c.l.bf16 %v1748_v55  ;;  %v1100_v6 = vmax.f32 %v1003_v59, %v2001_v24  ;;  %v2525_v37 = vld [vmem:[%s2102_s11 + $0x21c] sm:$0xff]  }
  0x7b   : > { %v907_v52 = vmax.f32 %v683_v61, %v824_v19  ;;  %v407_v13 = vrot.slane %v303_v62, 1  ;;  %v234_v42 = vunpack.c.l.bf16 %v1583_v58  ;;  %v1908_v16 = vunpack.c.l.bf16 %v2484_v0 }
  0x7c   : > { %v825_v14 = vrot.slane %v722_v4, 1  ;;  %v1243_v15 = vrot.slane %v1140_v5, 1  ;;  %v1909_v60 = vunpack.c.h.bf16 %v2484_v0  ;;  %v1324_v7 = vmax.f32 %v1100_v6, %v1239_v50  ;;  %v2536_v5 = vld [vmem:[%s2102_s11 + $0x2e8] sm:$0xff]  }
  0x7d   : > { %v1004_v57 = vmax.f32 %v907_v52, %v1968_v47  ;;  %v408_v18 = vsel %vm358_vm0, %v405_v30, %v407_v13  ;;  %v266_v20 = vmax.f32 %v1968_v47, %v234_v42  ;;  %v1070_v1 = vunpack.c.h.bf16 %v2465_v38 }
  0x7e   : > { %v490_v22 = vmax.f32 %v265_v56, %v408_v18  ;;  %v826_v23 = vsel %vm358_vm0, %v823_v39, %v825_v14  ;;  %v653_v10 = vunpack.c.l.bf16 %v2492_v53  ;;  %v1807_v24 = vpack.c.bf16 %v1324_v7, %v1324_v7 }
  0x7f   : > { %v1101_v26 = vmax.f32 %v1004_v57, %v1069_v54  ;;  %v491_v9 = vmax.f32 %v266_v20, %v1242_v2  ;;  %v827_v27 = vrot.slane %v1908_v16, 1  ;;  %v828_v28 = vrot.slane %v1909_v60, 1  ;;  %v2545_v20 = vld [vmem:[%s2102_s11 + $0x15c] sm:$0xff]  }
  0x80   : > { %v587_v25 = vmax.f32 %v490_v22, %v555_v11  ;;  %v974_v30 = vunpack.c.l.bf16 %v2498_v21  ;;  %v975_v31 = vunpack.c.h.bf16 %v2498_v21  ;;  %1485 = vst.msk [vmem:[%s2173_s15 + $0x44] sm:$0xf] %vm1467_vm1, %v1807_v24  ;;  %v1244_v32 = vsel %vm358_vm0, %v2478_v45, %v1243_v15  ;;  %v1669_v11 = vld [vmem:[%s2102_s11 + $0x218] sm:$0x1] }
  0x81   : > { %v1325_v17 = vmax.f32 %v1101_v26, %v1242_v2  ;;  %v588_v34 = vmax.f32 %v491_v9, %v1908_v16  ;;  %v235_v12 = vunpack.c.h.bf16 %v1583_v58  ;;  %v829_v38 = vsel %vm358_vm0, %v827_v27, %v828_v28  ;;  %v1670_v27 = vld [vmem:[%s2102_s11 + $0x224] sm:$0x1] }
  0x82   : > { %v684_v36 = vmax.f32 %v587_v25, %v1937_v3  ;;  %v1245_v41 = vrot.slane %v974_v30, 1  ;;  %v1246_v35 = vrot.slane %v975_v31, 1  ;;  %v2004_v39 = vunpack.c.l.bf16 %v2508_v63 }
  0x83   : > { %v1808_v44 = vpack.c.bf16 %v1325_v17, %v1325_v17  ;;  %v685_v46 = vmax.f32 %v588_v34, %v653_v10  ;;  %v304_v47 = vunpack.c.l.bf16 %v288_v40  ;;  %v267_v51 = vmax.f32 %v2467_v29, %v235_v12  ;;  %v1750_v40 = vld [vmem:[%s2102_s11 + $0x98] sm:$0x1] }
  0x84   : > { %v908_v49 = vmax.f32 %v684_v36, %v826_v23  ;;  %v1247_v50 = vsel %vm358_vm0, %v1245_v41, %v1246_v35  ;;  %v723_v54 = vunpack.c.l.bf16 %v1669_v11  ;;  %v654_v19 = vunpack.c.h.bf16 %v2492_v53  ;;  %v2050_v53 = vld [vmem:[%s2102_s11 + $0x90] sm:$0xff]   ;;  %v1587_v11 = vld [vmem:[%s2102_s11 + $0x15c] sm:$0xff]  }
  0x85   : > { %1486 = vst.msk [vmem:[%s2173_s15 + $0x48] sm:$0xf] %vm1467_vm1, %v1808_v44  ;;  %v909_v55 = vmax.f32 %v685_v46, %v829_v38  ;;  %v412_v33 = vrot.slane %v304_v47, 1  ;;  %v1141_v8 = vunpack.c.l.bf16 %v1749_v43  ;;  %v171_v61 = vunpack.c.l.bf16 %v139_v48  ;;  %v2565_v43 = vld [vmem:[%s2102_s11 + $0x228] sm:$0xff]  }
  0x86   : > { %v1005_v58 = vmax.f32 %v908_v49, %v2467_v29  ;;  %v830_v59 = vrot.slane %v723_v54, 1  ;;  %v172_v56 = vunpack.c.h.bf16 %v139_v48  ;;  %v2005_v3 = vunpack.c.h.bf16 %v2508_v63 }
  0x87   : > { %v1006_v62 = vmax.f32 %v909_v55, %v974_v30  ;;  %v413_v2 = vsel %vm358_vm0, %v2478_v45, %v412_v33  ;;  %v558_v4 = vunpack.c.l.bf16 %v2525_v37  ;;  %v1248_v13 = vrot.slane %v1141_v8, 1 }
  0x88   : > { %v1102_v6 = vmax.f32 %v1005_v58, %v1070_v1  ;;  %v492_v52 = vmax.f32 %v267_v51, %v413_v2  ;;  %v268_v42 = vmax.f32 %v171_v61, %v2004_v39  ;;  %v831_v14 = vsel %vm358_vm0, %v828_v28, %v830_v59  ;;  %v2580_v59 = vld [vmem:[%s2102_s11 + $0x9c] sm:$0xff]  }
  0x89   : > { %v1103_v29 = vmax.f32 %v1006_v62, %v2004_v39  ;;  %v414_v15 = vrot.slane %v171_v61, 1  ;;  %v415_v16 = vrot.slane %v172_v56, 1  ;;  %v559_v57 = vunpack.c.h.bf16 %v2525_v37 }
  0x8a   : > { %v1326_v45 = vmax.f32 %v1102_v6, %v1244_v32  ;;  %v589_v7 = vmax.f32 %v492_v52, %v1909_v60  ;;  %v1940_v18 = vunpack.c.l.bf16 %v2536_v5  ;;  %v832_v1 = vrot.slane %v558_v4, 1  ;;  %v289_v60 = vld [vmem:[%s2102_s11 + $0x8c] sm:$0x1] }
  0x8b   : > { %v1327_v22 = vmax.f32 %v1103_v29, %v1247_v50  ;;  %v416_v23 = vsel %vm358_vm0, %v414_v15, %v415_v16  ;;  %v1972_v10 = vunpack.c.l.bf16 %v2050_v53  ;;  %v833_v0 = vrot.slane %v559_v57, 1  ;;  %v2586_v29 = vld [vmem:[%s2102_s11 + $0x168] sm:$0xff]  }
  0x8c   : > { %v1809_v24 = vpack.c.bf16 %v1326_v45, %v1326_v45  ;;  %v686_v26 = vmax.f32 %v589_v7, %v654_v19  ;;  %v493_v9 = vmax.f32 %v268_v42, %v416_v23  ;;  %v1249_v28 = vsel %vm358_vm0, %v1246_v35, %v1248_v13  ;;  %v2575_v19 = vld [vmem:[%s2102_s11 + $0x2f4] sm:$0xff]  }
  0x8d   : > { %v1810_v25 = vpack.c.bf16 %v1327_v22, %v1327_v22  ;;  %v2551_v30 = vunpack.c.h.bf16 %v2050_v53  ;;  %v1073_v63 = vunpack.c.l.bf16 %v2545_v20  ;;  %v834_v34 = vsel %vm358_vm0, %v832_v1, %v833_v0 }
  0x8e   : > { %1487 = vst.msk [vmem:[%s2173_s15 + $0x4c] sm:$0xf] %vm1467_vm1, %v1809_v24  ;;  %v910_v17 = vmax.f32 %v686_v26, %v831_v14  ;;  %v590_v32 = vmax.f32 %v493_v9, %v558_v4  ;;  %v1250_v12 = vrot.slane %v1972_v10, 1  ;;  %v269_v38 = vmax.f32 %v172_v56, %v2005_v3  ;;  %v290_v14 = vld [vmem:[%s2102_s11 + $0x98] sm:$0x1] }
  0x8f   : > { %1488 = vst.msk [vmem:[%s2173_s15 + $0x50] sm:$0xf] %vm1467_vm1, %v1810_v25  ;;  %v2562_v36 = vrot.slane %v2551_v30, 1  ;;  %v305_v41 = vunpack.c.l.bf16 %v289_v60  ;;  %v724_v35 = vunpack.c.l.bf16 %v1670_v27  ;;  %v1941_v39 = vunpack.c.h.bf16 %v2536_v5  ;;  %v1751_v9 = vld [vmem:[%s2102_s11 + $0xa4] sm:$0x1] }
  0x90   : > { %v1007_v44 = vmax.f32 %v910_v17, %v975_v31  ;;  %v687_v46 = vmax.f32 %v590_v32, %v1940_v18  ;;  %v1142_v47 = vunpack.c.l.bf16 %v1750_v40  ;;  %v1074_v50 = vunpack.c.h.bf16 %v2545_v20  ;;  %v1671_v18 = vld [vmem:[%s2102_s11 + $0x230] sm:$0x1] }
  0x91   : > { %v417_v48 = vrot.slane %v305_v41, 1  ;;  %v835_v49 = vrot.slane %v724_v35, 1  ;;  %v238_v51 = vunpack.c.l.bf16 %v1587_v11  ;;  %v1252_v55 = vsel %vm358_vm0, %v1250_v12, %v2562_v36 }
  0x92   : > { %v1104_v54 = vmax.f32 %v1007_v44, %v2005_v3  ;;  %v911_v37 = vmax.f32 %v687_v46, %v834_v34  ;;  %v1912_v33 = vunpack.c.l.bf16 %v2565_v43  ;;  %v1253_v31 = vrot.slane %v1142_v47, 1 }
  0x93   : > { %v418_v21 = vsel %vm358_vm0, %v415_v16, %v417_v48  ;;  %v270_v8 = vmax.f32 %v1972_v10, %v238_v51  ;;  %v1913_v58 = vunpack.c.h.bf16 %v2565_v43  ;;  %v836_v2 = vsel %vm358_vm0, %v833_v0, %v835_v49  ;;  %v143_v0 = vld [vmem:[%s2102_s11 + $0x9c] sm:$0xff]  }
  0x94   : > { %v1328_v61 = vmax.f32 %v1104_v54, %v1249_v28  ;;  %v1008_v56 = vmax.f32 %v911_v37, %v1972_v10  ;;  %v494_v62 = vmax.f32 %v269_v38, %v418_v21  ;;  %v657_v4 = vunpack.c.l.bf16 %v2575_v19  ;;  %v2615_v51 = vld [vmem:[%s2102_s11 + $0x300] sm:$0xff]  }
  0x95   : > { %v495_v3 = vmax.f32 %v270_v8, %v1252_v55  ;;  %v837_v5 = vrot.slane %v1912_v33, 1  ;;  %v838_v6 = vrot.slane %v1913_v58, 1  ;;  %v978_v53 = vunpack.c.l.bf16 %v2580_v59 }
  0x96   : > { %v1811_v52 = vpack.c.bf16 %v1328_v61, %v1328_v61  ;;  %v1105_v13 = vmax.f32 %v1008_v56, %v1073_v63  ;;  %v591_v42 = vmax.f32 %v494_v62, %v559_v57  ;;  %v1254_v15 = vsel %vm358_vm0, %v2562_v36, %v1253_v31  ;;  %v2603_v63 = vld [vmem:[%s2102_s11 + $0x234] sm:$0xff]  }
  0x97   : > { %v592_v16 = vmax.f32 %v495_v3, %v1912_v33  ;;  %v839_v45 = vsel %vm358_vm0, %v837_v5, %v838_v6  ;;  %v979_v7 = vunpack.c.h.bf16 %v2580_v59  ;;  %v1255_v22 = vrot.slane %v978_v53, 1  ;;  %v2623_v62 = vld [vmem:[%s2102_s11 + $0x174] sm:$0xff]   ;;  %v291_v5 = vld [vmem:[%s2102_s11 + $0xa4] sm:$0x1] }
  0x98   : > { %1489 = vst.msk [vmem:[%s2173_s15 + $0x54] sm:$0xf] %vm1467_vm1, %v1811_v52  ;;  %v1329_v57 = vmax.f32 %v1105_v13, %v1252_v55  ;;  %v688_v20 = vmax.f32 %v591_v42, %v1941_v39  ;;  %v239_v23 = vunpack.c.h.bf16 %v1587_v11  ;;  %v2008_v10 = vunpack.c.l.bf16 %v2586_v29 }
  0x99   : > { %v689_v1 = vmax.f32 %v592_v16, %v657_v4  ;;  %v1256_v24 = vrot.slane %v979_v7, 1  ;;  %v306_v26 = vunpack.c.l.bf16 %v290_v14  ;;  %v725_v28 = vunpack.c.l.bf16 %v1671_v18  ;;  %v1591_v18 = vld [vmem:[%s2102_s11 + $0x174] sm:$0xff]  }
  0x9a   : > { %v1812_v60 = vpack.c.bf16 %v1329_v57, %v1329_v57  ;;  %v912_v27 = vmax.f32 %v688_v20, %v836_v2  ;;  %v271_v25 = vmax.f32 %v2551_v30, %v239_v23  ;;  %v658_v34 = vunpack.c.h.bf16 %v2575_v19 }
  0x9b   : > { %v913_v40 = vmax.f32 %v689_v1, %v839_v45  ;;  %v1257_v17 = vsel %vm358_vm0, %v1255_v22, %v1256_v24  ;;  %v422_v32 = vrot.slane %v306_v26, 1  ;;  %v840_v11 = vrot.slane %v725_v28, 1  ;;  %v1752_v45 = vld [vmem:[%s2102_s11 + $0xb0] sm:$0x1]  ;;  %v2642_v1 = vld [vmem:[%s2102_s11 + $0x240] sm:$0xff]  }
  0x9c   : > { %1490 = vst.msk [vmem:[%s2173_s15 + $0x58] sm:$0xf] %vm1467_vm1, %v1812_v60  ;;  %v1009_v12 = vmax.f32 %v912_v27, %v2551_v30  ;;  %v1143_v38 = vunpack.c.l.bf16 %v1751_v9  ;;  %v175_v41 = vunpack.c.l.bf16 %v143_v0  ;;  %v176_v44 = vunpack.c.h.bf16 %v143_v0 }
  0x9d   : > { %v1010_v35 = vmax.f32 %v913_v40, %v978_v53  ;;  %v423_v43 = vsel %vm358_vm0, %v2562_v36, %v422_v32  ;;  %v562_v46 = vunpack.c.l.bf16 %v2603_v63  ;;  %v2009_v48 = vunpack.c.h.bf16 %v2586_v29  ;;  %v1672_v53 = vld [vmem:[%s2102_s11 + $0x23c] sm:$0x1]  ;;  %v2651_v32 = vld [vmem:[%s2102_s11 + $0x30c] sm:$0xff]  }
  0x9e   : > { %v1106_v39 = vmax.f32 %v1009_v12, %v1074_v50  ;;  %v496_v47 = vmax.f32 %v271_v25, %v423_v43  ;;  %v1258_v49 = vrot.slane %v1143_v38, 1  ;;  %v272_v54 = vmax.f32 %v175_v41, %v2008_v10  ;;  %v2051_v50 = vld [vmem:[%s2102_s11 + $0xa8] sm:$0xff]   ;;  %v2657_v43 = vld [vmem:[%s2102_s11 + $0xb4] sm:$0xff]  }
  0x9f   : > { %v1107_v30 = vmax.f32 %v1010_v35, %v2008_v10  ;;  %v424_v37 = vrot.slane %v175_v41, 1  ;;  %v425_v55 = vrot.slane %v176_v44, 1  ;;  %v841_v36 = vsel %vm358_vm0, %v838_v6, %v840_v11 }
  0xa0   : > { %v1330_v33 = vmax.f32 %v1106_v39, %v1254_v15  ;;  %v593_v19 = vmax.f32 %v496_v47, %v1913_v58  ;;  %v563_v21 = vunpack.c.h.bf16 %v2603_v63  ;;  %v1944_v61 = vunpack.c.l.bf16 %v2615_v51 }
  0xa1   : > { %v1331_v31 = vmax.f32 %v1107_v30, %v1257_v17  ;;  %v426_v8 = vsel %vm358_vm0, %v424_v37, %v425_v55  ;;  %v842_v56 = vrot.slane %v562_v46, 1  ;;  %v1259_v52 = vsel %vm358_vm0, %v1256_v24, %v1258_v49 }
  0xa2   : > { %v1813_v2 = vpack.c.bf16 %v1330_v33, %v1330_v33  ;;  %v690_v3 = vmax.f32 %v593_v19, %v658_v34  ;;  %v497_v58 = vmax.f32 %v272_v54, %v426_v8  ;;  %v843_v4 = vrot.slane %v563_v21, 1  ;;  %v292_v54 = vld [vmem:[%s2102_s11 + $0xb0] sm:$0x1] }
  0xa3   : > { %v1814_v6 = vpack.c.bf16 %v1331_v31, %v1331_v31  ;;  %v1976_v13 = vunpack.c.l.bf16 %v2051_v50  ;;  %v2627_v42 = vunpack.c.h.bf16 %v2051_v50  ;;  %v1077_v16 = vunpack.c.l.bf16 %v2623_v62 }
  0xa4   : > { %1491 = vst.msk [vmem:[%s2173_s15 + $0x5c] sm:$0xf] %vm1467_vm1, %v1813_v2  ;;  %v914_v29 = vmax.f32 %v690_v3, %v841_v36  ;;  %v594_v14 = vmax.f32 %v497_v58, %v562_v46  ;;  %v844_v15 = vsel %vm358_vm0, %v842_v56, %v843_v4  ;;  %v273_v22 = vmax.f32 %v176_v44, %v2009_v48  ;;  %v2667_v36 = vld [vmem:[%s2102_s11 + $0x180] sm:$0xff]   ;;  %v1753_v58 = vld [vmem:[%s2102_s11 + $0xbc] sm:$0x1] }
  0xa5   : > { %1492 = vst.msk [vmem:[%s2173_s15 + $0x60] sm:$0xf] %vm1467_vm1, %v1814_v6  ;;  %v1260_v57 = vrot.slane %v1976_v13, 1  ;;  %v2639_v20 = vrot.slane %v2627_v42, 1  ;;  %v307_v23 = vunpack.c.l.bf16 %v291_v5  ;;  %v1945_v26 = vunpack.c.h.bf16 %v2615_v51 }
  0xa6   : > { %v1011_v10 = vmax.f32 %v914_v29, %v979_v7  ;;  %v691_v24 = vmax.f32 %v594_v14, %v1944_v61  ;;  %v726_v9 = vunpack.c.l.bf16 %v1672_v53  ;;  %v1144_v27 = vunpack.c.l.bf16 %v1752_v45  ;;  %v1673_v61 = vld [vmem:[%s2102_s11 + $0x248] sm:$0x1] }
  0xa7   : > { %v1262_v0 = vsel %vm358_vm0, %v1260_v57, %v2639_v20  ;;  %v427_v60 = vrot.slane %v307_v23, 1  ;;  %v242_v25 = vunpack.c.l.bf16 %v1591_v18  ;;  %v1916_v17 = vunpack.c.l.bf16 %v2642_v1 }
  0xa8   : > { %v1108_v28 = vmax.f32 %v1011_v10, %v2009_v48  ;;  %v915_v63 = vmax.f32 %v691_v24, %v844_v15  ;;  %v845_v40 = vrot.slane %v726_v9, 1  ;;  %v1263_v7 = vrot.slane %v1144_v27, 1  ;;  %v1625_v24 = vld [vmem:[%s2102_s11 + $0x24c] sm:$0xff]   ;;  %v2044_v27 = vld [vmem:[%s2102_s11 + $0x318] sm:$0xff]  }
  0xa9   : > { %v428_v59 = vsel %vm358_vm0, %v425_v55, %v427_v60  ;;  %v274_v34 = vmax.f32 %v1976_v13, %v242_v25  ;;  %v1917_v12 = vunpack.c.h.bf16 %v2642_v1  ;;  %v1078_v35 = vunpack.c.h.bf16 %v2623_v62 }
  0xaa   : > { %v1332_v11 = vmax.f32 %v1108_v28, %v1259_v52  ;;  %v1012_v38 = vmax.f32 %v915_v63, %v1976_v13  ;;  %v498_v41 = vmax.f32 %v273_v22, %v428_v59  ;;  %v846_v44 = vsel %vm358_vm0, %v843_v4, %v845_v40  ;;  %v147_v4 = vld [vmem:[%s2102_s11 + $0xb4] sm:$0xff]   ;;  %v2052_v59 = vld [vmem:[%s2102_s11 + $0xc0] sm:$0xff]  }
  0xab   : > { %v499_v46 = vmax.f32 %v274_v34, %v1262_v0  ;;  %v661_v39 = vunpack.c.l.bf16 %v2651_v32  ;;  %v847_v47 = vrot.slane %v1916_v17, 1  ;;  %v848_v30 = vrot.slane %v1917_v12, 1 }
  0xac   : > { %v1815_v48 = vpack.c.bf16 %v1332_v11, %v1332_v11  ;;  %v1109_v49 = vmax.f32 %v1012_v38, %v1077_v16  ;;  %v595_v51 = vmax.f32 %v498_v41, %v563_v21  ;;  %v1264_v37 = vsel %vm358_vm0, %v2639_v20, %v1263_v7 }
  0xad   : > { %v596_v55 = vmax.f32 %v499_v46, %v1916_v17  ;;  %v982_v33 = vunpack.c.l.bf16 %v2657_v43  ;;  %v983_v19 = vunpack.c.h.bf16 %v2657_v43  ;;  %v849_v21 = vsel %vm358_vm0, %v847_v47, %v848_v30 }
  0xae   : > { %1493 = vst.msk [vmem:[%s2173_s15 + $0x64] sm:$0xf] %vm1467_vm1, %v1815_v48  ;;  %v1333_v50 = vmax.f32 %v1109_v49, %v1262_v0  ;;  %v692_v31 = vmax.f32 %v595_v51, %v1945_v26  ;;  %v243_v8 = vunpack.c.h.bf16 %v1591_v18  ;;  %v308_v3 = vunpack.c.l.bf16 %v292_v54  ;;  %v1674_v51 = vld [vmem:[%s2102_s11 + $0x254] sm:$0x1] }
  0xaf   : > { %v693_v56 = vmax.f32 %v596_v55, %v661_v39  ;;  %v1265_v62 = vrot.slane %v982_v33, 1  ;;  %v1266_v2 = vrot.slane %v983_v19, 1  ;;  %v2012_v52 = vunpack.c.l.bf16 %v2667_v36  ;;  %v293_v39 = vld [vmem:[%s2102_s11 + $0xbc] sm:$0x1]  ;;  %v1737_v55 = vld [vmem:[%s2102_s11 + $0x18c] sm:$0xff]  }
  0xb0   : > { %v1816_v5 = vpack.c.bf16 %v1333_v50, %v1333_v50  ;;  %v916_v6 = vmax.f32 %v692_v31, %v846_v44  ;;  %v275_v13 = vmax.f32 %v2627_v42, %v243_v8  ;;  %v432_v29 = vrot.slane %v308_v3, 1 }
  0xb1   : > { %v917_v53 = vmax.f32 %v693_v56, %v849_v21  ;;  %v662_v14 = vunpack.c.h.bf16 %v2651_v32  ;;  %v727_v15 = vunpack.c.l.bf16 %v1673_v61  ;;  %v1267_v45 = vsel %vm358_vm0, %v1265_v62, %v1266_v2 }
  0xb2   : > { %1494 = vst.msk [vmem:[%s2173_s15 + $0x68] sm:$0xf] %vm1467_vm1, %v1816_v5  ;;  %v1013_v16 = vmax.f32 %v916_v6, %v2627_v42  ;;  %v1145_v18 = vunpack.c.l.bf16 %v1753_v58  ;;  %v179_v57 = vunpack.c.l.bf16 %v147_v4  ;;  %v433_v23 = vsel %vm358_vm0, %v2639_v20, %v432_v29  ;;  %v1754_v5 = vld [vmem:[%s2102_s11 + $0xc8] sm:$0x1] }
  0xb3   : > { %v1014_v22 = vmax.f32 %v917_v53, %v982_v33  ;;  %v850_v1 = vrot.slane %v727_v15, 1  ;;  %v180_v10 = vunpack.c.h.bf16 %v147_v4  ;;  %v500_v9 = vmax.f32 %v275_v13, %v433_v23 }
  0xb4   : > { %v1110_v26 = vmax.f32 %v1013_v16, %v1078_v35  ;;  %v2013_v0 = vunpack.c.h.bf16 %v2667_v36  ;;  %v276_v60 = vmax.f32 %v179_v57, %v2012_v52  ;;  %v1268_v42 = vrot.slane %v1145_v18, 1 }
  0xb5   : > { %v1111_v25 = vmax.f32 %v1014_v22, %v2012_v52  ;;  %v434_v28 = vrot.slane %v179_v57, 1  ;;  %v435_v63 = vrot.slane %v180_v10, 1  ;;  %v597_v17 = vmax.f32 %v500_v9, %v1917_v12 }
  0xb6   : > { %v1334_v40 = vmax.f32 %v1110_v26, %v1264_v37  ;;  %v851_v32 = vsel %vm358_vm0, %v848_v30, %v850_v1  ;;  %v566_v20 = vunpack.c.l.bf16 %v1625_v24  ;;  %v567_v11 = vunpack.c.h.bf16 %v1625_v24 }
  0xb7   : > { %v1335_v7 = vmax.f32 %v1111_v25, %v1267_v45  ;;  %v436_v34 = vsel %vm358_vm0, %v434_v28, %v435_v63  ;;  %v1948_v38 = vunpack.c.l.bf16 %v2044_v27  ;;  %v694_v35 = vmax.f32 %v597_v17, %v662_v14 }
  0xb8   : > { %v1817_v41 = vpack.c.bf16 %v1334_v40, %v1334_v40  ;;  %v501_v44 = vmax.f32 %v276_v60, %v436_v34  ;;  %v852_v46 = vrot.slane %v566_v20, 1  ;;  %v853_v12 = vrot.slane %v567_v11, 1 }
  0xb9   : > { %v1818_v47 = vpack.c.bf16 %v1335_v7, %v1335_v7  ;;  %v1980_v48 = vunpack.c.l.bf16 %v2052_v59  ;;  %v1981_v49 = vunpack.c.h.bf16 %v2052_v59  ;;  %v918_v30 = vmax.f32 %v694_v35, %v851_v32 }
  0xba   : > { %1495 = vst.msk [vmem:[%s2173_s15 + $0x6c] sm:$0xf] %vm1467_vm1, %v1817_v41  ;;  %v598_v54 = vmax.f32 %v501_v44, %v566_v20  ;;  %v854_v37 = vsel %vm358_vm0, %v852_v46, %v853_v12  ;;  %v309_v33 = vunpack.c.l.bf16 %v293_v39  ;;  %v277_v31 = vmax.f32 %v180_v10, %v2013_v0 }
  0xbb   : > { %1496 = vst.msk [vmem:[%s2173_s15 + $0x70] sm:$0xf] %vm1467_vm1, %v1818_v47  ;;  %v1015_v36 = vmax.f32 %v918_v30, %v983_v19  ;;  %v728_v21 = vunpack.c.l.bf16 %v1674_v51  ;;  %v1269_v8 = vsel %vm358_vm0, %v1266_v2, %v1268_v42  ;;  %v1270_v61 = vrot.slane %v1980_v48, 1 }
  0xbc   : > { %v695_v50 = vmax.f32 %v598_v54, %v1948_v38  ;;  %v1271_v56 = vrot.slane %v1981_v49, 1  ;;  %v437_v62 = vrot.slane %v309_v33, 1  ;;  %v1081_v4 = vunpack.c.l.bf16 %v1737_v55 }
  0xbd   : > { %v1112_v3 = vmax.f32 %v1015_v36, %v2013_v0  ;;  %v855_v52 = vrot.slane %v728_v21, 1  ;;  %v1949_v19 = vunpack.c.h.bf16 %v2044_v27  ;;  %v1146_v14 = vunpack.c.l.bf16 %v1754_v5 }
  0xbe   : > { %v919_v58 = vmax.f32 %v695_v50, %v854_v37  ;;  %v438_v6 = vsel %vm358_vm0, %v435_v63, %v437_v62  ;;  %v1272_v29 = vsel %vm358_vm0, %v1270_v61, %v1271_v56  ;;  %v1082_v10 = vunpack.c.h.bf16 %v1737_v55 }
  0xbf   : > { %v1336_v13 = vmax.f32 %v1112_v3, %v1269_v8  ;;  %v502_v43 = vmax.f32 %v277_v31, %v438_v6  ;;  %v856_v45 = vsel %vm358_vm0, %v853_v12, %v855_v52  ;;  %v1273_v22 = vrot.slane %v1146_v14, 1 }
  0xc0   : > { %v1016_v53 = vmax.f32 %v919_v58, %v1980_v48 }
  0xc1   : > { %v1819_v2 = vpack.c.bf16 %v1336_v13, %v1336_v13  ;;  %v599_v16 = vmax.f32 %v502_v43, %v567_v11  ;;  %v1274_v26 = vsel %vm358_vm0, %v1271_v56, %v1273_v22 }
  0xc2   : > { %v1113_v15 = vmax.f32 %v1016_v53, %v1081_v4 }
  0xc3   : > { %1497 = vst.msk [vmem:[%s2173_s15 + $0x74] sm:$0xf] %vm1467_vm1, %v1819_v2  ;;  %v696_v57 = vmax.f32 %v599_v16, %v1949_v19 }
  0xc4   : > { %v1337_v18 = vmax.f32 %v1113_v15, %v1272_v29 }
  0xc5   : > { %v920_v1 = vmax.f32 %v696_v57, %v856_v45 }
  0xc6   : > { %v1820_v23 = vpack.c.bf16 %v1337_v18, %v1337_v18 }
  0xc7   : > { %v1017_v24 = vmax.f32 %v920_v1, %v1981_v49 }
  0xc8   : > { %1498 = vst.msk [vmem:[%s2173_s15 + $0x78] sm:$0xf] %vm1467_vm1, %v1820_v23 }
  0xc9   : > { %v1114_v9 = vmax.f32 %v1017_v24, %v1082_v10 }
  0xcb   : > { %v1338_v0 = vmax.f32 %v1114_v9, %v1274_v26 }
  0xcd   : > { %v1821_v60 = vpack.c.bf16 %v1338_v0, %v1338_v0 }
  0xcf   : > { %1499 = vst.msk [vmem:[%s2173_s15 + $0x7c] sm:$0xf] %vm1467_vm1, %v1821_v60 }
  0xd0 PF: > { %s11_s6 = sadd.s32 1, %s2076_s6  }
  0xd1   : > { %p8_p4 = scmp.ge.s32.totalorder %s11_s6, 4  }
  0xd3   :  { %10 = sbr.rel (!%p8_p4) target bundleno = 1 (0x1), region = 59 }

// kernel: resnet18_forward.8
= control target key start
LH: loop header
LB: loop body
LE: loop exit
PB: predicated region body
PF: predicated region fallthrough
CT: control target
= control target key end

     0   :  { %s1361_s15 = smov 0   ;;  %s1623_s0 = inlined_call_operand.vmem [shape: bf16[2,144,192], index: 0, kind: input, shape index: {}]   ;;  %s1624_s1 = inlined_call_operand.vmem [shape: bf16[3,192,128], index: 1, kind: input, shape index: {}]   ;;  %s1625_s2 = inlined_call_operand.vmem [shape: bf16[2,64,128], index: 2, kind: output, shape index: {0}]   ;;  %s1626_s3 = inlined_call_operand.vmem [shape: f32[2,1,128], index: 3, kind: output, shape index: {1}]   ;;  %s1627_s4 = inlined_call_operand.vmem [shape: f32[2,1,128], index: 4, kind: output, shape index: {2}]  }
   0x1 LB: > { %s1059_s16 = sadd.s32 4294967295, %s1333_s15   ;;  %p1063_p0 = scmp.ge.s32.totalorder %s1333_s15, 1  ;;  %s1333_s15 = sphi %s1361_s15, %s15_s15  }
   0x2   : > { %p167_p1 = scmp.lt.s32.totalorder %s1333_s15, 3 }
   0x4   : > { %p168_p2 = pnand %p1063_p0, %p167_p1 }
   0x5   : > { %p199_p3 = scmp.lt.s32.totalorder (!%p168_p2), %s1059_s16, 1 }
   0x6   : > { %171 = sbr.rel (%p168_p2) target bundleno = 340 (0x154), region = 28 }
   0xb   : > { %v1263_v0 = vld [vmem:[%s1624_s1 + $0x98] sm:$0xff]   ;;  %v1335_v1 = vmov 0   ;;  %v1265_v3 = vld [vmem:[%s1624_s1 + $0x90] sm:$0xff]   ;;  %v1267_v5 = vld [vmem:[%s1624_s1 + $0x88] sm:$0xff]   ;;  %s1629_s16 = smov (!%p199_p3, %s1059_s16), 1  ;;  %vm389_vm0 = vcmask 523264  }
   0xc   : > { %402 = vmatprep.subr.bf16.mxu0 %v1335_v1  ;;  %587 = vmatprep.subr.bf16.mxu1 %v1335_v1  ;;  %v1264_v2 = vld [vmem:[%s1624_s1 + $0x38] sm:$0xff]   ;;  %v1266_v4 = vld [vmem:[%s1624_s1 + $0x30] sm:$0xff]   ;;  %v1268_v6 = vld [vmem:[%s1624_s1 + $0x28] sm:$0xff]   ;;  %s1253_s13 = smul.u32 144, %s1629_s16  ;;  %s211_s28 = scalar_lea.vmem %s1626_s3, %s1629_s16 }
   0xd   : > { %403 = vmatpush1.bf16.msra.mxu0 %v1263_v0  ;;  %588 = vmatpush1.bf16.msra.mxu1 %v1264_v2  ;;  %v1269_v7 = vld [vmem:[%s1624_s1 + $0x80] sm:$0xff]   ;;  %v1271_v9 = vld [vmem:[%s1624_s1 + $0x78] sm:$0xff]   ;;  %v1273_v11 = vld [vmem:[%s1624_s1 + $0x70] sm:$0xff]   ;;  %s214_s5 = scalar_lea.vmem %s1627_s4, %s1629_s16 }
   0xe   : > { %404 = vmatprep.subr.bf16.mxu0 %v1335_v1  ;;  %589 = vmatprep.subr.bf16.mxu1 %v1335_v1  ;;  %v1270_v8 = vld [vmem:[%s1624_s1 + $0x20] sm:$0xff]   ;;  %v1272_v10 = vld [vmem:[%s1624_s1 + $0x18] sm:$0xff]   ;;  %v1274_v12 = vld [vmem:[%s1624_s1 + $0x10] sm:$0xff]   ;;  %s1430_s22 = scalar_lea.vmem %s1623_s0, %s1253_s13 }
   0xf   : > { %v1275_v13 = vld [vmem:[%s1624_s1 + $0x68] sm:$0xff]   ;;  %v216_v16 = vld [vmem:[%s1430_s22] sm:$0xff]  ;;  %v1279_v21 = vld [vmem:[%s1624_s1 + $0xb8] sm:$0xff]  }
  0x10   : > { %v1276_v14 = vld [vmem:[%s1624_s1 + $0x8] sm:$0xff]   ;;  %v1277_v18 = vld [vmem:[%s1624_s1 + $0x60] sm:$0xff]   ;;  %v1280_v22 = vld [vmem:[%s1624_s1 + $0x58] sm:$0xff]  }
  0x11   : > { %405 = vmatpush1.bf16.msra.mxu0 %v1265_v3  ;;  %590 = vmatpush1.bf16.msra.mxu1 %v1266_v4  ;;  %v1289_v15 = vld [vmem:[%s1430_s22 + $0x4c] ss:$8 sps:$4 sm:$0xff]   ;;  %v1278_v20 = vld [vmem:[%s1624_s1] sm:$0xff]   ;;  %v1287_v29 = vld [vmem:[%s1430_s22 + $0x48] ss:$8 sps:$4 sm:$0xff]  }
  0x12   : > { %406 = vmatprep.subr.bf16.mxu0 %v1335_v1  ;;  %591 = vmatprep.subr.bf16.mxu1 %v1335_v1  ;;  %v1440_v17 = vld [vmem:[%s1430_s22 + $0x8] sm:$0xff]  ;;  %v1281_v23 = vld [vmem:[%s1624_s1 + $0xb0] sm:$0xff]   ;;  %v1285_v27 = vld [vmem:[%s1624_s1 + $0xa0] sm:$0xff]  }
  0x13   : > { %v1116_v19 = vcombine.high %v216_v16, %v1440_v17  ;;  %1111 = vmatprep.mubr.msk.bf16.mxu0 %vm389_vm0, %v1289_v15  ;;  %v1282_v24 = vld [vmem:[%s1624_s1 + $0x50] sm:$0xff]   ;;  %v1283_v25 = vld [vmem:[%s1624_s1 + $0xa8] sm:$0xff]   ;;  %v1286_v28 = vld [vmem:[%s1624_s1 + $0x40] sm:$0xff]   ;;  %v1115_v30 = vcombine.low %v216_v16, %v1440_v17 }
  0x14   : > { %v1284_v26 = vld [vmem:[%s1624_s1 + $0x48] sm:$0xff]   ;;  %v1292_v31 = vld [vmem:[%s1624_s1 + $0xf8] sm:$0xff]   ;;  %v1491_v32 = vld [vmem:[%s1430_s22 + $0x10] sm:$0xff] }
  0x15   : > { %407 = vmatpush1.bf16.msra.mxu0 %v1267_v5  ;;  %592 = vmatpush1.bf16.msra.mxu1 %v1268_v6  ;;  %v1494_v33 = vld [vmem:[%s1430_s22 + $0x18] sm:$0xff]  ;;  %v1293_v36 = vld [vmem:[%s1624_s1 + $0xf0] sm:$0xff]   ;;  %v1294_v38 = vld [vmem:[%s1624_s1 + $0xe8] sm:$0xff]   ;;  %v1164_v56 = vcombine.high %v1440_v17, %v1491_v32  ;;  %v1163_v0 = vcombine.low %v1440_v17, %v1491_v32 }
  0x16   : > { %408 = vmatprep.subr.bf16.mxu0 %v1335_v1  ;;  %593 = vmatprep.subr.bf16.mxu1 %v1335_v1  ;;  %v1296_v34 = vld [vmem:[%s1430_s22 + $0x5c] ss:$8 sps:$4 sm:$0xff]   ;;  %v1118_v35 = vcombine.high %v1491_v32, %v1494_v33  ;;  %v1299_v37 = vld [vmem:[%s1430_s22 + $0x58] ss:$8 sps:$4 sm:$0xff]   ;;  %v1117_v39 = vcombine.low %v1491_v32, %v1494_v33  ;;  %v1518_v41 = vld [vmem:[%s1430_s22 + $0x28] sm:$0xff] }
  0x17   : > { %1135 = vmatprep.mubr.msk.bf16.mxu1 %vm389_vm0, %v1116_v19  ;;  %v1515_v40 = vld [vmem:[%s1430_s22 + $0x20] sm:$0xff]  ;;  %v1303_v42 = vld [vmem:[%s1430_s22 + $0x6c] ss:$8 sps:$4 sm:$0xff]   ;;  %v1306_v45 = vld [vmem:[%s1430_s22 + $0x68] ss:$8 sps:$4 sm:$0xff]  }
  0x18   : > { %v1120_v43 = vcombine.high %v1515_v40, %v1518_v41  ;;  %v1295_v44 = vld [vmem:[%s1624_s1 + $0xe0] sm:$0xff]   ;;  %v1298_v46 = vld [vmem:[%s1624_s1 + $0xd8] sm:$0xff]   ;;  %v1119_v47 = vcombine.low %v1515_v40, %v1518_v41  ;;  %v222_v48 = vld [vmem:[%s1430_s22 + $0x30] sm:$0xff]  ;;  %v1166_v3 = vcombine.high %v1494_v33, %v1515_v40 }
  0x19   : > { %409 = vmatpush1.bf16.msra.mxu0 %v1269_v7  ;;  %594 = vmatpush1.bf16.msra.mxu1 %v1270_v8  ;;  %v1540_v49 = vld [vmem:[%s1430_s22 + $0x38] sm:$0xff]  ;;  %v1302_v52 = vld [vmem:[%s1624_s1 + $0xd0] sm:$0xff]   ;;  %v1305_v54 = vld [vmem:[%s1624_s1 + $0xc8] sm:$0xff]   ;;  %v1168_v57 = vcombine.high %v1518_v41, %v222_v48  ;;  %v1167_v2 = vcombine.low %v1518_v41, %v222_v48 }
  0x1a   : > { %410 = vmatprep.subr.bf16.mxu0 %v1335_v1  ;;  %595 = vmatprep.subr.bf16.mxu1 %v1335_v1  ;;  %v1310_v50 = vld [vmem:[%s1430_s22 + $0x7c] ss:$8 sps:$4 sm:$0xff]   ;;  %v1122_v51 = vcombine.high %v222_v48, %v1540_v49  ;;  %v1313_v53 = vld [vmem:[%s1430_s22 + $0x78] ss:$8 sps:$4 sm:$0xff]   ;;  %v1121_v55 = vcombine.low %v222_v48, %v1540_v49  ;;  %v1316_v60 = vld [vmem:[%s1624_s1 + $0x110] sm:$0xff]  }
  0x1b   : > { %v1309_v58 = vld [vmem:[%s1624_s1 + $0xc0] sm:$0xff]   ;;  %v1312_v59 = vld [vmem:[%s1624_s1 + $0x118] sm:$0xff]   ;;  %v1317_v61 = vld [vmem:[%s1624_s1 + $0x108] sm:$0xff]  }
  0x1c   : > { %v1318_v62 = vld [vmem:[%s1624_s1 + $0x100] sm:$0xff]  }
  0x1d   : > { %411 = vmatpush1.bf16.msra.mxu0 %v1271_v9  ;;  %596 = vmatpush1.bf16.msra.mxu1 %v1272_v10  ;;  %v659_v63 = vld [vmem:[%s1430_s22 + $0x40] sm:$0xff]  ;;  %s1197_s22 = sshll.u32 %s1629_s16, 5 }
  0x1e   : > { %412 = vmatprep.subr.bf16.mxu0 %v1335_v1  ;;  %597 = vmatprep.subr.bf16.mxu1 %v1335_v1  ;;  %v1170_v4 = vcombine.high %v1540_v49, %v659_v63  ;;  %v1169_v5 = vcombine.low %v1540_v49, %v659_v63  ;;  %s1606_s25 = scalar_lea.vmem %s1625_s2, %s1197_s22 }
  0x21   : > { %413 = vmatpush1.bf16.msra.mxu0 %v1273_v11  ;;  %598 = vmatpush1.bf16.msra.mxu1 %v1274_v12 }
  0x22   : > { %414 = vmatprep.subr.bf16.mxu0 %v1335_v1  ;;  %599 = vmatprep.subr.bf16.mxu1 %v1335_v1 }
  0x25   : > { %415 = vmatpush1.bf16.msra.mxu0 %v1275_v13  ;;  %600 = vmatpush1.bf16.msra.mxu1 %v1276_v14 }
  0x26   : > { %416 = vmatprep.subr.bf16.mxu0 %v1335_v1  ;;  %601 = vmatprep.subr.bf16.mxu1 %v1335_v1 }
  0x29   : > { %417 = vmatpush1.bf16.msra.mxu0 %v1277_v18  ;;  %602 = vmatpush1.bf16.msra.mxu1 %v1278_v20 }
  0x2a   : > { %426 = vmatprep.subr.bf16.mxu0 %v1335_v1  ;;  %611 = vmatprep.subr.bf16.mxu1 %v1335_v1 }
  0x2d   : > { %427 = vmatpush2.bf16.msra.mxu0 %v1279_v21  ;;  %612 = vmatpush2.bf16.msra.mxu1 %v1280_v22 }
  0x2e   : > { %428 = vmatprep.subr.bf16.mxu0 %v1335_v1  ;;  %613 = vmatprep.subr.bf16.mxu1 %v1335_v1 }
  0x31   : > { %429 = vmatpush2.bf16.msra.mxu0 %v1281_v23  ;;  %614 = vmatpush2.bf16.msra.mxu1 %v1282_v24 }
  0x32   : > { %430 = vmatprep.subr.bf16.mxu0 %v1335_v1  ;;  %615 = vmatprep.subr.bf16.mxu1 %v1335_v1 }
  0x35   : > { %431 = vmatpush2.bf16.msra.mxu0 %v1283_v25  ;;  %616 = vmatpush2.bf16.msra.mxu1 %v1284_v26 }
  0x36   : > { %432 = vmatprep.subr.bf16.mxu0 %v1335_v1  ;;  %617 = vmatprep.subr.bf16.mxu1 %v1335_v1 }
  0x39   : > { %433 = vmatpush2.bf16.msra.mxu0 %v1285_v27  ;;  %618 = vmatpush2.bf16.msra.mxu1 %v1286_v28 }
  0x3a   : > { %805 = vmatprep.subr.bf16.mxu0 %v1335_v1  ;;  %1229 = vmatprep.subr.bf16.mxu1 %v1335_v1 }
  0x3c   : > { %435 = vmatmul.mubr.bf16.vlgmr.msra.gmra.mxu0 %v1287_v29  ;;  %620 = vmatmul.mubr.bf16.vlgmr.msra.gmra.mxu1 %v1115_v30 }
  0x3d   : > { %806 = vmatpush1.bf16.msra.mxu0 %v1292_v31  ;;  %1241 = vmatpush1.bf16.msra.mxu1 %v1292_v31 }
  0x3e   : > { %807 = vmatprep.subr.bf16.mxu0 %v1335_v1  ;;  %1230 = vmatprep.subr.bf16.mxu1 %v1335_v1 }
  0x3f   : > { %1112 = vmatprep.mubr.msk.bf16.mxu0 %vm389_vm0, %v1296_v34  ;;  %1136 = vmatprep.mubr.msk.bf16.mxu1 %vm389_vm0, %v1118_v35 }
  0x41   : > { %808 = vmatpush1.bf16.msra.mxu0 %v1293_v36  ;;  %1242 = vmatpush1.bf16.msra.mxu1 %v1293_v36 }
  0x42   : > { %809 = vmatprep.subr.bf16.mxu0 %v1335_v1  ;;  %1231 = vmatprep.subr.bf16.mxu1 %v1335_v1 }
  0x44   : > { %443 = vmatmul.mubr.bf16.gmra.mxu0 %v1299_v37  ;;  %628 = vmatmul.mubr.bf16.gmra.mxu1 %v1117_v39 }
  0x45   : > { %810 = vmatpush1.bf16.msra.mxu0 %v1294_v38  ;;  %1243 = vmatpush1.bf16.msra.mxu1 %v1294_v38 }
  0x46   : > { %811 = vmatprep.subr.bf16.mxu0 %v1335_v1  ;;  %1232 = vmatprep.subr.bf16.mxu1 %v1335_v1 }
  0x47   : > { %1113 = vmatprep.mubr.msk.bf16.mxu0 %vm389_vm0, %v1303_v42  ;;  %1137 = vmatprep.mubr.msk.bf16.mxu1 %vm389_vm0, %v1120_v43 }
  0x49   : > { %812 = vmatpush1.bf16.msra.mxu0 %v1295_v44  ;;  %1244 = vmatpush1.bf16.msra.mxu1 %v1295_v44 }
  0x4a   : > { %813 = vmatprep.subr.bf16.mxu0 %v1335_v1  ;;  %1233 = vmatprep.subr.bf16.mxu1 %v1335_v1 }
  0x4c   : > { %451 = vmatmul.mubr.bf16.gmra.mxu0 %v1306_v45  ;;  %636 = vmatmul.mubr.bf16.gmra.mxu1 %v1119_v47 }
  0x4d   : > { %814 = vmatpush1.bf16.msra.mxu0 %v1298_v46  ;;  %1245 = vmatpush1.bf16.msra.mxu1 %v1298_v46 }
  0x4e   : > { %815 = vmatprep.subr.bf16.mxu0 %v1335_v1  ;;  %1234 = vmatprep.subr.bf16.mxu1 %v1335_v1 }
  0x4f   : > { %1114 = vmatprep.mubr.msk.bf16.mxu0 %vm389_vm0, %v1310_v50  ;;  %1138 = vmatprep.mubr.msk.bf16.mxu1 %vm389_vm0, %v1122_v51 }
  0x51   : > { %816 = vmatpush1.bf16.msra.mxu0 %v1302_v52  ;;  %1246 = vmatpush1.bf16.msra.mxu1 %v1302_v52 }
  0x52   : > { %817 = vmatprep.subr.bf16.mxu0 %v1335_v1  ;;  %1235 = vmatprep.subr.bf16.mxu1 %v1335_v1 }
  0x54   : > { %459 = vmatmul.mubr.bf16.gmra.mxu0 %v1313_v53  ;;  %644 = vmatmul.mubr.bf16.gmra.mxu1 %v1121_v55 }
  0x55   : > { %818 = vmatpush1.bf16.msra.mxu0 %v1305_v54  ;;  %1247 = vmatpush1.bf16.msra.mxu1 %v1305_v54 }
  0x56   : > { %819 = vmatprep.subr.bf16.mxu0 %v1335_v1  ;;  %1236 = vmatprep.subr.bf16.mxu1 %v1335_v1 }
  0x57   : > { %1183 = vmatprep.mubr.msk.bf16.mxu0 %vm389_vm0, %v1164_v56  ;;  %1185 = vmatprep.mubr.msk.bf16.mxu1 %vm389_vm0, %v1168_v57 }
  0x59   : > { %820 = vmatpush1.bf16.msra.mxu0 %v1309_v58  ;;  %1248 = vmatpush1.bf16.msra.mxu1 %v1309_v58 }
  0x5a   : > { %829 = vmatprep.subr.bf16.mxu0 %v1335_v1  ;;  %1237 = vmatprep.subr.bf16.mxu1 %v1335_v1 }
  0x5d   : > { %830 = vmatpush2.bf16.msra.mxu0 %v1312_v59  ;;  %1249 = vmatpush2.bf16.msra.mxu1 %v1312_v59 }
  0x5e   : > { %831 = vmatprep.subr.bf16.mxu0 %v1335_v1  ;;  %1238 = vmatprep.subr.bf16.mxu1 %v1335_v1 }
  0x61   : > { %832 = vmatpush2.bf16.msra.mxu0 %v1316_v60  ;;  %1250 = vmatpush2.bf16.msra.mxu1 %v1316_v60 }
  0x62   : > { %833 = vmatprep.subr.bf16.mxu0 %v1335_v1  ;;  %1239 = vmatprep.subr.bf16.mxu1 %v1335_v1 }
  0x65   : > { %834 = vmatpush2.bf16.msra.mxu0 %v1317_v61  ;;  %1251 = vmatpush2.bf16.msra.mxu1 %v1317_v61 }
  0x66   : > { %835 = vmatprep.subr.bf16.mxu0 %v1335_v1  ;;  %1240 = vmatprep.subr.bf16.mxu1 %v1335_v1  ;;  %v1165_v1 = vcombine.low %v1494_v33, %v1515_v40 }
  0x69   : > { %836 = vmatpush2.bf16.msra.mxu0 %v1318_v62  ;;  %1252 = vmatpush2.bf16.msra.mxu1 %v1318_v62 }
  0x6c   : > { %838 = vmatmul.mubr.bf16.vlgmr.msra.gmra.mxu0 %v1163_v0  ;;  %854 = vmatmul.mubr.bf16.vlgmr.msra.gmra.mxu1 %v1167_v2 }
  0x6d   : > { %1184 = vmatprep.mubr.msk.bf16.mxu0 %vm389_vm0, %v1166_v3  ;;  %1186 = vmatprep.mubr.msk.bf16.mxu1 %vm389_vm0, %v1170_v4 }
  0x74   : > { %846 = vmatmul.mubr.bf16.gmra.mxu0 %v1165_v1  ;;  %862 = vmatmul.mubr.bf16.gmra.mxu1 %v1169_v5 }
  0xfc   : > { %v436_v6 = vpop.f32.mrf.mxu0  ;;  %v621_v7 = vpop.f32.mrf.mxu1 }
  0xfd   : > { %v622_v41 = vadd.f32 %v621_v7, %v436_v6 }
  0xfe   : > { %v438_v8 = vpop.f32.mrf.mxu0  ;;  %v623_v9 = vpop.f32.mrf.mxu1 }
 0x100   : > { %v439_v10 = vpop.f32.mrf.mxu0  ;;  %v624_v11 = vpop.f32.mrf.mxu1 }
 0x101   : > { %v625_v42 = vadd.f32 %v624_v11, %v439_v10 }
 0x102   : > { %v441_v12 = vpop.f32.mrf.mxu0  ;;  %v626_v13 = vpop.f32.mrf.mxu1 }
 0x104   : > { %v444_v14 = vpop.f32.mrf.mxu0  ;;  %v629_v15 = vpop.f32.mrf.mxu1 }
 0x105   : > { %v630_v53 = vadd.f32 %v629_v15, %v444_v14 }
 0x106   : > { %v446_v16 = vpop.f32.mrf.mxu0  ;;  %v631_v17 = vpop.f32.mrf.mxu1 }
 0x108   : > { %v447_v18 = vpop.f32.mrf.mxu0  ;;  %v632_v19 = vpop.f32.mrf.mxu1 }
 0x109   : > { %v633_v62 = vadd.f32 %v632_v19, %v447_v18 }
 0x10a   : > { %v449_v20 = vpop.f32.mrf.mxu0  ;;  %v634_v21 = vpop.f32.mrf.mxu1 }
 0x10c   : > { %v452_v22 = vpop.f32.mrf.mxu0  ;;  %v637_v23 = vpop.f32.mrf.mxu1 }
 0x10d   : > { %v638_v44 = vadd.f32 %v637_v23, %v452_v22 }
 0x10e   : > { %v454_v24 = vpop.f32.mrf.mxu0  ;;  %v639_v25 = vpop.f32.mrf.mxu1 }
 0x110   : > { %v455_v26 = vpop.f32.mrf.mxu0  ;;  %v640_v27 = vpop.f32.mrf.mxu1 }
 0x111   : > { %v641_v45 = vadd.f32 %v640_v27, %v455_v26 }
 0x112   : > { %v457_v28 = vpop.f32.mrf.mxu0  ;;  %v642_v29 = vpop.f32.mrf.mxu1 }
 0x114   : > { %v460_v30 = vpop.f32.mrf.mxu0  ;;  %v645_v31 = vpop.f32.mrf.mxu1 }
 0x115   : > { %v646_v4 = vadd.f32 %v645_v31, %v460_v30 }
 0x116   : > { %v462_v32 = vpop.f32.mrf.mxu0  ;;  %v647_v33 = vpop.f32.mrf.mxu1 }
 0x118   : > { %v463_v34 = vpop.f32.mrf.mxu0  ;;  %v648_v35 = vpop.f32.mrf.mxu1 }
 0x119   : > { %v649_v1 = vadd.f32 %v648_v35, %v463_v34 }
 0x11a   : > { %v465_v36 = vpop.f32.mrf.mxu0  ;;  %v650_v37 = vpop.f32.mrf.mxu1 }
 0x12c   : > { %v839_v38 = vpop.f32.mrf.mxu0  ;;  %v855_v39 = vpop.f32.mrf.mxu1 }
 0x12d   : > { %v870_v47 = vadd.f32 %v839_v38, %v622_v41  ;;  %v874_v50 = vadd.f32 %v855_v39, %v638_v44 }
 0x12e   : > { %v841_v40 = vpop.f32.mrf.mxu0  ;;  %v857_v43 = vpop.f32.mrf.mxu1 }
 0x12f   : > { %v932_v63 = vmul.f32 %v870_v47, %v870_v47  ;;  %v936_v19 = vmul.f32 %v874_v50, %v874_v50 }
 0x130   : > { %v842_v46 = vpop.f32.mrf.mxu0  ;;  %v858_v49 = vpop.f32.mrf.mxu1 }
 0x131   : > { %v871_v48 = vadd.f32 %v842_v46, %v625_v42  ;;  %v875_v51 = vadd.f32 %v858_v49, %v641_v45 }
 0x132   : > { %v844_v52 = vpop.f32.mrf.mxu0  ;;  %v860_v55 = vpop.f32.mrf.mxu1 }
 0x133   : > { %v1209_v54 = vpack.c.bf16 %v871_v48, %v870_v47  ;;  %v1219_v56 = vpack.c.bf16 %v875_v51, %v874_v50  ;;  %v933_v58 = vmul.f32 %v871_v48, %v871_v48  ;;  %v918_v0 = vadd.f32 %v871_v48, %v870_v47 }
 0x134   : > { %v847_v57 = vpop.f32.mrf.mxu0  ;;  %v863_v60 = vpop.f32.mrf.mxu1  ;;  %v937_v22 = vmul.f32 %v875_v51, %v875_v51 }
 0x135   : > { %1210 = vst [vmem:[%s1606_s25] sm:$0xff] %v1209_v54   ;;  %v872_v59 = vadd.f32 %v847_v57, %v630_v53  ;;  %1227 = vst [vmem:[%s1606_s25 + $0x10] sm:$0xff] %v1219_v56   ;;  %v940_v6 = vadd.f32 %v933_v58, %v932_v63  ;;  %v876_v10 = vadd.f32 %v863_v60, %v646_v4 }
 0x136   : > { %v849_v61 = vpop.f32.mrf.mxu0  ;;  %v865_v3 = vpop.f32.mrf.mxu1 }
 0x137   : > { %v934_v2 = vmul.f32 %v872_v59, %v872_v59  ;;  %v919_v7 = vadd.f32 %v918_v0, %v872_v59  ;;  %v938_v25 = vmul.f32 %v876_v10, %v876_v10 }
 0x138   : > { %v850_v5 = vpop.f32.mrf.mxu0  ;;  %v866_v9 = vpop.f32.mrf.mxu1 }
 0x139   : > { %v873_v8 = vadd.f32 %v850_v5, %v633_v62  ;;  %v877_v11 = vadd.f32 %v866_v9, %v649_v1  ;;  %v941_v13 = vadd.f32 %v940_v6, %v934_v2 }
 0x13a   : > { %v852_v12 = vpop.f32.mrf.mxu0  ;;  %v868_v17 = vpop.f32.mrf.mxu1 }
 0x13b   : > { %v1214_v14 = vpack.c.bf16 %v873_v8, %v872_v59  ;;  %v920_v15 = vadd.f32 %v919_v7, %v873_v8  ;;  %v935_v16 = vmul.f32 %v873_v8, %v873_v8  ;;  %v1224_v18 = vpack.c.bf16 %v877_v11, %v876_v10 }
 0x13c   : > { %v939_v29 = vmul.f32 %v877_v11, %v877_v11 }
 0x13d   : > { %1226 = vst [vmem:[%s1606_s25 + $0x8] sm:$0xff] %v1214_v14   ;;  %v921_v20 = vadd.f32 %v920_v15, %v874_v50  ;;  %v942_v21 = vadd.f32 %v941_v13, %v935_v16  ;;  %1228 = vst [vmem:[%s1606_s25 + $0x18] sm:$0xff] %v1224_v18  }
 0x13f   : > { %v943_v23 = vadd.f32 %v942_v21, %v936_v19  ;;  %v922_v24 = vadd.f32 %v921_v20, %v875_v51 }
 0x141   : > { %v923_v26 = vadd.f32 %v922_v24, %v876_v10  ;;  %v944_v27 = vadd.f32 %v943_v23, %v937_v22 }
 0x143   : > { %v924_v28 = vadd.f32 %v923_v26, %v877_v11  ;;  %v945_v30 = vadd.f32 %v944_v27, %v938_v25 }
 0x145   : > { %v925_v31 = vrot.slane %v924_v28, 4  ;;  %v946_v32 = vadd.f32 %v945_v30, %v939_v29 }
 0x147   : > { %v926_v33 = vadd.f32 %v925_v31, %v924_v28  ;;  %v947_v34 = vrot.slane %v946_v32, 4 }
 0x149   : > { %v927_v35 = vrot.slane %v926_v33, 2  ;;  %v948_v36 = vadd.f32 %v947_v34, %v946_v32 }
 0x14b   : > { %v928_v37 = vadd.f32 %v927_v35, %v926_v33  ;;  %v949_v38 = vrot.slane %v948_v36, 2 }
 0x14d   : > { %v929_v39 = vrot.slane %v928_v37, 1  ;;  %v950_v40 = vadd.f32 %v949_v38, %v948_v36 }
 0x14f   : > { %v930_v41 = vadd.f32 %v929_v39, %v928_v37  ;;  %v951_v42 = vrot.slane %v950_v40, 1 }
 0x151   : > { %931 = vst [vmem:[%s211_s28] sm:$0x1] %v930_v41  ;;  %v952_v43 = vadd.f32 %v951_v42, %v950_v40 }
 0x153   : > { %953 = vst [vmem:[%s214_s5] sm:$0x1] %v952_v43 }
 0x154 PF: > { %s15_s15 = sadd.s32 1, %s1333_s15  }
 0x155   : > { %p12_p4 = scmp.ge.s32.totalorder %s15_s15, 4  }
 0x157   :  { %14 = sbr.rel (!%p12_p4) target bundleno = 1 (0x1), region = 84 }

// kernel: resnet18_forward.9
= control target key start
LH: loop header
LB: loop body
LE: loop exit
PB: predicated region body
PF: predicated region fallthrough
CT: control target
= control target key end

     0   :  { %s2202_s15 = smov 0   ;;  %s2709_s0 = inlined_call_operand.vmem [shape: bf16[2,40,384], index: 0, kind: input, shape index: {}]   ;;  %s2710_s1 = inlined_call_operand.vmem [shape: bf16[3,384,256], index: 1, kind: input, shape index: {}]   ;;  %s2711_s2 = inlined_call_operand.vmem [shape: bf16[2,16,256], index: 2, kind: output, shape index: {0}]   ;;  %s2712_s3 = inlined_call_operand.vmem [shape: f32[2,1,256], index: 3, kind: output, shape index: {1}]   ;;  %s2713_s4 = inlined_call_operand.vmem [shape: f32[2,1,256], index: 4, kind: output, shape index: {2}]  }
   0x1 LB: > { %s1652_s16 = sadd.s32 4294967295, %s2173_s15   ;;  %p1656_p0 = scmp.ge.s32.totalorder %s2173_s15, 1  ;;  %s2173_s15 = sphi %s2202_s15, %s15_s15  }
   0x2   : > { %p167_p1 = scmp.lt.s32.totalorder %s2173_s15, 3 }
   0x4   : > { %p168_p2 = pnand %p1656_p0, %p167_p1 }
   0x5   : > { %p201_p3 = scmp.lt.s32.totalorder (!%p168_p2), %s1652_s16, 1 }
   0x6   : > { %171 = sbr.rel (%p168_p2) target bundleno = 399 (0x18f), region = 28 }
   0xb   : > { %v1935_v0 = vld [vmem:[%s2710_s1 + $0x1f4] ss:$8 sps:$4 sm:$0xff]   ;;  %v2175_v2 = vmov 0   ;;  %v1939_v3 = vld [vmem:[%s2710_s1 + $0x1f0] ss:$8 sps:$4 sm:$0xff]   ;;  %s2715_s16 = smov (!%p201_p3, %s1652_s16), 1 }
   0xc   : > { %v1937_v1 = vld [vmem:[%s2710_s1 + $0x2f4] ss:$8 sps:$4 sm:$0xff]   ;;  %676 = vmatprep.mubr.bf16.mxu1 %v2175_v2  ;;  %601 = vmatprep.subr.bf16.mxu0 %v1935_v0  ;;  %v1940_v4 = vld [vmem:[%s2710_s1 + $0x2f0] ss:$8 sps:$4 sm:$0xff]   ;;  %v1941_v5 = vld [vmem:[%s2710_s1 + $0x1e4] ss:$8 sps:$4 sm:$0xff]  }
   0xd   : > { %644 = vmatprep.subr.bf16.mxu1 %v1937_v1  ;;  %602 = vmatpush1.bf16.msra.mxu0 %v1939_v3  ;;  %v1943_v6 = vld [vmem:[%s2710_s1 + $0x2e4] ss:$8 sps:$4 sm:$0xff]   ;;  %v1945_v7 = vld [vmem:[%s2710_s1 + $0x1e0] ss:$8 sps:$4 sm:$0xff]   ;;  %v1947_v9 = vld [vmem:[%s2710_s1 + $0x1d4] ss:$8 sps:$4 sm:$0xff]  }
   0xe   : > { %645 = vmatpush1.bf16.msra.mxu1 %v1940_v4  ;;  %603 = vmatprep.subr.bf16.mxu0 %v1941_v5  ;;  %v1946_v8 = vld [vmem:[%s2710_s1 + $0x2e0] ss:$8 sps:$4 sm:$0xff]   ;;  %v1949_v10 = vld [vmem:[%s2710_s1 + $0x2d4] ss:$8 sps:$4 sm:$0xff]   ;;  %v1951_v11 = vld [vmem:[%s2710_s1 + $0x1d0] ss:$8 sps:$4 sm:$0xff]  }
   0xf   : > { %646 = vmatprep.subr.bf16.mxu1 %v1943_v6  ;;  %v1952_v12 = vld [vmem:[%s2710_s1 + $0x2d0] ss:$8 sps:$4 sm:$0xff]   ;;  %v1953_v13 = vld [vmem:[%s2710_s1 + $0x1c4] ss:$8 sps:$4 sm:$0xff]   ;;  %v1957_v15 = vld [vmem:[%s2710_s1 + $0x1c0] ss:$8 sps:$4 sm:$0xff]  }
  0x10   : > { %v1955_v14 = vld [vmem:[%s2710_s1 + $0x2c4] ss:$8 sps:$4 sm:$0xff]   ;;  %v1958_v16 = vld [vmem:[%s2710_s1 + $0x2c0] ss:$8 sps:$4 sm:$0xff]   ;;  %v1959_v17 = vld [vmem:[%s2710_s1 + $0x1b4] ss:$8 sps:$4 sm:$0xff]  }
  0x11   : > { %604 = vmatpush1.bf16.msra.mxu0 %v1945_v7  ;;  %v1961_v18 = vld [vmem:[%s2710_s1 + $0x2b4] ss:$8 sps:$4 sm:$0xff]   ;;  %v1963_v19 = vld [vmem:[%s2710_s1 + $0x1b0] ss:$8 sps:$4 sm:$0xff]   ;;  %v1965_v21 = vld [vmem:[%s2710_s1 + $0x1a4] ss:$8 sps:$4 sm:$0xff]  }
  0x12   : > { %647 = vmatpush1.bf16.msra.mxu1 %v1946_v8  ;;  %605 = vmatprep.subr.bf16.mxu0 %v1947_v9  ;;  %v1964_v20 = vld [vmem:[%s2710_s1 + $0x2b0] ss:$8 sps:$4 sm:$0xff]   ;;  %v1967_v22 = vld [vmem:[%s2710_s1 + $0x2a4] ss:$8 sps:$4 sm:$0xff]   ;;  %s1924_s11 = smul.u32 60, %s2715_s16  ;;  %vm348_vm0 = vcmask 1045504  }
  0x13   : > { %648 = vmatprep.subr.bf16.mxu1 %v1949_v10  ;;  %v1969_v23 = vld [vmem:[%s2710_s1 + $0x1a0] ss:$8 sps:$4 sm:$0xff]   ;;  %v1971_v25 = vld [vmem:[%s2710_s1 + $0x194] ss:$8 sps:$4 sm:$0xff]   ;;  %v1975_v27 = vld [vmem:[%s2710_s1 + $0x190] ss:$8 sps:$4 sm:$0xff]  }
  0x14   : > { %v1970_v24 = vld [vmem:[%s2710_s1 + $0x2a0] ss:$8 sps:$4 sm:$0xff]   ;;  %v1973_v26 = vld [vmem:[%s2710_s1 + $0x294] ss:$8 sps:$4 sm:$0xff]   ;;  %s2302_s26 = scalar_lea.vmem %s2709_s0, %s1924_s11  ;;  %v1976_v28 = vld [vmem:[%s2710_s1 + $0x290] ss:$8 sps:$4 sm:$0xff]  }
  0x15   : > { %606 = vmatpush1.bf16.msra.mxu0 %v1951_v11  ;;  %v1977_v29 = vld [vmem:[%s2710_s1 + $0x184] ss:$8 sps:$4 sm:$0xff]   ;;  %v1990_v32 = vld [vmem:[%s2302_s26 + $0x38] ss:$0 sps:$4 sm:$0x33]   ;;  %s1921_s29 = sshll.u32 %s2715_s16, 4 }
  0x16   : > { %649 = vmatpush1.bf16.msra.mxu1 %v1952_v12  ;;  %607 = vmatprep.subr.bf16.mxu0 %v1953_v13  ;;  %v1979_v30 = vld [vmem:[%s2710_s1 + $0x284] ss:$8 sps:$4 sm:$0xff]   ;;  %v1981_v33 = vld [vmem:[%s2710_s1 + $0x180] ss:$8 sps:$4 sm:$0xff]   ;;  %v1983_v35 = vld [vmem:[%s2710_s1 + $0x274] ss:$8 sps:$4 sm:$0xff]   ;;  %s210_s6 = scalar_lea.vmem %s2711_s2, %s1921_s29 }
  0x17   : > { %650 = vmatprep.subr.bf16.mxu1 %v1955_v14  ;;  %v1989_v31 = vld [vmem:[%s2302_s26 + $0x20] ss:$12 sps:$4 sm:$0xfc]   ;;  %v356_v37 = vrot.slane %v1990_v32, 2  ;;  %v1987_v38 = vld [vmem:[%s2710_s1 + $0x74] ss:$8 sps:$4 sm:$0xff]  }
  0x18   : > { %v1982_v34 = vld [vmem:[%s2710_s1 + $0x280] ss:$8 sps:$4 sm:$0xff]   ;;  %v355_v36 = vrot.slane %v1989_v31, 2  ;;  %v1985_v39 = vld [vmem:[%s2710_s1 + $0x70] ss:$8 sps:$4 sm:$0xff]   ;;  %s1660_s7 = sshll.u32 %s2715_s16, 1 }
  0x19   : > { %608 = vmatpush1.bf16.msra.mxu0 %v1957_v15  ;;  %v1988_v40 = vld [vmem:[%s2710_s1 + $0x270] ss:$8 sps:$4 sm:$0xff]   ;;  %v1991_v42 = vld [vmem:[%s2710_s1 + $0x264] ss:$8 sps:$4 sm:$0xff]   ;;  %v1993_v44 = vld [vmem:[%s2710_s1 + $0x60] ss:$8 sps:$4 sm:$0xff]   ;;  %s214_s10 = scalar_lea.vmem %s2712_s3, %s1660_s7  ;;  %s218_s13 = scalar_lea.vmem %s2713_s4, %s1660_s7 }
  0x1a   : > { %651 = vmatpush1.bf16.msra.mxu1 %v1958_v16  ;;  %609 = vmatprep.subr.bf16.mxu0 %v1959_v17  ;;  %v357_v41 = vsel %vm348_vm0, %v355_v36, %v356_v37  ;;  %v1995_v43 = vld [vmem:[%s2710_s1 + $0x64] ss:$8 sps:$4 sm:$0xff]   ;;  %v1996_v45 = vld [vmem:[%s2710_s1 + $0x260] ss:$8 sps:$4 sm:$0xff]   ;;  %v1997_v46 = vld [vmem:[%s2710_s1 + $0x254] ss:$8 sps:$4 sm:$0xff]  }
  0x1b   : > { %652 = vmatprep.subr.bf16.mxu1 %v1961_v18  ;;  %v2001_v47 = vld [vmem:[%s2710_s1 + $0x54] ss:$8 sps:$4 sm:$0xff]   ;;  %v1999_v48 = vld [vmem:[%s2710_s1 + $0x50] ss:$8 sps:$4 sm:$0xff]   ;;  %v2003_v50 = vld [vmem:[%s2710_s1 + $0x244] ss:$8 sps:$4 sm:$0xff]  }
  0x1c   : > { %v2002_v49 = vld [vmem:[%s2710_s1 + $0x250] ss:$8 sps:$4 sm:$0xff]   ;;  %v2007_v51 = vld [vmem:[%s2710_s1 + $0x44] ss:$8 sps:$4 sm:$0xff]   ;;  %v2005_v52 = vld [vmem:[%s2710_s1 + $0x40] ss:$8 sps:$4 sm:$0xff]  }
  0x1d   : > { %610 = vmatpush1.bf16.msra.mxu0 %v1963_v19  ;;  %v2008_v53 = vld [vmem:[%s2710_s1 + $0x240] ss:$8 sps:$4 sm:$0xff]   ;;  %v2009_v54 = vld [vmem:[%s2710_s1 + $0x234] ss:$8 sps:$4 sm:$0xff]   ;;  %v2011_v59 = vld [vmem:[%s2710_s1 + $0x30] ss:$8 sps:$4 sm:$0xff]  }
  0x1e   : > { %653 = vmatpush1.bf16.msra.mxu1 %v1964_v20  ;;  %611 = vmatprep.subr.bf16.mxu0 %v1965_v21  ;;  %v2013_v55 = vld [vmem:[%s2710_s1 + $0x34] ss:$8 sps:$4 sm:$0xff]   ;;  %v2014_v61 = vld [vmem:[%s2710_s1 + $0x230] ss:$8 sps:$4 sm:$0xff]   ;;  %v2015_v62 = vld [vmem:[%s2710_s1 + $0x224] ss:$8 sps:$4 sm:$0xff]  }
  0x1f   : > { %654 = vmatprep.subr.bf16.mxu1 %v1967_v22  ;;  %v276_v56 = vld [vmem:[%s2302_s26 + $0x30] sm:$0x33]  ;;  %v2033_v57 = vld [vmem:[%s2302_s26 + $0x1c] ss:$12 sps:$4 sm:$0xfc]  }
  0x20   : > { %v1714_v58 = vcombine.high %v276_v56, %v276_v56  ;;  %v352_v60 = vrot.slane %v2033_v57, 2  ;;  %v2019_v0 = vld [vmem:[%s2710_s1 + $0x24] ss:$8 sps:$4 sm:$0xff]   ;;  %v2017_v3 = vld [vmem:[%s2710_s1 + $0x20] ss:$8 sps:$4 sm:$0xff]   ;;  %v1713_v11 = vcombine.low %v276_v56, %v276_v56 }
  0x21   : > { %612 = vmatpush1.bf16.msra.mxu0 %v1969_v23  ;;  %v2020_v4 = vld [vmem:[%s2710_s1 + $0x220] ss:$8 sps:$4 sm:$0xff]   ;;  %v2021_v5 = vld [vmem:[%s2710_s1 + $0x214] ss:$8 sps:$4 sm:$0xff]   ;;  %v2023_v7 = vld [vmem:[%s2710_s1 + $0x10] ss:$8 sps:$4 sm:$0xff]  }
  0x22   : > { %655 = vmatpush1.bf16.msra.mxu1 %v1970_v24  ;;  %613 = vmatprep.subr.bf16.mxu0 %v1971_v25  ;;  %v353_v63 = vrot.slane %v1714_v58, 2  ;;  %v2025_v6 = vld [vmem:[%s2710_s1 + $0x14] ss:$8 sps:$4 sm:$0xff]   ;;  %v2026_v8 = vld [vmem:[%s2710_s1 + $0x210] ss:$8 sps:$4 sm:$0xff]   ;;  %v350_v16 = vrot.slane %v1713_v11, 2 }
  0x23   : > { %656 = vmatprep.subr.bf16.mxu1 %v1973_v26  ;;  %v2027_v9 = vld [vmem:[%s2710_s1 + $0x204] ss:$8 sps:$4 sm:$0xff]   ;;  %v2029_v13 = vld [vmem:[%s2710_s1] ss:$8 sps:$4 sm:$0xff]   ;;  %v2040_v17 = vld [vmem:[%s2710_s1 + $0xf4] ss:$8 sps:$4 sm:$0xff]  }
  0x24   : > { %v354_v1 = vsel %vm348_vm0, %v352_v60, %v353_v63  ;;  %v2036_v10 = vld [vmem:[%s2302_s26 + $0x18] ss:$12 sps:$4 sm:$0xfc]   ;;  %v2032_v14 = vld [vmem:[%s2710_s1 + $0x200] ss:$8 sps:$4 sm:$0xff]  }
  0x25   : > { %614 = vmatpush1.bf16.msra.mxu0 %v1975_v27  ;;  %633 = vmatprep.mubr.bf16.mxu0 %v354_v1  ;;  %v2031_v12 = vld [vmem:[%s2710_s1 + $0x4] ss:$8 sps:$4 sm:$0xff]   ;;  %v349_v15 = vrot.slane %v2036_v10, 2  ;;  %v2043_v18 = vld [vmem:[%s2710_s1 + $0x174] ss:$8 sps:$4 sm:$0xff]  }
  0x26   : > { %657 = vmatpush1.bf16.msra.mxu1 %v1976_v28  ;;  %615 = vmatprep.subr.bf16.mxu0 %v1977_v29  ;;  %v2038_v19 = vld [vmem:[%s2710_s1 + $0xf0] ss:$8 sps:$4 sm:$0xff]   ;;  %v2046_v22 = vld [vmem:[%s2710_s1 + $0xe4] ss:$8 sps:$4 sm:$0xff]   ;;  %v2044_v24 = vld [vmem:[%s2710_s1 + $0xe0] ss:$8 sps:$4 sm:$0xff]  }
  0x27   : > { %658 = vmatprep.subr.bf16.mxu1 %v1979_v30  ;;  %v2041_v20 = vld [vmem:[%s2710_s1 + $0x170] ss:$8 sps:$4 sm:$0xff]   ;;  %v351_v21 = vsel %vm348_vm0, %v349_v15, %v350_v16  ;;  %v2049_v23 = vld [vmem:[%s2710_s1 + $0x164] ss:$8 sps:$4 sm:$0xff]   ;;  %v2047_v25 = vld [vmem:[%s2710_s1 + $0x160] ss:$8 sps:$4 sm:$0xff]  }
  0x28   : > { %v2052_v26 = vld [vmem:[%s2710_s1 + $0xd4] ss:$8 sps:$4 sm:$0xff]   ;;  %v2451_v27 = vld [vmem:[%s2302_s26] sm:$0xff]  ;;  %v2454_v28 = vld [vmem:[%s2302_s26 + $0xc] sm:$0xff] }
  0x29   : > { %616 = vmatpush1.bf16.msra.mxu0 %v1981_v33  ;;  %v2055_v29 = vld [vmem:[%s2710_s1 + $0x154] ss:$8 sps:$4 sm:$0xff]   ;;  %v1765_v30 = vcombine.high %v2451_v27, %v2454_v28  ;;  %v2050_v31 = vld [vmem:[%s2710_s1 + $0xd0] ss:$8 sps:$4 sm:$0xff]   ;;  %v2058_v33 = vld [vmem:[%s2710_s1 + $0xc4] ss:$8 sps:$4 sm:$0xff]   ;;  %v1764_v56 = vcombine.low %v2451_v27, %v2454_v28 }
  0x2a   : > { %659 = vmatpush1.bf16.msra.mxu1 %v1982_v34  ;;  %617 = vmatprep.subr.bf16.mxu0 %v1983_v35  ;;  %v2053_v32 = vld [vmem:[%s2710_s1 + $0x150] ss:$8 sps:$4 sm:$0xff]   ;;  %v2061_v34 = vld [vmem:[%s2710_s1 + $0x144] ss:$8 sps:$4 sm:$0xff]   ;;  %v2056_v35 = vld [vmem:[%s2710_s1 + $0xc0] ss:$8 sps:$4 sm:$0xff]  }
  0x2b   : > { %943 = vmatprep.subr.bf16.mxu1 %v1987_v38  ;;  %v2059_v36 = vld [vmem:[%s2710_s1 + $0x140] ss:$8 sps:$4 sm:$0xff]   ;;  %v2064_v37 = vld [vmem:[%s2710_s1 + $0xb4] ss:$8 sps:$4 sm:$0xff]   ;;  %v2089_v57 = vld [vmem:[%s2710_s1 + $0x370] ss:$8 sps:$4 sm:$0xff]  }
  0x2c   : > { %v2067_v38 = vld [vmem:[%s2710_s1 + $0x134] ss:$8 sps:$4 sm:$0xff]   ;;  %v2110_v58 = vld [vmem:[%s2710_s1 + $0x470] ss:$8 sps:$4 sm:$0xff]   ;;  %v2118_v60 = vld [vmem:[%s2710_s1 + $0x464] ss:$8 sps:$4 sm:$0xff]  }
  0x2d   : > { %677 = vmatmul.mubr.bf16.vlgmr.msra.gmra.mxu1 %v357_v41  ;;  %618 = vmatpush2.bf16.msra.mxu0 %v1988_v40  ;;  %v2065_v40 = vld [vmem:[%s2710_s1 + $0x130] ss:$8 sps:$4 sm:$0xff]   ;;  %v2070_v41 = vld [vmem:[%s2710_s1 + $0xa4] ss:$8 sps:$4 sm:$0xff]   ;;  %v2116_v63 = vld [vmem:[%s2710_s1 + $0x460] ss:$8 sps:$4 sm:$0xff]  }
  0x2e   : > { %944 = vmatpush1.bf16.msra.mxu1 %v1985_v39  ;;  %619 = vmatprep.subr.bf16.mxu0 %v1991_v42  ;;  %v2062_v39 = vld [vmem:[%s2710_s1 + $0xb0] ss:$8 sps:$4 sm:$0xff]   ;;  %v2073_v42 = vld [vmem:[%s2710_s1 + $0x124] ss:$8 sps:$4 sm:$0xff]   ;;  %v2098_v11 = vld [vmem:[%s2710_s1 + $0x340] ss:$8 sps:$4 sm:$0xff]  }
  0x2f   : > { %945 = vmatprep.subr.bf16.mxu1 %v1995_v43  ;;  %975 = vmatprep.mubr.bf16.mxu1 %v1765_v30  ;;  %v2068_v43 = vld [vmem:[%s2710_s1 + $0xa0] ss:$8 sps:$4 sm:$0xff]   ;;  %v2101_v16 = vld [vmem:[%s2710_s1 + $0x330] ss:$8 sps:$4 sm:$0xff]   ;;  %v2154_v30 = vld [vmem:[%s2710_s1 + $0x404] ss:$8 sps:$4 sm:$0xff]  }
  0x30   : > { %v2563_v1 = vld [vmem:[%s2302_s26] sm:$0xcc]  ;;  %v2159_v27 = vld [vmem:[%s2302_s26 + $0x20] ss:$0 sps:$4 sm:$0x33]  }
  0x31   : > { %620 = vmatpush2.bf16.msra.mxu0 %v1996_v45  ;;  %v2076_v45 = vld [vmem:[%s2710_s1 + $0x94] ss:$8 sps:$4 sm:$0xff]  }
  0x32   : > { %946 = vmatpush1.bf16.msra.mxu1 %v1993_v44  ;;  %621 = vmatprep.subr.bf16.mxu0 %v1997_v46  ;;  %v2071_v44 = vld [vmem:[%s2710_s1 + $0x120] ss:$8 sps:$4 sm:$0xff]   ;;  %v2079_v46 = vld [vmem:[%s2710_s1 + $0x114] ss:$8 sps:$4 sm:$0xff]  }
  0x33   : > { %947 = vmatprep.subr.bf16.mxu1 %v2001_v47  ;;  %v2074_v47 = vld [vmem:[%s2710_s1 + $0x90] ss:$8 sps:$4 sm:$0xff]  }
  0x35   : > { %622 = vmatpush2.bf16.msra.mxu0 %v2002_v49  ;;  %v2082_v49 = vld [vmem:[%s2710_s1 + $0x84] ss:$8 sps:$4 sm:$0xff]  }
  0x36   : > { %948 = vmatpush1.bf16.msra.mxu1 %v1999_v48  ;;  %623 = vmatprep.subr.bf16.mxu0 %v2003_v50  ;;  %v2077_v48 = vld [vmem:[%s2710_s1 + $0x110] ss:$8 sps:$4 sm:$0xff]   ;;  %v2085_v50 = vld [vmem:[%s2710_s1 + $0x104] ss:$8 sps:$4 sm:$0xff]  }
  0x37   : > { %949 = vmatprep.subr.bf16.mxu1 %v2007_v51  ;;  %v2080_v51 = vld [vmem:[%s2710_s1 + $0x80] ss:$8 sps:$4 sm:$0xff]  }
  0x39   : > { %624 = vmatpush2.bf16.msra.mxu0 %v2008_v53  ;;  %v2091_v53 = vld [vmem:[%s2710_s1 + $0x374] ss:$8 sps:$4 sm:$0xff]  }
  0x3a   : > { %950 = vmatpush1.bf16.msra.mxu1 %v2005_v52  ;;  %625 = vmatprep.subr.bf16.mxu0 %v2009_v54  ;;  %v2083_v52 = vld [vmem:[%s2710_s1 + $0x100] ss:$8 sps:$4 sm:$0xff]   ;;  %v2112_v54 = vld [vmem:[%s2710_s1 + $0x474] ss:$8 sps:$4 sm:$0xff]  }
  0x3b   : > { %951 = vmatprep.subr.bf16.mxu1 %v2013_v55  ;;  %v2088_v55 = vld [vmem:[%s2302_s26 + $0x8] ss:$12 sps:$4 sm:$0xff]  }
  0x3d   : > { %626 = vmatpush2.bf16.msra.mxu0 %v2014_v61  ;;  %v2092_v61 = vld [vmem:[%s2710_s1 + $0x360] ss:$8 sps:$4 sm:$0xff]  }
  0x3e   : > { %952 = vmatpush1.bf16.msra.mxu1 %v2011_v59  ;;  %627 = vmatprep.subr.bf16.mxu0 %v2015_v62  ;;  %v2094_v59 = vld [vmem:[%s2710_s1 + $0x364] ss:$8 sps:$4 sm:$0xff]   ;;  %v2097_v62 = vld [vmem:[%s2710_s1 + $0x354] ss:$8 sps:$4 sm:$0xff]  }
  0x3f   : > { %953 = vmatprep.subr.bf16.mxu1 %v2019_v0  ;;  %v2124_v0 = vld [vmem:[%s2710_s1 + $0x454] ss:$8 sps:$4 sm:$0xff]  }
  0x41   : > { %628 = vmatpush2.bf16.msra.mxu0 %v2020_v4  ;;  %v2122_v4 = vld [vmem:[%s2710_s1 + $0x450] ss:$8 sps:$4 sm:$0xff]  }
  0x42   : > { %954 = vmatpush1.bf16.msra.mxu1 %v2017_v3  ;;  %629 = vmatprep.subr.bf16.mxu0 %v2021_v5  ;;  %v2095_v3 = vld [vmem:[%s2710_s1 + $0x350] ss:$8 sps:$4 sm:$0xff]  }
  0x43   : > { %955 = vmatprep.subr.bf16.mxu1 %v2025_v6  ;;  %v2572_v5 = vld [vmem:[%s2302_s26 + $0x18] sm:$0x33]  ;;  %v1864_v6 = vcombine.high %v2563_v1, %v2454_v28 }
  0x45   : > { %630 = vmatpush2.bf16.msra.mxu0 %v2026_v8  ;;  %v1867_v8 = vcombine.high %v2572_v5, %v2572_v5 }
  0x46   : > { %956 = vmatpush1.bf16.msra.mxu1 %v2023_v7  ;;  %631 = vmatprep.subr.bf16.mxu0 %v2027_v9  ;;  %v2130_v7 = vld [vmem:[%s2710_s1 + $0x444] ss:$8 sps:$4 sm:$0xff]   ;;  %v1108_v9 = vrot.slane %v1864_v6, 2 }
  0x47   : > { %957 = vmatprep.subr.bf16.mxu1 %v2031_v12  ;;  %v1109_v10 = vrot.slane %v1867_v8, 2  ;;  %v2128_v12 = vld [vmem:[%s2710_s1 + $0x440] ss:$8 sps:$4 sm:$0xff]  }
  0x49   : > { %632 = vmatpush2.bf16.msra.mxu0 %v2032_v14  ;;  %v2136_v14 = vld [vmem:[%s2710_s1 + $0x434] ss:$8 sps:$4 sm:$0xff]   ;;  %v1110_v15 = vsel %vm348_vm0, %v1108_v9, %v1109_v10 }
  0x4a   : > { %958 = vmatpush1.bf16.msra.mxu1 %v2029_v13  ;;  %986 = vmatprep.subr.bf16.mxu0 %v2043_v18  ;;  %v2103_v13 = vld [vmem:[%s2710_s1 + $0x334] ss:$8 sps:$4 sm:$0xff]   ;;  %v2106_v18 = vld [vmem:[%s2710_s1 + $0x324] ss:$8 sps:$4 sm:$0xff]  }
  0x4b   : > { %959 = vmatprep.subr.bf16.mxu1 %v2040_v17  ;;  %v2134_v17 = vld [vmem:[%s2710_s1 + $0x430] ss:$8 sps:$4 sm:$0xff]  }
  0x4c   : > { %634 = vmatmul.mubr.bf16.vlgmr.msra.gmra.mxu0 %v351_v21  ;;  %v2140_v21 = vld [vmem:[%s2710_s1 + $0x420] ss:$8 sps:$4 sm:$0xff]  }
  0x4d   : > { %987 = vmatpush1.bf16.msra.mxu0 %v2041_v20  ;;  %1018 = vmatprep.mubr.bf16.mxu0 %v2175_v2  ;;  %v2104_v20 = vld [vmem:[%s2710_s1 + $0x320] ss:$8 sps:$4 sm:$0xff]  }
  0x4e   : > { %960 = vmatpush2.bf16.msra.mxu1 %v2038_v19  ;;  %988 = vmatprep.subr.bf16.mxu0 %v2049_v23  ;;  %v2142_v19 = vld [vmem:[%s2710_s1 + $0x424] ss:$8 sps:$4 sm:$0xff]   ;;  %v2148_v23 = vld [vmem:[%s2710_s1 + $0x414] ss:$8 sps:$4 sm:$0xff]  }
  0x4f   : > { %961 = vmatprep.subr.bf16.mxu1 %v2046_v22  ;;  %v2109_v22 = vld [vmem:[%s2710_s1 + $0x314] ss:$8 sps:$4 sm:$0xff]  }
  0x51   : > { %989 = vmatpush1.bf16.msra.mxu0 %v2047_v25  ;;  %v2146_v25 = vld [vmem:[%s2710_s1 + $0x410] ss:$8 sps:$4 sm:$0xff]  }
  0x52   : > { %962 = vmatpush2.bf16.msra.mxu1 %v2044_v24  ;;  %990 = vmatprep.subr.bf16.mxu0 %v2055_v29  ;;  %v2107_v24 = vld [vmem:[%s2710_s1 + $0x310] ss:$8 sps:$4 sm:$0xff]   ;;  %v2115_v29 = vld [vmem:[%s2710_s1 + $0x304] ss:$8 sps:$4 sm:$0xff]  }
  0x53   : > { %963 = vmatprep.subr.bf16.mxu1 %v2052_v26  ;;  %v2158_v26 = vld [vmem:[%s2302_s26 + $0x8] ss:$12 sps:$4 sm:$0xfc]  }
  0x55   : > { %991 = vmatpush1.bf16.msra.mxu0 %v2053_v32  ;;  %v2152_v32 = vld [vmem:[%s2710_s1 + $0x400] ss:$8 sps:$4 sm:$0xff]  }
  0x56   : > { %964 = vmatpush2.bf16.msra.mxu1 %v2050_v31  ;;  %992 = vmatprep.subr.bf16.mxu0 %v2061_v34  ;;  %v2113_v31 = vld [vmem:[%s2710_s1 + $0x300] ss:$8 sps:$4 sm:$0xff]   ;;  %v1112_v34 = vrot.slane %v2159_v27, 2 }
  0x57   : > { %965 = vmatprep.subr.bf16.mxu1 %v2058_v33  ;;  %v1111_v33 = vrot.slane %v2158_v26, 2 }
  0x59   : > { %993 = vmatpush1.bf16.msra.mxu0 %v2059_v36  ;;  %v2119_v36 = vld [vmem:[%s2710_s1 + $0x3f0] ss:$8 sps:$4 sm:$0xff]  }
  0x5a   : > { %966 = vmatpush2.bf16.msra.mxu1 %v2056_v35  ;;  %994 = vmatprep.subr.bf16.mxu0 %v2067_v38  ;;  %v2121_v35 = vld [vmem:[%s2710_s1 + $0x3f4] ss:$8 sps:$4 sm:$0xff]   ;;  %v2127_v38 = vld [vmem:[%s2710_s1 + $0x3e4] ss:$8 sps:$4 sm:$0xff]  }
  0x5b   : > { %967 = vmatprep.subr.bf16.mxu1 %v2064_v37  ;;  %v1113_v37 = vsel %vm348_vm0, %v1111_v33, %v1112_v34 }
  0x5d   : > { %995 = vmatpush1.bf16.msra.mxu0 %v2065_v40  ;;  %v2133_v40 = vld [vmem:[%s2710_s1 + $0x3d4] ss:$8 sps:$4 sm:$0xff]  }
  0x5e   : > { %968 = vmatpush2.bf16.msra.mxu1 %v2062_v39  ;;  %996 = vmatprep.subr.bf16.mxu0 %v2073_v42  ;;  %v2125_v39 = vld [vmem:[%s2710_s1 + $0x3e0] ss:$8 sps:$4 sm:$0xff]   ;;  %v2139_v42 = vld [vmem:[%s2710_s1 + $0x3c4] ss:$8 sps:$4 sm:$0xff]  }
  0x5f   : > { %969 = vmatprep.subr.bf16.mxu1 %v2070_v41  ;;  %v2131_v41 = vld [vmem:[%s2710_s1 + $0x3d0] ss:$8 sps:$4 sm:$0xff]  }
  0x61   : > { %997 = vmatpush1.bf16.msra.mxu0 %v2071_v44  ;;  %v2145_v44 = vld [vmem:[%s2710_s1 + $0x3b4] ss:$8 sps:$4 sm:$0xff]  }
  0x62   : > { %970 = vmatpush2.bf16.msra.mxu1 %v2068_v43  ;;  %998 = vmatprep.subr.bf16.mxu0 %v2079_v46  ;;  %v2137_v43 = vld [vmem:[%s2710_s1 + $0x3c0] ss:$8 sps:$4 sm:$0xff]   ;;  %v2151_v46 = vld [vmem:[%s2710_s1 + $0x3a4] ss:$8 sps:$4 sm:$0xff]  }
  0x63   : > { %971 = vmatprep.subr.bf16.mxu1 %v2076_v45  ;;  %v2143_v45 = vld [vmem:[%s2710_s1 + $0x3b0] ss:$8 sps:$4 sm:$0xff]  }
  0x65   : > { %999 = vmatpush1.bf16.msra.mxu0 %v2077_v48  ;;  %v2157_v48 = vld [vmem:[%s2710_s1 + $0x394] ss:$8 sps:$4 sm:$0xff]  }
  0x66   : > { %972 = vmatpush2.bf16.msra.mxu1 %v2074_v47  ;;  %1000 = vmatprep.subr.bf16.mxu0 %v2085_v50  ;;  %v2149_v47 = vld [vmem:[%s2710_s1 + $0x3a0] ss:$8 sps:$4 sm:$0xff]   ;;  %v1863_v50 = vcombine.low %v2563_v1, %v2454_v28 }
  0x67   : > { %973 = vmatprep.subr.bf16.mxu1 %v2082_v49  ;;  %v2155_v49 = vld [vmem:[%s2710_s1 + $0x390] ss:$8 sps:$4 sm:$0xff]  }
  0x69   : > { %1001 = vmatpush1.bf16.msra.mxu0 %v2083_v52  ;;  %v2162_v52 = vld [vmem:[%s2710_s1 + $0x384] ss:$8 sps:$4 sm:$0xff]  }
  0x6a   : > { %974 = vmatpush2.bf16.msra.mxu1 %v2080_v51  ;;  %1357 = vmatprep.subr.bf16.mxu0 %v2091_v53  ;;  %v1866_v51 = vcombine.low %v2572_v5, %v2572_v5  ;;  %v2160_v53 = vld [vmem:[%s2710_s1 + $0x380] ss:$8 sps:$4 sm:$0xff]  }
  0x6b   : > { %1400 = vmatprep.subr.bf16.mxu1 %v2112_v54  ;;  %v1105_v54 = vrot.slane %v1863_v50, 2  ;;  %v2176_v50 = vmov 1966171168  }
  0x6c   : > { %1019 = vmatmul.mubr.bf16.vlgmr.msra.gmra.mxu0 %v2088_v55  ;;  %v1106_v55 = vrot.slane %v1866_v51, 2  ;;  %v1479_v51 = vunpack.c.l.s4 %v2176_v50 }
  0x6d   : > { %976 = vmatmul.mubr.bf16.vlgmr.msra.gmra.mxu1 %v1764_v56  ;;  %1358 = vmatpush1.bf16.msra.mxu0 %v2089_v57 }
  0x6e   : > { %1401 = vmatpush1.bf16.msra.mxu1 %v2110_v58  ;;  %1359 = vmatprep.subr.bf16.mxu0 %v2094_v59  ;;  %v1107_v56 = vsel %vm348_vm0, %v1105_v54, %v1106_v55 }
  0x6f   : > { %1402 = vmatprep.subr.bf16.mxu1 %v2118_v60  ;;  %1432 = vmatprep.mubr.bf16.mxu1 %v2175_v2  ;;  %v2100_v2 = vld [vmem:[%s2710_s1 + $0x344] ss:$8 sps:$4 sm:$0xff]  }
  0x70   : > { %1389 = vmatprep.mubr.bf16.mxu0 %v1110_v15 }
  0x71   : > { %1360 = vmatpush1.bf16.msra.mxu0 %v2092_v61 }
  0x72   : > { %1403 = vmatpush1.bf16.msra.mxu1 %v2116_v63  ;;  %1361 = vmatprep.subr.bf16.mxu0 %v2097_v62 }
  0x73   : > { %1404 = vmatprep.subr.bf16.mxu1 %v2124_v0 }
  0x75   : > { %1362 = vmatpush1.bf16.msra.mxu0 %v2095_v3 }
  0x76   : > { %1405 = vmatpush1.bf16.msra.mxu1 %v2122_v4  ;;  %1363 = vmatprep.subr.bf16.mxu0 %v2100_v2 }
  0x77   : > { %1406 = vmatprep.subr.bf16.mxu1 %v2130_v7 }
  0x79   : > { %1364 = vmatpush1.bf16.msra.mxu0 %v2098_v11 }
  0x7a   : > { %1407 = vmatpush1.bf16.msra.mxu1 %v2128_v12  ;;  %1365 = vmatprep.subr.bf16.mxu0 %v2103_v13 }
  0x7b   : > { %1408 = vmatprep.subr.bf16.mxu1 %v2136_v14 }
  0x7d   : > { %1366 = vmatpush1.bf16.msra.mxu0 %v2101_v16 }
  0x7e   : > { %1409 = vmatpush1.bf16.msra.mxu1 %v2134_v17  ;;  %1367 = vmatprep.subr.bf16.mxu0 %v2106_v18 }
  0x7f   : > { %1410 = vmatprep.subr.bf16.mxu1 %v2142_v19 }
  0x81   : > { %1368 = vmatpush1.bf16.msra.mxu0 %v2104_v20 }
  0x82   : > { %1411 = vmatpush1.bf16.msra.mxu1 %v2140_v21  ;;  %1369 = vmatprep.subr.bf16.mxu0 %v2109_v22 }
  0x83   : > { %1412 = vmatprep.subr.bf16.mxu1 %v2148_v23 }
  0x85   : > { %1370 = vmatpush1.bf16.msra.mxu0 %v2107_v24 }
  0x86   : > { %1413 = vmatpush1.bf16.msra.mxu1 %v2146_v25  ;;  %1371 = vmatprep.subr.bf16.mxu0 %v2115_v29 }
  0x87   : > { %1414 = vmatprep.subr.bf16.mxu1 %v2154_v30 }
  0x89   : > { %1372 = vmatpush1.bf16.msra.mxu0 %v2113_v31 }
  0x8a   : > { %1415 = vmatpush1.bf16.msra.mxu1 %v2152_v32  ;;  %1373 = vmatprep.subr.bf16.mxu0 %v2121_v35 }
  0x8d   : > { %1433 = vmatmul.mubr.bf16.vlgmr.msra.gmra.mxu1 %v1113_v37  ;;  %1374 = vmatpush2.bf16.msra.mxu0 %v2119_v36 }
  0x8e   : > { %1375 = vmatprep.subr.bf16.mxu0 %v2127_v38 }
  0x91   : > { %1376 = vmatpush2.bf16.msra.mxu0 %v2125_v39 }
  0x92   : > { %1377 = vmatprep.subr.bf16.mxu0 %v2133_v40 }
  0x95   : > { %1378 = vmatpush2.bf16.msra.mxu0 %v2131_v41 }
  0x96   : > { %1379 = vmatprep.subr.bf16.mxu0 %v2139_v42 }
  0x99   : > { %1380 = vmatpush2.bf16.msra.mxu0 %v2137_v43 }
  0x9a   : > { %1381 = vmatprep.subr.bf16.mxu0 %v2145_v44 }
  0x9d   : > { %1382 = vmatpush2.bf16.msra.mxu0 %v2143_v45 }
  0x9e   : > { %1383 = vmatprep.subr.bf16.mxu0 %v2151_v46 }
  0xa1   : > { %1384 = vmatpush2.bf16.msra.mxu0 %v2149_v47 }
  0xa2   : > { %1385 = vmatprep.subr.bf16.mxu0 %v2157_v48 }
  0xa5   : > { %1386 = vmatpush2.bf16.msra.mxu0 %v2155_v49 }
  0xa6   : > { %1387 = vmatprep.subr.bf16.mxu0 %v2162_v52 }
  0xa9   : > { %1388 = vmatpush2.bf16.msra.mxu0 %v2160_v53 }
  0xac   : > { %1390 = vmatmul.mubr.bf16.vlgmr.msra.gmra.mxu0 %v1107_v56  ;;  %v1481_v56 = vlaneseq }
  0xae   : > { %vm1495_vm1 = vcmp.lt.s32.totalorder %v1481_v56, 256 }
  0xed   : > { %v678_v28 = vpop.f32.mrf.mxu1 }
  0xef   : > { %v680_v57 = vpop.f32.mrf.mxu1 }
  0xf1   : > { %v682_v59 = vpop.f32.mrf.mxu1 }
  0xf3   : > { %v684_v61 = vpop.f32.mrf.mxu1 }
 0x10c   : > { %v635_v58 = vpop.f32.mrf.mxu0 }
 0x10d   : > { %v679_v8 = vadd.f32 %v678_v28, %v635_v58 }
 0x10e   : > { %v637_v60 = vpop.f32.mrf.mxu0 }
 0x10f   : > { %v681_v9 = vadd.f32 %v680_v57, %v637_v60  ;;  %v1480_v60 = vunpack.c.0.s8 %v1479_v51 }
 0x110   : > { %v639_v62 = vpop.f32.mrf.mxu0 }
 0x111   : > { %v683_v12 = vadd.f32 %v682_v59, %v639_v62 }
 0x112   : > { %v641_v0 = vpop.f32.mrf.mxu0 }
 0x113   : > { %v685_v16 = vadd.f32 %v684_v61, %v641_v0 }
 0x12c   : > { %v1020_v3 = vpop.f32.mrf.mxu0 }
 0x12d   : > { %v977_v63 = vpop.f32.mrf.mxu1 }
 0x12e   : > { %v1022_v5 = vpop.f32.mrf.mxu0  ;;  %v978_v13 = vadd.f32 %v977_v63, %v679_v8 }
 0x12f   : > { %v979_v1 = vpop.f32.mrf.mxu1 }
 0x130   : > { %v1024_v2 = vpop.f32.mrf.mxu0  ;;  %v980_v14 = vadd.f32 %v979_v1, %v681_v9  ;;  %v1021_v21 = vadd.f32 %v1020_v3, %v978_v13  ;;  %v1482_v1 = vshrl.u32 %v1481_v56, 7 }
 0x131   : > { %v981_v4 = vpop.f32.mrf.mxu1 }
 0x132   : > { %v1026_v10 = vpop.f32.mrf.mxu0  ;;  %v982_v17 = vadd.f32 %v981_v4, %v683_v12  ;;  %v1023_v22 = vadd.f32 %v1022_v5, %v980_v14  ;;  %v1483_v8 = vsub.s32 %v1480_v60, %v1482_v1 }
 0x133   : > { %v983_v6 = vpop.f32.mrf.mxu1 }
 0x134   : > { %v984_v23 = vadd.f32 %v983_v6, %v685_v16  ;;  %v1025_v26 = vadd.f32 %v1024_v2, %v982_v17 }
 0x136   : > { %v1027_v33 = vadd.f32 %v1026_v10, %v984_v23 }
 0x14d   : > { %v1434_v7 = vpop.f32.mrf.mxu1 }
 0x14f   : > { %v1436_v11 = vpop.f32.mrf.mxu1 }
 0x151   : > { %v1438_v19 = vpop.f32.mrf.mxu1 }
 0x153   : > { %v1440_v31 = vpop.f32.mrf.mxu1 }
 0x16c   : > { %v1391_v15 = vpop.f32.mrf.mxu0 }
 0x16d   : > { %v1435_v18 = vadd.f32 %v1434_v7, %v1391_v15 }
 0x16e   : > { %v1393_v20 = vpop.f32.mrf.mxu0 }
 0x16f   : > { %v1437_v24 = vadd.f32 %v1436_v11, %v1393_v20  ;;  %v1443_v27 = vadd.f32 %v1435_v18, %v1021_v21 }
 0x170   : > { %v1395_v25 = vpop.f32.mrf.mxu0 }
 0x171   : > { %v1444_v29 = vadd.f32 %v1437_v24, %v1023_v22  ;;  %v1439_v30 = vadd.f32 %v1438_v19, %v1395_v25  ;;  %v1498_v37 = vmul.f32 %v1443_v27, %v1443_v27 }
 0x172   : > { %v1397_v32 = vpop.f32.mrf.mxu0 }
 0x173   : > { %v1922_v34 = vpack.c.bf16 %v1444_v29, %v1443_v27  ;;  %v1445_v35 = vadd.f32 %v1439_v30, %v1025_v26  ;;  %v1441_v36 = vadd.f32 %v1440_v31, %v1397_v32  ;;  %v1499_v45 = vmul.f32 %v1444_v29, %v1444_v29 }
 0x175   : > { %1459 = vst [vmem:[%s210_s6] sm:$0xff] %v1922_v34  ;;  %v1461_v38 = vadd.f32 %v1445_v35, %v1443_v27  ;;  %v1500_v39 = vmul.f32 %v1445_v35, %v1445_v35  ;;  %v1446_v40 = vadd.f32 %v1441_v36, %v1027_v33 }
 0x177   : > { %v1462_v41 = vrot.slane %v1461_v38, 4  ;;  %v1502_v42 = vadd.f32 %v1500_v39, %v1498_v37  ;;  %v1923_v43 = vpack.c.bf16 %v1446_v40, %v1445_v35  ;;  %v1468_v44 = vadd.f32 %v1446_v40, %v1444_v29 }
 0x178   : > { %v1501_v46 = vmul.f32 %v1446_v40, %v1446_v40 }
 0x179   : > { %v1463_v47 = vadd.f32 %v1462_v41, %v1461_v38  ;;  %v1503_v48 = vrot.slane %v1502_v42, 4  ;;  %1460 = vst [vmem:[%s210_s6 + $0x8] sm:$0xff] %v1923_v43  ;;  %v1469_v49 = vrot.slane %v1468_v44, 4 }
 0x17a   : > { %v1509_v52 = vadd.f32 %v1501_v46, %v1499_v45 }
 0x17b   : > { %v1464_v53 = vrot.slane %v1463_v47, 2  ;;  %v1504_v54 = vadd.f32 %v1503_v48, %v1502_v42  ;;  %v1470_v55 = vadd.f32 %v1469_v49, %v1468_v44 }
 0x17c   : > { %v1510_v28 = vrot.slane %v1509_v52, 4 }
 0x17d   : > { %v1465_v57 = vadd.f32 %v1464_v53, %v1463_v47  ;;  %v1505_v58 = vrot.slane %v1504_v54, 2  ;;  %v1471_v59 = vrot.slane %v1470_v55, 2 }
 0x17e   : > { %v1511_v61 = vadd.f32 %v1510_v28, %v1509_v52 }
 0x17f   : > { %v1466_v62 = vrot.slane %v1465_v57, 1  ;;  %v1506_v63 = vadd.f32 %v1505_v58, %v1504_v54  ;;  %v1472_v0 = vadd.f32 %v1471_v59, %v1470_v55 }
 0x180   : > { %v1512_v3 = vrot.slane %v1511_v61, 2 }
 0x181   : > { %v1473_v4 = vrot.slane %v1472_v0, 1  ;;  %v1507_v5 = vrot.slane %v1506_v63, 1  ;;  %v1467_v2 = vadd.f32 %v1466_v62, %v1465_v57 }
 0x182   : > { %v1513_v6 = vadd.f32 %v1512_v3, %v1511_v61 }
 0x183   : > { %v1474_v7 = vadd.f32 %v1473_v4, %v1472_v0  ;;  %v1508_v11 = vadd.f32 %v1507_v5, %v1506_v63 }
 0x184   : > { %v1514_v9 = vrot.slane %v1513_v6, 1 }
 0x185   : > { %v1477_v10 = vcombine.low %v1467_v2, %v1474_v7 }
 0x186   : > { %v1515_v12 = vadd.f32 %v1514_v9, %v1513_v6 }
 0x187   : > { %v1484_v13 = vrot.slane %v1477_v10, %v1483_v8 }
 0x188   : > { %v1518_v14 = vcombine.low %v1508_v11, %v1515_v12 }
 0x189   : > { %v1491_v15 = vrot.slane %v1484_v13, %v1483_v8 }
 0x18a   : > { %v1525_v16 = vrot.slane %v1518_v14, %v1483_v8 }
 0x18b   : > { %1497 = vst.msk [vmem:[%s214_s10] sm:$0x3] %vm1495_vm1, %v1491_v15 }
 0x18c   : > { %v1532_v17 = vrot.slane %v1525_v16, %v1483_v8 }
 0x18e   : > { %1534 = vst.msk [vmem:[%s218_s13] sm:$0x3] %vm1495_vm1, %v1532_v17 }
 0x18f PF: > { %s15_s15 = sadd.s32 1, %s2173_s15  }
 0x190   : > { %p12_p4 = scmp.ge.s32.totalorder %s15_s15, 4  }
 0x192   :  { %14 = sbr.rel (!%p12_p4) target bundleno = 1 (0x1), region = 84 }

// kernel: resnet18_forward.11
= control target key start
LH: loop header
LB: loop body
LE: loop exit
PB: predicated region body
PF: predicated region fallthrough
CT: control target
= control target key end

     0   :  { %vm33_vm0 = vcmask 1043456   ;;  %s673_s0 = inlined_call_operand.vmem [shape: bf16[2,4,512], index: 0, kind: input, shape index: {}]   ;;  %s674_s1 = inlined_call_operand.vmem [shape: f32[512,128], index: 1, kind: input, shape index: {}]   ;;  %s675_s2 = inlined_call_operand.vmem [shape: f32[1,128], index: 2, kind: input, shape index: {}]   ;;  %s676_s3 = inlined_call_operand.hbm [shape: f32[2,128], index: 3, kind: output, shape index: {}]  }
   0x1   :  { %v130_v0 = vld [vmem:[%s674_s1 + $0xf8] sm:$0xff]  ;;  %v129_v4 = vld [vmem:[%s674_s1 + $0xf0] sm:$0xff]  ;;  %v128_v8 = vld [vmem:[%s674_s1 + $0xe8] sm:$0xff] }
   0x2   :  { %v162_v1 = vld [vmem:[%s674_s1 + $0x1f8] sm:$0xff]  ;;  %343 = vmatprep.subr.mxu0 %v130_v0  ;;  %v161_v5 = vld [vmem:[%s674_s1 + $0x1f0] sm:$0xff]  ;;  %v160_v9 = vld [vmem:[%s674_s1 + $0x1e8] sm:$0xff] }
   0x3   :  { %v114_v2 = vld [vmem:[%s674_s1 + $0x78] sm:$0xff]  ;;  %378 = vmatprep.subr.mxu1 %v162_v1  ;;  %v113_v6 = vld [vmem:[%s674_s1 + $0x70] sm:$0xff]  ;;  %v112_v10 = vld [vmem:[%s674_s1 + $0x68] sm:$0xff] }
   0x4   :  { %v146_v3 = vld [vmem:[%s674_s1 + $0x178] sm:$0xff]  ;;  %344 = vmatpush3.msra.mxu0 %v114_v2  ;;  %v145_v7 = vld [vmem:[%s674_s1 + $0x170] sm:$0xff]  ;;  %v144_v11 = vld [vmem:[%s674_s1 + $0x168] sm:$0xff] }
   0x5   :  { %379 = vmatpush3.msra.mxu1 %v146_v3  ;;  %345 = vmatprep.subr.mxu0 %v129_v4  ;;  %v127_v12 = vld [vmem:[%s674_s1 + $0xe0] sm:$0xff]  ;;  %v126_v16 = vld [vmem:[%s674_s1 + $0xd8] sm:$0xff]  ;;  %v125_v20 = vld [vmem:[%s674_s1 + $0xd0] sm:$0xff] }
   0x6   :  { %380 = vmatprep.subr.mxu1 %v161_v5  ;;  %346 = vmatpush3.msra.mxu0 %v113_v6  ;;  %v159_v13 = vld [vmem:[%s674_s1 + $0x1e0] sm:$0xff]  ;;  %v158_v17 = vld [vmem:[%s674_s1 + $0x1d8] sm:$0xff]  ;;  %v157_v21 = vld [vmem:[%s674_s1 + $0x1d0] sm:$0xff] }
   0x7   :  { %381 = vmatpush3.msra.mxu1 %v145_v7  ;;  %347 = vmatprep.subr.mxu0 %v128_v8  ;;  %v111_v14 = vld [vmem:[%s674_s1 + $0x60] sm:$0xff]  ;;  %v110_v18 = vld [vmem:[%s674_s1 + $0x58] sm:$0xff]  ;;  %v109_v22 = vld [vmem:[%s674_s1 + $0x50] sm:$0xff] }
   0x8   :  { %382 = vmatprep.subr.mxu1 %v160_v9  ;;  %v143_v15 = vld [vmem:[%s674_s1 + $0x160] sm:$0xff]  ;;  %348 = vmatpush3.msra.mxu0 %v112_v10  ;;  %v142_v19 = vld [vmem:[%s674_s1 + $0x158] sm:$0xff]  ;;  %v141_v23 = vld [vmem:[%s674_s1 + $0x150] sm:$0xff] }
   0x9   :  { %383 = vmatpush3.msra.mxu1 %v144_v11  ;;  %349 = vmatprep.subr.mxu0 %v127_v12  ;;  %v124_v24 = vld [vmem:[%s674_s1 + $0xc8] sm:$0xff]  ;;  %v123_v28 = vld [vmem:[%s674_s1 + $0xc0] sm:$0xff]  ;;  %v122_v32 = vld [vmem:[%s674_s1 + $0xb8] sm:$0xff] }
   0xa   :  { %384 = vmatprep.subr.mxu1 %v159_v13  ;;  %350 = vmatpush3.msra.mxu0 %v111_v14  ;;  %v156_v25 = vld [vmem:[%s674_s1 + $0x1c8] sm:$0xff]  ;;  %v155_v29 = vld [vmem:[%s674_s1 + $0x1c0] sm:$0xff]  ;;  %v154_v33 = vld [vmem:[%s674_s1 + $0x1b8] sm:$0xff] }
   0xb   :  { %385 = vmatpush3.msra.mxu1 %v143_v15  ;;  %351 = vmatprep.subr.mxu0 %v126_v16  ;;  %v108_v26 = vld [vmem:[%s674_s1 + $0x48] sm:$0xff]  ;;  %v107_v30 = vld [vmem:[%s674_s1 + $0x40] sm:$0xff]  ;;  %v106_v34 = vld [vmem:[%s674_s1 + $0x38] sm:$0xff] }
   0xc   :  { %386 = vmatprep.subr.mxu1 %v158_v17  ;;  %352 = vmatpush3.msra.mxu0 %v110_v18  ;;  %v140_v27 = vld [vmem:[%s674_s1 + $0x148] sm:$0xff]  ;;  %v139_v31 = vld [vmem:[%s674_s1 + $0x140] sm:$0xff]  ;;  %v138_v35 = vld [vmem:[%s674_s1 + $0x138] sm:$0xff] }
   0xd   :  { %387 = vmatpush3.msra.mxu1 %v142_v19  ;;  %353 = vmatprep.subr.mxu0 %v125_v20  ;;  %v121_v36 = vld [vmem:[%s674_s1 + $0xb0] sm:$0xff]  ;;  %v120_v40 = vld [vmem:[%s674_s1 + $0xa8] sm:$0xff]  ;;  %v119_v44 = vld [vmem:[%s674_s1 + $0xa0] sm:$0xff] }
   0xe   :  { %388 = vmatprep.subr.mxu1 %v157_v21  ;;  %354 = vmatpush3.msra.mxu0 %v109_v22  ;;  %v153_v37 = vld [vmem:[%s674_s1 + $0x1b0] sm:$0xff]  ;;  %v152_v41 = vld [vmem:[%s674_s1 + $0x1a8] sm:$0xff]  ;;  %v151_v45 = vld [vmem:[%s674_s1 + $0x1a0] sm:$0xff] }
   0xf   :  { %389 = vmatpush3.msra.mxu1 %v141_v23  ;;  %355 = vmatprep.subr.mxu0 %v124_v24  ;;  %v105_v38 = vld [vmem:[%s674_s1 + $0x30] sm:$0xff]  ;;  %v104_v42 = vld [vmem:[%s674_s1 + $0x28] sm:$0xff]  ;;  %v103_v46 = vld [vmem:[%s674_s1 + $0x20] sm:$0xff] }
  0x10   :  { %390 = vmatprep.subr.mxu1 %v156_v25  ;;  %356 = vmatpush3.msra.mxu0 %v108_v26  ;;  %v137_v39 = vld [vmem:[%s674_s1 + $0x130] sm:$0xff]  ;;  %v136_v43 = vld [vmem:[%s674_s1 + $0x128] sm:$0xff]  ;;  %v135_v47 = vld [vmem:[%s674_s1 + $0x120] sm:$0xff] }
  0x11   :  { %391 = vmatpush3.msra.mxu1 %v140_v27  ;;  %357 = vmatprep.subr.mxu0 %v123_v28  ;;  %v15_v48 = vld [vmem:[%s673_s0] sm:$0xff]  ;;  %v16_v49 = vld [vmem:[%s673_s0 + $0x8] sm:$0xff]  ;;  %v118_v50 = vld [vmem:[%s674_s1 + $0x98] sm:$0xff] }
  0x12   :  { %392 = vmatprep.subr.mxu1 %v155_v29  ;;  %358 = vmatpush3.msra.mxu0 %v107_v30  ;;  %v150_v51 = vld [vmem:[%s674_s1 + $0x198] sm:$0xff]  ;;  %v17_v52 = vunpack.c.l.bf16 %v15_v48  ;;  %v19_v53 = vunpack.c.l.bf16 %v16_v49  ;;  %v18_v54 = vunpack.c.h.bf16 %v15_v48  ;;  %v20_v55 = vunpack.c.h.bf16 %v16_v49 }
  0x13   :  { %393 = vmatpush3.msra.mxu1 %v139_v31  ;;  %359 = vmatprep.subr.mxu0 %v122_v32 }
  0x14   :  { %394 = vmatprep.subr.mxu1 %v154_v33  ;;  %360 = vmatpush3.msra.mxu0 %v106_v34 }
  0x15   :  { %395 = vmatpush3.msra.mxu1 %v138_v35  ;;  %361 = vmatprep.subr.mxu0 %v121_v36 }
  0x16   :  { %396 = vmatprep.subr.mxu1 %v153_v37  ;;  %362 = vmatpush3.msra.mxu0 %v105_v38 }
  0x17   :  { %397 = vmatpush3.msra.mxu1 %v137_v39  ;;  %363 = vmatprep.subr.mxu0 %v120_v40 }
  0x18   :  { %398 = vmatprep.subr.mxu1 %v152_v41  ;;  %364 = vmatpush3.msra.mxu0 %v104_v42 }
  0x19   :  { %399 = vmatpush3.msra.mxu1 %v136_v43 }
  0x1a   :  { %8 = vsyncpa [#allocation3], 0  ;;  %365 = vmatprep.subr.mxu0 %v119_v44  ;;  %400 = vmatprep.subr.mxu1 %v151_v45  ;;  %v102_v56 = vld [vmem:[%s674_s1 + $0x18] sm:$0xff]  ;;  %v117_v58 = vld [vmem:[%s674_s1 + $0x90] sm:$0xff]  ;;  %v25_v60 = vcombine.high %v17_v52, %v17_v52  ;;  %v27_v61 = vcombine.high %v19_v53, %v19_v53  ;;  %v26_v62 = vcombine.high %v18_v54, %v18_v54  ;;  %v34_v63 = vsel %vm33_vm0, %v17_v52, 0.0  ;;  %s436_s0 = smov [#allocation2]  }
  0x1b   :  { %v134_v57 = vld [vmem:[%s674_s1 + $0x118] sm:$0xff]  ;;  %366 = vmatpush3.msra.mxu0 %v103_v46  ;;  %401 = vmatpush3.msra.mxu1 %v135_v47  ;;  %v149_v59 = vld [vmem:[%s674_s1 + $0x190] sm:$0xff]  ;;  %v28_v2 = vcombine.high %v20_v55, %v20_v55  ;;  %v35_v3 = vrot.slane %v34_v63, 4  ;;  %v62_v4 = vsel %vm33_vm0, %v19_v53, 0.0  ;;  %v48_v5 = vsel %vm33_vm0, %v18_v54, 0.0  ;;  %v116_v6 = vld [vmem:[%s674_s1 + $0x88] sm:$0xff] }
  0x1c   :  { %367 = vmatprep.subr.mxu0 %v118_v50  ;;  %402 = vmatprep.subr.mxu1 %v150_v51  ;;  %v101_v0 = vld [vmem:[%s674_s1 + $0x10] sm:$0xff]  ;;  %v148_v7 = vld [vmem:[%s674_s1 + $0x188] sm:$0xff]  ;;  %v41_v8 = vsel %vm33_vm0, %v25_v60, 0.0  ;;  %v69_v9 = vsel %vm33_vm0, %v27_v61, 0.0  ;;  %v55_v10 = vsel %vm33_vm0, %v26_v62, 0.0  ;;  %v63_v11 = vrot.slane %v62_v4, 4 }
  0x1d   :  { %v133_v1 = vld [vmem:[%s674_s1 + $0x110] sm:$0xff]  ;;  %368 = vmatpush3.msra.mxu0 %v102_v56  ;;  %403 = vmatpush3.msra.mxu1 %v134_v57  ;;  %v100_v12 = vld [vmem:[%s674_s1 + $0x8] sm:$0xff]  ;;  %v42_v14 = vrot.slane %v41_v8, 4  ;;  %v70_v15 = vrot.slane %v69_v9, 4  ;;  %v56_v16 = vrot.slane %v55_v10, 4  ;;  %v83_v17 = vsel %vm33_vm0, %v28_v2, 0.0 }
  0x1e   :  { %369 = vmatprep.subr.mxu0 %v117_v58  ;;  %404 = vmatprep.subr.mxu1 %v149_v59  ;;  %v132_v13 = vld [vmem:[%s674_s1 + $0x108] sm:$0xff]  ;;  %v115_v18 = vld [vmem:[%s674_s1 + $0x80] sm:$0xff]  ;;  %v84_v20 = vrot.slane %v83_v17, 4  ;;  %v36_v21 = vadd.f32 %v35_v3, %v34_v63  ;;  %v64_v22 = vadd.f32 %v63_v11, %v62_v4  ;;  %v49_v23 = vrot.slane %v48_v5, 4  ;;  %s334_s9 = sshll.u32 %s436_s0, 4  ;;  %s335_s9 = int_to_ptr.vmem [resolvable:$true] %s334_s9 }
  0x1f   :  { %370 = vmatpush3.msra.mxu0 %v101_v0  ;;  %405 = vmatpush3.msra.mxu1 %v133_v1  ;;  %v147_v19 = vld [vmem:[%s674_s1 + $0x180] sm:$0xff]  ;;  %v43_v25 = vadd.f32 %v42_v14, %v41_v8  ;;  %v71_v26 = vadd.f32 %v70_v15, %v69_v9  ;;  %vm178_vm1 = vcmask 1041409   ;;  %v57_v28 = vadd.f32 %v56_v16, %v55_v10  ;;  %s414_s10 = scalar_lea.vmem %s335_s9, 32  ;;  %p419_p1 = scmp.lt.s32.totalorder %s335_s9, %s335_s9 }
  0x20   :  { %371 = vmatprep.subr.mxu0 %v116_v6  ;;  %406 = vmatprep.subr.mxu1 %v148_v7  ;;  %v99_v24 = vld [vmem:[%s674_s1] sm:$0xff]  ;;  %v76_v29 = vsel %vm33_vm0, %v20_v55, 0.0  ;;  %v85_v30 = vadd.f32 %v84_v20, %v83_v17  ;;  %v37_v31 = vrot.slane %v36_v21, 2  ;;  %v65_v32 = vrot.slane %v64_v22, 2  ;;  %p415_p0 = scmp.ne.s32.totalorder %s335_s9, %s414_s10  ;;  %p420_p2 = scmp.lt.s32.totalorder %s414_s10, %s414_s10 }
  0x21   :  { %v131_v27 = vld [vmem:[%s674_s1 + $0x100] sm:$0xff]  ;;  %372 = vmatpush3.msra.mxu0 %v100_v12  ;;  %407 = vmatpush3.msra.mxu1 %v132_v13  ;;  %v50_v33 = vadd.f32 %v49_v23, %v48_v5  ;;  %v44_v34 = vrot.slane %v43_v25, 2  ;;  %v72_v35 = vrot.slane %v71_v26, 2  ;;  %v58_v36 = vrot.slane %v57_v28, 2 }
  0x22   :  { %373 = vmatprep.subr.mxu0 %v115_v18  ;;  %408 = vmatprep.subr.mxu1 %v147_v19  ;;  %v77_v37 = vrot.slane %v76_v29, 4  ;;  %v86_v38 = vrot.slane %v85_v30, 2  ;;  %v38_v39 = vadd.f32 %v37_v31, %v36_v21  ;;  %v66_v40 = vadd.f32 %v65_v32, %v64_v22  ;;  %v342_v15 = vld [vmem:[%s675_s2] ss:$0 sm:$0xff]  ;;  %p421_p3 = por %p420_p2, %p419_p1 }
  0x23   :  { %374 = vmatpush3.msra.mxu0 %v99_v24  ;;  %409 = vmatpush3.msra.mxu1 %v131_v27  ;;  %v51_v41 = vrot.slane %v50_v33, 2  ;;  %v45_v42 = vadd.f32 %v44_v34, %v43_v25  ;;  %v73_v43 = vadd.f32 %v72_v35, %v71_v26  ;;  %v59_v44 = vadd.f32 %v58_v36, %v57_v28 }
  0x24   :  { %v78_v45 = vadd.f32 %v77_v37, %v76_v29  ;;  %v87_v46 = vadd.f32 %v86_v38, %v85_v30  ;;  %v39_v47 = vrot.slane %v38_v39, 1  ;;  %v67_v48 = vrot.slane %v66_v40, 1  ;;  %p422_p4 = pnand %p421_p3, %p415_p0 }
  0x25   :  { %v52_v49 = vadd.f32 %v51_v41, %v50_v33  ;;  %v46_v50 = vrot.slane %v45_v42, 1  ;;  %v74_v51 = vrot.slane %v73_v43, 1  ;;  %v60_v52 = vrot.slane %v59_v44, 1 }
  0x26   :  { %v79_v53 = vrot.slane %v78_v45, 2  ;;  %v88_v54 = vrot.slane %v87_v46, 1  ;;  %v40_v55 = vadd.f32 %v39_v47, %v38_v39  ;;  %v68_v56 = vadd.f32 %v67_v48, %v66_v40 }
  0x27   :  { %v53_v57 = vrot.slane %v52_v49, 1  ;;  %v47_v58 = vadd.f32 %v46_v50, %v45_v42  ;;  %v75_v59 = vadd.f32 %v74_v51, %v73_v43  ;;  %v61_v60 = vadd.f32 %v60_v52, %v59_v44 }
  0x28   :  { %v80_v61 = vadd.f32 %v79_v53, %v78_v45  ;;  %v89_v62 = vadd.f32 %v88_v54, %v87_v46  ;;  %v91_v63 = vmul.f32 0.25, %v40_v55  ;;  %v95_v0 = vmul.f32 0.25, %v68_v56 }
  0x29   :  { %v54_v1 = vadd.f32 %v53_v57, %v52_v49  ;;  %v92_v2 = vmul.f32 0.25, %v47_v58  ;;  %v96_v3 = vmul.f32 0.25, %v75_v59  ;;  %v94_v4 = vmul.f32 0.25, %v61_v60 }
  0x2a   :  { %v81_v5 = vrot.slane %v80_v61, 1  ;;  %v98_v6 = vmul.f32 0.25, %v89_v62  ;;  %v179_v7 = vsel %vm178_vm1, %v95_v0, %v91_v63 }
  0x2b   :  { %v180_v8 = vsel %vm178_vm1, %v96_v3, %v92_v2  ;;  %v93_v10 = vmul.f32 0.25, %v54_v1 }
  0x2c   :  { %v82_v9 = vadd.f32 %v81_v5, %v80_v61  ;;  %251 = vmatprep.mubr.f32.mxu0 %v180_v8  ;;  %v182_v11 = vsel %vm178_vm1, %v98_v6, %v94_v4 }
  0x2d   :  { %321 = vmatprep.mubr.f32.mxu1 %v182_v11  ;;  %252 = vmatmul.mubr.f32.vlgmr.msra.gmra.mxu0 %v179_v7 }
  0x2e   :  { %v97_v12 = vmul.f32 0.25, %v82_v9 }
  0x30   :  { %v181_v13 = vsel %vm178_vm1, %v97_v12, %v93_v10 }
  0x31   :  { %322 = vmatmul.mubr.f32.vlgmr.msra.gmra.mxu1 %v181_v13 }
  0xed   :  { %v375_v14 = vpop.f32.mrf.mxu0 }
  0xef   :  { %v376_v16 = vpop.f32.mrf.mxu0 }
  0xf0   :  { %v377_v18 = vadd.f32 %v376_v16, %v375_v14 }
  0xf1   :  { %v410_v17 = vpop.f32.mrf.mxu1 }
  0xf2   :  { %v254_v19 = vadd.f32 %v377_v18, %v342_v15 }
  0xf3   :  { %v411_v20 = vpop.f32.mrf.mxu1 }
  0xf4   :  { %v412_v21 = vadd.f32 %v411_v20, %v410_v17 }
  0xf6   :  { %v324_v22 = vadd.f32 %v412_v21, %v254_v19 }
  0xf8   :  { %327 = vst [vmem:[#allocation2] sm:$0x3] %v324_v22 }
  0xf9   :  { %425 = shalt.err (!%p422_p4)
}
  0xfa   :  { %337 = dma.vmem_to_hbm [thread:$0]  %s335_s9, 32, %s676_s3, [#allocation3]  }
  0xfb   :  { %434 = dma.done.wait [#allocation3], 32  }
  0xfc   :  { %435 = vsyncadd [#allocation3], 4294967264 }
  0xfd   :  { %341 = vsyncpa [#allocation3], 1 }

// kernel: resnet18_forward.10
= control target key start
LH: loop header
LB: loop body
LE: loop exit
PB: predicated region body
PF: predicated region fallthrough
CT: control target
= control target key end

     0   :  { %s6708_s15 = smov 0   ;;  %s8692_s0 = inlined_call_operand.vmem [shape: bf16[2,12,768], index: 0, kind: input, shape index: {}]   ;;  %s8693_s1 = inlined_call_operand.vmem [shape: bf16[3,768,512], index: 1, kind: input, shape index: {}]   ;;  %s8694_s2 = inlined_call_operand.vmem [shape: bf16[2,4,512], index: 2, kind: output, shape index: {0}]   ;;  %s8695_s3 = inlined_call_operand.vmem [shape: f32[2,1,512], index: 3, kind: output, shape index: {1}]   ;;  %s8696_s4 = inlined_call_operand.vmem [shape: f32[2,1,512], index: 4, kind: output, shape index: {2}]  }
   0x1 LB: > { %s4784_s16 = sadd.s32 4294967295, %s6679_s15   ;;  %p4788_p0 = scmp.ge.s32.totalorder %s6679_s15, 1  ;;  %s6679_s15 = sphi %s6708_s15, %s15_s15  }
   0x2   : > { %p167_p1 = scmp.lt.s32.totalorder %s6679_s15, 3 }
   0x4   : > { %p168_p2 = pnand %p4788_p0, %p167_p1 }
   0x5   : > { %p201_p3 = scmp.lt.s32.totalorder (!%p168_p2), %s4784_s16, 1 }
   0x6   : > { %171 = sbr.rel (%p168_p2) target bundleno = 813 (0x32d), region = 28 }
   0xb   : > { %v5788_v0 = vld [vmem:[%s8693_s1 + $0x6e4] ss:$16 sps:$4 sm:$0xff]   ;;  %v5792_v2 = vld [vmem:[%s8693_s1 + $0x6e0] ss:$16 sps:$4 sm:$0xff]   ;;  %s8698_s16 = smov (!%p201_p3, %s4784_s16), 1  ;;  %vm4542_vm0 = vcmask 1043456  }
   0xc   : > { %v5790_v1 = vld [vmem:[%s8693_s1 + $0x8e4] ss:$16 sps:$4 sm:$0xff]   ;;  %1609 = vmatprep.subr.bf16.mxu0 %v5788_v0  ;;  %v5793_v3 = vld [vmem:[%s8693_s1 + $0x8e0] ss:$16 sps:$4 sm:$0xff]   ;;  %s5777_s29 = smul.u32 48, %s8698_s16  ;;  %s5776_s5 = sshll.u32 %s8698_s16, 3 }
   0xd   : > { %1650 = vmatprep.subr.bf16.mxu1 %v5790_v1  ;;  %v5794_v4 = vld [vmem:[%s8693_s1 + $0x6c4] ss:$16 sps:$4 sm:$0xff]   ;;  %1610 = vmatpush1.bf16.msra.mxu0 %v5792_v2  ;;  %v5798_v6 = vld [vmem:[%s8693_s1 + $0x6c0] ss:$16 sps:$4 sm:$0xff]   ;;  %s210_s8 = scalar_lea.vmem %s8694_s2, %s5776_s5  ;;  %s4792_s9 = sshll.u32 %s8698_s16, 2 }
   0xe   : > { %1651 = vmatpush1.bf16.msra.mxu1 %v5793_v3  ;;  %v5796_v5 = vld [vmem:[%s8693_s1 + $0x8c4] ss:$16 sps:$4 sm:$0xff]   ;;  %1611 = vmatprep.subr.bf16.mxu0 %v5794_v4  ;;  %v5799_v7 = vld [vmem:[%s8693_s1 + $0x8c0] ss:$16 sps:$4 sm:$0xff]   ;;  %s6864_s14 = scalar_lea.vmem %s8692_s0, %s5777_s29  ;;  %s214_s12 = scalar_lea.vmem %s8695_s3, %s4792_s9 }
   0xf   : > { %1652 = vmatprep.subr.bf16.mxu1 %v5796_v5  ;;  %v5800_v8 = vld [vmem:[%s8693_s1 + $0x6a4] ss:$16 sps:$4 sm:$0xff]   ;;  %v5804_v10 = vld [vmem:[%s8693_s1 + $0x6a0] ss:$16 sps:$4 sm:$0xff]   ;;  %s218_s16 = scalar_lea.vmem %s8696_s4, %s4792_s9 }
  0x10   : > { %v5802_v9 = vld [vmem:[%s8693_s1 + $0x8a4] ss:$16 sps:$4 sm:$0xff]   ;;  %v5805_v11 = vld [vmem:[%s8693_s1 + $0x8a0] ss:$16 sps:$4 sm:$0xff]  }
  0x11   : > { %1612 = vmatpush1.bf16.msra.mxu0 %v5798_v6  ;;  %v5806_v12 = vld [vmem:[%s8693_s1 + $0x684] ss:$16 sps:$4 sm:$0xff]   ;;  %v5810_v14 = vld [vmem:[%s8693_s1 + $0x680] ss:$16 sps:$4 sm:$0xff]  }
  0x12   : > { %1653 = vmatpush1.bf16.msra.mxu1 %v5799_v7  ;;  %1613 = vmatprep.subr.bf16.mxu0 %v5800_v8  ;;  %v5808_v13 = vld [vmem:[%s8693_s1 + $0x884] ss:$16 sps:$4 sm:$0xff]   ;;  %v5811_v15 = vld [vmem:[%s8693_s1 + $0x880] ss:$16 sps:$4 sm:$0xff]   ;;  %v5895_v7 = vld [vmem:[%s8693_s1 + $0x6ec] ss:$16 sps:$4 sm:$0xff]  }
  0x13   : > { %1654 = vmatprep.subr.bf16.mxu1 %v5802_v9  ;;  %v5812_v16 = vld [vmem:[%s8693_s1 + $0x664] ss:$16 sps:$4 sm:$0xff]   ;;  %v5816_v18 = vld [vmem:[%s8693_s1 + $0x660] ss:$16 sps:$4 sm:$0xff]  }
  0x14   : > { %v5814_v17 = vld [vmem:[%s8693_s1 + $0x864] ss:$16 sps:$4 sm:$0xff]   ;;  %v5817_v19 = vld [vmem:[%s8693_s1 + $0x860] ss:$16 sps:$4 sm:$0xff]  }
  0x15   : > { %1614 = vmatpush1.bf16.msra.mxu0 %v5804_v10  ;;  %v5818_v20 = vld [vmem:[%s8693_s1 + $0x644] ss:$16 sps:$4 sm:$0xff]   ;;  %v5822_v22 = vld [vmem:[%s8693_s1 + $0x640] ss:$16 sps:$4 sm:$0xff]  }
  0x16   : > { %1655 = vmatpush1.bf16.msra.mxu1 %v5805_v11  ;;  %1615 = vmatprep.subr.bf16.mxu0 %v5806_v12  ;;  %v5820_v21 = vld [vmem:[%s8693_s1 + $0x844] ss:$16 sps:$4 sm:$0xff]   ;;  %v5823_v23 = vld [vmem:[%s8693_s1 + $0x840] ss:$16 sps:$4 sm:$0xff]   ;;  %v5893_v11 = vld [vmem:[%s8693_s1 + $0x6e8] ss:$16 sps:$4 sm:$0xff]  }
  0x17   : > { %1656 = vmatprep.subr.bf16.mxu1 %v5808_v13  ;;  %v5824_v24 = vld [vmem:[%s8693_s1 + $0x624] ss:$16 sps:$4 sm:$0xff]   ;;  %v5828_v26 = vld [vmem:[%s8693_s1 + $0x620] ss:$16 sps:$4 sm:$0xff]   ;;  %v5901_v13 = vld [vmem:[%s8693_s1 + $0x6cc] ss:$16 sps:$4 sm:$0xff]  }
  0x18   : > { %v5826_v25 = vld [vmem:[%s8693_s1 + $0x824] ss:$16 sps:$4 sm:$0xff]   ;;  %v5829_v27 = vld [vmem:[%s8693_s1 + $0x820] ss:$16 sps:$4 sm:$0xff]  }
  0x19   : > { %1616 = vmatpush1.bf16.msra.mxu0 %v5810_v14  ;;  %v5830_v28 = vld [vmem:[%s8693_s1 + $0x604] ss:$16 sps:$4 sm:$0xff]   ;;  %v5834_v30 = vld [vmem:[%s8693_s1 + $0x600] ss:$16 sps:$4 sm:$0xff]  }
  0x1a   : > { %1657 = vmatpush1.bf16.msra.mxu1 %v5811_v15  ;;  %1617 = vmatprep.subr.bf16.mxu0 %v5812_v16  ;;  %v5832_v29 = vld [vmem:[%s8693_s1 + $0x804] ss:$16 sps:$4 sm:$0xff]   ;;  %v5835_v31 = vld [vmem:[%s8693_s1 + $0x800] ss:$16 sps:$4 sm:$0xff]   ;;  %v5899_v15 = vld [vmem:[%s8693_s1 + $0x6c8] ss:$16 sps:$4 sm:$0xff]  }
  0x1b   : > { %1658 = vmatprep.subr.bf16.mxu1 %v5814_v17  ;;  %v5836_v32 = vld [vmem:[%s8693_s1 + $0x7e4] ss:$16 sps:$4 sm:$0xff]   ;;  %v5840_v34 = vld [vmem:[%s8693_s1 + $0x7e0] ss:$16 sps:$4 sm:$0xff]   ;;  %v5907_v17 = vld [vmem:[%s8693_s1 + $0x6ac] ss:$16 sps:$4 sm:$0xff]  }
  0x1c   : > { %v5838_v33 = vld [vmem:[%s8693_s1 + $0x9e4] ss:$16 sps:$4 sm:$0xff]   ;;  %v5841_v35 = vld [vmem:[%s8693_s1 + $0x9e0] ss:$16 sps:$4 sm:$0xff]  }
  0x1d   : > { %1618 = vmatpush1.bf16.msra.mxu0 %v5816_v18  ;;  %v5842_v36 = vld [vmem:[%s8693_s1 + $0x7c4] ss:$16 sps:$4 sm:$0xff]   ;;  %v5846_v38 = vld [vmem:[%s8693_s1 + $0x7c0] ss:$16 sps:$4 sm:$0xff]  }
  0x1e   : > { %1659 = vmatpush1.bf16.msra.mxu1 %v5817_v19  ;;  %1619 = vmatprep.subr.bf16.mxu0 %v5818_v20  ;;  %v5844_v37 = vld [vmem:[%s8693_s1 + $0x9c4] ss:$16 sps:$4 sm:$0xff]   ;;  %v5847_v39 = vld [vmem:[%s8693_s1 + $0x9c0] ss:$16 sps:$4 sm:$0xff]   ;;  %v5905_v19 = vld [vmem:[%s8693_s1 + $0x6a8] ss:$16 sps:$4 sm:$0xff]  }
  0x1f   : > { %1660 = vmatprep.subr.bf16.mxu1 %v5820_v21  ;;  %v5848_v40 = vld [vmem:[%s8693_s1 + $0x7a4] ss:$16 sps:$4 sm:$0xff]   ;;  %v5852_v42 = vld [vmem:[%s8693_s1 + $0x7a0] ss:$16 sps:$4 sm:$0xff]   ;;  %v5913_v21 = vld [vmem:[%s8693_s1 + $0x68c] ss:$16 sps:$4 sm:$0xff]  }
  0x20   : > { %v5850_v41 = vld [vmem:[%s8693_s1 + $0x9a4] ss:$16 sps:$4 sm:$0xff]   ;;  %v5853_v43 = vld [vmem:[%s8693_s1 + $0x9a0] ss:$16 sps:$4 sm:$0xff]  }
  0x21   : > { %1620 = vmatpush1.bf16.msra.mxu0 %v5822_v22  ;;  %v5854_v44 = vld [vmem:[%s8693_s1 + $0x784] ss:$16 sps:$4 sm:$0xff]   ;;  %v5858_v46 = vld [vmem:[%s8693_s1 + $0x780] ss:$16 sps:$4 sm:$0xff]  }
  0x22   : > { %1661 = vmatpush1.bf16.msra.mxu1 %v5823_v23  ;;  %1621 = vmatprep.subr.bf16.mxu0 %v5824_v24  ;;  %v5856_v45 = vld [vmem:[%s8693_s1 + $0x984] ss:$16 sps:$4 sm:$0xff]   ;;  %v5859_v47 = vld [vmem:[%s8693_s1 + $0x980] ss:$16 sps:$4 sm:$0xff]   ;;  %v5911_v23 = vld [vmem:[%s8693_s1 + $0x688] ss:$16 sps:$4 sm:$0xff]  }
  0x23   : > { %1662 = vmatprep.subr.bf16.mxu1 %v5826_v25  ;;  %v6873_v48 = vld [vmem:[%s6864_s14 + $0x4] ss:$24 sps:$4 sm:$0x18]   ;;  %v6883_v52 = vld [vmem:[%s6864_s14 + $0xc] ss:$24 sps:$4 sm:$0x18]  }
  0x24   : > { %v5860_v49 = vld [vmem:[%s8693_s1 + $0x764] ss:$16 sps:$4 sm:$0xff]   ;;  %v638_v51 = vrot.slane %v6873_v48, 3  ;;  %v5864_v53 = vld [vmem:[%s8693_s1 + $0x760] ss:$16 sps:$4 sm:$0xff]   ;;  %v640_v55 = vrot.slane %v6883_v52, 3 }
  0x25   : > { %1622 = vmatpush1.bf16.msra.mxu0 %v5828_v26  ;;  %v5862_v50 = vld [vmem:[%s8693_s1 + $0x964] ss:$16 sps:$4 sm:$0xff]   ;;  %v5865_v54 = vld [vmem:[%s8693_s1 + $0x960] ss:$16 sps:$4 sm:$0xff]   ;;  %v5919_v25 = vld [vmem:[%s8693_s1 + $0x66c] ss:$16 sps:$4 sm:$0xff]  }
  0x26   : > { %1663 = vmatpush1.bf16.msra.mxu1 %v5829_v27  ;;  %1623 = vmatprep.subr.bf16.mxu0 %v5830_v28  ;;  %v5866_v56 = vld [vmem:[%s8693_s1 + $0x744] ss:$16 sps:$4 sm:$0xff]   ;;  %v5870_v58 = vld [vmem:[%s8693_s1 + $0x740] ss:$16 sps:$4 sm:$0xff]   ;;  %v5917_v27 = vld [vmem:[%s8693_s1 + $0x668] ss:$16 sps:$4 sm:$0xff]  }
  0x27   : > { %1664 = vmatprep.subr.bf16.mxu1 %v5832_v29  ;;  %v5868_v57 = vld [vmem:[%s8693_s1 + $0x944] ss:$16 sps:$4 sm:$0xff]   ;;  %1641 = vmatprep.mubr.bf16.mxu0 %v638_v51  ;;  %v5871_v59 = vld [vmem:[%s8693_s1 + $0x940] ss:$16 sps:$4 sm:$0xff]   ;;  %v5925_v29 = vld [vmem:[%s8693_s1 + $0x64c] ss:$16 sps:$4 sm:$0xff]  }
  0x28   : > { %1682 = vmatprep.mubr.bf16.mxu1 %v640_v55  ;;  %v5872_v60 = vld [vmem:[%s8693_s1 + $0x724] ss:$16 sps:$4 sm:$0xff]   ;;  %v5876_v62 = vld [vmem:[%s8693_s1 + $0x720] ss:$16 sps:$4 sm:$0xff]   ;;  %v6009_v52 = vld [vmem:[%s8693_s1 + $0x88c] ss:$16 sps:$4 sm:$0xff]  }
  0x29   : > { %1624 = vmatpush1.bf16.msra.mxu0 %v5834_v30  ;;  %v5874_v61 = vld [vmem:[%s8693_s1 + $0x924] ss:$16 sps:$4 sm:$0xff]   ;;  %v5877_v63 = vld [vmem:[%s8693_s1 + $0x920] ss:$16 sps:$4 sm:$0xff]  }
  0x2a   : > { %1665 = vmatpush1.bf16.msra.mxu1 %v5835_v31  ;;  %1625 = vmatprep.subr.bf16.mxu0 %v5836_v32  ;;  %v5878_v0 = vld [vmem:[%s8693_s1 + $0x704] ss:$16 sps:$4 sm:$0xff]   ;;  %v6925_v2 = vld [vmem:[%s6864_s14] ss:$24 sps:$4 sm:$0x18]  }
  0x2b   : > { %1666 = vmatprep.subr.bf16.mxu1 %v5838_v33  ;;  %v5880_v1 = vld [vmem:[%s8693_s1 + $0x904] ss:$16 sps:$4 sm:$0xff]   ;;  %v6928_v3 = vld [vmem:[%s6864_s14 + $0x8] ss:$24 sps:$4 sm:$0x18]   ;;  %v637_v8 = vrot.slane %v6925_v2, 3 }
  0x2c   : > { %v5882_v4 = vld [vmem:[%s8693_s1 + $0x700] ss:$16 sps:$4 sm:$0xff]   ;;  %v5892_v6 = vld [vmem:[%s8693_s1 + $0xae4] ss:$16 sps:$4 sm:$0xff]   ;;  %v639_v9 = vrot.slane %v6928_v3, 3 }
  0x2d   : > { %1626 = vmatpush2.bf16.msra.mxu0 %v5840_v34  ;;  %v5883_v5 = vld [vmem:[%s8693_s1 + $0x900] ss:$16 sps:$4 sm:$0xff]   ;;  %v5898_v12 = vld [vmem:[%s8693_s1 + $0xac4] ss:$16 sps:$4 sm:$0xff]   ;;  %v5923_v31 = vld [vmem:[%s8693_s1 + $0x648] ss:$16 sps:$4 sm:$0xff]  }
  0x2e   : > { %1667 = vmatpush2.bf16.msra.mxu1 %v5841_v35  ;;  %1627 = vmatprep.subr.bf16.mxu0 %v5842_v36  ;;  %v5890_v10 = vld [vmem:[%s8693_s1 + $0xae0] ss:$16 sps:$4 sm:$0xff]   ;;  %v5904_v16 = vld [vmem:[%s8693_s1 + $0xaa4] ss:$16 sps:$4 sm:$0xff]   ;;  %v5931_v33 = vld [vmem:[%s8693_s1 + $0x62c] ss:$16 sps:$4 sm:$0xff]  }
  0x2f   : > { %1668 = vmatprep.subr.bf16.mxu1 %v5844_v37  ;;  %v5896_v14 = vld [vmem:[%s8693_s1 + $0xac0] ss:$16 sps:$4 sm:$0xff]   ;;  %v5910_v20 = vld [vmem:[%s8693_s1 + $0xa84] ss:$16 sps:$4 sm:$0xff]   ;;  %v5929_v35 = vld [vmem:[%s8693_s1 + $0x628] ss:$16 sps:$4 sm:$0xff]  }
  0x30   : > { %v5902_v18 = vld [vmem:[%s8693_s1 + $0xaa0] ss:$16 sps:$4 sm:$0xff]   ;;  %v5916_v24 = vld [vmem:[%s8693_s1 + $0xa64] ss:$16 sps:$4 sm:$0xff]   ;;  %v5937_v37 = vld [vmem:[%s8693_s1 + $0x60c] ss:$16 sps:$4 sm:$0xff]  }
  0x31   : > { %1628 = vmatpush2.bf16.msra.mxu0 %v5846_v38  ;;  %v5908_v22 = vld [vmem:[%s8693_s1 + $0xa80] ss:$16 sps:$4 sm:$0xff]   ;;  %v5922_v28 = vld [vmem:[%s8693_s1 + $0xa44] ss:$16 sps:$4 sm:$0xff]   ;;  %v6006_v2 = vld [vmem:[%s8693_s1 + $0xaac] ss:$16 sps:$4 sm:$0xff]  }
  0x32   : > { %1669 = vmatpush2.bf16.msra.mxu1 %v5847_v39  ;;  %1629 = vmatprep.subr.bf16.mxu0 %v5848_v40  ;;  %v5914_v26 = vld [vmem:[%s8693_s1 + $0xa60] ss:$16 sps:$4 sm:$0xff]   ;;  %v5928_v32 = vld [vmem:[%s8693_s1 + $0xa24] ss:$16 sps:$4 sm:$0xff]   ;;  %v5935_v40 = vld [vmem:[%s8693_s1 + $0x608] ss:$16 sps:$4 sm:$0xff]  }
  0x33   : > { %1670 = vmatprep.subr.bf16.mxu1 %v5850_v41  ;;  %v5920_v30 = vld [vmem:[%s8693_s1 + $0xa40] ss:$16 sps:$4 sm:$0xff]   ;;  %v5934_v36 = vld [vmem:[%s8693_s1 + $0xa04] ss:$16 sps:$4 sm:$0xff]  }
  0x34   : > { %v5926_v34 = vld [vmem:[%s8693_s1 + $0xa20] ss:$16 sps:$4 sm:$0xff]   ;;  %v7033_v38 = vld [vmem:[%s6864_s14 + $0x14] ss:$24 sps:$4 sm:$0x18]  }
  0x35   : > { %1630 = vmatpush2.bf16.msra.mxu0 %v5852_v42  ;;  %v5932_v39 = vld [vmem:[%s8693_s1 + $0xa00] ss:$16 sps:$4 sm:$0xff]   ;;  %v642_v41 = vrot.slane %v7033_v38, 3  ;;  %v5940_v42 = vld [vmem:[%s8693_s1 + $0xbe4] ss:$16 sps:$4 sm:$0xff]  }
  0x36   : > { %1671 = vmatpush2.bf16.msra.mxu1 %v5853_v43  ;;  %1631 = vmatprep.subr.bf16.mxu0 %v5854_v44  ;;  %v5943_v43 = vld [vmem:[%s8693_s1 + $0x7ec] ss:$16 sps:$4 sm:$0xff]   ;;  %v5938_v44 = vld [vmem:[%s8693_s1 + $0xbe0] ss:$16 sps:$4 sm:$0xff]   ;;  %v6102_v3 = vld [vmem:[%s8693_s1 + $0x2a4] ss:$16 sps:$4 sm:$0xff]  }
  0x37   : > { %1672 = vmatprep.subr.bf16.mxu1 %v5856_v45  ;;  %v5941_v45 = vld [vmem:[%s8693_s1 + $0x7e8] ss:$16 sps:$4 sm:$0xff]   ;;  %v5944_v48 = vld [vmem:[%s8693_s1 + $0xbc0] ss:$16 sps:$4 sm:$0xff]   ;;  %v6027_v38 = vld [vmem:[%s8693_s1 + $0x82c] ss:$16 sps:$4 sm:$0xff]  }
  0x39   : > { %1632 = vmatpush2.bf16.msra.mxu0 %v5858_v46  ;;  %v5946_v46 = vld [vmem:[%s8693_s1 + $0xbc4] ss:$16 sps:$4 sm:$0xff]  }
  0x3a   : > { %1673 = vmatpush2.bf16.msra.mxu1 %v5859_v47  ;;  %1633 = vmatprep.subr.bf16.mxu0 %v5860_v49  ;;  %v5949_v47 = vld [vmem:[%s8693_s1 + $0x7cc] ss:$16 sps:$4 sm:$0xff]   ;;  %v5947_v49 = vld [vmem:[%s8693_s1 + $0x7c8] ss:$16 sps:$4 sm:$0xff]  }
  0x3b   : > { %1674 = vmatprep.subr.bf16.mxu1 %v5862_v50  ;;  %v5952_v50 = vld [vmem:[%s8693_s1 + $0xba4] ss:$16 sps:$4 sm:$0xff]  }
  0x3d   : > { %1634 = vmatpush2.bf16.msra.mxu0 %v5864_v53  ;;  %v5950_v53 = vld [vmem:[%s8693_s1 + $0xba0] ss:$16 sps:$4 sm:$0xff]  }
  0x3e   : > { %1675 = vmatpush2.bf16.msra.mxu1 %v5865_v54  ;;  %1635 = vmatprep.subr.bf16.mxu0 %v5866_v56  ;;  %v5953_v54 = vld [vmem:[%s8693_s1 + $0x7a8] ss:$16 sps:$4 sm:$0xff]   ;;  %v5958_v56 = vld [vmem:[%s8693_s1 + $0xb84] ss:$16 sps:$4 sm:$0xff]  }
  0x3f   : > { %1676 = vmatprep.subr.bf16.mxu1 %v5868_v57  ;;  %v5961_v57 = vld [vmem:[%s8693_s1 + $0x78c] ss:$16 sps:$4 sm:$0xff]  }
  0x41   : > { %1636 = vmatpush2.bf16.msra.mxu0 %v5870_v58  ;;  %v5956_v58 = vld [vmem:[%s8693_s1 + $0xb80] ss:$16 sps:$4 sm:$0xff]  }
  0x42   : > { %1677 = vmatpush2.bf16.msra.mxu1 %v5871_v59  ;;  %1637 = vmatprep.subr.bf16.mxu0 %v5872_v60  ;;  %v5959_v59 = vld [vmem:[%s8693_s1 + $0x788] ss:$16 sps:$4 sm:$0xff]   ;;  %v5964_v60 = vld [vmem:[%s8693_s1 + $0xb64] ss:$16 sps:$4 sm:$0xff]  }
  0x43   : > { %1678 = vmatprep.subr.bf16.mxu1 %v5874_v61  ;;  %v5967_v61 = vld [vmem:[%s8693_s1 + $0x76c] ss:$16 sps:$4 sm:$0xff]  }
  0x45   : > { %1638 = vmatpush2.bf16.msra.mxu0 %v5876_v62  ;;  %v5962_v62 = vld [vmem:[%s8693_s1 + $0xb60] ss:$16 sps:$4 sm:$0xff]  }
  0x46   : > { %1679 = vmatpush2.bf16.msra.mxu1 %v5877_v63  ;;  %1639 = vmatprep.subr.bf16.mxu0 %v5878_v0  ;;  %v5965_v63 = vld [vmem:[%s8693_s1 + $0x768] ss:$16 sps:$4 sm:$0xff]   ;;  %v5970_v0 = vld [vmem:[%s8693_s1 + $0xb44] ss:$16 sps:$4 sm:$0xff]  }
  0x47   : > { %1680 = vmatprep.subr.bf16.mxu1 %v5880_v1  ;;  %v5973_v1 = vld [vmem:[%s8693_s1 + $0x74c] ss:$16 sps:$4 sm:$0xff]  }
  0x49   : > { %1640 = vmatpush2.bf16.msra.mxu0 %v5882_v4  ;;  %v5968_v4 = vld [vmem:[%s8693_s1 + $0xb40] ss:$16 sps:$4 sm:$0xff]  }
  0x4a   : > { %1681 = vmatpush2.bf16.msra.mxu1 %v5883_v5  ;;  %1691 = vmatprep.subr.bf16.mxu0 %v5892_v6  ;;  %v5971_v5 = vld [vmem:[%s8693_s1 + $0x748] ss:$16 sps:$4 sm:$0xff]   ;;  %v5976_v6 = vld [vmem:[%s8693_s1 + $0xb24] ss:$16 sps:$4 sm:$0xff]  }
  0x4b   : > { %1732 = vmatprep.subr.bf16.mxu1 %v5895_v7  ;;  %v5979_v7 = vld [vmem:[%s8693_s1 + $0x72c] ss:$16 sps:$4 sm:$0xff]  }
  0x4c   : > { %1642 = vmatmul.mubr.bf16.vlgmr.msra.gmra.mxu0 %v637_v8 }
  0x4d   : > { %1683 = vmatmul.mubr.bf16.vlgmr.msra.gmra.mxu1 %v639_v9  ;;  %1692 = vmatpush1.bf16.msra.mxu0 %v5890_v10  ;;  %v5974_v10 = vld [vmem:[%s8693_s1 + $0xb20] ss:$16 sps:$4 sm:$0xff]  }
  0x4e   : > { %1733 = vmatpush1.bf16.msra.mxu1 %v5893_v11  ;;  %1693 = vmatprep.subr.bf16.mxu0 %v5898_v12  ;;  %v5977_v11 = vld [vmem:[%s8693_s1 + $0x728] ss:$16 sps:$4 sm:$0xff]   ;;  %v5982_v12 = vld [vmem:[%s8693_s1 + $0xb04] ss:$16 sps:$4 sm:$0xff]  }
  0x4f   : > { %1734 = vmatprep.subr.bf16.mxu1 %v5901_v13  ;;  %1764 = vmatprep.mubr.bf16.mxu1 %v638_v51  ;;  %v5955_v51 = vld [vmem:[%s8693_s1 + $0x7ac] ss:$16 sps:$4 sm:$0xff]  }
  0x50   : > { %1723 = vmatprep.mubr.bf16.mxu0 %v642_v41  ;;  %v5985_v13 = vld [vmem:[%s8693_s1 + $0x70c] ss:$16 sps:$4 sm:$0xff]  }
  0x51   : > { %1694 = vmatpush1.bf16.msra.mxu0 %v5896_v14  ;;  %v7135_v14 = vld [vmem:[%s6864_s14 + $0x10] ss:$24 sps:$4 sm:$0x18]  }
  0x52   : > { %1735 = vmatpush1.bf16.msra.mxu1 %v5899_v15  ;;  %1695 = vmatprep.subr.bf16.mxu0 %v5904_v16  ;;  %v5980_v15 = vld [vmem:[%s8693_s1 + $0xb00] ss:$16 sps:$4 sm:$0xff]   ;;  %v5983_v16 = vld [vmem:[%s8693_s1 + $0x708] ss:$16 sps:$4 sm:$0xff]  }
  0x53   : > { %1736 = vmatprep.subr.bf16.mxu1 %v5907_v17  ;;  %v5991_v17 = vld [vmem:[%s8693_s1 + $0x8ec] ss:$16 sps:$4 sm:$0xff]  }
  0x55   : > { %1696 = vmatpush1.bf16.msra.mxu0 %v5902_v18  ;;  %v5994_v18 = vld [vmem:[%s8693_s1 + $0xaec] ss:$16 sps:$4 sm:$0xff]  }
  0x56   : > { %1737 = vmatpush1.bf16.msra.mxu1 %v5905_v19  ;;  %1697 = vmatprep.subr.bf16.mxu0 %v5910_v20  ;;  %v641_v19 = vrot.slane %v7135_v14, 3  ;;  %v5989_v20 = vld [vmem:[%s8693_s1 + $0x8e8] ss:$16 sps:$4 sm:$0xff]   ;;  %v6100_v14 = vld [vmem:[%s8693_s1 + $0x2a0] ss:$16 sps:$4 sm:$0xff]  }
  0x57   : > { %1738 = vmatprep.subr.bf16.mxu1 %v5913_v21  ;;  %v5992_v21 = vld [vmem:[%s8693_s1 + $0xae8] ss:$16 sps:$4 sm:$0xff]  }
  0x59   : > { %1698 = vmatpush1.bf16.msra.mxu0 %v5908_v22  ;;  %v5997_v22 = vld [vmem:[%s8693_s1 + $0x8cc] ss:$16 sps:$4 sm:$0xff]  }
  0x5a   : > { %1739 = vmatpush1.bf16.msra.mxu1 %v5911_v23  ;;  %1699 = vmatprep.subr.bf16.mxu0 %v5916_v24  ;;  %v6000_v23 = vld [vmem:[%s8693_s1 + $0xacc] ss:$16 sps:$4 sm:$0xff]   ;;  %v5995_v24 = vld [vmem:[%s8693_s1 + $0x8c8] ss:$16 sps:$4 sm:$0xff]  }
  0x5b   : > { %1740 = vmatprep.subr.bf16.mxu1 %v5919_v25  ;;  %v5998_v25 = vld [vmem:[%s8693_s1 + $0xac8] ss:$16 sps:$4 sm:$0xff]  }
  0x5d   : > { %1700 = vmatpush1.bf16.msra.mxu0 %v5914_v26  ;;  %v6003_v26 = vld [vmem:[%s8693_s1 + $0x8ac] ss:$16 sps:$4 sm:$0xff]  }
  0x5e   : > { %1741 = vmatpush1.bf16.msra.mxu1 %v5917_v27  ;;  %1701 = vmatprep.subr.bf16.mxu0 %v5922_v28  ;;  %v6004_v27 = vld [vmem:[%s8693_s1 + $0xaa8] ss:$16 sps:$4 sm:$0xff]  }
  0x5f   : > { %1742 = vmatprep.subr.bf16.mxu1 %v5925_v29  ;;  %v6007_v28 = vld [vmem:[%s8693_s1 + $0x888] ss:$16 sps:$4 sm:$0xff]  }
  0x60   : > { %v6010_v29 = vld [vmem:[%s8693_s1 + $0xa88] ss:$16 sps:$4 sm:$0xff]  }
  0x61   : > { %1702 = vmatpush1.bf16.msra.mxu0 %v5920_v30  ;;  %v6015_v30 = vld [vmem:[%s8693_s1 + $0x86c] ss:$16 sps:$4 sm:$0xff]  }
  0x62   : > { %1743 = vmatpush1.bf16.msra.mxu1 %v5923_v31  ;;  %1703 = vmatprep.subr.bf16.mxu0 %v5928_v32  ;;  %v6018_v31 = vld [vmem:[%s8693_s1 + $0xa6c] ss:$16 sps:$4 sm:$0xff]   ;;  %v6013_v32 = vld [vmem:[%s8693_s1 + $0x868] ss:$16 sps:$4 sm:$0xff]  }
  0x63   : > { %1744 = vmatprep.subr.bf16.mxu1 %v5931_v33  ;;  %v6016_v33 = vld [vmem:[%s8693_s1 + $0xa68] ss:$16 sps:$4 sm:$0xff]  }
  0x65   : > { %1704 = vmatpush1.bf16.msra.mxu0 %v5926_v34  ;;  %v6021_v34 = vld [vmem:[%s8693_s1 + $0x84c] ss:$16 sps:$4 sm:$0xff]  }
  0x66   : > { %1745 = vmatpush1.bf16.msra.mxu1 %v5929_v35  ;;  %1705 = vmatprep.subr.bf16.mxu0 %v5934_v36  ;;  %v6024_v35 = vld [vmem:[%s8693_s1 + $0xa4c] ss:$16 sps:$4 sm:$0xff]   ;;  %v6019_v36 = vld [vmem:[%s8693_s1 + $0x848] ss:$16 sps:$4 sm:$0xff]  }
  0x67   : > { %1746 = vmatprep.subr.bf16.mxu1 %v5937_v37  ;;  %v6022_v37 = vld [vmem:[%s8693_s1 + $0xa48] ss:$16 sps:$4 sm:$0xff]  }
  0x69   : > { %1706 = vmatpush1.bf16.msra.mxu0 %v5932_v39  ;;  %v6030_v39 = vld [vmem:[%s8693_s1 + $0xa2c] ss:$16 sps:$4 sm:$0xff]  }
  0x6a   : > { %1747 = vmatpush1.bf16.msra.mxu1 %v5935_v40  ;;  %1707 = vmatprep.subr.bf16.mxu0 %v5940_v42  ;;  %v6025_v40 = vld [vmem:[%s8693_s1 + $0x828] ss:$16 sps:$4 sm:$0xff]   ;;  %v6033_v42 = vld [vmem:[%s8693_s1 + $0x80c] ss:$16 sps:$4 sm:$0xff]  }
  0x6b   : > { %1748 = vmatprep.subr.bf16.mxu1 %v5943_v43  ;;  %v6036_v43 = vld [vmem:[%s8693_s1 + $0xa0c] ss:$16 sps:$4 sm:$0xff]  }
  0x6d   : > { %1708 = vmatpush2.bf16.msra.mxu0 %v5938_v44  ;;  %v6031_v44 = vld [vmem:[%s8693_s1 + $0x808] ss:$16 sps:$4 sm:$0xff]  }
  0x6e   : > { %1749 = vmatpush2.bf16.msra.mxu1 %v5941_v45  ;;  %1709 = vmatprep.subr.bf16.mxu0 %v5946_v46  ;;  %v6034_v45 = vld [vmem:[%s8693_s1 + $0xa08] ss:$16 sps:$4 sm:$0xff]   ;;  %v6039_v46 = vld [vmem:[%s8693_s1 + $0x9ec] ss:$16 sps:$4 sm:$0xff]  }
  0x6f   : > { %1750 = vmatprep.subr.bf16.mxu1 %v5949_v47  ;;  %v6042_v47 = vld [vmem:[%s8693_s1 + $0xbec] ss:$16 sps:$4 sm:$0xff]  }
  0x71   : > { %1710 = vmatpush2.bf16.msra.mxu0 %v5944_v48  ;;  %v6037_v48 = vld [vmem:[%s8693_s1 + $0x9e8] ss:$16 sps:$4 sm:$0xff]  }
  0x72   : > { %1751 = vmatpush2.bf16.msra.mxu1 %v5947_v49  ;;  %1711 = vmatprep.subr.bf16.mxu0 %v5952_v50  ;;  %v6040_v49 = vld [vmem:[%s8693_s1 + $0xbe8] ss:$16 sps:$4 sm:$0xff]   ;;  %v6045_v50 = vld [vmem:[%s8693_s1 + $0x9cc] ss:$16 sps:$4 sm:$0xff]  }
  0x73   : > { %1752 = vmatprep.subr.bf16.mxu1 %v5955_v51  ;;  %v6048_v51 = vld [vmem:[%s8693_s1 + $0xbcc] ss:$16 sps:$4 sm:$0xff]  }
  0x75   : > { %1712 = vmatpush2.bf16.msra.mxu0 %v5950_v53  ;;  %v6043_v53 = vld [vmem:[%s8693_s1 + $0x9c8] ss:$16 sps:$4 sm:$0xff]  }
  0x76   : > { %1753 = vmatpush2.bf16.msra.mxu1 %v5953_v54  ;;  %1713 = vmatprep.subr.bf16.mxu0 %v5958_v56  ;;  %v6046_v54 = vld [vmem:[%s8693_s1 + $0xbc8] ss:$16 sps:$4 sm:$0xff]   ;;  %v6051_v56 = vld [vmem:[%s8693_s1 + $0x9ac] ss:$16 sps:$4 sm:$0xff]  }
  0x77   : > { %1754 = vmatprep.subr.bf16.mxu1 %v5961_v57  ;;  %v6054_v57 = vld [vmem:[%s8693_s1 + $0xbac] ss:$16 sps:$4 sm:$0xff]  }
  0x79   : > { %1714 = vmatpush2.bf16.msra.mxu0 %v5956_v58  ;;  %v6049_v58 = vld [vmem:[%s8693_s1 + $0x9a8] ss:$16 sps:$4 sm:$0xff]  }
  0x7a   : > { %1755 = vmatpush2.bf16.msra.mxu1 %v5959_v59  ;;  %1715 = vmatprep.subr.bf16.mxu0 %v5964_v60  ;;  %v6052_v59 = vld [vmem:[%s8693_s1 + $0xba8] ss:$16 sps:$4 sm:$0xff]   ;;  %v6057_v60 = vld [vmem:[%s8693_s1 + $0x98c] ss:$16 sps:$4 sm:$0xff]  }
  0x7b   : > { %1756 = vmatprep.subr.bf16.mxu1 %v5967_v61  ;;  %v6060_v61 = vld [vmem:[%s8693_s1 + $0xb8c] ss:$16 sps:$4 sm:$0xff]  }
  0x7d   : > { %1716 = vmatpush2.bf16.msra.mxu0 %v5962_v62  ;;  %v6055_v62 = vld [vmem:[%s8693_s1 + $0x988] ss:$16 sps:$4 sm:$0xff]  }
  0x7e   : > { %1757 = vmatpush2.bf16.msra.mxu1 %v5965_v63  ;;  %1717 = vmatprep.subr.bf16.mxu0 %v5970_v0  ;;  %v6058_v63 = vld [vmem:[%s8693_s1 + $0xb88] ss:$16 sps:$4 sm:$0xff]   ;;  %v6063_v0 = vld [vmem:[%s8693_s1 + $0x96c] ss:$16 sps:$4 sm:$0xff]  }
  0x7f   : > { %1758 = vmatprep.subr.bf16.mxu1 %v5973_v1  ;;  %v6066_v1 = vld [vmem:[%s8693_s1 + $0xb6c] ss:$16 sps:$4 sm:$0xff]  }
  0x81   : > { %1718 = vmatpush2.bf16.msra.mxu0 %v5968_v4  ;;  %v6061_v4 = vld [vmem:[%s8693_s1 + $0x968] ss:$16 sps:$4 sm:$0xff]  }
  0x82   : > { %1759 = vmatpush2.bf16.msra.mxu1 %v5971_v5  ;;  %1719 = vmatprep.subr.bf16.mxu0 %v5976_v6  ;;  %v6064_v5 = vld [vmem:[%s8693_s1 + $0xb68] ss:$16 sps:$4 sm:$0xff]   ;;  %v6069_v6 = vld [vmem:[%s8693_s1 + $0x94c] ss:$16 sps:$4 sm:$0xff]  }
  0x83   : > { %1760 = vmatprep.subr.bf16.mxu1 %v5979_v7  ;;  %v6072_v7 = vld [vmem:[%s8693_s1 + $0xb4c] ss:$16 sps:$4 sm:$0xff]  }
  0x85   : > { %1720 = vmatpush2.bf16.msra.mxu0 %v5974_v10  ;;  %v6067_v10 = vld [vmem:[%s8693_s1 + $0x948] ss:$16 sps:$4 sm:$0xff]  }
  0x86   : > { %1761 = vmatpush2.bf16.msra.mxu1 %v5977_v11  ;;  %1721 = vmatprep.subr.bf16.mxu0 %v5982_v12  ;;  %v6070_v11 = vld [vmem:[%s8693_s1 + $0xb48] ss:$16 sps:$4 sm:$0xff]   ;;  %v6075_v12 = vld [vmem:[%s8693_s1 + $0x92c] ss:$16 sps:$4 sm:$0xff]  }
  0x87   : > { %1762 = vmatprep.subr.bf16.mxu1 %v5985_v13  ;;  %v6078_v13 = vld [vmem:[%s8693_s1 + $0xb2c] ss:$16 sps:$4 sm:$0xff]  }
  0x89   : > { %1722 = vmatpush2.bf16.msra.mxu0 %v5980_v15  ;;  %v6073_v15 = vld [vmem:[%s8693_s1 + $0x928] ss:$16 sps:$4 sm:$0xff]  }
  0x8a   : > { %1763 = vmatpush2.bf16.msra.mxu1 %v5983_v16  ;;  %1773 = vmatprep.subr.bf16.mxu0 %v5991_v17  ;;  %v6076_v16 = vld [vmem:[%s8693_s1 + $0xb28] ss:$16 sps:$4 sm:$0xff]   ;;  %v6081_v17 = vld [vmem:[%s8693_s1 + $0x90c] ss:$16 sps:$4 sm:$0xff]  }
  0x8b   : > { %1814 = vmatprep.subr.bf16.mxu1 %v5994_v18  ;;  %v6084_v18 = vld [vmem:[%s8693_s1 + $0xb0c] ss:$16 sps:$4 sm:$0xff]  }
  0x8c   : > { %1724 = vmatmul.mubr.bf16.vlgmr.msra.gmra.mxu0 %v641_v19 }
  0x8d   : > { %1765 = vmatmul.mubr.bf16.vlgmr.msra.gmra.mxu1 %v637_v8  ;;  %1774 = vmatpush1.bf16.msra.mxu0 %v5989_v20  ;;  %v6001_v8 = vld [vmem:[%s8693_s1 + $0x8a8] ss:$16 sps:$4 sm:$0xff]  }
  0x8e   : > { %1815 = vmatpush1.bf16.msra.mxu1 %v5992_v21  ;;  %1775 = vmatprep.subr.bf16.mxu0 %v5997_v22  ;;  %v6079_v20 = vld [vmem:[%s8693_s1 + $0x908] ss:$16 sps:$4 sm:$0xff]   ;;  %v6087_v22 = vld [vmem:[%s8693_s1 + $0xe4] ss:$16 sps:$4 sm:$0xff]  }
  0x8f   : > { %1816 = vmatprep.subr.bf16.mxu1 %v6000_v23  ;;  %1805 = vmatprep.mubr.bf16.mxu0 %v640_v55  ;;  %v6012_v55 = vld [vmem:[%s8693_s1 + $0xa8c] ss:$16 sps:$4 sm:$0xff]   ;;  %v6082_v21 = vld [vmem:[%s8693_s1 + $0xb08] ss:$16 sps:$4 sm:$0xff]   ;;  %v6090_v23 = vld [vmem:[%s8693_s1 + $0x2e4] ss:$16 sps:$4 sm:$0xff]  }
  0x90   : > { %1846 = vmatprep.mubr.bf16.mxu1 %v642_v41  ;;  %v6028_v41 = vld [vmem:[%s8693_s1 + $0xa28] ss:$16 sps:$4 sm:$0xff]  }
  0x91   : > { %1776 = vmatpush1.bf16.msra.mxu0 %v5995_v24  ;;  %v6085_v24 = vld [vmem:[%s8693_s1 + $0xe0] ss:$16 sps:$4 sm:$0xff]  }
  0x92   : > { %1817 = vmatpush1.bf16.msra.mxu1 %v5998_v25  ;;  %1777 = vmatprep.subr.bf16.mxu0 %v6003_v26  ;;  %v6088_v25 = vld [vmem:[%s8693_s1 + $0x2e0] ss:$16 sps:$4 sm:$0xff]  }
  0x93   : > { %1818 = vmatprep.subr.bf16.mxu1 %v6006_v2  ;;  %v7357_v26 = vld [vmem:[%s6864_s14] sm:$0x33]  ;;  %v7360_v2 = vld [vmem:[%s6864_s14 + $0x8] sm:$0x33] }
  0x95   : > { %1778 = vmatpush1.bf16.msra.mxu0 %v6001_v8  ;;  %v6093_v8 = vld [vmem:[%s8693_s1 + $0xc4] ss:$16 sps:$4 sm:$0xff]  }
  0x96   : > { %1819 = vmatpush1.bf16.msra.mxu1 %v6004_v27  ;;  %1779 = vmatprep.subr.bf16.mxu0 %v6009_v52  ;;  %v6096_v27 = vld [vmem:[%s8693_s1 + $0x2c4] ss:$16 sps:$4 sm:$0xff]   ;;  %v7370_v52 = vcombine.high %v7357_v26, %v7357_v26 }
  0x97   : > { %1820 = vmatprep.subr.bf16.mxu1 %v6012_v55  ;;  %v7374_v55 = vcombine.high %v7360_v2, %v7360_v2 }
  0x99   : > { %1780 = vmatpush1.bf16.msra.mxu0 %v6007_v28  ;;  %v6091_v28 = vld [vmem:[%s8693_s1 + $0xc0] ss:$16 sps:$4 sm:$0xff]  }
  0x9a   : > { %1821 = vmatpush1.bf16.msra.mxu1 %v6010_v29  ;;  %1781 = vmatprep.subr.bf16.mxu0 %v6015_v30  ;;  %v6094_v29 = vld [vmem:[%s8693_s1 + $0x2c0] ss:$16 sps:$4 sm:$0xff]   ;;  %v6099_v30 = vld [vmem:[%s8693_s1 + $0xa4] ss:$16 sps:$4 sm:$0xff]  }
  0x9b   : > { %1822 = vmatprep.subr.bf16.mxu1 %v6018_v31  ;;  %v6108_v31 = vld [vmem:[%s8693_s1 + $0x284] ss:$16 sps:$4 sm:$0xff]  }
  0x9d   : > { %1782 = vmatpush1.bf16.msra.mxu0 %v6013_v32  ;;  %v6103_v32 = vld [vmem:[%s8693_s1 + $0x80] ss:$16 sps:$4 sm:$0xff]  }
  0x9e   : > { %1823 = vmatpush1.bf16.msra.mxu1 %v6016_v33  ;;  %1783 = vmatprep.subr.bf16.mxu0 %v6021_v34  ;;  %v6106_v33 = vld [vmem:[%s8693_s1 + $0x280] ss:$16 sps:$4 sm:$0xff]   ;;  %v6111_v34 = vld [vmem:[%s8693_s1 + $0x64] ss:$16 sps:$4 sm:$0xff]  }
  0x9f   : > { %1824 = vmatprep.subr.bf16.mxu1 %v6024_v35  ;;  %v6114_v35 = vld [vmem:[%s8693_s1 + $0x264] ss:$16 sps:$4 sm:$0xff]  }
  0xa1   : > { %1784 = vmatpush1.bf16.msra.mxu0 %v6019_v36  ;;  %v6109_v36 = vld [vmem:[%s8693_s1 + $0x60] ss:$16 sps:$4 sm:$0xff]  }
  0xa2   : > { %1825 = vmatpush1.bf16.msra.mxu1 %v6022_v37  ;;  %1785 = vmatprep.subr.bf16.mxu0 %v6027_v38  ;;  %v6112_v37 = vld [vmem:[%s8693_s1 + $0x260] ss:$16 sps:$4 sm:$0xff]   ;;  %v6117_v38 = vld [vmem:[%s8693_s1 + $0x44] ss:$16 sps:$4 sm:$0xff]  }
  0xa3   : > { %1826 = vmatprep.subr.bf16.mxu1 %v6030_v39  ;;  %v6120_v39 = vld [vmem:[%s8693_s1 + $0x244] ss:$16 sps:$4 sm:$0xff]  }
  0xa5   : > { %1786 = vmatpush1.bf16.msra.mxu0 %v6025_v40  ;;  %v6115_v40 = vld [vmem:[%s8693_s1 + $0x40] ss:$16 sps:$4 sm:$0xff]  }
  0xa6   : > { %1827 = vmatpush1.bf16.msra.mxu1 %v6028_v41  ;;  %1787 = vmatprep.subr.bf16.mxu0 %v6033_v42  ;;  %v6118_v41 = vld [vmem:[%s8693_s1 + $0x240] ss:$16 sps:$4 sm:$0xff]   ;;  %v6123_v42 = vld [vmem:[%s8693_s1 + $0x24] ss:$16 sps:$4 sm:$0xff]  }
  0xa7   : > { %1828 = vmatprep.subr.bf16.mxu1 %v6036_v43  ;;  %v6126_v43 = vld [vmem:[%s8693_s1 + $0x224] ss:$16 sps:$4 sm:$0xff]  }
  0xa9   : > { %1788 = vmatpush1.bf16.msra.mxu0 %v6031_v44  ;;  %v6121_v44 = vld [vmem:[%s8693_s1 + $0x20] ss:$16 sps:$4 sm:$0xff]  }
  0xaa   : > { %1829 = vmatpush1.bf16.msra.mxu1 %v6034_v45  ;;  %1789 = vmatprep.subr.bf16.mxu0 %v6039_v46  ;;  %v6124_v45 = vld [vmem:[%s8693_s1 + $0x220] ss:$16 sps:$4 sm:$0xff]   ;;  %v6129_v46 = vld [vmem:[%s8693_s1 + $0x4] ss:$16 sps:$4 sm:$0xff]  }
  0xab   : > { %1830 = vmatprep.subr.bf16.mxu1 %v6042_v47  ;;  %v6132_v47 = vld [vmem:[%s8693_s1 + $0x204] ss:$16 sps:$4 sm:$0xff]  }
  0xad   : > { %1790 = vmatpush2.bf16.msra.mxu0 %v6037_v48  ;;  %v6127_v48 = vld [vmem:[%s8693_s1] ss:$16 sps:$4 sm:$0xff]  }
  0xae   : > { %1831 = vmatpush2.bf16.msra.mxu1 %v6040_v49  ;;  %1791 = vmatprep.subr.bf16.mxu0 %v6045_v50  ;;  %v6130_v49 = vld [vmem:[%s8693_s1 + $0x200] ss:$16 sps:$4 sm:$0xff]   ;;  %v6135_v50 = vld [vmem:[%s8693_s1 + $0x1e4] ss:$16 sps:$4 sm:$0xff]  }
  0xaf   : > { %1832 = vmatprep.subr.bf16.mxu1 %v6048_v51  ;;  %v6138_v51 = vld [vmem:[%s8693_s1 + $0x3e4] ss:$16 sps:$4 sm:$0xff]  }
  0xb1   : > { %1792 = vmatpush2.bf16.msra.mxu0 %v6043_v53  ;;  %v6133_v53 = vld [vmem:[%s8693_s1 + $0x1e0] ss:$16 sps:$4 sm:$0xff]  }
  0xb2   : > { %1833 = vmatpush2.bf16.msra.mxu1 %v6046_v54  ;;  %1793 = vmatprep.subr.bf16.mxu0 %v6051_v56  ;;  %v6136_v54 = vld [vmem:[%s8693_s1 + $0x3e0] ss:$16 sps:$4 sm:$0xff]   ;;  %v6141_v56 = vld [vmem:[%s8693_s1 + $0x1c4] ss:$16 sps:$4 sm:$0xff]  }
  0xb3   : > { %1834 = vmatprep.subr.bf16.mxu1 %v6054_v57  ;;  %v6144_v57 = vld [vmem:[%s8693_s1 + $0x3c4] ss:$16 sps:$4 sm:$0xff]  }
  0xb5   : > { %1794 = vmatpush2.bf16.msra.mxu0 %v6049_v58  ;;  %v6139_v58 = vld [vmem:[%s8693_s1 + $0x1c0] ss:$16 sps:$4 sm:$0xff]  }
  0xb6   : > { %1835 = vmatpush2.bf16.msra.mxu1 %v6052_v59  ;;  %1795 = vmatprep.subr.bf16.mxu0 %v6057_v60  ;;  %v6142_v59 = vld [vmem:[%s8693_s1 + $0x3c0] ss:$16 sps:$4 sm:$0xff]   ;;  %v6147_v60 = vld [vmem:[%s8693_s1 + $0x1a4] ss:$16 sps:$4 sm:$0xff]  }
  0xb7   : > { %1836 = vmatprep.subr.bf16.mxu1 %v6060_v61  ;;  %v6150_v61 = vld [vmem:[%s8693_s1 + $0x3a4] ss:$16 sps:$4 sm:$0xff]  }
  0xb9   : > { %1796 = vmatpush2.bf16.msra.mxu0 %v6055_v62  ;;  %v6145_v62 = vld [vmem:[%s8693_s1 + $0x1a0] ss:$16 sps:$4 sm:$0xff]  }
  0xba   : > { %1837 = vmatpush2.bf16.msra.mxu1 %v6058_v63  ;;  %1797 = vmatprep.subr.bf16.mxu0 %v6063_v0  ;;  %v6148_v63 = vld [vmem:[%s8693_s1 + $0x3a0] ss:$16 sps:$4 sm:$0xff]   ;;  %v6153_v0 = vld [vmem:[%s8693_s1 + $0x184] ss:$16 sps:$4 sm:$0xff]  }
  0xbb   : > { %1838 = vmatprep.subr.bf16.mxu1 %v6066_v1  ;;  %v6156_v1 = vld [vmem:[%s8693_s1 + $0x384] ss:$16 sps:$4 sm:$0xff]  }
  0xbd   : > { %1798 = vmatpush2.bf16.msra.mxu0 %v6061_v4  ;;  %v6151_v4 = vld [vmem:[%s8693_s1 + $0x180] ss:$16 sps:$4 sm:$0xff]  }
  0xbe   : > { %1839 = vmatpush2.bf16.msra.mxu1 %v6064_v5  ;;  %1799 = vmatprep.subr.bf16.mxu0 %v6069_v6  ;;  %v6154_v5 = vld [vmem:[%s8693_s1 + $0x380] ss:$16 sps:$4 sm:$0xff]   ;;  %v6159_v6 = vld [vmem:[%s8693_s1 + $0x164] ss:$16 sps:$4 sm:$0xff]  }
  0xbf   : > { %1840 = vmatprep.subr.bf16.mxu1 %v6072_v7  ;;  %v6162_v7 = vld [vmem:[%s8693_s1 + $0x364] ss:$16 sps:$4 sm:$0xff]  }
  0xc1   : > { %1800 = vmatpush2.bf16.msra.mxu0 %v6067_v10  ;;  %v6157_v10 = vld [vmem:[%s8693_s1 + $0x160] ss:$16 sps:$4 sm:$0xff]  }
  0xc2   : > { %1841 = vmatpush2.bf16.msra.mxu1 %v6070_v11  ;;  %1801 = vmatprep.subr.bf16.mxu0 %v6075_v12  ;;  %v6160_v11 = vld [vmem:[%s8693_s1 + $0x360] ss:$16 sps:$4 sm:$0xff]   ;;  %v6165_v12 = vld [vmem:[%s8693_s1 + $0x144] ss:$16 sps:$4 sm:$0xff]  }
  0xc3   : > { %1842 = vmatprep.subr.bf16.mxu1 %v6078_v13  ;;  %v6168_v13 = vld [vmem:[%s8693_s1 + $0x344] ss:$16 sps:$4 sm:$0xff]  }
  0xc5   : > { %1802 = vmatpush2.bf16.msra.mxu0 %v6073_v15  ;;  %v6163_v15 = vld [vmem:[%s8693_s1 + $0x140] ss:$16 sps:$4 sm:$0xff]  }
  0xc6   : > { %1843 = vmatpush2.bf16.msra.mxu1 %v6076_v16  ;;  %1803 = vmatprep.subr.bf16.mxu0 %v6081_v17  ;;  %v6166_v16 = vld [vmem:[%s8693_s1 + $0x340] ss:$16 sps:$4 sm:$0xff]   ;;  %v6171_v17 = vld [vmem:[%s8693_s1 + $0x124] ss:$16 sps:$4 sm:$0xff]  }
  0xc7   : > { %1844 = vmatprep.subr.bf16.mxu1 %v6084_v18  ;;  %v6174_v18 = vld [vmem:[%s8693_s1 + $0x324] ss:$16 sps:$4 sm:$0xff]  }
  0xc9   : > { %1804 = vmatpush2.bf16.msra.mxu0 %v6079_v20  ;;  %v6169_v20 = vld [vmem:[%s8693_s1 + $0x120] ss:$16 sps:$4 sm:$0xff]  }
  0xca   : > { %1845 = vmatpush2.bf16.msra.mxu1 %v6082_v21  ;;  %2836 = vmatprep.subr.bf16.mxu0 %v6087_v22  ;;  %v6172_v21 = vld [vmem:[%s8693_s1 + $0x320] ss:$16 sps:$4 sm:$0xff]   ;;  %v6177_v22 = vld [vmem:[%s8693_s1 + $0x104] ss:$16 sps:$4 sm:$0xff]  }
  0xcb   : > { %2877 = vmatprep.subr.bf16.mxu1 %v6090_v23  ;;  %v6180_v23 = vld [vmem:[%s8693_s1 + $0x304] ss:$16 sps:$4 sm:$0xff]  }
  0xcc   : > { %1806 = vmatmul.mubr.bf16.vlgmr.msra.gmra.mxu0 %v639_v9  ;;  %v6097_v9 = vld [vmem:[%s8693_s1 + $0xa0] ss:$16 sps:$4 sm:$0xff]  }
  0xcd   : > { %1847 = vmatmul.mubr.bf16.vlgmr.msra.gmra.mxu1 %v641_v19  ;;  %2837 = vmatpush1.bf16.msra.mxu0 %v6085_v24  ;;  %v6105_v19 = vld [vmem:[%s8693_s1 + $0x84] ss:$16 sps:$4 sm:$0xff]   ;;  %v6175_v24 = vld [vmem:[%s8693_s1 + $0x100] ss:$16 sps:$4 sm:$0xff]  }
  0xce   : > { %2878 = vmatpush1.bf16.msra.mxu1 %v6088_v25  ;;  %2838 = vmatprep.subr.bf16.mxu0 %v6093_v8  ;;  %v6178_v25 = vld [vmem:[%s8693_s1 + $0x300] ss:$16 sps:$4 sm:$0xff]   ;;  %v6187_v8 = vld [vmem:[%s8693_s1 + $0x4e4] ss:$16 sps:$4 sm:$0xff]  }
  0xcf   : > { %2879 = vmatprep.subr.bf16.mxu1 %v6096_v27  ;;  %2868 = vmatprep.mubr.bf16.mxu0 %v7370_v52  ;;  %v6190_v27 = vld [vmem:[%s8693_s1 + $0xec] ss:$16 sps:$4 sm:$0xff]  }
  0xd0   : > { %2909 = vmatprep.mubr.bf16.mxu1 %v7374_v55 }
  0xd1   : > { %2839 = vmatpush1.bf16.msra.mxu0 %v6091_v28  ;;  %v6185_v28 = vld [vmem:[%s8693_s1 + $0x4e0] ss:$16 sps:$4 sm:$0xff]  }
  0xd2   : > { %2880 = vmatpush1.bf16.msra.mxu1 %v6094_v29  ;;  %2840 = vmatprep.subr.bf16.mxu0 %v6099_v30  ;;  %v7567_v29 = vcombine.low %v7357_v26, %v7357_v26  ;;  %v7571_v30 = vcombine.low %v7360_v2, %v7360_v2  ;;  %v6196_v26 = vld [vmem:[%s8693_s1 + $0xcc] ss:$16 sps:$4 sm:$0xff]  }
  0xd3   : > { %2881 = vmatprep.subr.bf16.mxu1 %v6102_v3  ;;  %v7574_v3 = vld [vmem:[%s6864_s14 + $0x10] sm:$0x33] }
  0xd4   : > { %v7587_v2 = vcombine.high %v7574_v3, %v7574_v3 }
  0xd5   : > { %2841 = vmatpush1.bf16.msra.mxu0 %v6097_v9  ;;  %v6188_v9 = vld [vmem:[%s8693_s1 + $0xe8] ss:$16 sps:$4 sm:$0xff]  }
  0xd6   : > { %2882 = vmatpush1.bf16.msra.mxu1 %v6100_v14  ;;  %2842 = vmatprep.subr.bf16.mxu0 %v6105_v19  ;;  %v6193_v14 = vld [vmem:[%s8693_s1 + $0x4c4] ss:$16 sps:$4 sm:$0xff]  }
  0xd7   : > { %2883 = vmatprep.subr.bf16.mxu1 %v6108_v31 }
  0xd9   : > { %2843 = vmatpush1.bf16.msra.mxu0 %v6103_v32  ;;  %v6191_v32 = vld [vmem:[%s8693_s1 + $0x4c0] ss:$16 sps:$4 sm:$0xff]  }
  0xda   : > { %2884 = vmatpush1.bf16.msra.mxu1 %v6106_v33  ;;  %2844 = vmatprep.subr.bf16.mxu0 %v6111_v34  ;;  %v6194_v34 = vld [vmem:[%s8693_s1 + $0xc8] ss:$16 sps:$4 sm:$0xff]  }
  0xdb   : > { %2885 = vmatprep.subr.bf16.mxu1 %v6114_v35 }
  0xdd   : > { %2845 = vmatpush1.bf16.msra.mxu0 %v6109_v36 }
  0xde   : > { %2886 = vmatpush1.bf16.msra.mxu1 %v6112_v37  ;;  %2846 = vmatprep.subr.bf16.mxu0 %v6117_v38  ;;  %v6199_v37 = vld [vmem:[%s8693_s1 + $0x4a4] ss:$16 sps:$4 sm:$0xff]   ;;  %v6202_v38 = vld [vmem:[%s8693_s1 + $0xac] ss:$16 sps:$4 sm:$0xff]  }
  0xdf   : > { %2887 = vmatprep.subr.bf16.mxu1 %v6120_v39 }
  0xe1   : > { %2847 = vmatpush1.bf16.msra.mxu0 %v6115_v40 }
  0xe2   : > { %2888 = vmatpush1.bf16.msra.mxu1 %v6118_v41  ;;  %2848 = vmatprep.subr.bf16.mxu0 %v6123_v42  ;;  %v6197_v42 = vld [vmem:[%s8693_s1 + $0x4a0] ss:$16 sps:$4 sm:$0xff]  }
  0xe3   : > { %2889 = vmatprep.subr.bf16.mxu1 %v6126_v43  ;;  %v6200_v43 = vld [vmem:[%s8693_s1 + $0xa8] ss:$16 sps:$4 sm:$0xff]  }
  0xe5   : > { %2849 = vmatpush1.bf16.msra.mxu0 %v6121_v44 }
  0xe6   : > { %2890 = vmatpush1.bf16.msra.mxu1 %v6124_v45  ;;  %2850 = vmatprep.subr.bf16.mxu0 %v6129_v46  ;;  %v6208_v46 = vld [vmem:[%s8693_s1 + $0x8c] ss:$16 sps:$4 sm:$0xff]  }
  0xe7   : > { %2891 = vmatprep.subr.bf16.mxu1 %v6132_v47  ;;  %v6203_v47 = vld [vmem:[%s8693_s1 + $0x480] ss:$16 sps:$4 sm:$0xff]  }
  0xe9   : > { %2851 = vmatpush1.bf16.msra.mxu0 %v6127_v48  ;;  %v6206_v48 = vld [vmem:[%s8693_s1 + $0x88] ss:$16 sps:$4 sm:$0xff]  }
  0xea   : > { %2892 = vmatpush1.bf16.msra.mxu1 %v6130_v49  ;;  %2852 = vmatprep.subr.bf16.mxu0 %v6135_v50  ;;  %v6211_v49 = vld [vmem:[%s8693_s1 + $0x464] ss:$16 sps:$4 sm:$0xff]   ;;  %v6214_v50 = vld [vmem:[%s8693_s1 + $0x6c] ss:$16 sps:$4 sm:$0xff]  }
  0xeb   : > { %2893 = vmatprep.subr.bf16.mxu1 %v6138_v51  ;;  %v6209_v51 = vld [vmem:[%s8693_s1 + $0x460] ss:$16 sps:$4 sm:$0xff]  }
  0xed   : > { %2853 = vmatpush2.bf16.msra.mxu0 %v6133_v53  ;;  %v6212_v53 = vld [vmem:[%s8693_s1 + $0x68] ss:$16 sps:$4 sm:$0xff]  }
  0xee   : > { %2894 = vmatpush2.bf16.msra.mxu1 %v6136_v54  ;;  %2854 = vmatprep.subr.bf16.mxu0 %v6141_v56  ;;  %v6217_v54 = vld [vmem:[%s8693_s1 + $0x444] ss:$16 sps:$4 sm:$0xff]   ;;  %v6220_v56 = vld [vmem:[%s8693_s1 + $0x4c] ss:$16 sps:$4 sm:$0xff]  }
  0xef   : > { %2895 = vmatprep.subr.bf16.mxu1 %v6144_v57  ;;  %v6215_v57 = vld [vmem:[%s8693_s1 + $0x440] ss:$16 sps:$4 sm:$0xff]  }
  0xf1   : > { %2855 = vmatpush2.bf16.msra.mxu0 %v6139_v58  ;;  %v6218_v58 = vld [vmem:[%s8693_s1 + $0x48] ss:$16 sps:$4 sm:$0xff]  }
  0xf2   : > { %2896 = vmatpush2.bf16.msra.mxu1 %v6142_v59  ;;  %2856 = vmatprep.subr.bf16.mxu0 %v6147_v60  ;;  %v6223_v59 = vld [vmem:[%s8693_s1 + $0x424] ss:$16 sps:$4 sm:$0xff]   ;;  %v6226_v60 = vld [vmem:[%s8693_s1 + $0x2c] ss:$16 sps:$4 sm:$0xff]  }
  0xf3   : > { %2897 = vmatprep.subr.bf16.mxu1 %v6150_v61  ;;  %v6221_v61 = vld [vmem:[%s8693_s1 + $0x420] ss:$16 sps:$4 sm:$0xff]  }
  0xf5   : > { %2857 = vmatpush2.bf16.msra.mxu0 %v6145_v62  ;;  %v6224_v62 = vld [vmem:[%s8693_s1 + $0x28] ss:$16 sps:$4 sm:$0xff]  }
  0xf6   : > { %2898 = vmatpush2.bf16.msra.mxu1 %v6148_v63  ;;  %2858 = vmatprep.subr.bf16.mxu0 %v6153_v0  ;;  %v6229_v63 = vld [vmem:[%s8693_s1 + $0x404] ss:$16 sps:$4 sm:$0xff]   ;;  %v6232_v0 = vld [vmem:[%s8693_s1 + $0xc] ss:$16 sps:$4 sm:$0xff]  }
  0xf7   : > { %2899 = vmatprep.subr.bf16.mxu1 %v6156_v1  ;;  %v6227_v1 = vld [vmem:[%s8693_s1 + $0x400] ss:$16 sps:$4 sm:$0xff]  }
  0xf9   : > { %2859 = vmatpush2.bf16.msra.mxu0 %v6151_v4  ;;  %v6230_v4 = vld [vmem:[%s8693_s1 + $0x8] ss:$16 sps:$4 sm:$0xff]  }
  0xfa   : > { %2900 = vmatpush2.bf16.msra.mxu1 %v6154_v5  ;;  %2860 = vmatprep.subr.bf16.mxu0 %v6159_v6  ;;  %v6235_v5 = vld [vmem:[%s8693_s1 + $0x5e4] ss:$16 sps:$4 sm:$0xff]   ;;  %v6238_v6 = vld [vmem:[%s8693_s1 + $0x1ec] ss:$16 sps:$4 sm:$0xff]  }
  0xfb   : > { %2901 = vmatprep.subr.bf16.mxu1 %v6162_v7  ;;  %v6233_v7 = vld [vmem:[%s8693_s1 + $0x5e0] ss:$16 sps:$4 sm:$0xff]  }
  0xfd   : > { %2861 = vmatpush2.bf16.msra.mxu0 %v6157_v10  ;;  %v6236_v10 = vld [vmem:[%s8693_s1 + $0x1e8] ss:$16 sps:$4 sm:$0xff]  }
  0xfe   : > { %2902 = vmatpush2.bf16.msra.mxu1 %v6160_v11  ;;  %2862 = vmatprep.subr.bf16.mxu0 %v6165_v12  ;;  %v6241_v11 = vld [vmem:[%s8693_s1 + $0x5c4] ss:$16 sps:$4 sm:$0xff]   ;;  %v6244_v12 = vld [vmem:[%s8693_s1 + $0x1cc] ss:$16 sps:$4 sm:$0xff]  }
  0xff   : > { %2903 = vmatprep.subr.bf16.mxu1 %v6168_v13  ;;  %v6239_v13 = vld [vmem:[%s8693_s1 + $0x5c0] ss:$16 sps:$4 sm:$0xff]  }
 0x101   : > { %2863 = vmatpush2.bf16.msra.mxu0 %v6163_v15  ;;  %v6242_v15 = vld [vmem:[%s8693_s1 + $0x1c8] ss:$16 sps:$4 sm:$0xff]  }
 0x102   : > { %2904 = vmatpush2.bf16.msra.mxu1 %v6166_v16  ;;  %2864 = vmatprep.subr.bf16.mxu0 %v6171_v17  ;;  %v6247_v16 = vld [vmem:[%s8693_s1 + $0x5a4] ss:$16 sps:$4 sm:$0xff]   ;;  %v6250_v17 = vld [vmem:[%s8693_s1 + $0x1ac] ss:$16 sps:$4 sm:$0xff]  }
 0x103   : > { %2905 = vmatprep.subr.bf16.mxu1 %v6174_v18  ;;  %v6245_v18 = vld [vmem:[%s8693_s1 + $0x5a0] ss:$16 sps:$4 sm:$0xff]  }
 0x105   : > { %2865 = vmatpush2.bf16.msra.mxu0 %v6169_v20  ;;  %v6248_v20 = vld [vmem:[%s8693_s1 + $0x1a8] ss:$16 sps:$4 sm:$0xff]  }
 0x106   : > { %2906 = vmatpush2.bf16.msra.mxu1 %v6172_v21  ;;  %2866 = vmatprep.subr.bf16.mxu0 %v6177_v22  ;;  %v6253_v21 = vld [vmem:[%s8693_s1 + $0x584] ss:$16 sps:$4 sm:$0xff]   ;;  %v6256_v22 = vld [vmem:[%s8693_s1 + $0x18c] ss:$16 sps:$4 sm:$0xff]  }
 0x107   : > { %2907 = vmatprep.subr.bf16.mxu1 %v6180_v23  ;;  %v6251_v23 = vld [vmem:[%s8693_s1 + $0x580] ss:$16 sps:$4 sm:$0xff]  }
 0x109   : > { %2867 = vmatpush2.bf16.msra.mxu0 %v6175_v24  ;;  %v6254_v24 = vld [vmem:[%s8693_s1 + $0x188] ss:$16 sps:$4 sm:$0xff]  }
 0x10a   : > { %2908 = vmatpush2.bf16.msra.mxu1 %v6178_v25  ;;  %2918 = vmatprep.subr.bf16.mxu0 %v6187_v8  ;;  %v6259_v25 = vld [vmem:[%s8693_s1 + $0x564] ss:$16 sps:$4 sm:$0xff]   ;;  %v6262_v8 = vld [vmem:[%s8693_s1 + $0x16c] ss:$16 sps:$4 sm:$0xff]  }
 0x10b   : > { %2959 = vmatprep.subr.bf16.mxu1 %v6190_v27  ;;  %v6257_v27 = vld [vmem:[%s8693_s1 + $0x560] ss:$16 sps:$4 sm:$0xff]  }
 0x10c   : > { %v1643_v19 = vpop.f32.mrf.mxu0  ;;  %2869 = vmatmul.mubr.bf16.vlgmr.msra.gmra.mxu0 %v7567_v29 }
 0x10d   : > { %v1684_v31 = vpop.f32.mrf.mxu1  ;;  %2910 = vmatmul.mubr.bf16.vlgmr.msra.gmra.mxu1 %v7571_v30  ;;  %2919 = vmatpush1.bf16.msra.mxu0 %v6185_v28  ;;  %v6260_v28 = vld [vmem:[%s8693_s1 + $0x168] ss:$16 sps:$4 sm:$0xff]  }
 0x10e   : > { %v7594_v33 = vadd.f32 %v1684_v31, %v1643_v19  ;;  %2960 = vmatpush1.bf16.msra.mxu1 %v6188_v9  ;;  %v1645_v35 = vpop.f32.mrf.mxu0  ;;  %2920 = vmatprep.subr.bf16.mxu0 %v6193_v14  ;;  %v6265_v9 = vld [vmem:[%s8693_s1 + $0x544] ss:$16 sps:$4 sm:$0xff]   ;;  %v6268_v14 = vld [vmem:[%s8693_s1 + $0x14c] ss:$16 sps:$4 sm:$0xff]   ;;  %v6266_v19 = vld [vmem:[%s8693_s1 + $0x148] ss:$16 sps:$4 sm:$0xff]  }
 0x10f   : > { %v1686_v36 = vpop.f32.mrf.mxu1  ;;  %2961 = vmatprep.subr.bf16.mxu1 %v6196_v26  ;;  %2950 = vmatprep.mubr.bf16.mxu0 %v7587_v2  ;;  %v6263_v26 = vld [vmem:[%s8693_s1 + $0x540] ss:$16 sps:$4 sm:$0xff]   ;;  %v6271_v31 = vld [vmem:[%s8693_s1 + $0x524] ss:$16 sps:$4 sm:$0xff]  }
 0x110   : > { %v7605_v39 = vadd.f32 %v1686_v36, %v1645_v35  ;;  %2991 = vmatprep.mubr.bf16.mxu1 %v7370_v52  ;;  %v1647_v40 = vpop.f32.mrf.mxu0  ;;  %v6205_v52 = vld [vmem:[%s8693_s1 + $0x484] ss:$16 sps:$4 sm:$0xff]   ;;  %v6272_v35 = vld [vmem:[%s8693_s1 + $0x128] ss:$16 sps:$4 sm:$0xff]  }
 0x111   : > { %v1688_v41 = vpop.f32.mrf.mxu1  ;;  %2921 = vmatpush1.bf16.msra.mxu0 %v6191_v32  ;;  %v6274_v32 = vld [vmem:[%s8693_s1 + $0x12c] ss:$16 sps:$4 sm:$0xff]   ;;  %v6277_v36 = vld [vmem:[%s8693_s1 + $0x504] ss:$16 sps:$4 sm:$0xff]   ;;  %v6278_v40 = vld [vmem:[%s8693_s1 + $0x108] ss:$16 sps:$4 sm:$0xff]  }
 0x112   : > { %2962 = vmatpush1.bf16.msra.mxu1 %v6194_v34  ;;  %v1648_v44 = vpop.f32.mrf.mxu0  ;;  %2922 = vmatprep.subr.bf16.mxu0 %v6199_v37  ;;  %v6269_v34 = vld [vmem:[%s8693_s1 + $0x520] ss:$16 sps:$4 sm:$0xff]   ;;  %v6280_v37 = vld [vmem:[%s8693_s1 + $0x10c] ss:$16 sps:$4 sm:$0xff]  }
 0x113   : > { %v1689_v45 = vpop.f32.mrf.mxu1  ;;  %2963 = vmatprep.subr.bf16.mxu1 %v6202_v38  ;;  %v6275_v38 = vld [vmem:[%s8693_s1 + $0x500] ss:$16 sps:$4 sm:$0xff]   ;;  %v6285_v41 = vld [vmem:[%s8693_s1 + $0x2ec] ss:$16 sps:$4 sm:$0xff]   ;;  %v6286_v44 = vld [vmem:[%s8693_s1 + $0x4e8] ss:$16 sps:$4 sm:$0xff]  }
 0x114   : > { %v7785_v45 = vcombine.low %v7574_v3, %v7574_v3  ;;  %v6292_v3 = vld [vmem:[%s8693_s1 + $0x4c8] ss:$16 sps:$4 sm:$0xff]  }
 0x115   : > { %2923 = vmatpush1.bf16.msra.mxu0 %v6197_v42  ;;  %v6288_v42 = vld [vmem:[%s8693_s1 + $0x4ec] ss:$16 sps:$4 sm:$0xff]  }
 0x116   : > { %2964 = vmatpush1.bf16.msra.mxu1 %v6200_v43  ;;  %2924 = vmatprep.subr.bf16.mxu0 %v6205_v52  ;;  %v6283_v43 = vld [vmem:[%s8693_s1 + $0x2e8] ss:$16 sps:$4 sm:$0xff]   ;;  %v6291_v52 = vld [vmem:[%s8693_s1 + $0x2cc] ss:$16 sps:$4 sm:$0xff]  }
 0x117   : > { %2965 = vmatprep.subr.bf16.mxu1 %v6208_v46  ;;  %v6294_v46 = vld [vmem:[%s8693_s1 + $0x4cc] ss:$16 sps:$4 sm:$0xff]  }
 0x119   : > { %2925 = vmatpush1.bf16.msra.mxu0 %v6203_v47  ;;  %v6289_v47 = vld [vmem:[%s8693_s1 + $0x2c8] ss:$16 sps:$4 sm:$0xff]  }
 0x11a   : > { %2966 = vmatpush1.bf16.msra.mxu1 %v6206_v48  ;;  %2926 = vmatprep.subr.bf16.mxu0 %v6211_v49 }
 0x11b   : > { %2967 = vmatprep.subr.bf16.mxu1 %v6214_v50 }
 0x11d   : > { %2927 = vmatpush1.bf16.msra.mxu0 %v6209_v51 }
 0x11e   : > { %2968 = vmatpush1.bf16.msra.mxu1 %v6212_v53  ;;  %2928 = vmatprep.subr.bf16.mxu0 %v6217_v54  ;;  %v6297_v54 = vld [vmem:[%s8693_s1 + $0x2ac] ss:$16 sps:$4 sm:$0xff]  }
 0x11f   : > { %2969 = vmatprep.subr.bf16.mxu1 %v6220_v56  ;;  %v6300_v56 = vld [vmem:[%s8693_s1 + $0x4ac] ss:$16 sps:$4 sm:$0xff]  }
 0x121   : > { %2929 = vmatpush1.bf16.msra.mxu0 %v6215_v57  ;;  %v6298_v57 = vld [vmem:[%s8693_s1 + $0x4a8] ss:$16 sps:$4 sm:$0xff]  }
 0x122   : > { %2970 = vmatpush1.bf16.msra.mxu1 %v6218_v58  ;;  %2930 = vmatprep.subr.bf16.mxu0 %v6223_v59 }
 0x123   : > { %2971 = vmatprep.subr.bf16.mxu1 %v6226_v60 }
 0x125   : > { %2931 = vmatpush1.bf16.msra.mxu0 %v6221_v61 }
 0x126   : > { %2972 = vmatpush1.bf16.msra.mxu1 %v6224_v62  ;;  %2932 = vmatprep.subr.bf16.mxu0 %v6229_v63  ;;  %v6306_v62 = vld [vmem:[%s8693_s1 + $0x48c] ss:$16 sps:$4 sm:$0xff]  }
 0x127   : > { %2973 = vmatprep.subr.bf16.mxu1 %v6232_v0  ;;  %v6309_v63 = vld [vmem:[%s8693_s1 + $0x26c] ss:$16 sps:$4 sm:$0xff]  }
 0x128   : > { %v6312_v0 = vld [vmem:[%s8693_s1 + $0x46c] ss:$16 sps:$4 sm:$0xff]  }
 0x129   : > { %2933 = vmatpush1.bf16.msra.mxu0 %v6227_v1  ;;  %v6307_v1 = vld [vmem:[%s8693_s1 + $0x268] ss:$16 sps:$4 sm:$0xff]  }
 0x12a   : > { %2974 = vmatpush1.bf16.msra.mxu1 %v6230_v4  ;;  %2934 = vmatprep.subr.bf16.mxu0 %v6235_v5  ;;  %v6310_v4 = vld [vmem:[%s8693_s1 + $0x468] ss:$16 sps:$4 sm:$0xff]   ;;  %v6315_v5 = vld [vmem:[%s8693_s1 + $0x24c] ss:$16 sps:$4 sm:$0xff]  }
 0x12b   : > { %2975 = vmatprep.subr.bf16.mxu1 %v6238_v6  ;;  %v6318_v6 = vld [vmem:[%s8693_s1 + $0x44c] ss:$16 sps:$4 sm:$0xff]  }
 0x12d   : > { %2935 = vmatpush2.bf16.msra.mxu0 %v6233_v7  ;;  %v6313_v7 = vld [vmem:[%s8693_s1 + $0x248] ss:$16 sps:$4 sm:$0xff]  }
 0x12e   : > { %2976 = vmatpush2.bf16.msra.mxu1 %v6236_v10  ;;  %2936 = vmatprep.subr.bf16.mxu0 %v6241_v11  ;;  %v6316_v10 = vld [vmem:[%s8693_s1 + $0x448] ss:$16 sps:$4 sm:$0xff]   ;;  %v6321_v11 = vld [vmem:[%s8693_s1 + $0x22c] ss:$16 sps:$4 sm:$0xff]  }
 0x12f   : > { %2977 = vmatprep.subr.bf16.mxu1 %v6244_v12  ;;  %v6324_v12 = vld [vmem:[%s8693_s1 + $0x42c] ss:$16 sps:$4 sm:$0xff]  }
 0x131   : > { %2937 = vmatpush2.bf16.msra.mxu0 %v6239_v13  ;;  %v6319_v13 = vld [vmem:[%s8693_s1 + $0x228] ss:$16 sps:$4 sm:$0xff]  }
 0x132   : > { %2978 = vmatpush2.bf16.msra.mxu1 %v6242_v15  ;;  %2938 = vmatprep.subr.bf16.mxu0 %v6247_v16  ;;  %v6322_v15 = vld [vmem:[%s8693_s1 + $0x428] ss:$16 sps:$4 sm:$0xff]   ;;  %v6327_v16 = vld [vmem:[%s8693_s1 + $0x20c] ss:$16 sps:$4 sm:$0xff]  }
 0x133   : > { %2979 = vmatprep.subr.bf16.mxu1 %v6250_v17  ;;  %v6330_v17 = vld [vmem:[%s8693_s1 + $0x40c] ss:$16 sps:$4 sm:$0xff]  }
 0x135   : > { %2939 = vmatpush2.bf16.msra.mxu0 %v6245_v18  ;;  %v6325_v18 = vld [vmem:[%s8693_s1 + $0x208] ss:$16 sps:$4 sm:$0xff]  }
 0x136   : > { %2980 = vmatpush2.bf16.msra.mxu1 %v6248_v20  ;;  %2940 = vmatprep.subr.bf16.mxu0 %v6253_v21  ;;  %v6328_v20 = vld [vmem:[%s8693_s1 + $0x408] ss:$16 sps:$4 sm:$0xff]   ;;  %v6333_v21 = vld [vmem:[%s8693_s1 + $0x3ec] ss:$16 sps:$4 sm:$0xff]  }
 0x137   : > { %2981 = vmatprep.subr.bf16.mxu1 %v6256_v22  ;;  %v6336_v22 = vld [vmem:[%s8693_s1 + $0x5ec] ss:$16 sps:$4 sm:$0xff]  }
 0x139   : > { %2941 = vmatpush2.bf16.msra.mxu0 %v6251_v23  ;;  %v6331_v23 = vld [vmem:[%s8693_s1 + $0x3e8] ss:$16 sps:$4 sm:$0xff]  }
 0x13a   : > { %2982 = vmatpush2.bf16.msra.mxu1 %v6254_v24  ;;  %2942 = vmatprep.subr.bf16.mxu0 %v6259_v25  ;;  %v6334_v24 = vld [vmem:[%s8693_s1 + $0x5e8] ss:$16 sps:$4 sm:$0xff]   ;;  %v6339_v25 = vld [vmem:[%s8693_s1 + $0x3cc] ss:$16 sps:$4 sm:$0xff]  }
 0x13b   : > { %2983 = vmatprep.subr.bf16.mxu1 %v6262_v8  ;;  %v6342_v8 = vld [vmem:[%s8693_s1 + $0x5cc] ss:$16 sps:$4 sm:$0xff]  }
 0x13d   : > { %2943 = vmatpush2.bf16.msra.mxu0 %v6257_v27  ;;  %v6337_v27 = vld [vmem:[%s8693_s1 + $0x3c8] ss:$16 sps:$4 sm:$0xff]  }
 0x13e   : > { %2984 = vmatpush2.bf16.msra.mxu1 %v6260_v28  ;;  %2944 = vmatprep.subr.bf16.mxu0 %v6265_v9  ;;  %v6340_v28 = vld [vmem:[%s8693_s1 + $0x5c8] ss:$16 sps:$4 sm:$0xff]   ;;  %v6345_v9 = vld [vmem:[%s8693_s1 + $0x3ac] ss:$16 sps:$4 sm:$0xff]  }
 0x13f   : > { %2985 = vmatprep.subr.bf16.mxu1 %v6268_v14  ;;  %v6348_v14 = vld [vmem:[%s8693_s1 + $0x5ac] ss:$16 sps:$4 sm:$0xff]  }
 0x141   : > { %2945 = vmatpush2.bf16.msra.mxu0 %v6263_v26  ;;  %v6343_v26 = vld [vmem:[%s8693_s1 + $0x3a8] ss:$16 sps:$4 sm:$0xff]  }
 0x142   : > { %2986 = vmatpush2.bf16.msra.mxu1 %v6266_v19  ;;  %2946 = vmatprep.subr.bf16.mxu0 %v6271_v31  ;;  %v6346_v19 = vld [vmem:[%s8693_s1 + $0x5a8] ss:$16 sps:$4 sm:$0xff]   ;;  %v6351_v31 = vld [vmem:[%s8693_s1 + $0x38c] ss:$16 sps:$4 sm:$0xff]  }
 0x143   : > { %2987 = vmatprep.subr.bf16.mxu1 %v6274_v32  ;;  %v6354_v32 = vld [vmem:[%s8693_s1 + $0x58c] ss:$16 sps:$4 sm:$0xff]  }
 0x145   : > { %2947 = vmatpush2.bf16.msra.mxu0 %v6269_v34  ;;  %v6349_v34 = vld [vmem:[%s8693_s1 + $0x388] ss:$16 sps:$4 sm:$0xff]  }
 0x146   : > { %2988 = vmatpush2.bf16.msra.mxu1 %v6272_v35  ;;  %2948 = vmatprep.subr.bf16.mxu0 %v6277_v36  ;;  %v6352_v35 = vld [vmem:[%s8693_s1 + $0x588] ss:$16 sps:$4 sm:$0xff]   ;;  %v6357_v36 = vld [vmem:[%s8693_s1 + $0x36c] ss:$16 sps:$4 sm:$0xff]  }
 0x147   : > { %2989 = vmatprep.subr.bf16.mxu1 %v6280_v37  ;;  %v6360_v37 = vld [vmem:[%s8693_s1 + $0x56c] ss:$16 sps:$4 sm:$0xff]  }
 0x149   : > { %2949 = vmatpush2.bf16.msra.mxu0 %v6275_v38  ;;  %v6355_v38 = vld [vmem:[%s8693_s1 + $0x368] ss:$16 sps:$4 sm:$0xff]  }
 0x14a   : > { %2990 = vmatpush2.bf16.msra.mxu1 %v6278_v40  ;;  %3000 = vmatprep.subr.bf16.mxu0 %v6285_v41  ;;  %v6358_v40 = vld [vmem:[%s8693_s1 + $0x568] ss:$16 sps:$4 sm:$0xff]   ;;  %v6363_v41 = vld [vmem:[%s8693_s1 + $0x34c] ss:$16 sps:$4 sm:$0xff]  }
 0x14b   : > { %3041 = vmatprep.subr.bf16.mxu1 %v6288_v42  ;;  %v6366_v42 = vld [vmem:[%s8693_s1 + $0x54c] ss:$16 sps:$4 sm:$0xff]  }
 0x14c   : > { %v1725_v48 = vpop.f32.mrf.mxu0  ;;  %2951 = vmatmul.mubr.bf16.vlgmr.msra.gmra.mxu0 %v7785_v45 }
 0x14d   : > { %v7799_v49 = vpop.f32.mrf.mxu1  ;;  %2992 = vmatmul.mubr.bf16.vlgmr.msra.gmra.mxu1 %v7567_v29  ;;  %v7804_v50 = vadd.f32 %v1725_v48, %v7594_v33  ;;  %3001 = vmatpush1.bf16.msra.mxu0 %v6283_v43  ;;  %v6295_v33 = vld [vmem:[%s8693_s1 + $0x2a8] ss:$16 sps:$4 sm:$0xff]   ;;  %v6375_v48 = vld [vmem:[%s8693_s1 + $0x30c] ss:$16 sps:$4 sm:$0xff]  }
 0x14e   : > { %3042 = vmatpush1.bf16.msra.mxu1 %v6286_v44  ;;  %v1727_v51 = vpop.f32.mrf.mxu0  ;;  %3002 = vmatprep.subr.bf16.mxu0 %v6291_v52  ;;  %v6361_v43 = vld [vmem:[%s8693_s1 + $0x348] ss:$16 sps:$4 sm:$0xff]   ;;  %v6369_v52 = vld [vmem:[%s8693_s1 + $0x32c] ss:$16 sps:$4 sm:$0xff]  }
 0x14f   : > { %v7806_v53 = vpop.f32.mrf.mxu1  ;;  %3043 = vmatprep.subr.bf16.mxu1 %v6294_v46  ;;  %v7815_v29 = vadd.f32 %v1727_v51, %v7605_v39  ;;  %3032 = vmatprep.mubr.bf16.mxu0 %v7374_v55  ;;  %v6303_v39 = vld [vmem:[%s8693_s1 + $0x28c] ss:$16 sps:$4 sm:$0xff]   ;;  %v6301_v55 = vld [vmem:[%s8693_s1 + $0x288] ss:$16 sps:$4 sm:$0xff]  }
 0x150   : > { %3073 = vmatprep.mubr.bf16.mxu1 %v7587_v2  ;;  %v1729_v58 = vpop.f32.mrf.mxu0  ;;  %v6304_v2 = vld [vmem:[%s8693_s1 + $0x488] ss:$16 sps:$4 sm:$0xff]   ;;  %v6372_v46 = vld [vmem:[%s8693_s1 + $0x52c] ss:$16 sps:$4 sm:$0xff]  }
 0x151   : > { %v1770_v59 = vpop.f32.mrf.mxu1  ;;  %3003 = vmatpush1.bf16.msra.mxu0 %v6289_v47  ;;  %v6364_v44 = vld [vmem:[%s8693_s1 + $0x548] ss:$16 sps:$4 sm:$0xff]   ;;  %v6378_v51 = vld [vmem:[%s8693_s1 + $0x50c] ss:$16 sps:$4 sm:$0xff]   ;;  %v6381_v58 = vld [vmem:[%s8693_s1 + $0xce4] ss:$16 sps:$4 sm:$0xff]  }
 0x152   : > { %3044 = vmatpush1.bf16.msra.mxu1 %v6292_v3  ;;  %v1730_v60 = vpop.f32.mrf.mxu0  ;;  %3004 = vmatprep.subr.bf16.mxu0 %v6297_v54  ;;  %v6367_v47 = vld [vmem:[%s8693_s1 + $0x328] ss:$16 sps:$4 sm:$0xff]   ;;  %v7976_v54 = vld [vmem:[%s6864_s14] sm:$0x66] }
 0x153   : > { %v1771_v61 = vpop.f32.mrf.mxu1  ;;  %3045 = vmatprep.subr.bf16.mxu1 %v6300_v56  ;;  %v6370_v3 = vld [vmem:[%s8693_s1 + $0x528] ss:$16 sps:$4 sm:$0xff]   ;;  %v6384_v59 = vld [vmem:[%s8693_s1 + $0xee4] ss:$16 sps:$4 sm:$0xff]   ;;  %v5575_v60 = vcombine.high %v7976_v54, %v7976_v54 }
 0x154   : > { %v7979_v56 = vld [vmem:[%s6864_s14 + $0x8] sm:$0x66] }
 0x155   : > { %3005 = vmatpush1.bf16.msra.mxu0 %v6295_v33  ;;  %v6373_v33 = vld [vmem:[%s8693_s1 + $0x308] ss:$16 sps:$4 sm:$0xff]   ;;  %v5577_v61 = vcombine.high %v7979_v56, %v7979_v56 }
 0x156   : > { %3046 = vmatpush1.bf16.msra.mxu1 %v6298_v57  ;;  %3006 = vmatprep.subr.bf16.mxu0 %v6303_v39  ;;  %v6376_v57 = vld [vmem:[%s8693_s1 + $0x508] ss:$16 sps:$4 sm:$0xff]   ;;  %v6379_v39 = vld [vmem:[%s8693_s1 + $0xce0] ss:$16 sps:$4 sm:$0xff]  }
 0x157   : > { %3047 = vmatprep.subr.bf16.mxu1 %v6306_v62  ;;  %v6382_v62 = vld [vmem:[%s8693_s1 + $0xee0] ss:$16 sps:$4 sm:$0xff]  }
 0x159   : > { %3007 = vmatpush1.bf16.msra.mxu0 %v6301_v55  ;;  %v6387_v55 = vld [vmem:[%s8693_s1 + $0xcc4] ss:$16 sps:$4 sm:$0xff]  }
 0x15a   : > { %3048 = vmatpush1.bf16.msra.mxu1 %v6304_v2  ;;  %3008 = vmatprep.subr.bf16.mxu0 %v6309_v63  ;;  %v6390_v2 = vld [vmem:[%s8693_s1 + $0xec4] ss:$16 sps:$4 sm:$0xff]   ;;  %v8009_v63 = vrot.slane %v5575_v60, 1  ;;  %v6445_v60 = vld [vmem:[%s8693_s1 + $0xd80] ss:$16 sps:$4 sm:$0xff]  }
 0x15b   : > { %3049 = vmatprep.subr.bf16.mxu1 %v6312_v0  ;;  %v8011_v0 = vrot.slane %v5577_v61, 1  ;;  %v6448_v61 = vld [vmem:[%s8693_s1 + $0xf80] ss:$16 sps:$4 sm:$0xff]  }
 0x15d   : > { %3009 = vmatpush1.bf16.msra.mxu0 %v6307_v1 }
 0x15e   : > { %3050 = vmatpush1.bf16.msra.mxu1 %v6310_v4  ;;  %3010 = vmatprep.subr.bf16.mxu0 %v6315_v5 }
 0x15f   : > { %3051 = vmatprep.subr.bf16.mxu1 %v6318_v6  ;;  %v6385_v6 = vld [vmem:[%s8693_s1 + $0xcc0] ss:$16 sps:$4 sm:$0xff]  }
 0x161   : > { %3011 = vmatpush1.bf16.msra.mxu0 %v6313_v7  ;;  %v6388_v7 = vld [vmem:[%s8693_s1 + $0xec0] ss:$16 sps:$4 sm:$0xff]  }
 0x162   : > { %3052 = vmatpush1.bf16.msra.mxu1 %v6316_v10  ;;  %3012 = vmatprep.subr.bf16.mxu0 %v6321_v11 }
 0x163   : > { %3053 = vmatprep.subr.bf16.mxu1 %v6324_v12 }
 0x165   : > { %3013 = vmatpush1.bf16.msra.mxu0 %v6319_v13 }
 0x166   : > { %3054 = vmatpush1.bf16.msra.mxu1 %v6322_v15  ;;  %3014 = vmatprep.subr.bf16.mxu0 %v6327_v16 }
 0x167   : > { %3055 = vmatprep.subr.bf16.mxu1 %v6330_v17  ;;  %v6391_v17 = vld [vmem:[%s8693_s1 + $0xca0] ss:$16 sps:$4 sm:$0xff]  }
 0x169   : > { %3015 = vmatpush1.bf16.msra.mxu0 %v6325_v18  ;;  %v6394_v18 = vld [vmem:[%s8693_s1 + $0xea0] ss:$16 sps:$4 sm:$0xff]  }
 0x16a   : > { %3056 = vmatpush1.bf16.msra.mxu1 %v6328_v20  ;;  %3016 = vmatprep.subr.bf16.mxu0 %v6333_v21  ;;  %v6399_v21 = vld [vmem:[%s8693_s1 + $0xc84] ss:$16 sps:$4 sm:$0xff]  }
 0x16b   : > { %3057 = vmatprep.subr.bf16.mxu1 %v6336_v22  ;;  %v6402_v22 = vld [vmem:[%s8693_s1 + $0xe84] ss:$16 sps:$4 sm:$0xff]  }
 0x16d   : > { %3017 = vmatpush2.bf16.msra.mxu0 %v6331_v23  ;;  %v6397_v23 = vld [vmem:[%s8693_s1 + $0xc80] ss:$16 sps:$4 sm:$0xff]  }
 0x16e   : > { %3058 = vmatpush2.bf16.msra.mxu1 %v6334_v24  ;;  %3018 = vmatprep.subr.bf16.mxu0 %v6339_v25  ;;  %v6400_v24 = vld [vmem:[%s8693_s1 + $0xe80] ss:$16 sps:$4 sm:$0xff]   ;;  %v6405_v25 = vld [vmem:[%s8693_s1 + $0xc64] ss:$16 sps:$4 sm:$0xff]  }
 0x16f   : > { %3059 = vmatprep.subr.bf16.mxu1 %v6342_v8  ;;  %v6408_v8 = vld [vmem:[%s8693_s1 + $0xe64] ss:$16 sps:$4 sm:$0xff]  }
 0x171   : > { %3019 = vmatpush2.bf16.msra.mxu0 %v6337_v27  ;;  %v6403_v27 = vld [vmem:[%s8693_s1 + $0xc60] ss:$16 sps:$4 sm:$0xff]  }
 0x172   : > { %3060 = vmatpush2.bf16.msra.mxu1 %v6340_v28  ;;  %3020 = vmatprep.subr.bf16.mxu0 %v6345_v9  ;;  %v6406_v28 = vld [vmem:[%s8693_s1 + $0xe60] ss:$16 sps:$4 sm:$0xff]   ;;  %v6411_v9 = vld [vmem:[%s8693_s1 + $0xc44] ss:$16 sps:$4 sm:$0xff]  }
 0x173   : > { %3061 = vmatprep.subr.bf16.mxu1 %v6348_v14  ;;  %v6414_v14 = vld [vmem:[%s8693_s1 + $0xe44] ss:$16 sps:$4 sm:$0xff]  }
 0x175   : > { %3021 = vmatpush2.bf16.msra.mxu0 %v6343_v26  ;;  %v6409_v26 = vld [vmem:[%s8693_s1 + $0xc40] ss:$16 sps:$4 sm:$0xff]  }
 0x176   : > { %3062 = vmatpush2.bf16.msra.mxu1 %v6346_v19  ;;  %3022 = vmatprep.subr.bf16.mxu0 %v6351_v31  ;;  %v6412_v19 = vld [vmem:[%s8693_s1 + $0xe40] ss:$16 sps:$4 sm:$0xff]   ;;  %v6417_v31 = vld [vmem:[%s8693_s1 + $0xc24] ss:$16 sps:$4 sm:$0xff]  }
 0x177   : > { %3063 = vmatprep.subr.bf16.mxu1 %v6354_v32  ;;  %v6420_v32 = vld [vmem:[%s8693_s1 + $0xe24] ss:$16 sps:$4 sm:$0xff]  }
 0x179   : > { %3023 = vmatpush2.bf16.msra.mxu0 %v6349_v34  ;;  %v6415_v34 = vld [vmem:[%s8693_s1 + $0xc20] ss:$16 sps:$4 sm:$0xff]  }
 0x17a   : > { %3064 = vmatpush2.bf16.msra.mxu1 %v6352_v35  ;;  %3024 = vmatprep.subr.bf16.mxu0 %v6357_v36  ;;  %v6418_v35 = vld [vmem:[%s8693_s1 + $0xe20] ss:$16 sps:$4 sm:$0xff]   ;;  %v6423_v36 = vld [vmem:[%s8693_s1 + $0xc04] ss:$16 sps:$4 sm:$0xff]  }
 0x17b   : > { %3065 = vmatprep.subr.bf16.mxu1 %v6360_v37  ;;  %v6426_v37 = vld [vmem:[%s8693_s1 + $0xe04] ss:$16 sps:$4 sm:$0xff]  }
 0x17d   : > { %3025 = vmatpush2.bf16.msra.mxu0 %v6355_v38  ;;  %v6421_v38 = vld [vmem:[%s8693_s1 + $0xc00] ss:$16 sps:$4 sm:$0xff]  }
 0x17e   : > { %3066 = vmatpush2.bf16.msra.mxu1 %v6358_v40  ;;  %3026 = vmatprep.subr.bf16.mxu0 %v6363_v41  ;;  %v6424_v40 = vld [vmem:[%s8693_s1 + $0xe00] ss:$16 sps:$4 sm:$0xff]   ;;  %v6429_v41 = vld [vmem:[%s8693_s1 + $0xde4] ss:$16 sps:$4 sm:$0xff]  }
 0x17f   : > { %3067 = vmatprep.subr.bf16.mxu1 %v6366_v42  ;;  %v6432_v42 = vld [vmem:[%s8693_s1 + $0xfe4] ss:$16 sps:$4 sm:$0xff]  }
 0x181   : > { %3027 = vmatpush2.bf16.msra.mxu0 %v6361_v43  ;;  %v6427_v43 = vld [vmem:[%s8693_s1 + $0xde0] ss:$16 sps:$4 sm:$0xff]  }
 0x182   : > { %3068 = vmatpush2.bf16.msra.mxu1 %v6364_v44  ;;  %3028 = vmatprep.subr.bf16.mxu0 %v6369_v52  ;;  %v6430_v44 = vld [vmem:[%s8693_s1 + $0xfe0] ss:$16 sps:$4 sm:$0xff]   ;;  %v6435_v52 = vld [vmem:[%s8693_s1 + $0xdc4] ss:$16 sps:$4 sm:$0xff]  }
 0x183   : > { %3069 = vmatprep.subr.bf16.mxu1 %v6372_v46  ;;  %v6438_v46 = vld [vmem:[%s8693_s1 + $0xfc4] ss:$16 sps:$4 sm:$0xff]  }
 0x185   : > { %3029 = vmatpush2.bf16.msra.mxu0 %v6367_v47  ;;  %v6433_v47 = vld [vmem:[%s8693_s1 + $0xdc0] ss:$16 sps:$4 sm:$0xff]  }
 0x186   : > { %3070 = vmatpush2.bf16.msra.mxu1 %v6370_v3  ;;  %3030 = vmatprep.subr.bf16.mxu0 %v6375_v48  ;;  %v6436_v3 = vld [vmem:[%s8693_s1 + $0xfc0] ss:$16 sps:$4 sm:$0xff]   ;;  %v6441_v48 = vld [vmem:[%s8693_s1 + $0xda4] ss:$16 sps:$4 sm:$0xff]  }
 0x187   : > { %3071 = vmatprep.subr.bf16.mxu1 %v6378_v51  ;;  %v6444_v51 = vld [vmem:[%s8693_s1 + $0xfa4] ss:$16 sps:$4 sm:$0xff]  }
 0x189   : > { %3031 = vmatpush2.bf16.msra.mxu0 %v6373_v33  ;;  %v6439_v33 = vld [vmem:[%s8693_s1 + $0xda0] ss:$16 sps:$4 sm:$0xff]  }
 0x18a   : > { %3072 = vmatpush2.bf16.msra.mxu1 %v6376_v57  ;;  %4265 = vmatprep.subr.bf16.mxu0 %v6381_v58  ;;  %v6442_v57 = vld [vmem:[%s8693_s1 + $0xfa0] ss:$16 sps:$4 sm:$0xff]   ;;  %v6447_v58 = vld [vmem:[%s8693_s1 + $0xd84] ss:$16 sps:$4 sm:$0xff]  }
 0x18b   : > { %4306 = vmatprep.subr.bf16.mxu1 %v6384_v59  ;;  %v6450_v59 = vld [vmem:[%s8693_s1 + $0xf84] ss:$16 sps:$4 sm:$0xff]  }
 0x18c   : > { %v1807_v1 = vpop.f32.mrf.mxu0  ;;  %3033 = vmatmul.mubr.bf16.vlgmr.msra.gmra.mxu0 %v7571_v30  ;;  %v6393_v30 = vld [vmem:[%s8693_s1 + $0xca4] ss:$16 sps:$4 sm:$0xff]  }
 0x18d   : > { %v1848_v4 = vpop.f32.mrf.mxu1  ;;  %3074 = vmatmul.mubr.bf16.vlgmr.msra.gmra.mxu1 %v7785_v45  ;;  %v1808_v5 = vadd.f32 %v1807_v1, %v7799_v49  ;;  %4266 = vmatpush1.bf16.msra.mxu0 %v6379_v39  ;;  %v6396_v45 = vld [vmem:[%s8693_s1 + $0xea4] ss:$16 sps:$4 sm:$0xff]  }
 0x18e   : > { %4307 = vmatpush1.bf16.msra.mxu1 %v6382_v62  ;;  %v1809_v10 = vpop.f32.mrf.mxu0  ;;  %4267 = vmatprep.subr.bf16.mxu0 %v6387_v55  ;;  %v6453_v39 = vld [vmem:[%s8693_s1 + $0xd64] ss:$16 sps:$4 sm:$0xff]   ;;  %v6451_v55 = vld [vmem:[%s8693_s1 + $0xd60] ss:$16 sps:$4 sm:$0xff]  }
 0x18f   : > { %v1850_v11 = vpop.f32.mrf.mxu1  ;;  %4308 = vmatprep.subr.bf16.mxu1 %v6390_v2  ;;  %v8028_v49 = vadd.f32 %v1848_v4, %v1808_v5  ;;  %v1810_v12 = vadd.f32 %v1809_v10, %v7806_v53  ;;  %4297 = vmatprep.mubr.bf16.mxu0 %v8009_v63  ;;  %v6456_v62 = vld [vmem:[%s8693_s1 + $0xf64] ss:$16 sps:$4 sm:$0xff]   ;;  %v6454_v2 = vld [vmem:[%s8693_s1 + $0xf60] ss:$16 sps:$4 sm:$0xff]  }
 0x190   : > { %4338 = vmatprep.mubr.bf16.mxu1 %v8011_v0  ;;  %v1811_v13 = vpop.f32.mrf.mxu0  ;;  %v6459_v1 = vld [vmem:[%s8693_s1 + $0xd44] ss:$16 sps:$4 sm:$0xff]   ;;  %v6457_v5 = vld [vmem:[%s8693_s1 + $0xd40] ss:$16 sps:$4 sm:$0xff]  }
 0x191   : > { %v1852_v15 = vpop.f32.mrf.mxu1  ;;  %v8033_v16 = vadd.f32 %v1850_v11, %v1810_v12  ;;  %4268 = vmatpush1.bf16.msra.mxu0 %v6385_v6  ;;  %v6462_v4 = vld [vmem:[%s8693_s1 + $0xf44] ss:$16 sps:$4 sm:$0xff]   ;;  %v6460_v6 = vld [vmem:[%s8693_s1 + $0xf40] ss:$16 sps:$4 sm:$0xff]   ;;  %v5574_v13 = vcombine.low %v7976_v54, %v7976_v54 }
 0x192   : > { %4309 = vmatpush1.bf16.msra.mxu1 %v6388_v7  ;;  %v1812_v20 = vpop.f32.mrf.mxu0  ;;  %4269 = vmatprep.subr.bf16.mxu0 %v6393_v30  ;;  %v6465_v7 = vld [vmem:[%s8693_s1 + $0xd24] ss:$16 sps:$4 sm:$0xff]   ;;  %v6463_v11 = vld [vmem:[%s8693_s1 + $0xd20] ss:$16 sps:$4 sm:$0xff]   ;;  %v5576_v15 = vcombine.low %v7979_v56, %v7979_v56  ;;  %v6484_v56 = vld [vmem:[%s8693_s1 + $0xcec] ss:$16 sps:$4 sm:$0xff]  }
 0x193   : > { %v1853_v53 = vpop.f32.mrf.mxu1  ;;  %4310 = vmatprep.subr.bf16.mxu1 %v6396_v45  ;;  %v6468_v10 = vld [vmem:[%s8693_s1 + $0xf24] ss:$16 sps:$4 sm:$0xff]   ;;  %v6466_v30 = vld [vmem:[%s8693_s1 + $0xf20] ss:$16 sps:$4 sm:$0xff]  }
 0x194   : > { %v6471_v45 = vld [vmem:[%s8693_s1 + $0xd04] ss:$16 sps:$4 sm:$0xff]   ;;  %v6472_v20 = vld [vmem:[%s8693_s1 + $0xf00] ss:$16 sps:$4 sm:$0xff]  }
 0x195   : > { %4270 = vmatpush1.bf16.msra.mxu0 %v6391_v17  ;;  %v6474_v12 = vld [vmem:[%s8693_s1 + $0xf04] ss:$16 sps:$4 sm:$0xff]  }
 0x196   : > { %4311 = vmatpush1.bf16.msra.mxu1 %v6394_v18  ;;  %4271 = vmatprep.subr.bf16.mxu0 %v6399_v21  ;;  %v8196_v17 = vld [vmem:[%s6864_s14 + $0x10] sm:$0x66]  ;;  %v8212_v21 = vrot.slane %v5574_v13, 1 }
 0x197   : > { %4312 = vmatprep.subr.bf16.mxu1 %v6402_v22  ;;  %v6469_v18 = vld [vmem:[%s8693_s1 + $0xd00] ss:$16 sps:$4 sm:$0xff]   ;;  %v6481_v54 = vld [vmem:[%s8693_s1 + $0x10e4] ss:$16 sps:$4 sm:$0xff]   ;;  %v5579_v53 = vcombine.high %v8196_v17, %v8196_v17  ;;  %v8214_v22 = vrot.slane %v5576_v15, 1 }
 0x198   : > { %v6541_v13 = vld [vmem:[%s8693_s1 + $0x11a4] ss:$16 sps:$4 sm:$0xff]   ;;  %v6544_v15 = vld [vmem:[%s8693_s1 + $0xdac] ss:$16 sps:$4 sm:$0xff]  }
 0x199   : > { %4272 = vmatpush1.bf16.msra.mxu0 %v6397_v23  ;;  %v6479_v23 = vld [vmem:[%s8693_s1 + $0x10e0] ss:$16 sps:$4 sm:$0xff]  }
 0x19a   : > { %4313 = vmatpush1.bf16.msra.mxu1 %v6400_v24  ;;  %4273 = vmatprep.subr.bf16.mxu0 %v6405_v25  ;;  %v6482_v24 = vld [vmem:[%s8693_s1 + $0xce8] ss:$16 sps:$4 sm:$0xff]   ;;  %v6487_v25 = vld [vmem:[%s8693_s1 + $0x10c4] ss:$16 sps:$4 sm:$0xff]  }
 0x19b   : > { %4314 = vmatprep.subr.bf16.mxu1 %v6408_v8  ;;  %v6490_v8 = vld [vmem:[%s8693_s1 + $0xccc] ss:$16 sps:$4 sm:$0xff]  }
 0x19d   : > { %4274 = vmatpush1.bf16.msra.mxu0 %v6403_v27  ;;  %v8228_v27 = vrot.slane %v5579_v53, 1  ;;  %v6545_v53 = vld [vmem:[%s8693_s1 + $0x1180] ss:$16 sps:$4 sm:$0xff]  }
 0x19e   : > { %4315 = vmatpush1.bf16.msra.mxu1 %v6406_v28  ;;  %4275 = vmatprep.subr.bf16.mxu0 %v6411_v9 }
 0x19f   : > { %4316 = vmatprep.subr.bf16.mxu1 %v6414_v14 }
 0x1a1   : > { %4276 = vmatpush1.bf16.msra.mxu0 %v6409_v26  ;;  %v6485_v26 = vld [vmem:[%s8693_s1 + $0x10c0] ss:$16 sps:$4 sm:$0xff]  }
 0x1a2   : > { %4317 = vmatpush1.bf16.msra.mxu1 %v6412_v19  ;;  %4277 = vmatprep.subr.bf16.mxu0 %v6417_v31  ;;  %v6488_v19 = vld [vmem:[%s8693_s1 + $0xcc8] ss:$16 sps:$4 sm:$0xff]  }
 0x1a3   : > { %4318 = vmatprep.subr.bf16.mxu1 %v6420_v32 }
 0x1a5   : > { %4278 = vmatpush1.bf16.msra.mxu0 %v6415_v34  ;;  %v6493_v34 = vld [vmem:[%s8693_s1 + $0x10a4] ss:$16 sps:$4 sm:$0xff]  }
 0x1a6   : > { %4319 = vmatpush1.bf16.msra.mxu1 %v6418_v35  ;;  %4279 = vmatprep.subr.bf16.mxu0 %v6423_v36 }
 0x1a7   : > { %4320 = vmatprep.subr.bf16.mxu1 %v6426_v37 }
 0x1a9   : > { %4280 = vmatpush1.bf16.msra.mxu0 %v6421_v38 }
 0x1aa   : > { %4321 = vmatpush1.bf16.msra.mxu1 %v6424_v40  ;;  %4281 = vmatprep.subr.bf16.mxu0 %v6429_v41  ;;  %v6491_v41 = vld [vmem:[%s8693_s1 + $0x10a0] ss:$16 sps:$4 sm:$0xff]  }
 0x1ab   : > { %4322 = vmatprep.subr.bf16.mxu1 %v6432_v42  ;;  %v6494_v42 = vld [vmem:[%s8693_s1 + $0xca8] ss:$16 sps:$4 sm:$0xff]  }
 0x1ad   : > { %4282 = vmatpush2.bf16.msra.mxu0 %v6427_v43 }
 0x1ae   : > { %4323 = vmatpush2.bf16.msra.mxu1 %v6430_v44  ;;  %4283 = vmatprep.subr.bf16.mxu0 %v6435_v52  ;;  %v6502_v44 = vld [vmem:[%s8693_s1 + $0xc8c] ss:$16 sps:$4 sm:$0xff]   ;;  %v6497_v52 = vld [vmem:[%s8693_s1 + $0x1080] ss:$16 sps:$4 sm:$0xff]  }
 0x1af   : > { %4324 = vmatprep.subr.bf16.mxu1 %v6438_v46  ;;  %v6500_v46 = vld [vmem:[%s8693_s1 + $0xc88] ss:$16 sps:$4 sm:$0xff]  }
 0x1b1   : > { %4284 = vmatpush2.bf16.msra.mxu0 %v6433_v47  ;;  %v6505_v47 = vld [vmem:[%s8693_s1 + $0x1064] ss:$16 sps:$4 sm:$0xff]  }
 0x1b2   : > { %4325 = vmatpush2.bf16.msra.mxu1 %v6436_v3  ;;  %4285 = vmatprep.subr.bf16.mxu0 %v6441_v48  ;;  %v6508_v3 = vld [vmem:[%s8693_s1 + $0xc6c] ss:$16 sps:$4 sm:$0xff]   ;;  %v6503_v48 = vld [vmem:[%s8693_s1 + $0x1060] ss:$16 sps:$4 sm:$0xff]  }
 0x1b3   : > { %4326 = vmatprep.subr.bf16.mxu1 %v6444_v51  ;;  %v6506_v51 = vld [vmem:[%s8693_s1 + $0xc68] ss:$16 sps:$4 sm:$0xff]  }
 0x1b5   : > { %4286 = vmatpush2.bf16.msra.mxu0 %v6439_v33  ;;  %v6511_v33 = vld [vmem:[%s8693_s1 + $0x1044] ss:$16 sps:$4 sm:$0xff]  }
 0x1b6   : > { %4327 = vmatpush2.bf16.msra.mxu1 %v6442_v57  ;;  %4287 = vmatprep.subr.bf16.mxu0 %v6447_v58  ;;  %v6514_v57 = vld [vmem:[%s8693_s1 + $0xc4c] ss:$16 sps:$4 sm:$0xff]   ;;  %v6509_v58 = vld [vmem:[%s8693_s1 + $0x1040] ss:$16 sps:$4 sm:$0xff]  }
 0x1b7   : > { %4328 = vmatprep.subr.bf16.mxu1 %v6450_v59  ;;  %v6512_v59 = vld [vmem:[%s8693_s1 + $0xc48] ss:$16 sps:$4 sm:$0xff]  }
 0x1b9   : > { %4288 = vmatpush2.bf16.msra.mxu0 %v6445_v60  ;;  %v6517_v60 = vld [vmem:[%s8693_s1 + $0x1024] ss:$16 sps:$4 sm:$0xff]  }
 0x1ba   : > { %4329 = vmatpush2.bf16.msra.mxu1 %v6448_v61  ;;  %4289 = vmatprep.subr.bf16.mxu0 %v6453_v39  ;;  %v6520_v61 = vld [vmem:[%s8693_s1 + $0xc2c] ss:$16 sps:$4 sm:$0xff]   ;;  %v6515_v39 = vld [vmem:[%s8693_s1 + $0x1020] ss:$16 sps:$4 sm:$0xff]  }
 0x1bb   : > { %4330 = vmatprep.subr.bf16.mxu1 %v6456_v62  ;;  %v6518_v62 = vld [vmem:[%s8693_s1 + $0xc28] ss:$16 sps:$4 sm:$0xff]  }
 0x1bd   : > { %4290 = vmatpush2.bf16.msra.mxu0 %v6451_v55  ;;  %v6523_v55 = vld [vmem:[%s8693_s1 + $0x1004] ss:$16 sps:$4 sm:$0xff]  }
 0x1be   : > { %4331 = vmatpush2.bf16.msra.mxu1 %v6454_v2  ;;  %4291 = vmatprep.subr.bf16.mxu0 %v6459_v1  ;;  %v6526_v2 = vld [vmem:[%s8693_s1 + $0xc0c] ss:$16 sps:$4 sm:$0xff]   ;;  %v6521_v1 = vld [vmem:[%s8693_s1 + $0x1000] ss:$16 sps:$4 sm:$0xff]  }
 0x1bf   : > { %4332 = vmatprep.subr.bf16.mxu1 %v6462_v4  ;;  %v6524_v4 = vld [vmem:[%s8693_s1 + $0xc08] ss:$16 sps:$4 sm:$0xff]  }
 0x1c1   : > { %4292 = vmatpush2.bf16.msra.mxu0 %v6457_v5  ;;  %v6529_v5 = vld [vmem:[%s8693_s1 + $0x11e4] ss:$16 sps:$4 sm:$0xff]  }
 0x1c2   : > { %4333 = vmatpush2.bf16.msra.mxu1 %v6460_v6  ;;  %4293 = vmatprep.subr.bf16.mxu0 %v6465_v7  ;;  %v6532_v6 = vld [vmem:[%s8693_s1 + $0xdec] ss:$16 sps:$4 sm:$0xff]   ;;  %v6527_v7 = vld [vmem:[%s8693_s1 + $0x11e0] ss:$16 sps:$4 sm:$0xff]  }
 0x1c3   : > { %4334 = vmatprep.subr.bf16.mxu1 %v6468_v10  ;;  %v6530_v10 = vld [vmem:[%s8693_s1 + $0xde8] ss:$16 sps:$4 sm:$0xff]  }
 0x1c5   : > { %4294 = vmatpush2.bf16.msra.mxu0 %v6463_v11  ;;  %v6535_v11 = vld [vmem:[%s8693_s1 + $0x11c4] ss:$16 sps:$4 sm:$0xff]  }
 0x1c6   : > { %4335 = vmatpush2.bf16.msra.mxu1 %v6466_v30  ;;  %4295 = vmatprep.subr.bf16.mxu0 %v6471_v45  ;;  %v6538_v30 = vld [vmem:[%s8693_s1 + $0xdcc] ss:$16 sps:$4 sm:$0xff]   ;;  %v6533_v45 = vld [vmem:[%s8693_s1 + $0x11c0] ss:$16 sps:$4 sm:$0xff]  }
 0x1c7   : > { %4336 = vmatprep.subr.bf16.mxu1 %v6474_v12  ;;  %v6536_v12 = vld [vmem:[%s8693_s1 + $0xdc8] ss:$16 sps:$4 sm:$0xff]  }
 0x1c9   : > { %4296 = vmatpush2.bf16.msra.mxu0 %v6469_v18  ;;  %v6539_v18 = vld [vmem:[%s8693_s1 + $0x11a0] ss:$16 sps:$4 sm:$0xff]  }
 0x1ca   : > { %4337 = vmatpush2.bf16.msra.mxu1 %v6472_v20  ;;  %4347 = vmatprep.subr.bf16.mxu0 %v6481_v54  ;;  %v6542_v20 = vld [vmem:[%s8693_s1 + $0xda8] ss:$16 sps:$4 sm:$0xff]   ;;  %v6547_v54 = vld [vmem:[%s8693_s1 + $0x1184] ss:$16 sps:$4 sm:$0xff]  }
 0x1cb   : > { %4388 = vmatprep.subr.bf16.mxu1 %v6484_v56  ;;  %v6550_v56 = vld [vmem:[%s8693_s1 + $0xd8c] ss:$16 sps:$4 sm:$0xff]  }
 0x1cc   : > { %v2870_v28 = vpop.f32.mrf.mxu0  ;;  %4298 = vmatmul.mubr.bf16.vlgmr.msra.gmra.mxu0 %v8212_v21 }
 0x1cd   : > { %v2911_v9 = vpop.f32.mrf.mxu1  ;;  %4339 = vmatmul.mubr.bf16.vlgmr.msra.gmra.mxu1 %v8214_v22  ;;  %v2871_v14 = vadd.f32 %v2870_v28, %v7804_v50  ;;  %4348 = vmatpush1.bf16.msra.mxu0 %v6479_v23  ;;  %v6496_v50 = vld [vmem:[%s8693_s1 + $0xcac] ss:$16 sps:$4 sm:$0xff]   ;;  %v6548_v23 = vld [vmem:[%s8693_s1 + $0xd88] ss:$16 sps:$4 sm:$0xff]  }
 0x1ce   : > { %4389 = vmatpush1.bf16.msra.mxu1 %v6482_v24  ;;  %v2872_v31 = vpop.f32.mrf.mxu0  ;;  %4349 = vmatprep.subr.bf16.mxu0 %v6487_v25  ;;  %v6553_v24 = vld [vmem:[%s8693_s1 + $0x1164] ss:$16 sps:$4 sm:$0xff]   ;;  %v6556_v25 = vld [vmem:[%s8693_s1 + $0xd6c] ss:$16 sps:$4 sm:$0xff]   ;;  %v6554_v28 = vld [vmem:[%s8693_s1 + $0xd68] ss:$16 sps:$4 sm:$0xff]  }
 0x1cf   : > { %v2913_v32 = vpop.f32.mrf.mxu1  ;;  %4390 = vmatprep.subr.bf16.mxu1 %v6490_v8  ;;  %v8245_v35 = vadd.f32 %v2911_v9, %v2871_v14  ;;  %v2873_v36 = vadd.f32 %v2872_v31, %v7815_v29  ;;  %4379 = vmatprep.mubr.bf16.mxu0 %v8228_v27  ;;  %v6551_v8 = vld [vmem:[%s8693_s1 + $0x1160] ss:$16 sps:$4 sm:$0xff]   ;;  %v6559_v9 = vld [vmem:[%s8693_s1 + $0x1144] ss:$16 sps:$4 sm:$0xff]   ;;  %v6562_v14 = vld [vmem:[%s8693_s1 + $0xd4c] ss:$16 sps:$4 sm:$0xff]  }
 0x1d0   : > { %4420 = vmatprep.mubr.bf16.mxu1 %v8009_v63  ;;  %v2874_v37 = vpop.f32.mrf.mxu0  ;;  %v6499_v63 = vld [vmem:[%s8693_s1 + $0x1084] ss:$16 sps:$4 sm:$0xff]  }
 0x1d1   : > { %v2915_v38 = vpop.f32.mrf.mxu1  ;;  %v8250_v40 = vadd.f32 %v2913_v32, %v2873_v36  ;;  %4350 = vmatpush1.bf16.msra.mxu0 %v6485_v26  ;;  %v6557_v26 = vld [vmem:[%s8693_s1 + $0x1140] ss:$16 sps:$4 sm:$0xff]   ;;  %v6565_v31 = vld [vmem:[%s8693_s1 + $0x1124] ss:$16 sps:$4 sm:$0xff]   ;;  %v6568_v32 = vld [vmem:[%s8693_s1 + $0xd2c] ss:$16 sps:$4 sm:$0xff]  }
 0x1d2   : > { %4391 = vmatpush1.bf16.msra.mxu1 %v6488_v19  ;;  %v2875_v43 = vpop.f32.mrf.mxu0  ;;  %4351 = vmatprep.subr.bf16.mxu0 %v6493_v34  ;;  %v6560_v19 = vld [vmem:[%s8693_s1 + $0xd48] ss:$16 sps:$4 sm:$0xff]   ;;  %v6563_v34 = vld [vmem:[%s8693_s1 + $0x1120] ss:$16 sps:$4 sm:$0xff]   ;;  %v6571_v36 = vld [vmem:[%s8693_s1 + $0x1104] ss:$16 sps:$4 sm:$0xff]   ;;  %v5578_v38 = vcombine.low %v8196_v17, %v8196_v17 }
 0x1d3   : > { %v2916_v29 = vpop.f32.mrf.mxu1  ;;  %4392 = vmatprep.subr.bf16.mxu1 %v6496_v50  ;;  %v6566_v50 = vld [vmem:[%s8693_s1 + $0xd28] ss:$16 sps:$4 sm:$0xff]   ;;  %v6574_v37 = vld [vmem:[%s8693_s1 + $0xd0c] ss:$16 sps:$4 sm:$0xff]  }
 0x1d4   : > { %v6579_v43 = vld [vmem:[%s8693_s1 + $0xeec] ss:$16 sps:$4 sm:$0xff]   ;;  %v8422_v29 = vrot.slane %v5578_v38, 1  ;;  %v6646_v38 = vld [vmem:[%s8693_s1 + $0x1188] ss:$16 sps:$4 sm:$0xff]  }
 0x1d5   : > { %4352 = vmatpush1.bf16.msra.mxu0 %v6491_v41  ;;  %v6569_v41 = vld [vmem:[%s8693_s1 + $0x1100] ss:$16 sps:$4 sm:$0xff]   ;;  %v6582_v17 = vld [vmem:[%s8693_s1 + $0x10ec] ss:$16 sps:$4 sm:$0xff]  }
 0x1d6   : > { %4393 = vmatpush1.bf16.msra.mxu1 %v6494_v42  ;;  %4353 = vmatprep.subr.bf16.mxu0 %v6499_v63  ;;  %v6572_v42 = vld [vmem:[%s8693_s1 + $0xd08] ss:$16 sps:$4 sm:$0xff]  }
 0x1d7   : > { %4394 = vmatprep.subr.bf16.mxu1 %v6502_v44  ;;  %v6577_v63 = vld [vmem:[%s8693_s1 + $0xee8] ss:$16 sps:$4 sm:$0xff]  }
 0x1d8   : > { %v6580_v44 = vld [vmem:[%s8693_s1 + $0x10e8] ss:$16 sps:$4 sm:$0xff]  }
 0x1d9   : > { %4354 = vmatpush1.bf16.msra.mxu0 %v6497_v52  ;;  %v6585_v52 = vld [vmem:[%s8693_s1 + $0xecc] ss:$16 sps:$4 sm:$0xff]  }
 0x1da   : > { %4395 = vmatpush1.bf16.msra.mxu1 %v6500_v46  ;;  %4355 = vmatprep.subr.bf16.mxu0 %v6505_v47  ;;  %v6588_v46 = vld [vmem:[%s8693_s1 + $0x10cc] ss:$16 sps:$4 sm:$0xff]  }
 0x1db   : > { %4396 = vmatprep.subr.bf16.mxu1 %v6508_v3 }
 0x1dd   : > { %4356 = vmatpush1.bf16.msra.mxu0 %v6503_v48 }
 0x1de   : > { %4397 = vmatpush1.bf16.msra.mxu1 %v6506_v51  ;;  %4357 = vmatprep.subr.bf16.mxu0 %v6511_v33  ;;  %v6583_v33 = vld [vmem:[%s8693_s1 + $0xec8] ss:$16 sps:$4 sm:$0xff]  }
 0x1df   : > { %4398 = vmatprep.subr.bf16.mxu1 %v6514_v57  ;;  %v6586_v57 = vld [vmem:[%s8693_s1 + $0x10c8] ss:$16 sps:$4 sm:$0xff]  }
 0x1e1   : > { %4358 = vmatpush1.bf16.msra.mxu0 %v6509_v58 }
 0x1e2   : > { %4399 = vmatpush1.bf16.msra.mxu1 %v6512_v59  ;;  %4359 = vmatprep.subr.bf16.mxu0 %v6517_v60 }
 0x1e3   : > { %4400 = vmatprep.subr.bf16.mxu1 %v6520_v61 }
 0x1e5   : > { %4360 = vmatpush1.bf16.msra.mxu0 %v6515_v39 }
 0x1e6   : > { %4401 = vmatpush1.bf16.msra.mxu1 %v6518_v62  ;;  %4361 = vmatprep.subr.bf16.mxu0 %v6523_v55  ;;  %v6589_v62 = vld [vmem:[%s8693_s1 + $0xea8] ss:$16 sps:$4 sm:$0xff]  }
 0x1e7   : > { %4402 = vmatprep.subr.bf16.mxu1 %v6526_v2 }
 0x1e9   : > { %4362 = vmatpush1.bf16.msra.mxu0 %v6521_v1  ;;  %v6598_v1 = vld [vmem:[%s8693_s1 + $0x1088] ss:$16 sps:$4 sm:$0xff]  }
 0x1ea   : > { %4403 = vmatpush1.bf16.msra.mxu1 %v6524_v4  ;;  %4363 = vmatprep.subr.bf16.mxu0 %v6529_v5  ;;  %v6603_v4 = vld [vmem:[%s8693_s1 + $0xe6c] ss:$16 sps:$4 sm:$0xff]  }
 0x1eb   : > { %4404 = vmatprep.subr.bf16.mxu1 %v6532_v6  ;;  %v6606_v5 = vld [vmem:[%s8693_s1 + $0x106c] ss:$16 sps:$4 sm:$0xff]   ;;  %v6601_v6 = vld [vmem:[%s8693_s1 + $0xe68] ss:$16 sps:$4 sm:$0xff]  }
 0x1ed   : > { %4364 = vmatpush2.bf16.msra.mxu0 %v6527_v7  ;;  %v6604_v7 = vld [vmem:[%s8693_s1 + $0x1068] ss:$16 sps:$4 sm:$0xff]  }
 0x1ee   : > { %4405 = vmatpush2.bf16.msra.mxu1 %v6530_v10  ;;  %4365 = vmatprep.subr.bf16.mxu0 %v6535_v11  ;;  %v6609_v10 = vld [vmem:[%s8693_s1 + $0xe4c] ss:$16 sps:$4 sm:$0xff]  }
 0x1ef   : > { %4406 = vmatprep.subr.bf16.mxu1 %v6538_v30  ;;  %v6612_v11 = vld [vmem:[%s8693_s1 + $0x104c] ss:$16 sps:$4 sm:$0xff]   ;;  %v6607_v30 = vld [vmem:[%s8693_s1 + $0xe48] ss:$16 sps:$4 sm:$0xff]  }
 0x1f1   : > { %4366 = vmatpush2.bf16.msra.mxu0 %v6533_v45  ;;  %v6610_v45 = vld [vmem:[%s8693_s1 + $0x1048] ss:$16 sps:$4 sm:$0xff]  }
 0x1f2   : > { %4407 = vmatpush2.bf16.msra.mxu1 %v6536_v12  ;;  %4367 = vmatprep.subr.bf16.mxu0 %v6541_v13  ;;  %v6615_v12 = vld [vmem:[%s8693_s1 + $0xe2c] ss:$16 sps:$4 sm:$0xff]  }
 0x1f3   : > { %4408 = vmatprep.subr.bf16.mxu1 %v6544_v15  ;;  %v6618_v13 = vld [vmem:[%s8693_s1 + $0x102c] ss:$16 sps:$4 sm:$0xff]   ;;  %v6613_v15 = vld [vmem:[%s8693_s1 + $0xe28] ss:$16 sps:$4 sm:$0xff]  }
 0x1f5   : > { %4368 = vmatpush2.bf16.msra.mxu0 %v6539_v18  ;;  %v6616_v18 = vld [vmem:[%s8693_s1 + $0x1028] ss:$16 sps:$4 sm:$0xff]  }
 0x1f6   : > { %4409 = vmatpush2.bf16.msra.mxu1 %v6542_v20  ;;  %4369 = vmatprep.subr.bf16.mxu0 %v6547_v54  ;;  %v6621_v20 = vld [vmem:[%s8693_s1 + $0xe0c] ss:$16 sps:$4 sm:$0xff]  }
 0x1f7   : > { %4410 = vmatprep.subr.bf16.mxu1 %v6550_v56  ;;  %v6624_v54 = vld [vmem:[%s8693_s1 + $0x100c] ss:$16 sps:$4 sm:$0xff]   ;;  %v6619_v56 = vld [vmem:[%s8693_s1 + $0xe08] ss:$16 sps:$4 sm:$0xff]  }
 0x1f9   : > { %4370 = vmatpush2.bf16.msra.mxu0 %v6545_v53  ;;  %v6622_v53 = vld [vmem:[%s8693_s1 + $0x1008] ss:$16 sps:$4 sm:$0xff]  }
 0x1fa   : > { %4411 = vmatpush2.bf16.msra.mxu1 %v6548_v23  ;;  %4371 = vmatprep.subr.bf16.mxu0 %v6553_v24  ;;  %v6627_v23 = vld [vmem:[%s8693_s1 + $0xfec] ss:$16 sps:$4 sm:$0xff]  }
 0x1fb   : > { %4412 = vmatprep.subr.bf16.mxu1 %v6556_v25  ;;  %v6630_v24 = vld [vmem:[%s8693_s1 + $0x11ec] ss:$16 sps:$4 sm:$0xff]   ;;  %v6625_v25 = vld [vmem:[%s8693_s1 + $0xfe8] ss:$16 sps:$4 sm:$0xff]  }
 0x1fd   : > { %4372 = vmatpush2.bf16.msra.mxu0 %v6551_v8  ;;  %v6628_v8 = vld [vmem:[%s8693_s1 + $0x11e8] ss:$16 sps:$4 sm:$0xff]  }
 0x1fe   : > { %4413 = vmatpush2.bf16.msra.mxu1 %v6554_v28  ;;  %4373 = vmatprep.subr.bf16.mxu0 %v6559_v9  ;;  %v6633_v28 = vld [vmem:[%s8693_s1 + $0xfcc] ss:$16 sps:$4 sm:$0xff]  }
 0x1ff   : > { %4414 = vmatprep.subr.bf16.mxu1 %v6562_v14  ;;  %v6636_v9 = vld [vmem:[%s8693_s1 + $0x11cc] ss:$16 sps:$4 sm:$0xff]   ;;  %v6631_v14 = vld [vmem:[%s8693_s1 + $0xfc8] ss:$16 sps:$4 sm:$0xff]  }
 0x201   : > { %4374 = vmatpush2.bf16.msra.mxu0 %v6557_v26  ;;  %v6634_v26 = vld [vmem:[%s8693_s1 + $0x11c8] ss:$16 sps:$4 sm:$0xff]  }
 0x202   : > { %4415 = vmatpush2.bf16.msra.mxu1 %v6560_v19  ;;  %4375 = vmatprep.subr.bf16.mxu0 %v6565_v31  ;;  %v6639_v19 = vld [vmem:[%s8693_s1 + $0xfac] ss:$16 sps:$4 sm:$0xff]  }
 0x203   : > { %4416 = vmatprep.subr.bf16.mxu1 %v6568_v32  ;;  %v6642_v31 = vld [vmem:[%s8693_s1 + $0x11ac] ss:$16 sps:$4 sm:$0xff]   ;;  %v6637_v32 = vld [vmem:[%s8693_s1 + $0xfa8] ss:$16 sps:$4 sm:$0xff]  }
 0x205   : > { %4376 = vmatpush2.bf16.msra.mxu0 %v6563_v34  ;;  %v6640_v34 = vld [vmem:[%s8693_s1 + $0x11a8] ss:$16 sps:$4 sm:$0xff]  }
 0x206   : > { %4417 = vmatpush2.bf16.msra.mxu1 %v6566_v50  ;;  %4377 = vmatprep.subr.bf16.mxu0 %v6571_v36  ;;  %v6645_v50 = vld [vmem:[%s8693_s1 + $0xf8c] ss:$16 sps:$4 sm:$0xff]  }
 0x207   : > { %4418 = vmatprep.subr.bf16.mxu1 %v6574_v37  ;;  %v6648_v36 = vld [vmem:[%s8693_s1 + $0x118c] ss:$16 sps:$4 sm:$0xff]   ;;  %v6643_v37 = vld [vmem:[%s8693_s1 + $0xf88] ss:$16 sps:$4 sm:$0xff]  }
 0x209   : > { %4378 = vmatpush2.bf16.msra.mxu0 %v6569_v41  ;;  %v6651_v41 = vld [vmem:[%s8693_s1 + $0xf6c] ss:$16 sps:$4 sm:$0xff]  }
 0x20a   : > { %4419 = vmatpush2.bf16.msra.mxu1 %v6572_v42  ;;  %4429 = vmatprep.subr.bf16.mxu0 %v6579_v43  ;;  %v6654_v42 = vld [vmem:[%s8693_s1 + $0x116c] ss:$16 sps:$4 sm:$0xff]   ;;  %v6649_v43 = vld [vmem:[%s8693_s1 + $0xf68] ss:$16 sps:$4 sm:$0xff]  }
 0x20b   : > { %4470 = vmatprep.subr.bf16.mxu1 %v6582_v17  ;;  %v6652_v17 = vld [vmem:[%s8693_s1 + $0x1168] ss:$16 sps:$4 sm:$0xff]  }
 0x20c   : > { %v2952_v47 = vpop.f32.mrf.mxu0  ;;  %4380 = vmatmul.mubr.bf16.vlgmr.msra.gmra.mxu0 %v8422_v29 }
 0x20d   : > { %v2993_v3 = vpop.f32.mrf.mxu1  ;;  %4421 = vmatmul.mubr.bf16.vlgmr.msra.gmra.mxu1 %v8212_v21  ;;  %v8439_v48 = vadd.f32 %v2952_v47, %v8245_v35  ;;  %4430 = vmatpush1.bf16.msra.mxu0 %v6577_v63  ;;  %v6591_v21 = vld [vmem:[%s8693_s1 + $0xeac] ss:$16 sps:$4 sm:$0xff]  }
 0x20e   : > { %v8442_v51 = vadd.f32 %v2993_v3, %v8028_v49  ;;  %4471 = vmatpush1.bf16.msra.mxu1 %v6580_v44  ;;  %v2954_v58 = vpop.f32.mrf.mxu0  ;;  %4431 = vmatprep.subr.bf16.mxu0 %v6585_v52  ;;  %v6594_v49 = vld [vmem:[%s8693_s1 + $0x10ac] ss:$16 sps:$4 sm:$0xff]   ;;  %v6655_v52 = vld [vmem:[%s8693_s1 + $0xf48] ss:$16 sps:$4 sm:$0xff]  }
 0x20f   : > { %v2995_v59 = vpop.f32.mrf.mxu1  ;;  %4472 = vmatprep.subr.bf16.mxu1 %v6588_v46  ;;  %v8457_v35 = vadd.f32 %v2954_v58, %v8250_v40  ;;  %4461 = vmatprep.mubr.bf16.mxu0 %v8011_v0  ;;  %v6592_v40 = vld [vmem:[%s8693_s1 + $0x10a8] ss:$16 sps:$4 sm:$0xff]   ;;  %v6597_v0 = vld [vmem:[%s8693_s1 + $0xe8c] ss:$16 sps:$4 sm:$0xff]  }
 0x210   : > { %v8460_v60 = vadd.f32 %v2995_v59, %v8033_v16  ;;  %4502 = vmatprep.mubr.bf16.mxu1 %v8228_v27  ;;  %v2956_v61 = vpop.f32.mrf.mxu0  ;;  %v6600_v16 = vld [vmem:[%s8693_s1 + $0x108c] ss:$16 sps:$4 sm:$0xff]   ;;  %v6595_v27 = vld [vmem:[%s8693_s1 + $0xe88] ss:$16 sps:$4 sm:$0xff]  }
 0x211   : > { %v2997_v39 = vpop.f32.mrf.mxu1  ;;  %4432 = vmatpush1.bf16.msra.mxu0 %v6583_v33  ;;  %v6657_v63 = vld [vmem:[%s8693_s1 + $0xf4c] ss:$16 sps:$4 sm:$0xff]   ;;  %v6658_v46 = vld [vmem:[%s8693_s1 + $0x1148] ss:$16 sps:$4 sm:$0xff]  }
 0x212   : > { %4473 = vmatpush1.bf16.msra.mxu1 %v6586_v57  ;;  %v2957_v55 = vpop.f32.mrf.mxu0  ;;  %4433 = vmatprep.subr.bf16.mxu0 %v6591_v21  ;;  %v6660_v44 = vld [vmem:[%s8693_s1 + $0x114c] ss:$16 sps:$4 sm:$0xff]   ;;  %v6661_v33 = vld [vmem:[%s8693_s1 + $0xf28] ss:$16 sps:$4 sm:$0xff]  }
 0x213   : > { %v2998_v2 = vpop.f32.mrf.mxu1  ;;  %4474 = vmatprep.subr.bf16.mxu1 %v6594_v49  ;;  %v6663_v47 = vld [vmem:[%s8693_s1 + $0xf2c] ss:$16 sps:$4 sm:$0xff]   ;;  %v6664_v57 = vld [vmem:[%s8693_s1 + $0x1128] ss:$16 sps:$4 sm:$0xff]  }
 0x214   : > { %v6666_v3 = vld [vmem:[%s8693_s1 + $0x112c] ss:$16 sps:$4 sm:$0xff]   ;;  %v6667_v21 = vld [vmem:[%s8693_s1 + $0xf08] ss:$16 sps:$4 sm:$0xff]  }
 0x215   : > { %4434 = vmatpush1.bf16.msra.mxu0 %v6589_v62  ;;  %v6669_v58 = vld [vmem:[%s8693_s1 + $0xf0c] ss:$16 sps:$4 sm:$0xff]   ;;  %v6670_v49 = vld [vmem:[%s8693_s1 + $0x1108] ss:$16 sps:$4 sm:$0xff]  }
 0x216   : > { %4475 = vmatpush1.bf16.msra.mxu1 %v6592_v40  ;;  %4435 = vmatprep.subr.bf16.mxu0 %v6597_v0  ;;  %v6672_v59 = vld [vmem:[%s8693_s1 + $0x110c] ss:$16 sps:$4 sm:$0xff]  }
 0x217   : > { %4476 = vmatprep.subr.bf16.mxu1 %v6600_v16 }
 0x219   : > { %4436 = vmatpush1.bf16.msra.mxu0 %v6595_v27 }
 0x21a   : > { %4477 = vmatpush1.bf16.msra.mxu1 %v6598_v1  ;;  %4437 = vmatprep.subr.bf16.mxu0 %v6603_v4 }
 0x21b   : > { %4478 = vmatprep.subr.bf16.mxu1 %v6606_v5 }
 0x21d   : > { %4438 = vmatpush1.bf16.msra.mxu0 %v6601_v6 }
 0x21e   : > { %4479 = vmatpush1.bf16.msra.mxu1 %v6604_v7  ;;  %4439 = vmatprep.subr.bf16.mxu0 %v6609_v10 }
 0x21f   : > { %4480 = vmatprep.subr.bf16.mxu1 %v6612_v11 }
 0x221   : > { %4440 = vmatpush1.bf16.msra.mxu0 %v6607_v30 }
 0x222   : > { %4481 = vmatpush1.bf16.msra.mxu1 %v6610_v45  ;;  %4441 = vmatprep.subr.bf16.mxu0 %v6615_v12 }
 0x223   : > { %4482 = vmatprep.subr.bf16.mxu1 %v6618_v13 }
 0x225   : > { %4442 = vmatpush1.bf16.msra.mxu0 %v6613_v15 }
 0x226   : > { %4483 = vmatpush1.bf16.msra.mxu1 %v6616_v18  ;;  %4443 = vmatprep.subr.bf16.mxu0 %v6621_v20 }
 0x227   : > { %4484 = vmatprep.subr.bf16.mxu1 %v6624_v54 }
 0x229   : > { %4444 = vmatpush1.bf16.msra.mxu0 %v6619_v56 }
 0x22a   : > { %4485 = vmatpush1.bf16.msra.mxu1 %v6622_v53  ;;  %4445 = vmatprep.subr.bf16.mxu0 %v6627_v23 }
 0x22b   : > { %4486 = vmatprep.subr.bf16.mxu1 %v6630_v24 }
 0x22d   : > { %4446 = vmatpush2.bf16.msra.mxu0 %v6625_v25 }
 0x22e   : > { %4487 = vmatpush2.bf16.msra.mxu1 %v6628_v8  ;;  %4447 = vmatprep.subr.bf16.mxu0 %v6633_v28 }
 0x22f   : > { %4488 = vmatprep.subr.bf16.mxu1 %v6636_v9 }
 0x231   : > { %4448 = vmatpush2.bf16.msra.mxu0 %v6631_v14 }
 0x232   : > { %4489 = vmatpush2.bf16.msra.mxu1 %v6634_v26  ;;  %4449 = vmatprep.subr.bf16.mxu0 %v6639_v19 }
 0x233   : > { %4490 = vmatprep.subr.bf16.mxu1 %v6642_v31 }
 0x235   : > { %4450 = vmatpush2.bf16.msra.mxu0 %v6637_v32 }
 0x236   : > { %4491 = vmatpush2.bf16.msra.mxu1 %v6640_v34  ;;  %4451 = vmatprep.subr.bf16.mxu0 %v6645_v50 }
 0x237   : > { %4492 = vmatprep.subr.bf16.mxu1 %v6648_v36 }
 0x239   : > { %4452 = vmatpush2.bf16.msra.mxu0 %v6643_v37 }
 0x23a   : > { %4493 = vmatpush2.bf16.msra.mxu1 %v6646_v38  ;;  %4453 = vmatprep.subr.bf16.mxu0 %v6651_v41 }
 0x23b   : > { %4494 = vmatprep.subr.bf16.mxu1 %v6654_v42 }
 0x23d   : > { %4454 = vmatpush2.bf16.msra.mxu0 %v6649_v43 }
 0x23e   : > { %4495 = vmatpush2.bf16.msra.mxu1 %v6652_v17  ;;  %4455 = vmatprep.subr.bf16.mxu0 %v6657_v63 }
 0x23f   : > { %4496 = vmatprep.subr.bf16.mxu1 %v6660_v44 }
 0x241   : > { %4456 = vmatpush2.bf16.msra.mxu0 %v6655_v52 }
 0x242   : > { %4497 = vmatpush2.bf16.msra.mxu1 %v6658_v46  ;;  %4457 = vmatprep.subr.bf16.mxu0 %v6663_v47 }
 0x243   : > { %4498 = vmatprep.subr.bf16.mxu1 %v6666_v3 }
 0x245   : > { %4458 = vmatpush2.bf16.msra.mxu0 %v6661_v33 }
 0x246   : > { %4499 = vmatpush2.bf16.msra.mxu1 %v6664_v57  ;;  %4459 = vmatprep.subr.bf16.mxu0 %v6669_v58 }
 0x247   : > { %4500 = vmatprep.subr.bf16.mxu1 %v6672_v59 }
 0x249   : > { %4460 = vmatpush2.bf16.msra.mxu0 %v6667_v21 }
 0x24a   : > { %4501 = vmatpush2.bf16.msra.mxu1 %v6670_v49 }
 0x24c   : > { %v3034_v61 = vpop.f32.mrf.mxu0  ;;  %4462 = vmatmul.mubr.bf16.vlgmr.msra.gmra.mxu0 %v8214_v22 }
 0x24d   : > { %v3075_v39 = vpop.f32.mrf.mxu1  ;;  %4503 = vmatmul.mubr.bf16.vlgmr.msra.gmra.mxu1 %v8422_v29  ;;  %v3035_v62 = vadd.f32 %v3034_v61, %v8442_v51 }
 0x24e   : > { %v3036_v40 = vpop.f32.mrf.mxu0 }
 0x24f   : > { %v3077_v55 = vpop.f32.mrf.mxu1  ;;  %v8629_v2 = vadd.f32 %v3075_v39, %v3035_v62  ;;  %v3037_v0 = vadd.f32 %v3036_v40, %v8460_v60  ;;  %v6681_v40 = vmov 1983009808  }
 0x250   : > { %v3038_v16 = vpop.f32.mrf.mxu0 }
 0x251   : > { %v3079_v27 = vpop.f32.mrf.mxu1  ;;  %v8632_v1 = vadd.f32 %v3077_v55, %v3037_v0  ;;  %v4526_v55 = vunpack.c.l.s4 %v6681_v40  ;;  %v4528_v0 = vlaneseq }
 0x252   : > { %v3039_v4 = vpop.f32.mrf.mxu0 }
 0x253   : > { %v3080_v5 = vpop.f32.mrf.mxu1  ;;  %vm4602_vm1 = vcmp.lt.s32.totalorder %v4528_v0, 512 }
 0x28c   : > { %v4299_v6 = vpop.f32.mrf.mxu0 }
 0x28d   : > { %v4340_v7 = vpop.f32.mrf.mxu1 }
 0x28e   : > { %v4341_v10 = vadd.f32 %v4340_v7, %v4299_v6  ;;  %v4301_v22 = vpop.f32.mrf.mxu0  ;;  %v4527_v7 = vunpack.c.0.s8 %v4526_v55 }
 0x28f   : > { %v4342_v11 = vpop.f32.mrf.mxu1 }
 0x290   : > { %v4343_v29 = vadd.f32 %v4342_v11, %v4301_v22  ;;  %v4303_v30 = vpop.f32.mrf.mxu0 }
 0x291   : > { %v4344_v51 = vpop.f32.mrf.mxu1 }
 0x292   : > { %v4304_v45 = vpop.f32.mrf.mxu0 }
 0x293   : > { %v4345_v12 = vpop.f32.mrf.mxu1 }
 0x2cc   : > { %v4381_v13 = vpop.f32.mrf.mxu0 }
 0x2cd   : > { %v4422_v15 = vpop.f32.mrf.mxu1  ;;  %v4382_v18 = vadd.f32 %v4381_v13, %v4341_v10  ;;  %v4529_v10 = vshrl.u32 %v4528_v0, 7 }
 0x2ce   : > { %v4383_v60 = vpop.f32.mrf.mxu0 }
 0x2cf   : > { %v4424_v20 = vpop.f32.mrf.mxu1  ;;  %v8635_v54 = vadd.f32 %v4382_v18, %v8439_v48  ;;  %v4384_v56 = vadd.f32 %v4383_v60, %v4343_v29  ;;  %v4530_v18 = vsub.s32 %v4527_v7, %v4529_v10 }
 0x2d0   : > { %v4385_v53 = vpop.f32.mrf.mxu0 }
 0x2d1   : > { %v4426_v23 = vpop.f32.mrf.mxu1  ;;  %v4543_v24 = vsel %vm4542_vm0, %v8635_v54, 0.0  ;;  %v4605_v25 = vmul.f32 %v8635_v54, %v8635_v54  ;;  %v8642_v8 = vadd.f32 %v4384_v56, %v8457_v35 }
 0x2d2   : > { %v4544_v28 = vrot.slane %v4543_v24, 4  ;;  %v4386_v9 = vpop.f32.mrf.mxu0 }
 0x2d3   : > { %v4427_v14 = vpop.f32.mrf.mxu1  ;;  %v4609_v26 = vsel %vm4542_vm0, %v4605_v25, 0.0  ;;  %v5772_v48 = vpack.c.bf16 %v8642_v8, %v8635_v54  ;;  %v4550_v19 = vsel %vm4542_vm0, %v8642_v8, 0.0  ;;  %v4606_v31 = vmul.f32 %v8642_v8, %v8642_v8 }
 0x2d4   : > { %v4545_v32 = vadd.f32 %v4544_v28, %v4543_v24  ;;  %v4610_v34 = vrot.slane %v4609_v26, 4  ;;  %v4551_v50 = vrot.slane %v4550_v19, 4  ;;  %v6682_v9 = vmov 1966171168  }
 0x2d5   : > { %v4616_v35 = vsel %vm4542_vm0, %v4606_v31, 0.0  ;;  %v4531_v28 = vrot.slane %v5772_v48, %v4530_v18  ;;  %v4578_v14 = vunpack.c.l.s4 %v6682_v9 }
 0x2d6   : > { %v4546_v36 = vrot.slane %v4545_v32, 2  ;;  %v4611_v37 = vadd.f32 %v4610_v34, %v4609_v26  ;;  %v4552_v38 = vadd.f32 %v4551_v50, %v4550_v19  ;;  %v4617_v41 = vrot.slane %v4616_v35, 4 }
 0x2d8   : > { %v4547_v42 = vadd.f32 %v4546_v36, %v4545_v32  ;;  %v4612_v43 = vrot.slane %v4611_v37, 2  ;;  %v4553_v17 = vrot.slane %v4552_v38, 2  ;;  %v4618_v63 = vadd.f32 %v4617_v41, %v4616_v35 }
 0x2d9   : > { %v4579_v41 = vunpack.c.0.s8 %v4578_v14 }
 0x2da   : > { %v4548_v44 = vrot.slane %v4547_v42, 1  ;;  %v4613_v52 = vadd.f32 %v4612_v43, %v4611_v37  ;;  %v4554_v46 = vadd.f32 %v4553_v17, %v4552_v38  ;;  %v4619_v47 = vrot.slane %v4618_v63, 2 }
 0x2dc   : > { %v4614_v3 = vrot.slane %v4613_v52, 1  ;;  %v4555_v33 = vrot.slane %v4554_v46, 1  ;;  %v4620_v57 = vadd.f32 %v4619_v47, %v4618_v63  ;;  %v8652_v58 = vadd.f32 %v4548_v44, %v4547_v42 }
 0x2de   : > { %v8654_v59 = vadd.f32 %v4555_v33, %v4554_v46  ;;  %v4621_v21 = vrot.slane %v4620_v57, 1  ;;  %v8656_v49 = vadd.f32 %v4614_v3, %v4613_v52  ;;  %v4582_v46 = vsub.s32 %v4579_v41, %v4529_v10 }
 0x2e0   : > { %v4575_v61 = vcombine.low %v8652_v58, %v8654_v59  ;;  %v8660_v39 = vadd.f32 %v4621_v21, %v4620_v57 }
 0x2e2   : > { %v4641_v62 = vcombine.low %v8656_v49, %v8660_v39  ;;  %v4583_v55 = vrot.slane %v4575_v61, %v4582_v46 }
 0x30c   : > { %v4463_v16 = vpop.f32.mrf.mxu0 }
 0x30d   : > { %v4504_v27 = vpop.f32.mrf.mxu1  ;;  %v4464_v4 = vadd.f32 %v4463_v16, %v4422_v15 }
 0x30e   : > { %v4465_v5 = vpop.f32.mrf.mxu0 }
 0x30f   : > { %v4506_v6 = vpop.f32.mrf.mxu1  ;;  %v4505_v22 = vadd.f32 %v4504_v27, %v4464_v4  ;;  %v4466_v11 = vadd.f32 %v4465_v5, %v4424_v20  ;;  %v4649_v4 = vrot.slane %v4641_v62, %v4582_v46 }
 0x310   : > { %v4467_v29 = vpop.f32.mrf.mxu0 }
 0x311   : > { %v4508_v30 = vpop.f32.mrf.mxu1  ;;  %v4513_v51 = vadd.f32 %v4505_v22, %v8629_v2  ;;  %v4507_v45 = vadd.f32 %v4506_v6, %v4466_v11 }
 0x312   : > { %v4468_v12 = vpop.f32.mrf.mxu0 }
 0x313   : > { %v4509_v13 = vpop.f32.mrf.mxu1  ;;  %v4557_v60 = vsel %vm4542_vm0, %v4513_v51, 0.0  ;;  %v4607_v54 = vmul.f32 %v4513_v51, %v4513_v51  ;;  %v4514_v15 = vadd.f32 %v4507_v45, %v8632_v1 }
 0x314   : > { %v4558_v56 = vrot.slane %v4557_v60, 4 }
 0x315   : > { %v4623_v53 = vsel %vm4542_vm0, %v4607_v54, 0.0  ;;  %v5773_v23 = vpack.c.bf16 %v4514_v15, %v4513_v51  ;;  %v4564_v20 = vsel %vm4542_vm0, %v4514_v15, 0.0  ;;  %v4608_v24 = vmul.f32 %v4514_v15, %v4514_v15 }
 0x316   : > { %v4559_v25 = vadd.f32 %v4558_v56, %v4557_v60  ;;  %v4624_v8 = vrot.slane %v4623_v53, 4  ;;  %v4565_v2 = vrot.slane %v4564_v20, 4 }
 0x317   : > { %v4538_v26 = vrot.slane %v5773_v23, %v4530_v18  ;;  %v4630_v19 = vsel %vm4542_vm0, %v4608_v24, 0.0 }
 0x318   : > { %v4560_v31 = vrot.slane %v4559_v25, 2  ;;  %v4625_v32 = vadd.f32 %v4624_v8, %v4623_v53  ;;  %v4566_v1 = vadd.f32 %v4565_v2, %v4564_v20  ;;  %v4631_v34 = vrot.slane %v4630_v19, 4 }
 0x319   : > { %v4539_v50 = vcombine.low %v4531_v28, %v4538_v26 }
 0x31a   : > { %v4561_v35 = vadd.f32 %v4560_v31, %v4559_v25  ;;  %v4626_v36 = vrot.slane %v4625_v32, 2  ;;  %v4567_v37 = vrot.slane %v4566_v1, 2  ;;  %v4632_v38 = vadd.f32 %v4631_v34, %v4630_v19 }
 0x31b   : > { %4541 = vst [vmem:[%s210_s8] sm:$0xff] %v4539_v50 }
 0x31c   : > { %v4562_v48 = vrot.slane %v4561_v35, 1  ;;  %v4627_v42 = vadd.f32 %v4626_v36, %v4625_v32  ;;  %v4568_v43 = vadd.f32 %v4567_v37, %v4566_v1  ;;  %v4633_v17 = vrot.slane %v4632_v38, 2 }
 0x31e   : > { %v4628_v63 = vrot.slane %v4627_v42, 1  ;;  %v4569_v44 = vrot.slane %v4568_v43, 1  ;;  %v4634_v52 = vadd.f32 %v4633_v17, %v4632_v38  ;;  %v4563_v47 = vadd.f32 %v4562_v48, %v4561_v35 }
 0x320   : > { %v4570_v3 = vadd.f32 %v4569_v44, %v4568_v43  ;;  %v4635_v33 = vrot.slane %v4634_v52, 1  ;;  %v4629_v57 = vadd.f32 %v4628_v63, %v4627_v42 }
 0x322   : > { %v4576_v21 = vcombine.low %v4563_v47, %v4570_v3  ;;  %v4636_v40 = vadd.f32 %v4635_v33, %v4634_v52 }
 0x324   : > { %v4590_v16 = vrot.slane %v4576_v21, %v4582_v46  ;;  %v4642_v27 = vcombine.low %v4629_v57, %v4636_v40 }
 0x326   : > { %v4591_v5 = vcombine.low %v4583_v55, %v4590_v16  ;;  %v4656_v6 = vrot.slane %v4642_v27, %v4582_v46 }
 0x328   : > { %v4598_v7 = vrot.slane %v4591_v5, %v4582_v46  ;;  %v4657_v10 = vcombine.low %v4649_v4, %v4656_v6 }
 0x32a   : > { %4604 = vst.msk [vmem:[%s214_s12] sm:$0xf] %vm4602_vm1, %v4598_v7  ;;  %v4664_v58 = vrot.slane %v4657_v10, %v4582_v46 }
 0x32c   : > { %4666 = vst.msk [vmem:[%s218_s16] sm:$0xf] %vm4602_vm1, %v4664_v58 }
 0x32d PF: > { %s15_s15 = sadd.s32 1, %s6679_s15  }
 0x32e   : > { %p12_p4 = scmp.ge.s32.totalorder %s15_s15, 4  }
 0x330   :  { %14 = sbr.rel (!%p12_p4) target bundleno = 1 (0x1), region = 84 }

</bundles_post_ra>
